<compile_context>
chip_gen: v6e
topology: v6e:2x2x1
jax: 0.10.0
libtpu: 0.0.40
codegen_flags: <defaults>
</compile_context>

<pallas_src>
import functools

import jax
import jax.numpy as jnp
from jax.experimental import pallas as pl
from jax.experimental.pallas import tpu as pltpu

N_CLASSES = 10
N_OUT_PAD = 128          # lane-dense final layer / output block width
NEG_PAD_BIAS = -1e30     # padded logit columns -> exp() underflows to exactly 0


def _round_up(n, m):
    return ((n + m - 1) // m) * m


def mlp_kernel(x_ref,
               w1_ref, b1_ref,
               w2_ref, b2_ref,
               w3_ref, b3_ref,
               w4_ref, b4_ref,
               w5_ref, b5_ref,
               w6_ref, b6_ref,
               o_ref):
    """Fused MLP: 5x (bf16 matmul + f32 bias + ReLU), then matmul + bias + log_softmax."""
    h = x_ref[...]   # already bf16 (cast in the wrapper)

    def dense_relu(h_bf16, w_ref, b_ref):
        # bf16 x bf16 on the MXU, f32 accumulation; bias + ReLU in f32.
        y = jnp.dot(h_bf16, w_ref[...],
                    preferred_element_type=jnp.float32) + b_ref[...]
        return jnp.maximum(y, 0.0).astype(jnp.bfloat16)

    h = dense_relu(h, w1_ref, b1_ref)
    h = dense_relu(h, w2_ref, b2_ref)
    h = dense_relu(h, w3_ref, b3_ref)
    h = dense_relu(h, w4_ref, b4_ref)
    h = dense_relu(h, w5_ref, b5_ref)

    # Final layer over 128 lanes (columns >= 10 carry a -1e30 bias so their
    # exp() contribution is exactly 0), numerically-stable log_softmax.
    z = jnp.dot(h, w6_ref[...], preferred_element_type=jnp.float32) + b6_ref[...]
    m = jnp.max(z, axis=-1, keepdims=True)
    lse = m + jnp.log(jnp.sum(jnp.exp(z - m), axis=-1, keepdims=True))
    o_ref[...] = z - lse


def prepare_params(params):
    """Cast weights to bf16 (biases stay f32); lane-pad the final layer to 128 outputs.

    Do this once at model-load time so a serving loop does not re-cast per call.
    """
    prepped = []
    last = len(params) - 1
    for idx, (w, b) in enumerate(params):
        w = jnp.asarray(w, jnp.float32)
        b = jnp.asarray(b, jnp.float32).reshape(1, -1)
        if idx == last:
            pad = N_OUT_PAD - w.shape[1]
            w = jnp.pad(w, ((0, 0), (0, pad)))                               # zero weight cols
            b = jnp.pad(b, ((0, 0), (0, pad)), constant_values=NEG_PAD_BIAS)  # -1e30 bias cols
        prepped.append((w.astype(jnp.bfloat16), b))
    return prepped


def _tm_cap():
    try:
        kind = jax.devices()[0].device_kind.lower()
    except Exception:
        return 512
    # v5e is MXU-throughput bound for this kernel; bigger tiles buy nothing there.
    if "v5 lite" in kind or "v5e" in kind or "v5lite" in kind:
        return 256
    return 512


def _choose_tm(B, cap=None):
    cap = _tm_cap() if cap is None else cap
    if B <= cap:
        # Single tile; multiples of 16 match bf16 sublane packing.
        return max(16, _round_up(B, 16))
    candidates = [t for t in (512, 256, 128) if t <= cap]
    # Minimize padded-row waste; break ties toward the bigger tile.
    return min(candidates, key=lambda t: ((-B) % t, -t))


@functools.partial(jax.jit, static_argnames=("tm", "single_buffer_weights"))
def _mlp_forward(x, prepped_params, tm, single_buffer_weights):
    B, K = x.shape
    B_pad = _round_up(B, tm)

    # bf16 activations; only the batch axis is ever padded (fused with the cast).
    x_p = x.astype(jnp.bfloat16)
    if B_pad > B:
        x_p = jnp.pad(x_p, ((0, B_pad - B), (0, 0)))

    weight_kwargs = {}
    if single_buffer_weights:
        # Constant index_map -> never re-fetched; double-buffering is pure VMEM waste.
        weight_kwargs["pipeline_mode"] = pl.Buffered(1)

    flat_args = [x_p]
    in_specs = [pl.BlockSpec((tm, K), lambda i: (i, 0))]
    for w, b in prepped_params:
        flat_args += [w, b]
        # Constant index_map -> weight/bias blocks stay resident in VMEM across
        # all batch tiles (DMA'd once per call).
        in_specs += [pl.BlockSpec(w.shape, lambda i: (0, 0), **weight_kwargs),
                     pl.BlockSpec(b.shape, lambda i: (0, 0), **weight_kwargs)]

    out = pl.pallas_call(
        mlp_kernel,
        out_shape=jax.ShapeDtypeStruct((B_pad, N_OUT_PAD), jnp.float32),
        grid=(B_pad // tm,),
        in_specs=in_specs,
        out_specs=pl.BlockSpec((tm, N_OUT_PAD), lambda i: (i, 0)),
        compiler_params=pltpu.CompilerParams(
            # TODO(synk): on v7x verify "parallel" shards batch tiles across both
            # TensorCores; switch to pltpu.CORE_PARALLEL if it does not.
            dimension_semantics=("parallel",),
            vmem_limit_bytes=32 << 20,
        ),
    )(*flat_args)
    return out[:B, :N_CLASSES]


_SINGLE_BUFFER_OK = None  # lazily discovered: does this JAX accept pl.Buffered(1)?


def mlp_forward(x, prepped_params, tm=None):
    """x: (B, 784) float32. prepped_params: output of prepare_params()."""
    global _SINGLE_BUFFER_OK
    if tm is None:
        tm = _choose_tm(x.shape[0])
    if _SINGLE_BUFFER_OK is not False:
        try:
            out = _mlp_forward(x, prepped_params, tm, True)
            out = jax.block_until_ready(out)
            _SINGLE_BUFFER_OK = True
            return out
        except Exception:
            _SINGLE_BUFFER_OK = False
    return _mlp_forward(x, prepped_params, tm, False)


def init_params(key):
    """Deterministic init matching nn.Linear shapes (uniform +-1/sqrt(fan_in))."""
    dims = [784, 1024, 512, 256, 128, 64, 10]
    params = []
    for i in range(len(dims) - 1):
        fan_in, fan_out = dims[i], dims[i + 1]
        key, kw, kb = jax.random.split(key, 3)
        bound = 1.0 / jnp.sqrt(fan_in)
        w = jax.random.uniform(kw, (fan_in, fan_out), jnp.float32, -bound, bound)
        b = jax.random.uniform(kb, (1, fan_out), jnp.float32, -bound, bound)
        params.append((w, b))
    return params


def reference_forward_f32(x, params):
    """Pure-f32 reference matching the PyTorch module."""
    h = x
    for i, (w, b) in enumerate(params):
        h = h @ w + b
        if i < len(params) - 1:
            h = jnp.maximum(h, 0.0)
    return jax.nn.log_softmax(h, axis=1)


def reference_forward_bf16(x, params):
    """Reference mirroring the kernel's bf16-weight/activation, f32-accumulate math."""
    h = x.astype(jnp.bfloat16)
    z = None
    for i, (w, b) in enumerate(params):
        z = jnp.dot(h, w.astype(jnp.bfloat16),
                    preferred_element_type=jnp.float32) + b
        if i < len(params) - 1:
            h = jnp.maximum(z, 0.0).astype(jnp.bfloat16)
    return jax.nn.log_softmax(z, axis=1)


if __name__ == "__main__":
    key = jax.random.PRNGKey(0)
    key, kx = jax.random.split(key)
    # Input mimics flattened 28x28 images: (batch=8, 1, 28, 28) -> view to (8, 784).
    x_img = jax.random.normal(kx, (8, 1, 28, 28), jnp.float32)
    x = x_img.reshape(x_img.shape[0], -1)

    params = init_params(key)
    prepped = prepare_params(params)

    out = mlp_forward(x, prepped)
    out = jax.block_until_ready(out)
    assert out.shape == (8, 10)

    # Tight check against a reference using identical bf16 math.
    ref_bf16 = reference_forward_bf16(x, params)
    assert jnp.allclose(out, ref_bf16, atol=1e-3, rtol=1e-3), \
        "mismatch vs bf16-weight reference"

    # Looser check against the exact f32 PyTorch-equivalent semantics
    # (bf16 weight/activation quantization is the only source of difference).
    ref_f32 = reference_forward_f32(x, params)
    assert jnp.allclose(out, ref_f32, atol=5e-2, rtol=5e-2), \
        "mismatch vs f32 reference"

    print("KERNEL_OK")
</pallas_src>

<mosaic_0001>
module attributes {stable_mosaic.version = 11 : i64} {
  func.func @mlp_kernel(%arg0: i32, %arg1: memref<16x784xbf16, #tpu.memory_space<vmem>>, %arg2: memref<784x1024xbf16, #tpu.memory_space<vmem>>, %arg3: memref<1x1024xf32, #tpu.memory_space<vmem>>, %arg4: memref<1024x512xbf16, #tpu.memory_space<vmem>>, %arg5: memref<1x512xf32, #tpu.memory_space<vmem>>, %arg6: memref<512x256xbf16, #tpu.memory_space<vmem>>, %arg7: memref<1x256xf32, #tpu.memory_space<vmem>>, %arg8: memref<256x128xbf16, #tpu.memory_space<vmem>>, %arg9: memref<1x128xf32, #tpu.memory_space<vmem>>, %arg10: memref<128x64xbf16, #tpu.memory_space<vmem>>, %arg11: memref<1x64xf32, #tpu.memory_space<vmem>>, %arg12: memref<64x128xbf16, #tpu.memory_space<vmem>>, %arg13: memref<1x128xf32, #tpu.memory_space<vmem>>, %arg14: memref<16x128xf32, #tpu.memory_space<vmem>>) attributes {dimension_semantics = [#tpu.dimension_semantics<parallel>], iteration_bounds = array<i64: 1>, scalar_prefetch = 0 : i64, scratch_operands = 0 : i64, tpu.core_type = #tpu.core_type<tc>, window_params = [{transform_indices = @transform_0, window_bounds = array<i64: 16, 784>}, {pipeline_mode = #tpu.pipeline_mode<synchronous>, transform_indices = @transform_1, window_bounds = array<i64: 784, 1024>}, {pipeline_mode = #tpu.pipeline_mode<synchronous>, transform_indices = @transform_2, window_bounds = array<i64: 1, 1024>}, {pipeline_mode = #tpu.pipeline_mode<synchronous>, transform_indices = @transform_3, window_bounds = array<i64: 1024, 512>}, {pipeline_mode = #tpu.pipeline_mode<synchronous>, transform_indices = @transform_4, window_bounds = array<i64: 1, 512>}, {pipeline_mode = #tpu.pipeline_mode<synchronous>, transform_indices = @transform_5, window_bounds = array<i64: 512, 256>}, {pipeline_mode = #tpu.pipeline_mode<synchronous>, transform_indices = @transform_6, window_bounds = array<i64: 1, 256>}, {pipeline_mode = #tpu.pipeline_mode<synchronous>, transform_indices = @transform_7, window_bounds = array<i64: 256, 128>}, {pipeline_mode = #tpu.pipeline_mode<synchronous>, transform_indices = @transform_8, window_bounds = array<i64: 1, 128>}, {pipeline_mode = #tpu.pipeline_mode<synchronous>, transform_indices = @transform_9, window_bounds = array<i64: 128, 64>}, {pipeline_mode = #tpu.pipeline_mode<synchronous>, transform_indices = @transform_10, window_bounds = array<i64: 1, 64>}, {pipeline_mode = #tpu.pipeline_mode<synchronous>, transform_indices = @transform_11, window_bounds = array<i64: 64, 128>}, {pipeline_mode = #tpu.pipeline_mode<synchronous>, transform_indices = @transform_12, window_bounds = array<i64: 1, 128>}, {transform_indices = @transform_13, window_bounds = array<i64: 16, 128>}]} {
    %c0 = arith.constant 0 : index
    %c0_0 = arith.constant 0 : index
    %0 = vector.load %arg1[%c0, %c0_0] : memref<16x784xbf16, #tpu.memory_space<vmem>>, vector<16x784xbf16>
    %c0_1 = arith.constant 0 : index
    %c0_2 = arith.constant 0 : index
    %1 = vector.load %arg2[%c0_1, %c0_2] : memref<784x1024xbf16, #tpu.memory_space<vmem>>, vector<784x1024xbf16>
    %cst = arith.constant dense<0.000000e+00> : vector<16x1024xf32>
    %2 = tpu.matmul %0, %1, %cst {dimension_numbers = #tpu.dot_dimension_numbers<[1], [0], [0], [1], [0, 0, 1, 1], [], []>} : vector<16x784xbf16>, vector<784x1024xbf16>, vector<16x1024xf32> -> vector<16x1024xf32>
    %c0_3 = arith.constant 0 : index
    %c0_4 = arith.constant 0 : index
    %3 = vector.load %arg3[%c0_3, %c0_4] : memref<1x1024xf32, #tpu.memory_space<vmem>>, vector<1x1024xf32>
    %4 = vector.broadcast %3 : vector<1x1024xf32> to vector<16x1024xf32>
    %5 = arith.addf %2, %4 : vector<16x1024xf32>
    %cst_5 = arith.constant 0.000000e+00 : f32
    %6 = vector.broadcast %cst_5 : f32 to vector<16x1024xf32>
    %7 = arith.maximumf %5, %6 : vector<16x1024xf32>
    %8 = arith.truncf %7 : vector<16x1024xf32> to vector<16x1024xbf16>
    %c0_6 = arith.constant 0 : index
    %c0_7 = arith.constant 0 : index
    %9 = vector.load %arg4[%c0_6, %c0_7] : memref<1024x512xbf16, #tpu.memory_space<vmem>>, vector<1024x512xbf16>
    %cst_8 = arith.constant dense<0.000000e+00> : vector<16x512xf32>
    %10 = tpu.matmul %8, %9, %cst_8 {dimension_numbers = #tpu.dot_dimension_numbers<[1], [0], [0], [1], [0, 0, 1, 1], [], []>} : vector<16x1024xbf16>, vector<1024x512xbf16>, vector<16x512xf32> -> vector<16x512xf32>
    %c0_9 = arith.constant 0 : index
    %c0_10 = arith.constant 0 : index
    %11 = vector.load %arg5[%c0_9, %c0_10] : memref<1x512xf32, #tpu.memory_space<vmem>>, vector<1x512xf32>
    %12 = vector.broadcast %11 : vector<1x512xf32> to vector<16x512xf32>
    %13 = arith.addf %10, %12 : vector<16x512xf32>
    %cst_11 = arith.constant 0.000000e+00 : f32
    %14 = vector.broadcast %cst_11 : f32 to vector<16x512xf32>
    %15 = arith.maximumf %13, %14 : vector<16x512xf32>
    %16 = arith.truncf %15 : vector<16x512xf32> to vector<16x512xbf16>
    %c0_12 = arith.constant 0 : index
    %c0_13 = arith.constant 0 : index
    %17 = vector.load %arg6[%c0_12, %c0_13] : memref<512x256xbf16, #tpu.memory_space<vmem>>, vector<512x256xbf16>
    %cst_14 = arith.constant dense<0.000000e+00> : vector<16x256xf32>
    %18 = tpu.matmul %16, %17, %cst_14 {dimension_numbers = #tpu.dot_dimension_numbers<[1], [0], [0], [1], [0, 0, 1, 1], [], []>} : vector<16x512xbf16>, vector<512x256xbf16>, vector<16x256xf32> -> vector<16x256xf32>
    %c0_15 = arith.constant 0 : index
    %c0_16 = arith.constant 0 : index
    %19 = vector.load %arg7[%c0_15, %c0_16] : memref<1x256xf32, #tpu.memory_space<vmem>>, vector<1x256xf32>
    %20 = vector.broadcast %19 : vector<1x256xf32> to vector<16x256xf32>
    %21 = arith.addf %18, %20 : vector<16x256xf32>
    %cst_17 = arith.constant 0.000000e+00 : f32
    %22 = vector.broadcast %cst_17 : f32 to vector<16x256xf32>
    %23 = arith.maximumf %21, %22 : vector<16x256xf32>
    %24 = arith.truncf %23 : vector<16x256xf32> to vector<16x256xbf16>
    %c0_18 = arith.constant 0 : index
    %c0_19 = arith.constant 0 : index
    %25 = vector.load %arg8[%c0_18, %c0_19] : memref<256x128xbf16, #tpu.memory_space<vmem>>, vector<256x128xbf16>
    %cst_20 = arith.constant dense<0.000000e+00> : vector<16x128xf32>
    %26 = tpu.matmul %24, %25, %cst_20 {dimension_numbers = #tpu.dot_dimension_numbers<[1], [0], [0], [1], [0, 0, 1, 1], [], []>} : vector<16x256xbf16>, vector<256x128xbf16>, vector<16x128xf32> -> vector<16x128xf32>
    %c0_21 = arith.constant 0 : index
    %c0_22 = arith.constant 0 : index
    %27 = vector.load %arg9[%c0_21, %c0_22] : memref<1x128xf32, #tpu.memory_space<vmem>>, vector<1x128xf32>
    %28 = vector.broadcast %27 : vector<1x128xf32> to vector<16x128xf32>
    %29 = arith.addf %26, %28 : vector<16x128xf32>
    %cst_23 = arith.constant 0.000000e+00 : f32
    %30 = vector.broadcast %cst_23 : f32 to vector<16x128xf32>
    %31 = arith.maximumf %29, %30 : vector<16x128xf32>
    %32 = arith.truncf %31 : vector<16x128xf32> to vector<16x128xbf16>
    %c0_24 = arith.constant 0 : index
    %c0_25 = arith.constant 0 : index
    %33 = vector.load %arg10[%c0_24, %c0_25] : memref<128x64xbf16, #tpu.memory_space<vmem>>, vector<128x64xbf16>
    %cst_26 = arith.constant dense<0.000000e+00> : vector<16x64xf32>
    %34 = tpu.matmul %32, %33, %cst_26 {dimension_numbers = #tpu.dot_dimension_numbers<[1], [0], [0], [1], [0, 0, 1, 1], [], []>} : vector<16x128xbf16>, vector<128x64xbf16>, vector<16x64xf32> -> vector<16x64xf32>
    %c0_27 = arith.constant 0 : index
    %c0_28 = arith.constant 0 : index
    %35 = vector.load %arg11[%c0_27, %c0_28] : memref<1x64xf32, #tpu.memory_space<vmem>>, vector<1x64xf32>
    %36 = vector.broadcast %35 : vector<1x64xf32> to vector<16x64xf32>
    %37 = arith.addf %34, %36 : vector<16x64xf32>
    %cst_29 = arith.constant 0.000000e+00 : f32
    %38 = vector.broadcast %cst_29 : f32 to vector<16x64xf32>
    %39 = arith.maximumf %37, %38 : vector<16x64xf32>
    %40 = arith.truncf %39 : vector<16x64xf32> to vector<16x64xbf16>
    %c0_30 = arith.constant 0 : index
    %c0_31 = arith.constant 0 : index
    %41 = vector.load %arg12[%c0_30, %c0_31] : memref<64x128xbf16, #tpu.memory_space<vmem>>, vector<64x128xbf16>
    %cst_32 = arith.constant dense<0.000000e+00> : vector<16x128xf32>
    %42 = tpu.matmul %40, %41, %cst_32 {dimension_numbers = #tpu.dot_dimension_numbers<[1], [0], [0], [1], [0, 0, 1, 1], [], []>} : vector<16x64xbf16>, vector<64x128xbf16>, vector<16x128xf32> -> vector<16x128xf32>
    %c0_33 = arith.constant 0 : index
    %c0_34 = arith.constant 0 : index
    %43 = vector.load %arg13[%c0_33, %c0_34] : memref<1x128xf32, #tpu.memory_space<vmem>>, vector<1x128xf32>
    %44 = vector.broadcast %43 : vector<1x128xf32> to vector<16x128xf32>
    %45 = arith.addf %42, %44 : vector<16x128xf32>
    %cst_35 = arith.constant dense<0xFF800000> : vector<16xf32>
    %46 = vector.multi_reduction <maximumf>, %45, %cst_35 [1] : vector<16x128xf32> to vector<16xf32>
    %47 = vector.shape_cast %46 : vector<16xf32> to vector<16x1xf32>
    %48 = vector.broadcast %47 : vector<16x1xf32> to vector<16x128xf32>
    %49 = arith.subf %45, %48 : vector<16x128xf32>
    %50 = math.exp %49 : vector<16x128xf32>
    %cst_36 = arith.constant dense<0.000000e+00> : vector<16xf32>
    %51 = vector.multi_reduction <add>, %50, %cst_36 [1] : vector<16x128xf32> to vector<16xf32>
    %52 = vector.shape_cast %51 : vector<16xf32> to vector<16x1xf32>
    %53 = math.log %52 : vector<16x1xf32>
    %54 = arith.addf %47, %53 : vector<16x1xf32>
    %55 = vector.broadcast %54 : vector<16x1xf32> to vector<16x128xf32>
    %56 = arith.subf %45, %55 : vector<16x128xf32>
    %c0_37 = arith.constant 0 : index
    %c0_38 = arith.constant 0 : index
    %57 = vector.load %arg14[%c0_37, %c0_38] : memref<16x128xf32, #tpu.memory_space<vmem>>, vector<16x128xf32>
    tpu.vector_store %arg14[%c0_37, %c0_38], %56 {strides = array<i32>} : memref<16x128xf32, #tpu.memory_space<vmem>>, vector<16x128xf32>,
    return
  }
  func.func @transform_0(%arg0: i32) -> (i32, i32) {
    %c0_i32 = arith.constant 0 : i32
    %c0_i32_0 = arith.constant 0 : i32
    return %arg0, %c0_i32 : i32, i32
  }
  func.func @transform_1(%arg0: i32) -> (i32, i32) {
    %c0_i32 = arith.constant 0 : i32
    %c0_i32_0 = arith.constant 0 : i32
    %c0_i32_1 = arith.constant 0 : i32
    return %c0_i32, %c0_i32_0 : i32, i32
  }
  func.func @transform_2(%arg0: i32) -> (i32, i32) {
    %c0_i32 = arith.constant 0 : i32
    %c0_i32_0 = arith.constant 0 : i32
    %c0_i32_1 = arith.constant 0 : i32
    return %c0_i32, %c0_i32_0 : i32, i32
  }
  func.func @transform_3(%arg0: i32) -> (i32, i32) {
    %c0_i32 = arith.constant 0 : i32
    %c0_i32_0 = arith.constant 0 : i32
    %c0_i32_1 = arith.constant 0 : i32
    return %c0_i32, %c0_i32_0 : i32, i32
  }
  func.func @transform_4(%arg0: i32) -> (i32, i32) {
    %c0_i32 = arith.constant 0 : i32
    %c0_i32_0 = arith.constant 0 : i32
    %c0_i32_1 = arith.constant 0 : i32
    return %c0_i32, %c0_i32_0 : i32, i32
  }
  func.func @transform_5(%arg0: i32) -> (i32, i32) {
    %c0_i32 = arith.constant 0 : i32
    %c0_i32_0 = arith.constant 0 : i32
    %c0_i32_1 = arith.constant 0 : i32
    return %c0_i32, %c0_i32_0 : i32, i32
  }
  func.func @transform_6(%arg0: i32) -> (i32, i32) {
    %c0_i32 = arith.constant 0 : i32
    %c0_i32_0 = arith.constant 0 : i32
    %c0_i32_1 = arith.constant 0 : i32
    return %c0_i32, %c0_i32_0 : i32, i32
  }
  func.func @transform_7(%arg0: i32) -> (i32, i32) {
    %c0_i32 = arith.constant 0 : i32
    %c0_i32_0 = arith.constant 0 : i32
    %c0_i32_1 = arith.constant 0 : i32
    return %c0_i32, %c0_i32_0 : i32, i32
  }
  func.func @transform_8(%arg0: i32) -> (i32, i32) {
    %c0_i32 = arith.constant 0 : i32
    %c0_i32_0 = arith.constant 0 : i32
    %c0_i32_1 = arith.constant 0 : i32
    return %c0_i32, %c0_i32_0 : i32, i32
  }
  func.func @transform_9(%arg0: i32) -> (i32, i32) {
    %c0_i32 = arith.constant 0 : i32
    %c0_i32_0 = arith.constant 0 : i32
    %c0_i32_1 = arith.constant 0 : i32
    return %c0_i32, %c0_i32_0 : i32, i32
  }
  func.func @transform_10(%arg0: i32) -> (i32, i32) {
    %c0_i32 = arith.constant 0 : i32
    %c0_i32_0 = arith.constant 0 : i32
    %c0_i32_1 = arith.constant 0 : i32
    return %c0_i32, %c0_i32_0 : i32, i32
  }
  func.func @transform_11(%arg0: i32) -> (i32, i32) {
    %c0_i32 = arith.constant 0 : i32
    %c0_i32_0 = arith.constant 0 : i32
    %c0_i32_1 = arith.constant 0 : i32
    return %c0_i32, %c0_i32_0 : i32, i32
  }
  func.func @transform_12(%arg0: i32) -> (i32, i32) {
    %c0_i32 = arith.constant 0 : i32
    %c0_i32_0 = arith.constant 0 : i32
    %c0_i32_1 = arith.constant 0 : i32
    return %c0_i32, %c0_i32_0 : i32, i32
  }
  func.func @transform_13(%arg0: i32) -> (i32, i32) {
    %c0_i32 = arith.constant 0 : i32
    %c0_i32_0 = arith.constant 0 : i32
    return %arg0, %c0_i32 : i32, i32
  }
}

module attributes {stable_mosaic.version = 11 : i64} {
  func.func @mlp_kernel(%arg0: i32, %arg1: memref<16x784xbf16, #tpu.memory_space<vmem>>, %arg2: memref<784x1024xbf16, #tpu.memory_space<vmem>>, %arg3: memref<1x1024xf32, #tpu.memory_space<vmem>>, %arg4: memref<1024x512xbf16, #tpu.memory_space<vmem>>, %arg5: memref<1x512xf32, #tpu.memory_space<vmem>>, %arg6: memref<512x256xbf16, #tpu.memory_space<vmem>>, %arg7: memref<1x256xf32, #tpu.memory_space<vmem>>, %arg8: memref<256x128xbf16, #tpu.memory_space<vmem>>, %arg9: memref<1x128xf32, #tpu.memory_space<vmem>>, %arg10: memref<128x64xbf16, #tpu.memory_space<vmem>>, %arg11: memref<1x64xf32, #tpu.memory_space<vmem>>, %arg12: memref<64x128xbf16, #tpu.memory_space<vmem>>, %arg13: memref<1x128xf32, #tpu.memory_space<vmem>>, %arg14: memref<16x128xf32, #tpu.memory_space<vmem>>) attributes {dimension_semantics = [#tpu.dimension_semantics<parallel>], iteration_bounds = array<i64: 1>, scalar_prefetch = 0 : i64, scratch_operands = 0 : i64, tpu.core_type = #tpu.core_type<tc>, window_params = [{transform_indices = @transform_0, window_bounds = array<i64: 16, 784>}, {pipeline_mode = #tpu.pipeline_mode<synchronous>, transform_indices = @transform_1, window_bounds = array<i64: 784, 1024>}, {pipeline_mode = #tpu.pipeline_mode<synchronous>, transform_indices = @transform_2, window_bounds = array<i64: 1, 1024>}, {pipeline_mode = #tpu.pipeline_mode<synchronous>, transform_indices = @transform_3, window_bounds = array<i64: 1024, 512>}, {pipeline_mode = #tpu.pipeline_mode<synchronous>, transform_indices = @transform_4, window_bounds = array<i64: 1, 512>}, {pipeline_mode = #tpu.pipeline_mode<synchronous>, transform_indices = @transform_5, window_bounds = array<i64: 512, 256>}, {pipeline_mode = #tpu.pipeline_mode<synchronous>, transform_indices = @transform_6, window_bounds = array<i64: 1, 256>}, {pipeline_mode = #tpu.pipeline_mode<synchronous>, transform_indices = @transform_7, window_bounds = array<i64: 256, 128>}, {pipeline_mode = #tpu.pipeline_mode<synchronous>, transform_indices = @transform_8, window_bounds = array<i64: 1, 128>}, {pipeline_mode = #tpu.pipeline_mode<synchronous>, transform_indices = @transform_9, window_bounds = array<i64: 128, 64>}, {pipeline_mode = #tpu.pipeline_mode<synchronous>, transform_indices = @transform_10, window_bounds = array<i64: 1, 64>}, {pipeline_mode = #tpu.pipeline_mode<synchronous>, transform_indices = @transform_11, window_bounds = array<i64: 64, 128>}, {pipeline_mode = #tpu.pipeline_mode<synchronous>, transform_indices = @transform_12, window_bounds = array<i64: 1, 128>}, {transform_indices = @transform_13, window_bounds = array<i64: 16, 128>}]} {
    %c0 = arith.constant 0 : index
    %c0_0 = arith.constant 0 : index
    %0 = vector.load %arg1[%c0, %c0_0] : memref<16x784xbf16, #tpu.memory_space<vmem>>, vector<16x784xbf16>
    %c0_1 = arith.constant 0 : index
    %c0_2 = arith.constant 0 : index
    %1 = vector.load %arg2[%c0_1, %c0_2] : memref<784x1024xbf16, #tpu.memory_space<vmem>>, vector<784x1024xbf16>
    %cst = arith.constant dense<0.000000e+00> : vector<16x1024xf32>
    %2 = tpu.matmul %0, %1, %cst {dimension_numbers = #tpu.dot_dimension_numbers<[1], [0], [0], [1], [0, 0, 1, 1], [], []>} : vector<16x784xbf16>, vector<784x1024xbf16>, vector<16x1024xf32> -> vector<16x1024xf32>
    %c0_3 = arith.constant 0 : index
    %c0_4 = arith.constant 0 : index
    %3 = vector.load %arg3[%c0_3, %c0_4] : memref<1x1024xf32, #tpu.memory_space<vmem>>, vector<1x1024xf32>
    %4 = vector.broadcast %3 : vector<1x1024xf32> to vector<16x1024xf32>
    %5 = arith.addf %2, %4 : vector<16x1024xf32>
    %cst_5 = arith.constant 0.000000e+00 : f32
    %6 = vector.broadcast %cst_5 : f32 to vector<16x1024xf32>
    %7 = arith.maximumf %5, %6 : vector<16x1024xf32>
    %8 = arith.truncf %7 : vector<16x1024xf32> to vector<16x1024xbf16>
    %c0_6 = arith.constant 0 : index
    %c0_7 = arith.constant 0 : index
    %9 = vector.load %arg4[%c0_6, %c0_7] : memref<1024x512xbf16, #tpu.memory_space<vmem>>, vector<1024x512xbf16>
    %cst_8 = arith.constant dense<0.000000e+00> : vector<16x512xf32>
    %10 = tpu.matmul %8, %9, %cst_8 {dimension_numbers = #tpu.dot_dimension_numbers<[1], [0], [0], [1], [0, 0, 1, 1], [], []>} : vector<16x1024xbf16>, vector<1024x512xbf16>, vector<16x512xf32> -> vector<16x512xf32>
    %c0_9 = arith.constant 0 : index
    %c0_10 = arith.constant 0 : index
    %11 = vector.load %arg5[%c0_9, %c0_10] : memref<1x512xf32, #tpu.memory_space<vmem>>, vector<1x512xf32>
    %12 = vector.broadcast %11 : vector<1x512xf32> to vector<16x512xf32>
    %13 = arith.addf %10, %12 : vector<16x512xf32>
    %cst_11 = arith.constant 0.000000e+00 : f32
    %14 = vector.broadcast %cst_11 : f32 to vector<16x512xf32>
    %15 = arith.maximumf %13, %14 : vector<16x512xf32>
    %16 = arith.truncf %15 : vector<16x512xf32> to vector<16x512xbf16>
    %c0_12 = arith.constant 0 : index
    %c0_13 = arith.constant 0 : index
    %17 = vector.load %arg6[%c0_12, %c0_13] : memref<512x256xbf16, #tpu.memory_space<vmem>>, vector<512x256xbf16>
    %cst_14 = arith.constant dense<0.000000e+00> : vector<16x256xf32>
    %18 = tpu.matmul %16, %17, %cst_14 {dimension_numbers = #tpu.dot_dimension_numbers<[1], [0], [0], [1], [0, 0, 1, 1], [], []>} : vector<16x512xbf16>, vector<512x256xbf16>, vector<16x256xf32> -> vector<16x256xf32>
    %c0_15 = arith.constant 0 : index
    %c0_16 = arith.constant 0 : index
    %19 = vector.load %arg7[%c0_15, %c0_16] : memref<1x256xf32, #tpu.memory_space<vmem>>, vector<1x256xf32>
    %20 = vector.broadcast %19 : vector<1x256xf32> to vector<16x256xf32>
    %21 = arith.addf %18, %20 : vector<16x256xf32>
    %cst_17 = arith.constant 0.000000e+00 : f32
    %22 = vector.broadcast %cst_17 : f32 to vector<16x256xf32>
    %23 = arith.maximumf %21, %22 : vector<16x256xf32>
    %24 = arith.truncf %23 : vector<16x256xf32> to vector<16x256xbf16>
    %c0_18 = arith.constant 0 : index
    %c0_19 = arith.constant 0 : index
    %25 = vector.load %arg8[%c0_18, %c0_19] : memref<256x128xbf16, #tpu.memory_space<vmem>>, vector<256x128xbf16>
    %cst_20 = arith.constant dense<0.000000e+00> : vector<16x128xf32>
    %26 = tpu.matmul %24, %25, %cst_20 {dimension_numbers = #tpu.dot_dimension_numbers<[1], [0], [0], [1], [0, 0, 1, 1], [], []>} : vector<16x256xbf16>, vector<256x128xbf16>, vector<16x128xf32> -> vector<16x128xf32>
    %c0_21 = arith.constant 0 : index
    %c0_22 = arith.constant 0 : index
    %27 = vector.load %arg9[%c0_21, %c0_22] : memref<1x128xf32, #tpu.memory_space<vmem>>, vector<1x128xf32>
    %28 = vector.broadcast %27 : vector<1x128xf32> to vector<16x128xf32>
    %29 = arith.addf %26, %28 : vector<16x128xf32>
    %cst_23 = arith.constant 0.000000e+00 : f32
    %30 = vector.broadcast %cst_23 : f32 to vector<16x128xf32>
    %31 = arith.maximumf %29, %30 : vector<16x128xf32>
    %32 = arith.truncf %31 : vector<16x128xf32> to vector<16x128xbf16>
    %c0_24 = arith.constant 0 : index
    %c0_25 = arith.constant 0 : index
    %33 = vector.load %arg10[%c0_24, %c0_25] : memref<128x64xbf16, #tpu.memory_space<vmem>>, vector<128x64xbf16>
    %cst_26 = arith.constant dense<0.000000e+00> : vector<16x64xf32>
    %34 = tpu.matmul %32, %33, %cst_26 {dimension_numbers = #tpu.dot_dimension_numbers<[1], [0], [0], [1], [0, 0, 1, 1], [], []>} : vector<16x128xbf16>, vector<128x64xbf16>, vector<16x64xf32> -> vector<16x64xf32>
    %c0_27 = arith.constant 0 : index
    %c0_28 = arith.constant 0 : index
    %35 = vector.load %arg11[%c0_27, %c0_28] : memref<1x64xf32, #tpu.memory_space<vmem>>, vector<1x64xf32>
    %36 = vector.broadcast %35 : vector<1x64xf32> to vector<16x64xf32>
    %37 = arith.addf %34, %36 : vector<16x64xf32>
    %cst_29 = arith.constant 0.000000e+00 : f32
    %38 = vector.broadcast %cst_29 : f32 to vector<16x64xf32>
    %39 = arith.maximumf %37, %38 : vector<16x64xf32>
    %40 = arith.truncf %39 : vector<16x64xf32> to vector<16x64xbf16>
    %c0_30 = arith.constant 0 : index
    %c0_31 = arith.constant 0 : index
    %41 = vector.load %arg12[%c0_30, %c0_31] : memref<64x128xbf16, #tpu.memory_space<vmem>>, vector<64x128xbf16>
    %cst_32 = arith.constant dense<0.000000e+00> : vector<16x128xf32>
    %42 = tpu.matmul %40, %41, %cst_32 {dimension_numbers = #tpu.dot_dimension_numbers<[1], [0], [0], [1], [0, 0, 1, 1], [], []>} : vector<16x64xbf16>, vector<64x128xbf16>, vector<16x128xf32> -> vector<16x128xf32>
    %c0_33 = arith.constant 0 : index
    %c0_34 = arith.constant 0 : index
    %43 = vector.load %arg13[%c0_33, %c0_34] : memref<1x128xf32, #tpu.memory_space<vmem>>, vector<1x128xf32>
    %44 = vector.broadcast %43 : vector<1x128xf32> to vector<16x128xf32>
    %45 = arith.addf %42, %44 : vector<16x128xf32>
    %cst_35 = arith.constant dense<0xFF800000> : vector<16xf32>
    %46 = vector.multi_reduction <maximumf>, %45, %cst_35 [1] : vector<16x128xf32> to vector<16xf32>
    %47 = vector.shape_cast %46 : vector<16xf32> to vector<16x1xf32>
    %48 = vector.broadcast %47 : vector<16x1xf32> to vector<16x128xf32>
    %49 = arith.subf %45, %48 : vector<16x128xf32>
    %50 = math.exp %49 : vector<16x128xf32>
    %cst_36 = arith.constant dense<0.000000e+00> : vector<16xf32>
    %51 = vector.multi_reduction <add>, %50, %cst_36 [1] : vector<16x128xf32> to vector<16xf32>
    %52 = vector.shape_cast %51 : vector<16xf32> to vector<16x1xf32>
    %53 = math.log %52 : vector<16x1xf32>
    %54 = arith.addf %47, %53 : vector<16x1xf32>
    %55 = vector.broadcast %54 : vector<16x1xf32> to vector<16x128xf32>
    %56 = arith.subf %45, %55 : vector<16x128xf32>
    %c0_37 = arith.constant 0 : index
    %c0_38 = arith.constant 0 : index
    %57 = vector.load %arg14[%c0_37, %c0_38] : memref<16x128xf32, #tpu.memory_space<vmem>>, vector<16x128xf32>
    tpu.vector_store %arg14[%c0_37, %c0_38], %56 {strides = array<i32>} : memref<16x128xf32, #tpu.memory_space<vmem>>, vector<16x128xf32>,
    return
  }
  func.func @transform_0(%arg0: i32) -> (i32, i32) {
    %c0_i32 = arith.constant 0 : i32
    %c0_i32_0 = arith.constant 0 : i32
    return %arg0, %c0_i32 : i32, i32
  }
  func.func @transform_1(%arg0: i32) -> (i32, i32) {
    %c0_i32 = arith.constant 0 : i32
    %c0_i32_0 = arith.constant 0 : i32
    %c0_i32_1 = arith.constant 0 : i32
    return %c0_i32, %c0_i32_0 : i32, i32
  }
  func.func @transform_2(%arg0: i32) -> (i32, i32) {
    %c0_i32 = arith.constant 0 : i32
    %c0_i32_0 = arith.constant 0 : i32
    %c0_i32_1 = arith.constant 0 : i32
    return %c0_i32, %c0_i32_0 : i32, i32
  }
  func.func @transform_3(%arg0: i32) -> (i32, i32) {
    %c0_i32 = arith.constant 0 : i32
    %c0_i32_0 = arith.constant 0 : i32
    %c0_i32_1 = arith.constant 0 : i32
    return %c0_i32, %c0_i32_0 : i32, i32
  }
  func.func @transform_4(%arg0: i32) -> (i32, i32) {
    %c0_i32 = arith.constant 0 : i32
    %c0_i32_0 = arith.constant 0 : i32
    %c0_i32_1 = arith.constant 0 : i32
    return %c0_i32, %c0_i32_0 : i32, i32
  }
  func.func @transform_5(%arg0: i32) -> (i32, i32) {
    %c0_i32 = arith.constant 0 : i32
    %c0_i32_0 = arith.constant 0 : i32
    %c0_i32_1 = arith.constant 0 : i32
    return %c0_i32, %c0_i32_0 : i32, i32
  }
  func.func @transform_6(%arg0: i32) -> (i32, i32) {
    %c0_i32 = arith.constant 0 : i32
    %c0_i32_0 = arith.constant 0 : i32
    %c0_i32_1 = arith.constant 0 : i32
    return %c0_i32, %c0_i32_0 : i32, i32
  }
  func.func @transform_7(%arg0: i32) -> (i32, i32) {
    %c0_i32 = arith.constant 0 : i32
    %c0_i32_0 = arith.constant 0 : i32
    %c0_i32_1 = arith.constant 0 : i32
    return %c0_i32, %c0_i32_0 : i32, i32
  }
  func.func @transform_8(%arg0: i32) -> (i32, i32) {
    %c0_i32 = arith.constant 0 : i32
    %c0_i32_0 = arith.constant 0 : i32
    %c0_i32_1 = arith.constant 0 : i32
    return %c0_i32, %c0_i32_0 : i32, i32
  }
  func.func @transform_9(%arg0: i32) -> (i32, i32) {
    %c0_i32 = arith.constant 0 : i32
    %c0_i32_0 = arith.constant 0 : i32
    %c0_i32_1 = arith.constant 0 : i32
    return %c0_i32, %c0_i32_0 : i32, i32
  }
  func.func @transform_10(%arg0: i32) -> (i32, i32) {
    %c0_i32 = arith.constant 0 : i32
    %c0_i32_0 = arith.constant 0 : i32
    %c0_i32_1 = arith.constant 0 : i32
    return %c0_i32, %c0_i32_0 : i32, i32
  }
  func.func @transform_11(%arg0: i32) -> (i32, i32) {
    %c0_i32 = arith.constant 0 : i32
    %c0_i32_0 = arith.constant 0 : i32
    %c0_i32_1 = arith.constant 0 : i32
    return %c0_i32, %c0_i32_0 : i32, i32
  }
  func.func @transform_12(%arg0: i32) -> (i32, i32) {
    %c0_i32 = arith.constant 0 : i32
    %c0_i32_0 = arith.constant 0 : i32
    %c0_i32_1 = arith.constant 0 : i32
    return %c0_i32, %c0_i32_0 : i32, i32
  }
  func.func @transform_13(%arg0: i32) -> (i32, i32) {
    %c0_i32 = arith.constant 0 : i32
    %c0_i32_0 = arith.constant 0 : i32
    return %arg0, %c0_i32 : i32, i32
  }
}

</mosaic_0001>

<bundles_post_ra>
// kernel: _mlp_forward.1
= control target key start
LH: loop header
LB: loop body
LE: loop exit
PB: predicated region body
PF: predicated region fallthrough
CT: control target
= control target key end

     0   :  { %18 = vsyncpa [#allocation3], 0  ;;  %s8146_s0 = inlined_call_operand.vmem [shape: bf16[16,784], index: 0, kind: input, shape index: {}]   ;;  %s8147_s1 = inlined_call_operand.hbm [shape: bf16[784,1024], index: 1, kind: input, shape index: {}]   ;;  %s8148_s2 = inlined_call_operand.hbm [shape: f32[1,1024], index: 2, kind: input, shape index: {}]   ;;  %s8149_s3 = inlined_call_operand.hbm [shape: bf16[1024,512], index: 3, kind: input, shape index: {}]   ;;  %s8150_s4 = inlined_call_operand.hbm [shape: f32[1,512], index: 4, kind: input, shape index: {}]   ;;  %s8151_s5 = inlined_call_operand.hbm [shape: bf16[512,256], index: 5, kind: input, shape index: {}]   ;;  %s8152_s6 = inlined_call_operand.hbm [shape: f32[1,256], index: 6, kind: input, shape index: {}]   ;;  %s8153_s7 = inlined_call_operand.hbm [shape: bf16[256,128], index: 7, kind: input, shape index: {}]   ;;  %s8154_s8 = inlined_call_operand.hbm [shape: f32[1,128], index: 8, kind: input, shape index: {}]   ;;  %s8155_s9 = inlined_call_operand.vmem [shape: bf16[128,64], index: 9, kind: input, shape index: {}]   ;;  %s8156_s10 = inlined_call_operand.hbm [shape: f32[1,64], index: 10, kind: input, shape index: {}]   ;;  %s8157_s11 = inlined_call_operand.hbm [shape: bf16[64,128], index: 11, kind: input, shape index: {}]   ;;  %s8158_s12 = inlined_call_operand.hbm [shape: f32[1,128], index: 12, kind: input, shape index: {}]   ;;  %s8159_s13 = inlined_call_operand.vmem [shape: f32[16,128], index: 13, kind: output, shape index: {}]  }
   0x1   :  { %19 = vsyncpa [#allocation5], 0 }
   0x2   :  { %20 = vsyncpa [#allocation8], 0 }
   0x3   :  { %21 = vsyncpa [#allocation11], 0 }
   0x4   :  { %22 = vsyncpa [#allocation14], 0 }
   0x5   :  { %23 = vsyncpa [#allocation17], 0  ;;  %s7762_s25 = smov [#allocation4]   ;;  %s7763_s27 = smov [#allocation7]  }
   0x6   :  { %s44_s26 = sshll.u32 %s7762_s25, 4  ;;  %s66_s28 = sshll.u32 %s7763_s27, 4  ;;  %s45_s26 = int_to_ptr.vmem [resolvable:$true] %s44_s26  ;;  %s67_s28 = int_to_ptr.vmem [resolvable:$true] %s66_s28 }
   0x7   :  { %s7538_s29 = scalar_lea.vmem %s45_s26, 128  ;;  %p7543_p1 = scmp.lt.s32.totalorder %s45_s26, %s45_s26 }
   0x8   :  { %p7539_p0 = scmp.ne.s32.totalorder %s45_s26, %s7538_s29  ;;  %p7544_p2 = scmp.lt.s32.totalorder %s7538_s29, %s7538_s29 }
   0xa   :  { %p7545_p3 = por %p7544_p2, %p7543_p1 }
   0xc   :  { %p7546_p4 = pnand %p7545_p3, %p7539_p0 }
   0xe   :  { %7549 = shalt.err (!%p7546_p4)
}
   0xf   :  { %47 = dma.hbm_to_vmem [thread:$0]  %s8148_s2, 128, %s45_s26, [#allocation5]  }
  0x10   :  { %s7558_s15 = scalar_lea.vmem %s67_s28, 64  ;;  %p7563_p6 = scmp.lt.s32.totalorder %s67_s28, %s67_s28 }
  0x11   :  { %p7559_p5 = scmp.ne.s32.totalorder %s67_s28, %s7558_s15  ;;  %p7564_p7 = scmp.lt.s32.totalorder %s7558_s15, %s7558_s15 }
  0x13   :  { %p7565_p8 = por %p7564_p7, %p7563_p6 }
  0x15   :  { %p7566_p9 = pnand %p7565_p8, %p7559_p5 }
  0x17   :  { %7569 = shalt.err (!%p7566_p9)
}
  0x18   :  { %69 = dma.hbm_to_vmem [thread:$0]  %s8150_s4, 64, %s67_s28, [#allocation8]  }
  0x19   :  { %s7764_s18 = smov [#allocation10]   ;;  %s7765_s20 = smov [#allocation13]  }
  0x1a   :  { %s88_s19 = sshll.u32 %s7764_s18, 4  ;;  %s110_s21 = sshll.u32 %s7765_s20, 4  ;;  %s89_s19 = int_to_ptr.vmem [resolvable:$true] %s88_s19  ;;  %s111_s21 = int_to_ptr.vmem [resolvable:$true] %s110_s21 }
  0x1b   :  { %s7578_s22 = scalar_lea.vmem %s89_s19, 32  ;;  %p7583_p11 = scmp.lt.s32.totalorder %s89_s19, %s89_s19 }
  0x1c   :  { %p7579_p10 = scmp.ne.s32.totalorder %s89_s19, %s7578_s22  ;;  %p7584_p12 = scmp.lt.s32.totalorder %s7578_s22, %s7578_s22 }
  0x1e   :  { %p7585_p13 = por %p7584_p12, %p7583_p11 }
  0x20   :  { %p7586_p0 = pnand %p7585_p13, %p7579_p10 }
  0x22   :  { %7589 = shalt.err (!%p7586_p0)
}
  0x23   :  { %91 = dma.hbm_to_vmem [thread:$0]  %s8152_s6, 32, %s89_s19, [#allocation11]  }
  0x24   :  { %s7598_s24 = scalar_lea.vmem %s111_s21, 16  ;;  %s7602_s4 = scalar_lea.vmem %s111_s21, 32 }
  0x25   :  { %p7599_p1 = scmp.ne.s32.totalorder %s111_s21, %s7598_s24  ;;  %p7603_p2 = scmp.lt.s32.totalorder %s111_s21, %s111_s21 }
  0x26   :  { %p7604_p3 = scmp.lt.s32.totalorder %s7602_s4, %s7598_s24 }
  0x28   :  { %p7605_p4 = por %p7604_p3, %p7603_p2 }
  0x2a   :  { %p7606_p5 = pnand %p7605_p4, %p7599_p1 }
  0x2c   :  { %7609 = shalt.err (!%p7606_p5)
}
  0x2d   :  { %113 = dma.hbm_to_vmem [thread:$0]  %s8154_s8, 16, %s111_s21, [#allocation14]  }
  0x2e   :  { %s7766_s27 = smov [#allocation16]   ;;  %s7767_s29 = smov [#allocation2]  }
  0x2f   :  { %s131_s28 = sshll.u32 %s7766_s27, 4  ;;  %s31_s30 = sshll.u32 %s7767_s29, 4  ;;  %s132_s28 = int_to_ptr.vmem [resolvable:$true] %s131_s28  ;;  %s32_s30 = int_to_ptr.vmem [resolvable:$true] %s31_s30 }
  0x30   :  { %s7618_s14 = scalar_lea.vmem %s132_s28, 512  ;;  %p7623_p7 = scmp.lt.s32.totalorder %s132_s28, %s132_s28 }
  0x31   :  { %p7619_p6 = scmp.ne.s32.totalorder %s132_s28, %s7618_s14  ;;  %p7624_p8 = scmp.lt.s32.totalorder %s7618_s14, %s7618_s14 }
  0x33   :  { %p7625_p9 = por %p7624_p8, %p7623_p7 }
  0x35   :  { %p7626_p10 = pnand %p7625_p9, %p7619_p6 }
  0x37   :  { %7629 = shalt.err (!%p7626_p10)
}
  0x38   :  { %s7768_s6 = smov 64   ;;  %s7769_s15 = smov 4  }
  0x39   :  { %137 = dma.hbm_to_vmem [thread:$0]  %s8157_s11, 512, %s132_s28, [#allocation17], %s7768_s6, %s7768_s6, %s7769_s15  }
  0x3a   :  { %s7638_s17 = scalar_lea.vmem %s32_s30, 50176  ;;  %p7643_p12 = scmp.lt.s32.totalorder %s32_s30, %s32_s30 }
  0x3b   :  { %p7639_p11 = scmp.ne.s32.totalorder %s32_s30, %s7638_s17  ;;  %p7644_p13 = scmp.lt.s32.totalorder %s7638_s17, %s7638_s17 }
  0x3d   :  { %p7645_p0 = por %p7644_p13, %p7643_p12 }
  0x3f   :  { %p7646_p1 = pnand %p7645_p0, %p7639_p11 }
  0x41   :  { %7649 = shalt.err (!%p7646_p1)
}
  0x42   :  { %s7770_s18 = smov 512   ;;  %s7771_s19 = smov 32  }
  0x43   :  { %37 = dma.hbm_to_vmem [thread:$0]  %s8147_s1, 50176, %s32_s30, [#allocation3], %s7770_s18, %s7770_s18, %s7771_s19  }
  0x44   :  { %s7772_s22 = smov [#allocation6]  }
  0x45   :  { %s53_s2 = sshll.u32 %s7772_s22, 4  ;;  %s54_s2 = int_to_ptr.vmem [resolvable:$true] %s53_s2 }
  0x46   :  { %s7658_s23 = scalar_lea.vmem %s54_s2, 32768  ;;  %p7663_p3 = scmp.lt.s32.totalorder %s54_s2, %s54_s2 }
  0x47   :  { %p7659_p2 = scmp.ne.s32.totalorder %s54_s2, %s7658_s23  ;;  %p7664_p4 = scmp.lt.s32.totalorder %s7658_s23, %s7658_s23 }
  0x49   :  { %p7665_p5 = por %p7664_p4, %p7663_p3 }
  0x4b   :  { %p7666_p6 = pnand %p7665_p5, %p7659_p2 }
  0x4d   :  { %7669 = shalt.err (!%p7666_p6)
}
  0x4e   :  { %s7773_s11 = smov 256   ;;  %s7774_s24 = smov 16  }
  0x4f   :  { %59 = dma.hbm_to_vmem [thread:$0]  %s8149_s3, 32768, %s54_s2, [#allocation5], %s7773_s11, %s7773_s11, %s7774_s24  }
  0x50   :  { %s7775_s26 = smov [#allocation9]  }
  0x51   :  { %s75_s27 = sshll.u32 %s7775_s26, 4  ;;  %s76_s27 = int_to_ptr.vmem [resolvable:$true] %s75_s27 }
  0x52   :  { %s7678_s1 = scalar_lea.vmem %s76_s27, 8192  ;;  %p7683_p8 = scmp.lt.s32.totalorder %s76_s27, %s76_s27 }
  0x53   :  { %p7679_p7 = scmp.ne.s32.totalorder %s76_s27, %s7678_s1  ;;  %p7684_p9 = scmp.lt.s32.totalorder %s7678_s1, %s7678_s1 }
  0x55   :  { %p7685_p10 = por %p7684_p9, %p7683_p8 }
  0x57   :  { %p7686_p11 = pnand %p7685_p10, %p7679_p7 }
  0x59   :  { %7689 = shalt.err (!%p7686_p11)
}
  0x5a   :  { %s7776_s28 = smov 128   ;;  %s7777_s29 = smov 8  }
  0x5b   :  { %81 = dma.hbm_to_vmem [thread:$0]  %s8151_s5, 8192, %s76_s27, [#allocation8], %s7776_s28, %s7776_s28, %s7777_s29  }
  0x5c   :  { %s7778_s16 = smov [#allocation12]   ;;  %s7779_s17 = smov [#allocation15]  }
  0x5d   :  { %s97_s8 = sshll.u32 %s7778_s16, 4  ;;  %s122_s3 = sshll.u32 %s7779_s17, 4  ;;  %s98_s8 = int_to_ptr.vmem [resolvable:$true] %s97_s8  ;;  %s123_s3 = int_to_ptr.vmem [resolvable:$true] %s122_s3 }
  0x5e   :  { %s7698_s18 = scalar_lea.vmem %s98_s8, 2048  ;;  %p7703_p13 = scmp.lt.s32.totalorder %s98_s8, %s98_s8 }
  0x5f   :  { %p7699_p12 = scmp.ne.s32.totalorder %s98_s8, %s7698_s18  ;;  %p7704_p0 = scmp.lt.s32.totalorder %s7698_s18, %s7698_s18 }
  0x61   :  { %p7705_p1 = por %p7704_p0, %p7703_p13 }
  0x63   :  { %p7706_p2 = pnand %p7705_p1, %p7699_p12 }
  0x65   :  { %7709 = shalt.err (!%p7706_p2)
}
  0x66   :  { %103 = dma.hbm_to_vmem [thread:$0]  %s8153_s7, 2048, %s98_s8, [#allocation11], %s7768_s6, %s7768_s6, %s7769_s15  }
  0x67   :  { %s7718_s5 = scalar_lea.vmem %s123_s3, 16  ;;  %s7722_s21 = scalar_lea.vmem %s123_s3, 32 }
  0x68   :  { %p7719_p3 = scmp.ne.s32.totalorder %s123_s3, %s7718_s5  ;;  %p7723_p4 = scmp.lt.s32.totalorder %s123_s3, %s123_s3 }
  0x69   :  { %p7724_p5 = scmp.lt.s32.totalorder %s7722_s21, %s7718_s5 }
  0x6b   :  { %p7725_p6 = por %p7724_p5, %p7723_p4 }
  0x6d   :  { %p7726_p7 = pnand %p7725_p6, %p7719_p3 }
  0x6f   :  { %7729 = shalt.err (!%p7726_p7)
}
  0x70   :  { %125 = dma.hbm_to_vmem [thread:$0]  %s8156_s10, 16, %s123_s3, [#allocation14]  }
  0x71   :  { %s7780_s23 = smov [#allocation18]  }
  0x72   :  { %s144_s11 = sshll.u32 %s7780_s23, 4  ;;  %s145_s11 = int_to_ptr.vmem [resolvable:$true] %s144_s11 }
  0x73   :  { %s7738_s24 = scalar_lea.vmem %s145_s11, 16  ;;  %s7742_s4 = scalar_lea.vmem %s145_s11, 32 }
  0x74   :  { %p7739_p8 = scmp.ne.s32.totalorder %s145_s11, %s7738_s24  ;;  %p7743_p9 = scmp.lt.s32.totalorder %s145_s11, %s145_s11 }
  0x75   :  { %p7744_p10 = scmp.lt.s32.totalorder %s7742_s4, %s7738_s24 }
  0x77   :  { %p7745_p11 = por %p7744_p10, %p7743_p9 }
  0x79   :  { %p7746_p12 = pnand %p7745_p11, %p7739_p8 }
  0x7b   :  { %7749 = shalt.err (!%p7746_p12)
}
  0x7c   :  { %147 = dma.hbm_to_vmem [thread:$0]  %s8158_s12, 16, %s145_s11, [#allocation17]  }
  0x7d   :  { %7750 = dma.done.wait [#allocation3], 50176  }
  0x7e   :  { %7751 = vsyncadd [#allocation3], 4294917120 }
  0x7f   :  { %7752 = dma.done.wait [#allocation5], 32896  }
  0x80   :  { %7753 = vsyncadd [#allocation5], 4294934400 }
  0x81   :  { %7754 = dma.done.wait [#allocation8], 8256  }
  0x82   :  { %7755 = vsyncadd [#allocation8], 4294959040 }
  0x83   :  { %7756 = dma.done.wait [#allocation11], 2080  }
  0x84   :  { %7757 = vsyncadd [#allocation11], 4294965216 }
  0x85   :  { %7758 = dma.done.wait [#allocation14], 32  }
  0x86   :  { %7759 = vsyncadd [#allocation14], 4294967264 }
  0x87   :  { %7760 = dma.done.wait [#allocation17], 528  }
  0x88   :  { %7761 = vsyncadd [#allocation17], 4294966768  ;;  %v246_v0 = vld [vmem:[#allocation2 + $0x1c0] sm:$0xff]  ;;  %v7901_v59 = vld [vmem:[%s8146_s0 + $0xc] ss:$28 sps:$4 sm:$0xff]   ;;  %vm2619_vm0 = vcmask 130048  }
  0x89   :  { %v250_v1 = vld [vmem:[#allocation2 + $0x1e0] sm:$0xff]  ;;  %2698 = vmatprep.mubr.bf16.mxu1 %v7901_v59  ;;  %vm7783_vm1 = vmmov 0   ;;  %vm6070_vm2 = vcmask 523264  }
  0x8a   :  { %v374_v2 = vld [vmem:[#allocation2 + $0x5c0] sm:$0xff]  ;;  %v6213_v3 = vcombine.high %v246_v0, %v250_v1  ;;  %v6212_v5 = vcombine.low %v246_v0, %v250_v1 }
  0x8b   :  { %v378_v4 = vld [vmem:[#allocation2 + $0x5e0] sm:$0xff] }
  0x8c   :  { %v238_v6 = vld [vmem:[#allocation2 + $0x180] sm:$0xff]  ;;  %v6341_v8 = vcombine.high %v374_v2, %v378_v4  ;;  %v6340_v9 = vcombine.low %v374_v2, %v378_v4  ;;  %2623 = vmatprep.subr.bf16.mxu0 %v6213_v3 }
  0x8d   :  { %v242_v7 = vld [vmem:[#allocation2 + $0x1a0] sm:$0xff]  ;;  %2624 = vmatpush1.bf16.msra.mxu0 %v6212_v5 }
  0x8e   :  { %v6205_v10 = vcombine.high %v238_v6, %v242_v7  ;;  %v366_v11 = vld [vmem:[#allocation2 + $0x580] sm:$0xff]  ;;  %2666 = vmatprep.subr.bf16.mxu1 %v6341_v8  ;;  %v6204_v18 = vcombine.low %v238_v6, %v242_v7 }
  0x8f   :  { %v370_v12 = vld [vmem:[#allocation2 + $0x5a0] sm:$0xff]  ;;  %2667 = vmatpush1.bf16.msra.mxu1 %v6340_v9 }
  0x90   :  { %v230_v13 = vld [vmem:[#allocation2 + $0x140] sm:$0xff]  ;;  %v6333_v14 = vcombine.high %v366_v11, %v370_v12  ;;  %2625 = vmatprep.subr.bf16.mxu0 %v6205_v10  ;;  %v6332_v19 = vcombine.low %v366_v11, %v370_v12 }
  0x91   :  { %v234_v15 = vld [vmem:[#allocation2 + $0x160] sm:$0xff]  ;;  %2626 = vmatpush1.bf16.msra.mxu0 %v6204_v18 }
  0x92   :  { %v358_v16 = vld [vmem:[#allocation2 + $0x540] sm:$0xff]  ;;  %v6197_v20 = vcombine.high %v230_v13, %v234_v15  ;;  %2668 = vmatprep.subr.bf16.mxu1 %v6333_v14  ;;  %v6196_v26 = vcombine.low %v230_v13, %v234_v15 }
  0x93   :  { %v362_v17 = vld [vmem:[#allocation2 + $0x560] sm:$0xff]  ;;  %2669 = vmatpush1.bf16.msra.mxu1 %v6332_v19 }
  0x94   :  { %v6325_v21 = vcombine.high %v358_v16, %v362_v17  ;;  %v222_v22 = vld [vmem:[#allocation2 + $0x100] sm:$0xff]  ;;  %2627 = vmatprep.subr.bf16.mxu0 %v6197_v20  ;;  %v6324_v27 = vcombine.low %v358_v16, %v362_v17 }
  0x95   :  { %v226_v23 = vld [vmem:[#allocation2 + $0x120] sm:$0xff]  ;;  %2628 = vmatpush1.bf16.msra.mxu0 %v6196_v26 }
  0x96   :  { %v350_v24 = vld [vmem:[#allocation2 + $0x500] sm:$0xff]  ;;  %v6189_v28 = vcombine.high %v222_v22, %v226_v23  ;;  %2670 = vmatprep.subr.bf16.mxu1 %v6325_v21  ;;  %v6188_v34 = vcombine.low %v222_v22, %v226_v23 }
  0x97   :  { %v354_v25 = vld [vmem:[#allocation2 + $0x520] sm:$0xff]  ;;  %2671 = vmatpush1.bf16.msra.mxu1 %v6324_v27 }
  0x98   :  { %v6317_v29 = vcombine.high %v350_v24, %v354_v25  ;;  %v214_v30 = vld [vmem:[#allocation2 + $0xc0] sm:$0xff]  ;;  %2629 = vmatprep.subr.bf16.mxu0 %v6189_v28  ;;  %v6316_v35 = vcombine.low %v350_v24, %v354_v25 }
  0x99   :  { %v218_v31 = vld [vmem:[#allocation2 + $0xe0] sm:$0xff]  ;;  %2630 = vmatpush1.bf16.msra.mxu0 %v6188_v34 }
  0x9a   :  { %v342_v32 = vld [vmem:[#allocation2 + $0x4c0] sm:$0xff]  ;;  %v6181_v36 = vcombine.high %v214_v30, %v218_v31  ;;  %2672 = vmatprep.subr.bf16.mxu1 %v6317_v29  ;;  %v6180_v42 = vcombine.low %v214_v30, %v218_v31 }
  0x9b   :  { %v346_v33 = vld [vmem:[#allocation2 + $0x4e0] sm:$0xff]  ;;  %2673 = vmatpush1.bf16.msra.mxu1 %v6316_v35 }
  0x9c   :  { %v6309_v37 = vcombine.high %v342_v32, %v346_v33  ;;  %v206_v38 = vld [vmem:[#allocation2 + $0x80] sm:$0xff]  ;;  %2631 = vmatprep.subr.bf16.mxu0 %v6181_v36  ;;  %v6308_v43 = vcombine.low %v342_v32, %v346_v33 }
  0x9d   :  { %v210_v39 = vld [vmem:[#allocation2 + $0xa0] sm:$0xff]  ;;  %2632 = vmatpush1.bf16.msra.mxu0 %v6180_v42 }
  0x9e   :  { %v334_v40 = vld [vmem:[#allocation2 + $0x480] sm:$0xff]  ;;  %v6173_v44 = vcombine.high %v206_v38, %v210_v39  ;;  %2674 = vmatprep.subr.bf16.mxu1 %v6309_v37  ;;  %v6172_v50 = vcombine.low %v206_v38, %v210_v39 }
  0x9f   :  { %v338_v41 = vld [vmem:[#allocation2 + $0x4a0] sm:$0xff]  ;;  %2675 = vmatpush1.bf16.msra.mxu1 %v6308_v43 }
  0xa0   :  { %v6301_v45 = vcombine.high %v334_v40, %v338_v41  ;;  %v198_v46 = vld [vmem:[#allocation2 + $0x40] sm:$0xff]  ;;  %2633 = vmatprep.subr.bf16.mxu0 %v6173_v44  ;;  %v6300_v52 = vcombine.low %v334_v40, %v338_v41 }
  0xa1   :  { %v202_v47 = vld [vmem:[#allocation2 + $0x60] sm:$0xff]  ;;  %2634 = vmatpush1.bf16.msra.mxu0 %v6172_v50 }
  0xa2   :  { %v326_v48 = vld [vmem:[#allocation2 + $0x440] sm:$0xff]  ;;  %v6165_v53 = vcombine.high %v198_v46, %v202_v47  ;;  %2676 = vmatprep.subr.bf16.mxu1 %v6301_v45  ;;  %v6164_v60 = vcombine.low %v198_v46, %v202_v47 }
  0xa3   :  { %v330_v49 = vld [vmem:[#allocation2 + $0x460] sm:$0xff]  ;;  %2677 = vmatpush1.bf16.msra.mxu1 %v6300_v52 }
  0xa4   :  { %v190_v51 = vld [vmem:[#allocation2] sm:$0xff]  ;;  %v6293_v55 = vcombine.high %v326_v48, %v330_v49  ;;  %2635 = vmatprep.subr.bf16.mxu0 %v6165_v53  ;;  %v6292_v61 = vcombine.low %v326_v48, %v330_v49 }
  0xa5   :  { %v194_v54 = vld [vmem:[#allocation2 + $0x20] sm:$0xff]  ;;  %2636 = vmatpush1.bf16.msra.mxu0 %v6164_v60 }
  0xa6   :  { %v7896_v56 = vld [vmem:[%s8146_s0 + $0x4] ss:$28 sps:$4 sm:$0xff]   ;;  %v6157_v62 = vcombine.high %v190_v51, %v194_v54  ;;  %2678 = vmatprep.subr.bf16.mxu1 %v6293_v55  ;;  %v6156_v4 = vcombine.low %v190_v51, %v194_v54 }
  0xa7   :  { %v318_v57 = vld [vmem:[#allocation2 + $0x400] sm:$0xff]  ;;  %2655 = vmatprep.mubr.bf16.mxu0 %v7896_v56  ;;  %2679 = vmatpush1.bf16.msra.mxu1 %v6292_v61 }
  0xa8   :  { %v322_v58 = vld [vmem:[#allocation2 + $0x420] sm:$0xff]  ;;  %2637 = vmatprep.subr.bf16.mxu0 %v6157_v62 }
  0xa9   :  { %v6285_v63 = vcombine.high %v318_v57, %v322_v58  ;;  %v310_v0 = vld [vmem:[#allocation2 + $0x3c0] sm:$0xff]  ;;  %v6284_v5 = vcombine.low %v318_v57, %v322_v58  ;;  %2638 = vmatpush1.bf16.msra.mxu0 %v6156_v4 }
  0xaa   :  { %v314_v1 = vld [vmem:[#allocation2 + $0x3e0] sm:$0xff] }
  0xab   :  { %v438_v2 = vld [vmem:[#allocation2 + $0x7c0] sm:$0xff]  ;;  %v6277_v6 = vcombine.high %v310_v0, %v314_v1  ;;  %2680 = vmatprep.subr.bf16.mxu1 %v6285_v63  ;;  %v6276_v12 = vcombine.low %v310_v0, %v314_v1 }
  0xac   :  { %v442_v3 = vld [vmem:[#allocation2 + $0x7e0] sm:$0xff]  ;;  %2681 = vmatpush1.bf16.msra.mxu1 %v6284_v5 }
  0xad   :  { %v6405_v7 = vcombine.high %v438_v2, %v442_v3  ;;  %v302_v8 = vld [vmem:[#allocation2 + $0x380] sm:$0xff]  ;;  %2639 = vmatprep.subr.bf16.mxu0 %v6277_v6  ;;  %v6404_v13 = vcombine.low %v438_v2, %v442_v3 }
  0xae   :  { %v306_v9 = vld [vmem:[#allocation2 + $0x3a0] sm:$0xff]  ;;  %2640 = vmatpush2.bf16.msra.mxu0 %v6276_v12 }
  0xaf   :  { %v430_v10 = vld [vmem:[#allocation2 + $0x780] sm:$0xff]  ;;  %v6269_v14 = vcombine.high %v302_v8, %v306_v9  ;;  %2682 = vmatprep.subr.bf16.mxu1 %v6405_v7  ;;  %v6268_v20 = vcombine.low %v302_v8, %v306_v9 }
  0xb0   :  { %v434_v11 = vld [vmem:[#allocation2 + $0x7a0] sm:$0xff]  ;;  %2683 = vmatpush2.bf16.msra.mxu1 %v6404_v13  ;;  %v247_v13 = vld [vmem:[#allocation2 + $0x1c8] sm:$0xff] }
  0xb1   :  { %v6397_v15 = vcombine.high %v430_v10, %v434_v11  ;;  %v294_v16 = vld [vmem:[#allocation2 + $0x340] sm:$0xff]  ;;  %2641 = vmatprep.subr.bf16.mxu0 %v6269_v14  ;;  %v6396_v21 = vcombine.low %v430_v10, %v434_v11  ;;  %v251_v14 = vld [vmem:[#allocation2 + $0x1e8] sm:$0xff] }
  0xb2   :  { %v298_v17 = vld [vmem:[#allocation2 + $0x360] sm:$0xff]  ;;  %2642 = vmatpush2.bf16.msra.mxu0 %v6268_v20 }
  0xb3   :  { %v422_v18 = vld [vmem:[#allocation2 + $0x740] sm:$0xff]  ;;  %v6261_v22 = vcombine.high %v294_v16, %v298_v17  ;;  %2684 = vmatprep.subr.bf16.mxu1 %v6397_v15  ;;  %v6260_v28 = vcombine.low %v294_v16, %v298_v17 }
  0xb4   :  { %v426_v19 = vld [vmem:[#allocation2 + $0x760] sm:$0xff]  ;;  %2685 = vmatpush2.bf16.msra.mxu1 %v6396_v21 }
  0xb5   :  { %v6389_v23 = vcombine.high %v422_v18, %v426_v19  ;;  %v286_v24 = vld [vmem:[#allocation2 + $0x300] sm:$0xff]  ;;  %2643 = vmatprep.subr.bf16.mxu0 %v6261_v22  ;;  %v6388_v29 = vcombine.low %v422_v18, %v426_v19  ;;  %v6215_v19 = vcombine.high %v247_v13, %v251_v14  ;;  %v7917_v22 = vld [vmem:[%s8146_s0 + $0x14] ss:$28 sps:$4 sm:$0xff]  }
  0xb6   :  { %v290_v25 = vld [vmem:[#allocation2 + $0x320] sm:$0xff]  ;;  %2644 = vmatpush2.bf16.msra.mxu0 %v6260_v28  ;;  %v243_v28 = vld [vmem:[#allocation2 + $0x1a8] sm:$0xff] }
  0xb7   :  { %v414_v26 = vld [vmem:[#allocation2 + $0x700] sm:$0xff]  ;;  %v6253_v30 = vcombine.high %v286_v24, %v290_v25  ;;  %2686 = vmatprep.subr.bf16.mxu1 %v6389_v23  ;;  %v6252_v36 = vcombine.low %v286_v24, %v290_v25  ;;  %v239_v25 = vld [vmem:[#allocation2 + $0x188] sm:$0xff] }
  0xb8   :  { %v418_v27 = vld [vmem:[#allocation2 + $0x720] sm:$0xff]  ;;  %2687 = vmatpush2.bf16.msra.mxu1 %v6388_v29 }
  0xb9   :  { %v6381_v31 = vcombine.high %v414_v26, %v418_v27  ;;  %v278_v32 = vld [vmem:[#allocation2 + $0x2c0] sm:$0xff]  ;;  %2645 = vmatprep.subr.bf16.mxu0 %v6253_v30  ;;  %v6380_v37 = vcombine.low %v414_v26, %v418_v27  ;;  %v7781_v26 = vmov 0   ;;  %v7000_v27 = vld [vmem:[%s8146_s0 + $0x18] ss:$28 sps:$4 sm:$0xff]  }
  0xba   :  { %v282_v33 = vld [vmem:[#allocation2 + $0x2e0] sm:$0xff]  ;;  %2646 = vmatpush2.bf16.msra.mxu0 %v6252_v36  ;;  %v6207_v36 = vcombine.high %v239_v25, %v243_v28 }
  0xbb   :  { %v406_v34 = vld [vmem:[#allocation2 + $0x6c0] sm:$0xff]  ;;  %v6245_v38 = vcombine.high %v278_v32, %v282_v33  ;;  %2688 = vmatprep.subr.bf16.mxu1 %v6381_v31  ;;  %v6244_v44 = vcombine.low %v278_v32, %v282_v33  ;;  %v6214_v32 = vcombine.low %v247_v13, %v251_v14 }
  0xbc   :  { %v410_v35 = vld [vmem:[#allocation2 + $0x6e0] sm:$0xff]  ;;  %2689 = vmatpush2.bf16.msra.mxu1 %v6380_v37 }
  0xbd   :  { %v6373_v39 = vcombine.high %v406_v34, %v410_v35  ;;  %v270_v40 = vld [vmem:[#allocation2 + $0x280] sm:$0xff]  ;;  %2647 = vmatprep.subr.bf16.mxu0 %v6245_v38  ;;  %v6372_v45 = vcombine.low %v406_v34, %v410_v35  ;;  %v231_v34 = vld [vmem:[#allocation2 + $0x148] sm:$0xff] }
  0xbe   :  { %v274_v41 = vld [vmem:[#allocation2 + $0x2a0] sm:$0xff]  ;;  %2648 = vmatpush2.bf16.msra.mxu0 %v6244_v44  ;;  %v235_v35 = vld [vmem:[#allocation2 + $0x168] sm:$0xff] }
  0xbf   :  { %v398_v42 = vld [vmem:[#allocation2 + $0x680] sm:$0xff]  ;;  %v6237_v46 = vcombine.high %v270_v40, %v274_v41  ;;  %2690 = vmatprep.subr.bf16.mxu1 %v6373_v39  ;;  %v6236_v52 = vcombine.low %v270_v40, %v274_v41  ;;  %v6206_v40 = vcombine.low %v239_v25, %v243_v28  ;;  %v315_v25 = vld [vmem:[#allocation2 + $0x3e8] sm:$0xff] }
  0xc0   :  { %v402_v43 = vld [vmem:[#allocation2 + $0x6a0] sm:$0xff]  ;;  %2691 = vmatpush2.bf16.msra.mxu1 %v6372_v45 }
  0xc1   :  { %v6365_v47 = vcombine.high %v398_v42, %v402_v43  ;;  %v262_v48 = vld [vmem:[#allocation2 + $0x240] sm:$0xff]  ;;  %2649 = vmatprep.subr.bf16.mxu0 %v6237_v46  ;;  %v6364_v53 = vcombine.low %v398_v42, %v402_v43  ;;  %v223_v42 = vld [vmem:[#allocation2 + $0x108] sm:$0xff]  ;;  %v6199_v46 = vcombine.high %v231_v34, %v235_v35 }
  0xc2   :  { %v266_v49 = vld [vmem:[#allocation2 + $0x260] sm:$0xff]  ;;  %2650 = vmatpush2.bf16.msra.mxu0 %v6236_v52  ;;  %v227_v43 = vld [vmem:[#allocation2 + $0x128] sm:$0xff] }
  0xc3   :  { %v390_v50 = vld [vmem:[#allocation2 + $0x640] sm:$0xff]  ;;  %v6229_v54 = vcombine.high %v262_v48, %v266_v49  ;;  %2692 = vmatprep.subr.bf16.mxu1 %v6365_v47  ;;  %v6228_v62 = vcombine.low %v262_v48, %v266_v49  ;;  %v6191_v52 = vcombine.high %v223_v42, %v227_v43 }
  0xc4   :  { %v394_v51 = vld [vmem:[#allocation2 + $0x660] sm:$0xff]  ;;  %2693 = vmatpush2.bf16.msra.mxu1 %v6364_v53  ;;  %v215_v53 = vld [vmem:[#allocation2 + $0xc8] sm:$0xff] }
  0xc5   :  { %v6357_v55 = vcombine.high %v390_v50, %v394_v51  ;;  %v254_v57 = vld [vmem:[#allocation2 + $0x200] sm:$0xff]  ;;  %2651 = vmatprep.subr.bf16.mxu0 %v6229_v54  ;;  %v6356_v63 = vcombine.low %v390_v50, %v394_v51  ;;  %v6198_v50 = vcombine.low %v231_v34, %v235_v35  ;;  %v219_v54 = vld [vmem:[#allocation2 + $0xe8] sm:$0xff] }
  0xc6   :  { %v258_v58 = vld [vmem:[#allocation2 + $0x220] sm:$0xff]  ;;  %2652 = vmatpush2.bf16.msra.mxu0 %v6228_v62  ;;  %v207_v62 = vld [vmem:[#allocation2 + $0x88] sm:$0xff] }
  0xc7   :  { %v382_v60 = vld [vmem:[#allocation2 + $0x600] sm:$0xff]  ;;  %v6221_v0 = vcombine.high %v254_v57, %v258_v58  ;;  %2694 = vmatprep.subr.bf16.mxu1 %v6357_v55  ;;  %v6220_v6 = vcombine.low %v254_v57, %v258_v58  ;;  %v6190_v57 = vcombine.low %v223_v42, %v227_v43  ;;  %v307_v34 = vld [vmem:[#allocation2 + $0x3a8] sm:$0xff] }
  0xc8   :  { %v386_v61 = vld [vmem:[#allocation2 + $0x620] sm:$0xff]  ;;  %2695 = vmatpush2.bf16.msra.mxu1 %v6356_v63  ;;  %v211_v63 = vld [vmem:[#allocation2 + $0xa8] sm:$0xff] }
  0xc9   :  { %v6349_v1 = vcombine.high %v382_v60, %v386_v61  ;;  %v502_v2 = vld [vmem:[#allocation2 + $0x9c0] sm:$0xff]  ;;  %2653 = vmatprep.subr.bf16.mxu0 %v6221_v0  ;;  %v6348_v7 = vcombine.low %v382_v60, %v386_v61  ;;  %v6183_v61 = vcombine.high %v215_v53, %v219_v54  ;;  %v299_v42 = vld [vmem:[#allocation2 + $0x368] sm:$0xff] }
  0xca   :  { %v506_v3 = vld [vmem:[#allocation2 + $0x9e0] sm:$0xff]  ;;  %2654 = vmatpush2.bf16.msra.mxu0 %v6220_v6  ;;  %v199_v6 = vld [vmem:[#allocation2 + $0x48] sm:$0xff] }
  0xcb   :  { %v574_v4 = vld [vmem:[#allocation2 + $0xc00] sm:$0xff]  ;;  %v6469_v8 = vcombine.high %v502_v2, %v506_v3  ;;  %2696 = vmatprep.subr.bf16.mxu1 %v6349_v1  ;;  %v6468_v16 = vcombine.low %v502_v2, %v506_v3  ;;  %v6182_v1 = vcombine.low %v215_v53, %v219_v54 }
  0xcc   :  { %v578_v5 = vld [vmem:[#allocation2 + $0xc20] sm:$0xff]  ;;  %2697 = vmatpush2.bf16.msra.mxu1 %v6348_v7  ;;  %v203_v7 = vld [vmem:[#allocation2 + $0x68] sm:$0xff] }
  0xcd   :  { %v6541_v9 = vcombine.high %v574_v4, %v578_v5  ;;  %v494_v10 = vld [vmem:[#allocation2 + $0x980] sm:$0xff]  ;;  %2709 = vmatprep.subr.bf16.mxu0 %v6469_v8  ;;  %v6540_v17 = vcombine.low %v574_v4, %v578_v5  ;;  %v6175_v5 = vcombine.high %v207_v62, %v211_v63  ;;  %v6167_v14 = vcombine.high %v199_v6, %v203_v7 }
  0xce   :  { %v498_v11 = vld [vmem:[#allocation2 + $0x9a0] sm:$0xff] }
  0xcf   :  { %v7908_v12 = vld [vmem:[%s8146_s0] ss:$28 sps:$4 sm:$0xff]   ;;  %v6999_v15 = vld [vmem:[%s8146_s0 + $0x8] ss:$28 sps:$4 sm:$0xff]   ;;  %v6461_v18 = vcombine.high %v494_v10, %v498_v11  ;;  %2766 = vmatprep.subr.bf16.mxu1 %v6541_v9  ;;  %v6460_v23 = vcombine.low %v494_v10, %v498_v11  ;;  %v6174_v9 = vcombine.low %v207_v62, %v211_v63 }
  0xd0   :  { %v486_v20 = vld [vmem:[#allocation2 + $0x940] sm:$0xff]  ;;  %2656 = vmatmul.mubr.bf16.vlgmr.msra.gmra.mxu0 %v7908_v12  ;;  %2699 = vmatmul.mubr.bf16.vlgmr.msra.gmra.mxu1 %v6999_v15  ;;  %v191_v15 = vld [vmem:[#allocation2 + $0x8] sm:$0xff] }
  0xd1   :  { %v490_v21 = vld [vmem:[#allocation2 + $0x960] sm:$0xff]  ;;  %2710 = vmatpush1.bf16.msra.mxu0 %v6468_v16  ;;  %2767 = vmatpush1.bf16.msra.mxu1 %v6540_v17  ;;  %v195_v16 = vld [vmem:[#allocation2 + $0x28] sm:$0xff] }
  0xd2   :  { %2711 = vmatprep.subr.bf16.mxu0 %v6461_v18  ;;  %v6453_v24 = vcombine.high %v486_v20, %v490_v21  ;;  %2784 = vmatprep.mubr.bf16.mxu1 %v7781_v26  ;;  %v478_v29 = vld [vmem:[#allocation2 + $0x900] sm:$0xff]  ;;  %v6452_v31 = vcombine.low %v486_v20, %v490_v21  ;;  %v6166_v18 = vcombine.low %v199_v6, %v203_v7  ;;  %v375_v7 = vld [vmem:[#allocation2 + $0x5c8] sm:$0xff] }
  0xd3   :  { %2795 = vmatprep.subr.bf16.mxu1 %v6215_v19  ;;  %v482_v30 = vld [vmem:[#allocation2 + $0x920] sm:$0xff]  ;;  %2741 = vmatprep.mubr.bf16.mxu0 %v7917_v22  ;;  %v6158_v28 = vcombine.low %v191_v15, %v195_v16 }
  0xd4   :  { %v6445_v33 = vcombine.high %v478_v29, %v482_v30  ;;  %v470_v37 = vld [vmem:[#allocation2 + $0x8c0] sm:$0xff]  ;;  %v6444_v39 = vcombine.low %v478_v29, %v482_v30 }
  0xd5   :  { %2712 = vmatpush1.bf16.msra.mxu0 %v6460_v23  ;;  %v474_v38 = vld [vmem:[#allocation2 + $0x8e0] sm:$0xff]  ;;  %v6159_v23 = vcombine.high %v191_v15, %v195_v16  ;;  %v7929_v15 = vld [vmem:[%s8146_s0 + $0x10] ss:$28 sps:$4 sm:$0xff]  }
  0xd6   :  { %2713 = vmatprep.subr.bf16.mxu0 %v6453_v24  ;;  %v6437_v41 = vcombine.high %v470_v37, %v474_v38  ;;  %v462_v44 = vld [vmem:[#allocation2 + $0x880] sm:$0xff]  ;;  %v6436_v47 = vcombine.low %v470_v37, %v474_v38  ;;  %v311_v24 = vld [vmem:[#allocation2 + $0x3c8] sm:$0xff] }
  0xd7   :  { %v466_v45 = vld [vmem:[#allocation2 + $0x8a0] sm:$0xff] }
  0xd8   :  { %6548 = vmatmul.mubr.msk.bf16.vlgmr.msra.gmra.mxu1 %vm2619_vm0, %v7000_v27  ;;  %v454_v48 = vld [vmem:[#allocation2 + $0x840] sm:$0xff]  ;;  %v6429_v51 = vcombine.high %v462_v44, %v466_v45  ;;  %v6428_v55 = vcombine.low %v462_v44, %v466_v45 }
  0xd9   :  { %2714 = vmatpush1.bf16.msra.mxu0 %v6452_v31  ;;  %2796 = vmatpush1.bf16.msra.mxu1 %v6214_v32  ;;  %v458_v49 = vld [vmem:[#allocation2 + $0x860] sm:$0xff]  ;;  %v6279_v32 = vcombine.high %v311_v24, %v315_v25 }
  0xda   :  { %2715 = vmatprep.subr.bf16.mxu0 %v6445_v33  ;;  %2797 = vmatprep.subr.bf16.mxu1 %v6207_v36  ;;  %v6421_v58 = vcombine.high %v454_v48, %v458_v49  ;;  %v446_v60 = vld [vmem:[#allocation2 + $0x800] sm:$0xff]  ;;  %v6420_v0 = vcombine.low %v454_v48, %v458_v49  ;;  %v303_v33 = vld [vmem:[#allocation2 + $0x388] sm:$0xff]  ;;  %v6278_v36 = vcombine.low %v311_v24, %v315_v25 }
  0xdb   :  { %2827 = vmatprep.mubr.bf16.mxu1 %v7896_v56  ;;  %v450_v56 = vld [vmem:[#allocation2 + $0x820] sm:$0xff]  ;;  %v6270_v44 = vcombine.low %v303_v33, %v307_v34  ;;  %v287_v49 = vld [vmem:[#allocation2 + $0x308] sm:$0xff] }
  0xdc   :  { %v6413_v2 = vcombine.high %v446_v60, %v450_v56  ;;  %v566_v3 = vld [vmem:[#allocation2 + $0xbc0] sm:$0xff]  ;;  %v6412_v8 = vcombine.low %v446_v60, %v450_v56  ;;  %v283_v60 = vld [vmem:[#allocation2 + $0x2e8] sm:$0xff] }
  0xdd   :  { %2716 = vmatpush1.bf16.msra.mxu0 %v6444_v39  ;;  %2798 = vmatpush1.bf16.msra.mxu1 %v6206_v40  ;;  %v570_v4 = vld [vmem:[#allocation2 + $0xbe0] sm:$0xff]  ;;  %v6271_v40 = vcombine.high %v303_v33, %v307_v34 }
  0xde   :  { %2717 = vmatprep.subr.bf16.mxu0 %v6437_v41  ;;  %2799 = vmatprep.subr.bf16.mxu1 %v6199_v46  ;;  %v6533_v10 = vcombine.high %v566_v3, %v570_v4  ;;  %v558_v11 = vld [vmem:[#allocation2 + $0xb80] sm:$0xff]  ;;  %v6532_v17 = vcombine.low %v566_v3, %v570_v4  ;;  %v295_v41 = vld [vmem:[#allocation2 + $0x348] sm:$0xff] }
  0xdf   :  { %v562_v13 = vld [vmem:[#allocation2 + $0xba0] sm:$0xff]  ;;  %v6263_v48 = vcombine.high %v295_v41, %v299_v42  ;;  %v275_v3 = vld [vmem:[#allocation2 + $0x2a8] sm:$0xff] }
  0xe0   :  { %v6525_v19 = vcombine.high %v558_v11, %v562_v13  ;;  %v550_v20 = vld [vmem:[#allocation2 + $0xb40] sm:$0xff]  ;;  %v6524_v27 = vcombine.low %v558_v11, %v562_v13  ;;  %v267_v11 = vld [vmem:[#allocation2 + $0x268] sm:$0xff] }
  0xe1   :  { %2718 = vmatpush1.bf16.msra.mxu0 %v6436_v47  ;;  %2800 = vmatpush1.bf16.msra.mxu1 %v6198_v50  ;;  %v554_v21 = vld [vmem:[#allocation2 + $0xb60] sm:$0xff]  ;;  %v291_v50 = vld [vmem:[#allocation2 + $0x328] sm:$0xff] }
  0xe2   :  { %2719 = vmatprep.subr.bf16.mxu0 %v6429_v51  ;;  %2801 = vmatprep.subr.bf16.mxu1 %v6191_v52  ;;  %v6517_v29 = vcombine.high %v550_v20, %v554_v21  ;;  %v542_v30 = vld [vmem:[#allocation2 + $0xb00] sm:$0xff]  ;;  %v6516_v35 = vcombine.low %v550_v20, %v554_v21  ;;  %v6262_v52 = vcombine.low %v295_v41, %v299_v42  ;;  %v255_v20 = vld [vmem:[#allocation2 + $0x208] sm:$0xff] }
  0xe3   :  { %v546_v31 = vld [vmem:[#allocation2 + $0xb20] sm:$0xff]  ;;  %v259_v21 = vld [vmem:[#allocation2 + $0x228] sm:$0xff] }
  0xe4   :  { %v6509_v37 = vcombine.high %v542_v30, %v546_v31  ;;  %v534_v38 = vld [vmem:[#allocation2 + $0xac0] sm:$0xff]  ;;  %v6508_v43 = vcombine.low %v542_v30, %v546_v31  ;;  %v503_v30 = vld [vmem:[#allocation2 + $0x9c8] sm:$0xff]  ;;  %v6222_v33 = vcombine.low %v255_v20, %v259_v21 }
  0xe5   :  { %2720 = vmatpush1.bf16.msra.mxu0 %v6428_v55  ;;  %2802 = vmatpush1.bf16.msra.mxu1 %v6190_v57  ;;  %v538_v39 = vld [vmem:[#allocation2 + $0xae0] sm:$0xff]  ;;  %v6255_v57 = vcombine.high %v287_v49, %v291_v50  ;;  %v507_v31 = vld [vmem:[#allocation2 + $0x9e8] sm:$0xff] }
  0xe6   :  { %2721 = vmatprep.subr.bf16.mxu0 %v6421_v58  ;;  %2803 = vmatprep.subr.bf16.mxu1 %v6183_v61  ;;  %v6501_v45 = vcombine.high %v534_v38, %v538_v39  ;;  %v526_v46 = vld [vmem:[#allocation2 + $0xa80] sm:$0xff]  ;;  %v6500_v51 = vcombine.low %v534_v38, %v538_v39  ;;  %v279_v58 = vld [vmem:[#allocation2 + $0x2c8] sm:$0xff]  ;;  %v6254_v61 = vcombine.low %v287_v49, %v291_v50 }
  0xe7   :  { %v530_v47 = vld [vmem:[#allocation2 + $0xaa0] sm:$0xff]  ;;  %v495_v38 = vld [vmem:[#allocation2 + $0x988] sm:$0xff]  ;;  %v6470_v41 = vcombine.low %v503_v30, %v507_v31 }
  0xe8   :  { %v6493_v53 = vcombine.high %v526_v46, %v530_v47  ;;  %v518_v54 = vld [vmem:[#allocation2 + $0xa40] sm:$0xff]  ;;  %v6492_v56 = vcombine.low %v526_v46, %v530_v47  ;;  %v499_v39 = vld [vmem:[#allocation2 + $0x9a8] sm:$0xff] }
  0xe9   :  { %2722 = vmatpush1.bf16.msra.mxu0 %v6420_v0  ;;  %2804 = vmatpush1.bf16.msra.mxu1 %v6182_v1  ;;  %v522_v55 = vld [vmem:[#allocation2 + $0xa60] sm:$0xff]  ;;  %v6247_v1 = vcombine.high %v279_v58, %v283_v60  ;;  %v491_v46 = vld [vmem:[#allocation2 + $0x968] sm:$0xff] }
  0xea   :  { %2723 = vmatprep.subr.bf16.mxu0 %v6413_v2  ;;  %2805 = vmatprep.subr.bf16.mxu1 %v6175_v5  ;;  %v6485_v62 = vcombine.high %v518_v54, %v522_v55  ;;  %v510_v63 = vld [vmem:[#allocation2 + $0xa00] sm:$0xff]  ;;  %v271_v2 = vld [vmem:[#allocation2 + $0x288] sm:$0xff]  ;;  %v6484_v4 = vcombine.low %v518_v54, %v522_v55  ;;  %v6246_v5 = vcombine.low %v279_v58, %v283_v60 }
  0xeb   :  { %v514_v0 = vld [vmem:[#allocation2 + $0xa20] sm:$0xff]  ;;  %v335_v50 = vld [vmem:[#allocation2 + $0x488] sm:$0xff] }
  0xec   :  { %v6477_v6 = vcombine.high %v510_v63, %v514_v0  ;;  %v6476_v13 = vcombine.low %v510_v63, %v514_v0  ;;  %v483_v54 = vld [vmem:[#allocation2 + $0x928] sm:$0xff] }
  0xed   :  { %2724 = vmatpush1.bf16.msra.mxu0 %v6412_v8  ;;  %2806 = vmatpush1.bf16.msra.mxu1 %v6174_v9  ;;  %v379_v8 = vld [vmem:[#allocation2 + $0x5e8] sm:$0xff]  ;;  %v6239_v9 = vcombine.high %v271_v2, %v275_v3 }
  0xee   :  { %2725 = vmatprep.subr.bf16.mxu0 %v6533_v10  ;;  %2807 = vmatprep.subr.bf16.mxu1 %v6167_v14  ;;  %v263_v10 = vld [vmem:[#allocation2 + $0x248] sm:$0xff]  ;;  %v6238_v14 = vcombine.low %v271_v2, %v275_v3  ;;  %v6343_v16 = vcombine.high %v375_v7, %v379_v8 }
  0xef   :  { %v6230_v24 = vcombine.low %v263_v10, %v267_v11  ;;  %v331_v58 = vld [vmem:[#allocation2 + $0x468] sm:$0xff] }
  0xf0   :  { %v467_v2 = vld [vmem:[#allocation2 + $0x8a8] sm:$0xff] }
  0xf1   :  { %2726 = vmatpush2.bf16.msra.mxu0 %v6532_v17  ;;  %2808 = vmatpush1.bf16.msra.mxu1 %v6166_v18  ;;  %v367_v17 = vld [vmem:[#allocation2 + $0x588] sm:$0xff] }
  0xf2   :  { %2727 = vmatprep.subr.bf16.mxu0 %v6525_v19  ;;  %2809 = vmatprep.subr.bf16.mxu1 %v6159_v23  ;;  %v371_v18 = vld [vmem:[#allocation2 + $0x5a8] sm:$0xff]  ;;  %v6231_v19 = vcombine.high %v263_v10, %v267_v11  ;;  %v6342_v23 = vcombine.low %v375_v7, %v379_v8 }
  0xf3   :  { %v6335_v25 = vcombine.high %v367_v17, %v371_v18  ;;  %v319_v3 = vld [vmem:[#allocation2 + $0x408] sm:$0xff] }
  0xf4   :  { %v439_v7 = vld [vmem:[#allocation2 + $0x7c8] sm:$0xff] }
  0xf5   :  { %2728 = vmatpush2.bf16.msra.mxu0 %v6524_v27  ;;  %2810 = vmatpush1.bf16.msra.mxu1 %v6158_v28  ;;  %v359_v27 = vld [vmem:[#allocation2 + $0x548] sm:$0xff] }
  0xf6   :  { %2729 = vmatprep.subr.bf16.mxu0 %v6517_v29  ;;  %2811 = vmatprep.subr.bf16.mxu1 %v6279_v32  ;;  %v363_v28 = vld [vmem:[#allocation2 + $0x568] sm:$0xff]  ;;  %v6223_v29 = vcombine.high %v255_v20, %v259_v21  ;;  %v6334_v32 = vcombine.low %v367_v17, %v371_v18 }
  0xf7   :  { %v6327_v34 = vcombine.high %v359_v27, %v363_v28  ;;  %v443_v8 = vld [vmem:[#allocation2 + $0x7e8] sm:$0xff] }
  0xf8   :  { %v455_v11 = vld [vmem:[#allocation2 + $0x848] sm:$0xff]  ;;  %v6407_v18 = vcombine.high %v439_v7, %v443_v8 }
  0xf9   :  { %2730 = vmatpush2.bf16.msra.mxu0 %v6516_v35  ;;  %2812 = vmatpush2.bf16.msra.mxu1 %v6278_v36  ;;  %v351_v35 = vld [vmem:[#allocation2 + $0x508] sm:$0xff] }
  0xfa   :  { %2731 = vmatprep.subr.bf16.mxu0 %v6509_v37  ;;  %2813 = vmatprep.subr.bf16.mxu1 %v6271_v40  ;;  %v355_v36 = vld [vmem:[#allocation2 + $0x528] sm:$0xff]  ;;  %v6471_v37 = vcombine.high %v503_v30, %v507_v31  ;;  %v6326_v40 = vcombine.low %v359_v27, %v363_v28 }
  0xfb   :  { %v6319_v42 = vcombine.high %v351_v35, %v355_v36  ;;  %v6318_v47 = vcombine.low %v351_v35, %v355_v36  ;;  %v451_v20 = vld [vmem:[#allocation2 + $0x828] sm:$0xff] }
  0xfc   :  { %v431_v21 = vld [vmem:[#allocation2 + $0x788] sm:$0xff] }
  0xfd   :  { %2732 = vmatpush2.bf16.msra.mxu0 %v6508_v43  ;;  %2814 = vmatpush2.bf16.msra.mxu1 %v6270_v44  ;;  %v343_v43 = vld [vmem:[#allocation2 + $0x4c8] sm:$0xff] }
  0xfe   :  { %2733 = vmatprep.subr.bf16.mxu0 %v6501_v45  ;;  %2815 = vmatprep.subr.bf16.mxu1 %v6263_v48  ;;  %v347_v44 = vld [vmem:[#allocation2 + $0x4e8] sm:$0xff]  ;;  %v6462_v48 = vcombine.low %v495_v38, %v499_v39 }
  0xff   :  { %v487_v45 = vld [vmem:[#allocation2 + $0x948] sm:$0xff]  ;;  %v6311_v49 = vcombine.high %v343_v43, %v347_v44  ;;  %v6310_v55 = vcombine.low %v343_v43, %v347_v44 }
 0x100   :  { %v571_v30 = vld [vmem:[#allocation2 + $0xbe8] sm:$0xff] }
 0x101   :  { %2734 = vmatpush2.bf16.msra.mxu0 %v6500_v51  ;;  %2816 = vmatpush2.bf16.msra.mxu1 %v6262_v52  ;;  %v339_v51 = vld [vmem:[#allocation2 + $0x4a8] sm:$0xff]  ;;  %v6455_v52 = vcombine.high %v487_v45, %v491_v46 }
 0x102   :  { %2735 = vmatprep.subr.bf16.mxu0 %v6493_v53  ;;  %2817 = vmatprep.subr.bf16.mxu1 %v6255_v57  ;;  %v479_v53 = vld [vmem:[#allocation2 + $0x908] sm:$0xff]  ;;  %v6303_v60 = vcombine.high %v335_v50, %v339_v51  ;;  %v6302_v63 = vcombine.low %v335_v50, %v339_v51 }
 0x103   :  { %v327_v57 = vld [vmem:[#allocation2 + $0x448] sm:$0xff]  ;;  %v6446_v0 = vcombine.low %v479_v53, %v483_v54 }
 0x104   :  { %v423_v31 = vld [vmem:[#allocation2 + $0x748] sm:$0xff] }
 0x105   :  { %2736 = vmatpush2.bf16.msra.mxu0 %v6492_v56  ;;  %2818 = vmatpush2.bf16.msra.mxu1 %v6254_v61  ;;  %v6447_v56 = vcombine.high %v479_v53, %v483_v54  ;;  %v471_v61 = vld [vmem:[#allocation2 + $0x8c8] sm:$0xff] }
 0x106   :  { %2737 = vmatprep.subr.bf16.mxu0 %v6485_v62  ;;  %2819 = vmatprep.subr.bf16.mxu1 %v6247_v1  ;;  %v475_v62 = vld [vmem:[#allocation2 + $0x8e8] sm:$0xff] }
 0x107   :  { %v463_v1 = vld [vmem:[#allocation2 + $0x888] sm:$0xff] }
 0x108   :  { %v6430_v17 = vcombine.low %v463_v1, %v467_v2  ;;  %v547_v53 = vld [vmem:[#allocation2 + $0xb28] sm:$0xff] }
 0x109   :  { %2738 = vmatpush2.bf16.msra.mxu0 %v6484_v4  ;;  %2820 = vmatpush2.bf16.msra.mxu1 %v6246_v5  ;;  %v323_v4 = vld [vmem:[#allocation2 + $0x428] sm:$0xff]  ;;  %v6439_v5 = vcombine.high %v471_v61, %v475_v62 }
 0x10a   :  { %2739 = vmatprep.subr.bf16.mxu0 %v6477_v6  ;;  %2821 = vmatprep.subr.bf16.mxu1 %v6239_v9  ;;  %v6294_v6 = vcombine.low %v327_v57, %v331_v58  ;;  %v6438_v9 = vcombine.low %v471_v61, %v475_v62  ;;  %v6287_v10 = vcombine.high %v319_v3, %v323_v4  ;;  %v399_v54 = vld [vmem:[#allocation2 + $0x688] sm:$0xff] }
 0x10b   :  { %v539_v61 = vld [vmem:[#allocation2 + $0xae8] sm:$0xff] }
 0x10c   :  { %v391_v62 = vld [vmem:[#allocation2 + $0x648] sm:$0xff] }
 0x10d   :  { %2740 = vmatpush2.bf16.msra.mxu0 %v6476_v13  ;;  %2822 = vmatpush2.bf16.msra.mxu1 %v6238_v14  ;;  %v459_v13 = vld [vmem:[#allocation2 + $0x868] sm:$0xff]  ;;  %v6431_v14 = vcombine.high %v463_v1, %v467_v2 }
 0x10e   :  { %2838 = vmatprep.subr.bf16.mxu0 %v6343_v16  ;;  %2823 = vmatprep.subr.bf16.mxu1 %v6231_v19  ;;  %v6286_v16 = vcombine.low %v319_v3, %v323_v4  ;;  %v447_v19 = vld [vmem:[#allocation2 + $0x808] sm:$0xff]  ;;  %v6422_v27 = vcombine.low %v455_v11, %v459_v13 }
 0x10f   :  { %v6414_v35 = vcombine.low %v447_v19, %v451_v20  ;;  %v527_v3 = vld [vmem:[#allocation2 + $0xa88] sm:$0xff] }
 0x110   :  { %2742 = vmatmul.mubr.bf16.vlgmr.msra.gmra.mxu0 %v7929_v15  ;;  %v531_v4 = vld [vmem:[#allocation2 + $0xaa8] sm:$0xff] }
 0x111   :  { %2839 = vmatpush1.bf16.msra.mxu0 %v6342_v23  ;;  %2870 = vmatprep.mubr.bf16.mxu0 %v7901_v59  ;;  %v6463_v59 = vcombine.high %v495_v38, %v499_v39  ;;  %v435_v23 = vld [vmem:[#allocation2 + $0x7a8] sm:$0xff] }
 0x112   :  { %2824 = vmatpush2.bf16.msra.mxu1 %v6230_v24  ;;  %2840 = vmatprep.subr.bf16.mxu0 %v6335_v25  ;;  %v6423_v24 = vcombine.high %v455_v11, %v459_v13  ;;  %v6406_v25 = vcombine.low %v439_v7, %v443_v8  ;;  %v6399_v28 = vcombine.high %v431_v21, %v435_v23  ;;  %v563_v38 = vld [vmem:[#allocation2 + $0xba8] sm:$0xff] }
 0x113   :  { %2825 = vmatprep.subr.bf16.mxu1 %v6223_v29  ;;  %v567_v29 = vld [vmem:[#allocation2 + $0xbc8] sm:$0xff] }
 0x114   :  { %v415_v39 = vld [vmem:[#allocation2 + $0x708] sm:$0xff]  ;;  %v6534_v43 = vcombine.low %v567_v29, %v571_v30 }
 0x115   :  { %2841 = vmatpush1.bf16.msra.mxu0 %v6334_v32  ;;  %v427_v32 = vld [vmem:[#allocation2 + $0x768] sm:$0xff] }
 0x116   :  { %2826 = vmatpush2.bf16.msra.mxu1 %v6222_v33  ;;  %2842 = vmatprep.subr.bf16.mxu0 %v6327_v34  ;;  %v6415_v33 = vcombine.high %v447_v19, %v451_v20  ;;  %v6398_v34 = vcombine.low %v431_v21, %v435_v23  ;;  %v6391_v36 = vcombine.high %v423_v31, %v427_v32  ;;  %v519_v11 = vld [vmem:[#allocation2 + $0xa48] sm:$0xff] }
 0x117   :  { %2881 = vmatprep.subr.bf16.mxu1 %v6471_v37  ;;  %v559_v37 = vld [vmem:[#allocation2 + $0xb88] sm:$0xff]  ;;  %v6494_v19 = vcombine.low %v527_v3, %v531_v4 }
 0x118   :  { %v6526_v50 = vcombine.low %v559_v37, %v563_v38  ;;  %v523_v13 = vld [vmem:[#allocation2 + $0xa68] sm:$0xff] }
 0x119   :  { %2828 = vmatmul.mubr.bf16.vlgmr.msra.gmra.mxu1 %v7908_v12  ;;  %2843 = vmatpush1.bf16.msra.mxu0 %v6326_v40  ;;  %v6454_v12 = vcombine.low %v487_v45, %v491_v46  ;;  %v419_v40 = vld [vmem:[#allocation2 + $0x728] sm:$0xff] }
 0x11a   :  { %2882 = vmatpush1.bf16.msra.mxu1 %v6470_v41  ;;  %2844 = vmatprep.subr.bf16.mxu0 %v6319_v42  ;;  %v6535_v41 = vcombine.high %v567_v29, %v571_v30  ;;  %v6390_v42 = vcombine.low %v423_v31, %v427_v32  ;;  %v6383_v44 = vcombine.high %v415_v39, %v419_v40  ;;  %v555_v45 = vld [vmem:[#allocation2 + $0xb68] sm:$0xff]  ;;  %v232_v29 = vld [vmem:[#allocation2 + $0x150] sm:$0xff] }
 0x11b   :  { %2883 = vmatprep.subr.bf16.mxu1 %v6463_v59  ;;  %2913 = vmatprep.mubr.bf16.mxu1 %v7917_v22  ;;  %v6295_v22 = vcombine.high %v327_v57, %v331_v58  ;;  %v551_v59 = vld [vmem:[#allocation2 + $0xb48] sm:$0xff]  ;;  %v236_v30 = vld [vmem:[#allocation2 + $0x170] sm:$0xff]  ;;  %v6486_v31 = vcombine.low %v519_v11, %v523_v13 }
 0x11c   :  { %v407_v46 = vld [vmem:[#allocation2 + $0x6c8] sm:$0xff]  ;;  %v6519_v57 = vcombine.high %v551_v59, %v555_v45 }
 0x11d   :  { %2845 = vmatpush1.bf16.msra.mxu0 %v6318_v47  ;;  %v411_v47 = vld [vmem:[#allocation2 + $0x6e8] sm:$0xff] }
 0x11e   :  { %2884 = vmatpush1.bf16.msra.mxu1 %v6462_v48  ;;  %2846 = vmatprep.subr.bf16.mxu0 %v6311_v49  ;;  %v6527_v48 = vcombine.high %v559_v37, %v563_v38  ;;  %v6382_v49 = vcombine.low %v415_v39, %v419_v40  ;;  %v6375_v51 = vcombine.high %v407_v46, %v411_v47  ;;  %v511_v21 = vld [vmem:[#allocation2 + $0xa08] sm:$0xff]  ;;  %v224_v38 = vld [vmem:[#allocation2 + $0x110] sm:$0xff]  ;;  %v7944_v40 = vld [vmem:[%s8146_s0 + $0x4] ss:$28 sps:$4 sm:$0xff]  }
 0x11f   :  { %2885 = vmatprep.subr.bf16.mxu1 %v6455_v52  ;;  %v543_v52 = vld [vmem:[#allocation2 + $0xb08] sm:$0xff]  ;;  %v6374_v58 = vcombine.low %v407_v46, %v411_v47  ;;  %v228_v39 = vld [vmem:[#allocation2 + $0x130] sm:$0xff] }
 0x120   :  { %v6510_v1 = vcombine.low %v543_v52, %v547_v53  ;;  %v515_v23 = vld [vmem:[#allocation2 + $0xa28] sm:$0xff]  ;;  %v6193_v47 = vcombine.high %v224_v38, %v228_v39 }
 0x121   :  { %2847 = vmatpush1.bf16.msra.mxu0 %v6310_v55  ;;  %v403_v55 = vld [vmem:[#allocation2 + $0x6a8] sm:$0xff] }
 0x122   :  { %2886 = vmatpush1.bf16.msra.mxu1 %v6454_v12  ;;  %2848 = vmatprep.subr.bf16.mxu0 %v6303_v60  ;;  %v6518_v12 = vcombine.low %v551_v59, %v555_v45  ;;  %v6367_v60 = vcombine.high %v399_v54, %v403_v55  ;;  %v6200_v45 = vcombine.low %v232_v29, %v236_v30 }
 0x123   :  { %2887 = vmatprep.subr.bf16.mxu1 %v6447_v56  ;;  %v535_v56 = vld [vmem:[#allocation2 + $0xac8] sm:$0xff] }
 0x124   :  { %v6503_v7 = vcombine.high %v535_v56, %v539_v61 }
 0x125   :  { %2849 = vmatpush1.bf16.msra.mxu0 %v6302_v63  ;;  %v395_v63 = vld [vmem:[#allocation2 + $0x668] sm:$0xff] }
 0x126   :  { %2888 = vmatpush1.bf16.msra.mxu1 %v6446_v0  ;;  %2850 = vmatprep.subr.bf16.mxu0 %v6295_v22  ;;  %v6511_v0 = vcombine.high %v543_v52, %v547_v53  ;;  %v6366_v22 = vcombine.low %v399_v54, %v403_v55  ;;  %v6359_v2 = vcombine.high %v391_v62, %v395_v63  ;;  %v368_v53 = vld [vmem:[#allocation2 + $0x590] sm:$0xff] }
 0x127   :  { %2889 = vmatprep.subr.bf16.mxu1 %v6439_v5  ;;  %v383_v5 = vld [vmem:[#allocation2 + $0x608] sm:$0xff]  ;;  %v6358_v8 = vcombine.low %v391_v62, %v395_v63  ;;  %v372_v54 = vld [vmem:[#allocation2 + $0x5b0] sm:$0xff] }
 0x128   :  { %v208_v55 = vld [vmem:[#allocation2 + $0x90] sm:$0xff]  ;;  %v6337_v63 = vcombine.high %v368_v53, %v372_v54 }
 0x129   :  { %2851 = vmatpush1.bf16.msra.mxu0 %v6294_v6  ;;  %v387_v6 = vld [vmem:[#allocation2 + $0x628] sm:$0xff]  ;;  %v204_v62 = vld [vmem:[#allocation2 + $0x70] sm:$0xff] }
 0x12a   :  { %2890 = vmatpush1.bf16.msra.mxu1 %v6438_v9  ;;  %2852 = vmatprep.subr.bf16.mxu0 %v6287_v10  ;;  %v6502_v9 = vcombine.low %v535_v56, %v539_v61  ;;  %v6351_v10 = vcombine.high %v383_v5, %v387_v6  ;;  %v360_v56 = vld [vmem:[#allocation2 + $0x550] sm:$0xff] }
 0x12b   :  { %2891 = vmatprep.subr.bf16.mxu1 %v6431_v14  ;;  %v248_v14 = vld [vmem:[#allocation2 + $0x1d0] sm:$0xff] }
 0x12c   :  { %v364_v61 = vld [vmem:[#allocation2 + $0x570] sm:$0xff] }
 0x12d   :  { %2853 = vmatpush1.bf16.msra.mxu0 %v6286_v16  ;;  %v252_v16 = vld [vmem:[#allocation2 + $0x1f0] sm:$0xff] }
 0x12e   :  { %2892 = vmatpush1.bf16.msra.mxu1 %v6430_v17  ;;  %2854 = vmatprep.subr.bf16.mxu0 %v6407_v18  ;;  %v6495_v17 = vcombine.high %v527_v3, %v531_v4  ;;  %v6350_v18 = vcombine.low %v383_v5, %v387_v6  ;;  %v6217_v20 = vcombine.high %v248_v14, %v252_v16  ;;  %v352_v3 = vld [vmem:[#allocation2 + $0x510] sm:$0xff] }
 0x12f   :  { %2893 = vmatprep.subr.bf16.mxu1 %v6423_v24  ;;  %v240_v24 = vld [vmem:[#allocation2 + $0x190] sm:$0xff] }
 0x130   :  { %v356_v4 = vld [vmem:[#allocation2 + $0x530] sm:$0xff] }
 0x131   :  { %2855 = vmatpush2.bf16.msra.mxu0 %v6406_v25  ;;  %v244_v25 = vld [vmem:[#allocation2 + $0x1b0] sm:$0xff] }
 0x132   :  { %2894 = vmatpush1.bf16.msra.mxu1 %v6422_v27  ;;  %2856 = vmatprep.subr.bf16.mxu0 %v6399_v28  ;;  %v6487_v27 = vcombine.high %v519_v11, %v523_v13  ;;  %v6216_v28 = vcombine.low %v248_v14, %v252_v16  ;;  %v6209_v32 = vcombine.high %v240_v24, %v244_v25  ;;  %v192_v5 = vld [vmem:[#allocation2 + $0x10] sm:$0xff] }
 0x133   :  { %2895 = vmatprep.subr.bf16.mxu1 %v6415_v33  ;;  %v575_v33 = vld [vmem:[#allocation2 + $0xc08] sm:$0xff]  ;;  %v6208_v37 = vcombine.low %v240_v24, %v244_v25  ;;  %v196_v6 = vld [vmem:[#allocation2 + $0x30] sm:$0xff] }
 0x134   :  { %v6161_v11 = vcombine.high %v192_v5, %v196_v6  ;;  %v344_v13 = vld [vmem:[#allocation2 + $0x4d0] sm:$0xff] }
 0x135   :  { %2857 = vmatpush2.bf16.msra.mxu0 %v6398_v34  ;;  %v579_v34 = vld [vmem:[#allocation2 + $0xc28] sm:$0xff]  ;;  %v348_v14 = vld [vmem:[#allocation2 + $0x4f0] sm:$0xff] }
 0x136   :  { %2896 = vmatpush1.bf16.msra.mxu1 %v6414_v35  ;;  %2858 = vmatprep.subr.bf16.mxu0 %v6391_v36  ;;  %v6479_v35 = vcombine.high %v511_v21, %v515_v23  ;;  %v7938_v36 = vld [vmem:[%s8146_s0 + $0x8] ss:$28 sps:$4 sm:$0xff]   ;;  %v6543_v59 = vcombine.high %v575_v33, %v579_v34  ;;  %v6542_v46 = vcombine.low %v575_v33, %v579_v34  ;;  %v312_v16 = vld [vmem:[#allocation2 + $0x3d0] sm:$0xff] }
 0x137   :  { %2897 = vmatprep.subr.bf16.mxu1 %v6535_v41  ;;  %v6478_v41 = vcombine.low %v511_v21, %v515_v23  ;;  %v336_v23 = vld [vmem:[#allocation2 + $0x490] sm:$0xff] }
 0x138   :  { %v340_v24 = vld [vmem:[#allocation2 + $0x4b0] sm:$0xff] }
 0x139   :  { %2859 = vmatpush2.bf16.msra.mxu0 %v6390_v42  ;;  %v6201_v42 = vcombine.high %v232_v29, %v236_v30  ;;  %v304_v25 = vld [vmem:[#allocation2 + $0x390] sm:$0xff]  ;;  %v6312_v30 = vcombine.low %v344_v13, %v348_v14 }
 0x13a   :  { %2898 = vmatpush2.bf16.msra.mxu1 %v6534_v43  ;;  %2860 = vmatprep.subr.bf16.mxu0 %v6383_v44  ;;  %v376_v43 = vld [vmem:[#allocation2 + $0x5d0] sm:$0xff] }
 0x13b   :  { %2899 = vmatprep.subr.bf16.mxu1 %v6527_v48  ;;  %v380_v44 = vld [vmem:[#allocation2 + $0x5f0] sm:$0xff] }
 0x13c   :  { %v216_v48 = vld [vmem:[#allocation2 + $0xd0] sm:$0xff] }
 0x13d   :  { %2861 = vmatpush2.bf16.msra.mxu0 %v6382_v49  ;;  %v220_v49 = vld [vmem:[#allocation2 + $0xf0] sm:$0xff] }
 0x13e   :  { %2900 = vmatpush2.bf16.msra.mxu1 %v6526_v50  ;;  %2862 = vmatprep.subr.bf16.mxu0 %v6375_v51  ;;  %v6345_v50 = vcombine.high %v376_v43, %v380_v44  ;;  %v6192_v51 = vcombine.low %v224_v38, %v228_v39  ;;  %v6185_v52 = vcombine.high %v216_v48, %v220_v49  ;;  %v332_v33 = vld [vmem:[#allocation2 + $0x470] sm:$0xff] }
 0x13f   :  { %2901 = vmatprep.subr.bf16.mxu1 %v6519_v57  ;;  %v212_v57 = vld [vmem:[#allocation2 + $0xb0] sm:$0xff]  ;;  %v6304_v39 = vcombine.low %v336_v23, %v340_v24 }
 0x140   :  { %v296_v34 = vld [vmem:[#allocation2 + $0x350] sm:$0xff] }
 0x141   :  { %2863 = vmatpush2.bf16.msra.mxu0 %v6374_v58  ;;  %v6184_v58 = vcombine.low %v216_v48, %v220_v49  ;;  %v440_v49 = vld [vmem:[#allocation2 + $0x7d0] sm:$0xff] }
 0x142   :  { %2902 = vmatpush2.bf16.msra.mxu1 %v6518_v12  ;;  %2864 = vmatprep.subr.bf16.mxu0 %v6367_v60  ;;  %v6344_v12 = vcombine.low %v376_v43, %v380_v44  ;;  %v6177_v60 = vcombine.high %v208_v55, %v212_v57  ;;  %v324_v43 = vld [vmem:[#allocation2 + $0x430] sm:$0xff] }
 0x143   :  { %2903 = vmatprep.subr.bf16.mxu1 %v6511_v0  ;;  %v7952_v0 = vld [vmem:[%s8146_s0 + $0x18] ss:$28 sps:$4 sm:$0xff]  }
 0x144   :  { %v288_v44 = vld [vmem:[#allocation2 + $0x310] sm:$0xff] }
 0x145   :  { %2865 = vmatpush2.bf16.msra.mxu0 %v6366_v22  ;;  %v6176_v22 = vcombine.low %v208_v55, %v212_v57 }
 0x146   :  { %2904 = vmatpush2.bf16.msra.mxu1 %v6510_v1  ;;  %2866 = vmatprep.subr.bf16.mxu0 %v6359_v2  ;;  %v6336_v1 = vcombine.low %v368_v53, %v372_v54 }
 0x147   :  { %2905 = vmatprep.subr.bf16.mxu1 %v6503_v7  ;;  %v6329_v7 = vcombine.high %v360_v56, %v364_v61 }
 0x149   :  { %2867 = vmatpush2.bf16.msra.mxu0 %v6358_v8  ;;  %v7959_v8 = vld [vmem:[%s8146_s0 + $0xc] ss:$28 sps:$4 sm:$0xff]  }
 0x14a   :  { %2906 = vmatpush2.bf16.msra.mxu1 %v6502_v9  ;;  %2868 = vmatprep.subr.bf16.mxu0 %v6351_v10  ;;  %v6328_v10 = vcombine.low %v360_v56, %v364_v61  ;;  %v276_v56 = vld [vmem:[#allocation2 + $0x2b0] sm:$0xff] }
 0x14b   :  { %2907 = vmatprep.subr.bf16.mxu1 %v6495_v17  ;;  %v316_v17 = vld [vmem:[#allocation2 + $0x3f0] sm:$0xff] }
 0x14c   :  { %v6281_v21 = vcombine.high %v312_v16, %v316_v17  ;;  %v6280_v29 = vcombine.low %v312_v16, %v316_v17 }
 0x14d   :  { %2869 = vmatpush2.bf16.msra.mxu0 %v6350_v18  ;;  %v6321_v18 = vcombine.high %v352_v3, %v356_v4 }
 0x14e   :  { %2908 = vmatpush2.bf16.msra.mxu1 %v6494_v19  ;;  %2967 = vmatprep.subr.bf16.mxu0 %v6217_v20  ;;  %v6160_v19 = vcombine.low %v192_v5, %v196_v6  ;;  %v6320_v20 = vcombine.low %v352_v3, %v356_v4  ;;  %v268_v3 = vld [vmem:[#allocation2 + $0x270] sm:$0xff]  ;;  %v584_v6 = vlaneseq }
 0x14f   :  { %2909 = vmatprep.subr.bf16.mxu1 %v6487_v27  ;;  %v308_v27 = vld [vmem:[#allocation2 + $0x3b0] sm:$0xff] }
 0x150   :  { %2871 = vmatmul.mubr.bf16.vlgmr.msra.gmra.mxu0 %v7938_v36  ;;  %v6272_v38 = vcombine.low %v304_v25, %v308_v27 }
 0x151   :  { %2968 = vmatpush1.bf16.msra.mxu0 %v6216_v28  ;;  %2999 = vmatprep.mubr.bf16.mxu0 %v7944_v40  ;;  %v6313_v28 = vcombine.high %v344_v13, %v348_v14  ;;  %v256_v13 = vld [vmem:[#allocation2 + $0x210] sm:$0xff] }
 0x152   :  { %2910 = vmatpush2.bf16.msra.mxu1 %v6486_v31  ;;  %2969 = vmatprep.subr.bf16.mxu0 %v6209_v32  ;;  %v6273_v31 = vcombine.high %v304_v25, %v308_v27  ;;  %v328_v32 = vld [vmem:[#allocation2 + $0x450] sm:$0xff] }
 0x153   :  { %2911 = vmatprep.subr.bf16.mxu1 %v6479_v35  ;;  %v300_v35 = vld [vmem:[#allocation2 + $0x370] sm:$0xff] }
 0x154   :  { %v260_v14 = vld [vmem:[#allocation2 + $0x230] sm:$0xff] }
 0x155   :  { %2970 = vmatpush1.bf16.msra.mxu0 %v6208_v37  ;;  %v6305_v37 = vcombine.high %v336_v23, %v340_v24  ;;  %v412_v23 = vld [vmem:[#allocation2 + $0x6f0] sm:$0xff] }
 0x156   :  { %2912 = vmatpush2.bf16.msra.mxu1 %v6478_v41  ;;  %2971 = vmatprep.subr.bf16.mxu0 %v6201_v42  ;;  %v6265_v41 = vcombine.high %v296_v34, %v300_v35  ;;  %v320_v42 = vld [vmem:[#allocation2 + $0x410] sm:$0xff] }
 0x157   :  { %2938 = vmatprep.subr.bf16.mxu1 %v6543_v59  ;;  %v292_v59 = vld [vmem:[#allocation2 + $0x330] sm:$0xff]  ;;  %v6289_v53 = vcombine.high %v320_v42, %v324_v43  ;;  %v6288_v55 = vcombine.low %v320_v42, %v324_v43 }
 0x158   :  { %v6257_v48 = vcombine.high %v288_v44, %v292_v59  ;;  %v6256_v54 = vcombine.low %v288_v44, %v292_v59  ;;  %v504_v24 = vld [vmem:[#allocation2 + $0x9d0] sm:$0xff] }
 0x159   :  { %2914 = vmatmul.mubr.bf16.vlgmr.msra.gmra.mxu1 %v7929_v15  ;;  %2972 = vmatpush1.bf16.msra.mxu0 %v6200_v45  ;;  %v200_v15 = vld [vmem:[#allocation2 + $0x50] sm:$0xff]  ;;  %v6297_v45 = vcombine.high %v328_v32, %v332_v33 }
 0x15a   :  { %2939 = vmatpush1.bf16.msra.mxu1 %v6542_v46  ;;  %2973 = vmatprep.subr.bf16.mxu0 %v6193_v47  ;;  %v6169_v2 = vcombine.high %v200_v15, %v204_v62  ;;  %v6168_v9 = vcombine.low %v200_v15, %v204_v62  ;;  %v6264_v46 = vcombine.low %v296_v34, %v300_v35  ;;  %v508_v25 = vld [vmem:[#allocation2 + $0x9f0] sm:$0xff] }
 0x15b   :  { %2956 = vmatprep.mubr.bf16.mxu1 %v7781_v26  ;;  %3010 = vmatprep.subr.bf16.mxu1 %v6345_v50  ;;  %v6296_v47 = vcombine.low %v328_v32, %v332_v33  ;;  %v444_v50 = vld [vmem:[#allocation2 + $0x7f0] sm:$0xff]  ;;  %v6473_v32 = vcombine.high %v504_v24, %v508_v25 }
 0x15c   :  { %v6409_v61 = vcombine.high %v440_v49, %v444_v50  ;;  %v6408_v62 = vcombine.low %v440_v49, %v444_v50  ;;  %v400_v33 = vld [vmem:[#allocation2 + $0x690] sm:$0xff] }
 0x15d   :  { %2974 = vmatpush1.bf16.msra.mxu0 %v6192_v51  ;;  %v280_v51 = vld [vmem:[#allocation2 + $0x2d0] sm:$0xff] }
 0x15e   :  { %2975 = vmatprep.subr.bf16.mxu0 %v6185_v52  ;;  %v284_v52 = vld [vmem:[#allocation2 + $0x2f0] sm:$0xff] }
 0x15f   :  { %v6249_v57 = vcombine.high %v280_v51, %v284_v52  ;;  %v6248_v15 = vcombine.low %v280_v51, %v284_v52  ;;  %v404_v34 = vld [vmem:[#allocation2 + $0x6b0] sm:$0xff] }
 0x160   :  { %v496_v35 = vld [vmem:[#allocation2 + $0x990] sm:$0xff]  ;;  %v6369_v44 = vcombine.high %v400_v33, %v404_v34 }
 0x161   :  { %6549 = vmatmul.mubr.msk.bf16.vlgmr.msra.gmra.mxu1 %vm2619_vm0, %v7952_v0  ;;  %2976 = vmatpush1.bf16.msra.mxu0 %v6184_v58  ;;  %v432_v58 = vld [vmem:[#allocation2 + $0x790] sm:$0xff] }
 0x162   :  { %3011 = vmatpush1.bf16.msra.mxu1 %v6344_v12  ;;  %2977 = vmatprep.subr.bf16.mxu0 %v6177_v60  ;;  %v436_v12 = vld [vmem:[#allocation2 + $0x7b0] sm:$0xff] }
 0x163   :  { %3012 = vmatprep.subr.bf16.mxu1 %v6337_v63  ;;  %3042 = vmatprep.mubr.bf16.mxu1 %v7959_v8  ;;  %v272_v60 = vld [vmem:[#allocation2 + $0x290] sm:$0xff]  ;;  %v6401_v4 = vcombine.high %v432_v58, %v436_v12 }
 0x164   :  { %v6241_v63 = vcombine.high %v272_v60, %v276_v56  ;;  %v6240_v5 = vcombine.low %v272_v60, %v276_v56  ;;  %v488_v59 = vld [vmem:[#allocation2 + $0x950] sm:$0xff] }
 0x165   :  { %2978 = vmatpush1.bf16.msra.mxu0 %v6176_v22  ;;  %v424_v22 = vld [vmem:[#allocation2 + $0x750] sm:$0xff] }
 0x166   :  { %3013 = vmatpush1.bf16.msra.mxu1 %v6336_v1  ;;  %2979 = vmatprep.subr.bf16.mxu0 %v6169_v2  ;;  %v428_v1 = vld [vmem:[#allocation2 + $0x770] sm:$0xff] }
 0x167   :  { %3014 = vmatprep.subr.bf16.mxu1 %v6329_v7  ;;  %v264_v2 = vld [vmem:[#allocation2 + $0x250] sm:$0xff]  ;;  %v6400_v7 = vcombine.low %v432_v58, %v436_v12  ;;  %v6393_v16 = vcombine.high %v424_v22, %v428_v1 }
 0x168   :  { %v6232_v17 = vcombine.low %v264_v2, %v268_v3  ;;  %v396_v49 = vld [vmem:[#allocation2 + $0x670] sm:$0xff] }
 0x169   :  { %2980 = vmatpush1.bf16.msra.mxu0 %v6168_v9  ;;  %v6233_v9 = vcombine.high %v264_v2, %v268_v3  ;;  %v480_v56 = vld [vmem:[#allocation2 + $0x910] sm:$0xff] }
 0x16a   :  { %3015 = vmatpush1.bf16.msra.mxu1 %v6328_v10  ;;  %2981 = vmatprep.subr.bf16.mxu0 %v6161_v11  ;;  %v416_v10 = vld [vmem:[#allocation2 + $0x710] sm:$0xff] }
 0x16b   :  { %3016 = vmatprep.subr.bf16.mxu1 %v6321_v18  ;;  %v420_v11 = vld [vmem:[#allocation2 + $0x730] sm:$0xff]  ;;  %v7962_v18 = vshrl.u32 %v584_v6, 7 }
 0x16c   :  { %v6385_v27 = vcombine.high %v416_v10, %v420_v11 }
 0x16d   :  { %2982 = vmatpush1.bf16.msra.mxu0 %v6160_v19  ;;  %v6392_v19 = vcombine.low %v424_v22, %v428_v1 }
 0x16e   :  { %3017 = vmatpush1.bf16.msra.mxu1 %v6320_v20  ;;  %2983 = vmatprep.subr.bf16.mxu0 %v6281_v21  ;;  %v6225_v20 = vcombine.high %v256_v13, %v260_v14  ;;  %v408_v21 = vld [vmem:[#allocation2 + $0x6d0] sm:$0xff] }
 0x16f   :  { %3018 = vmatprep.subr.bf16.mxu1 %v6313_v28  ;;  %v6224_v28 = vcombine.low %v256_v13, %v260_v14  ;;  %v6376_v42 = vcombine.low %v408_v21, %v412_v23 }
 0x171   :  { %2984 = vmatpush2.bf16.msra.mxu0 %v6280_v29  ;;  %v7964_v29 = vld [vmem:[#allocation4] sm:$0xff] }
 0x172   :  { %3019 = vmatpush1.bf16.msra.mxu1 %v6312_v30  ;;  %2985 = vmatprep.subr.bf16.mxu0 %v6273_v31  ;;  %v7967_v30 = vsub.s32 0, %v7962_v18  ;;  %v6384_v31 = vcombine.low %v416_v10, %v420_v11  ;;  %v576_v10 = vld [vmem:[#allocation2 + $0xc10] sm:$0xff] }
 0x173   :  { %3020 = vmatprep.subr.bf16.mxu1 %v6305_v37  ;;  %v500_v37 = vld [vmem:[#allocation2 + $0x9b0] sm:$0xff] }
 0x174   :  { %v6465_v43 = vcombine.high %v496_v35, %v500_v37  ;;  %v6464_v52 = vcombine.low %v496_v35, %v500_v37  ;;  %v580_v11 = vld [vmem:[#allocation2 + $0xc30] sm:$0xff] }
 0x175   :  { %2986 = vmatpush2.bf16.msra.mxu0 %v6272_v38  ;;  %v6377_v38 = vcombine.high %v408_v21, %v412_v23  ;;  %v249_v21 = vld [vmem:[#allocation2 + $0x1d8] sm:$0xff]  ;;  %v448_v35 = vld [vmem:[#allocation2 + $0x810] sm:$0xff] }
 0x176   :  { %3021 = vmatpush1.bf16.msra.mxu1 %v6304_v39  ;;  %2987 = vmatprep.subr.bf16.mxu0 %v6265_v41  ;;  %v587_v39 = vrot.slane %v7964_v29, %v7967_v30  ;;  %v6472_v41 = vcombine.low %v504_v24, %v508_v25  ;;  %v253_v23 = vld [vmem:[#allocation2 + $0x1f8] sm:$0xff]  ;;  %v6544_v25 = vcombine.low %v576_v10, %v580_v11  ;;  %v452_v37 = vld [vmem:[#allocation2 + $0x830] sm:$0xff] }
 0x177   :  { %3022 = vmatprep.subr.bf16.mxu1 %v6297_v45  ;;  %v492_v45 = vld [vmem:[#allocation2 + $0x970] sm:$0xff] }
 0x178   :  { %v6456_v1 = vcombine.low %v488_v59, %v492_v45 }
 0x179   :  { %2988 = vmatpush2.bf16.msra.mxu0 %v6264_v46 }
 0x17a   :  { %3023 = vmatpush1.bf16.msra.mxu1 %v6296_v47  ;;  %2989 = vmatprep.subr.bf16.mxu0 %v6257_v48  ;;  %v7974_v47 = vld [vmem:[%s8146_s0] ss:$28 sps:$4 sm:$0xff]   ;;  %v392_v48 = vld [vmem:[#allocation2 + $0x650] sm:$0xff] }
 0x17b   :  { %3024 = vmatprep.subr.bf16.mxu1 %v6289_v53  ;;  %v7980_v53 = vld [vmem:[%s8146_s0 + $0x14] ss:$28 sps:$4 sm:$0xff]   ;;  %v6361_v60 = vcombine.high %v392_v48, %v396_v49  ;;  %v6360_v3 = vcombine.low %v392_v48, %v396_v49  ;;  %v6416_v48 = vcombine.low %v448_v35, %v452_v37 }
 0x17d   :  { %2990 = vmatpush2.bf16.msra.mxu0 %v6256_v54 }
 0x17e   :  { %3025 = vmatpush1.bf16.msra.mxu1 %v6288_v55  ;;  %2991 = vmatprep.subr.bf16.mxu0 %v6249_v57  ;;  %v6368_v55 = vcombine.low %v400_v33, %v404_v34  ;;  %v6457_v57 = vcombine.high %v488_v59, %v492_v45  ;;  %v568_v59 = vld [vmem:[#allocation2 + $0xbd0] sm:$0xff]  ;;  %v233_v45 = vld [vmem:[#allocation2 + $0x158] sm:$0xff] }
 0x17f   :  { %3026 = vmatprep.subr.bf16.mxu1 %v6409_v61  ;;  %v484_v61 = vld [vmem:[#allocation2 + $0x930] sm:$0xff] }
 0x180   :  { %v6448_v13 = vcombine.low %v480_v56, %v484_v61 }
 0x181   :  { %2992 = vmatpush2.bf16.msra.mxu0 %v6248_v15 }
 0x182   :  { %3027 = vmatpush2.bf16.msra.mxu1 %v6408_v62  ;;  %2993 = vmatprep.subr.bf16.mxu0 %v6241_v63  ;;  %v384_v62 = vld [vmem:[#allocation2 + $0x610] sm:$0xff] }
 0x183   :  { %3028 = vmatprep.subr.bf16.mxu1 %v6401_v4  ;;  %v388_v63 = vld [vmem:[#allocation2 + $0x630] sm:$0xff]  ;;  %v6449_v4 = vcombine.high %v480_v56, %v484_v61 }
 0x184   :  { %v6353_v6 = vcombine.high %v384_v62, %v388_v63  ;;  %v6352_v14 = vcombine.low %v384_v62, %v388_v63  ;;  %v552_v62 = vld [vmem:[#allocation2 + $0xb50] sm:$0xff] }
 0x185   :  { %2994 = vmatpush2.bf16.msra.mxu0 %v6240_v5  ;;  %v556_v63 = vld [vmem:[#allocation2 + $0xb70] sm:$0xff] }
 0x186   :  { %3029 = vmatpush2.bf16.msra.mxu1 %v6400_v7  ;;  %2995 = vmatprep.subr.bf16.mxu0 %v6233_v9  ;;  %v472_v7 = vld [vmem:[#allocation2 + $0x8d0] sm:$0xff] }
 0x187   :  { %3030 = vmatprep.subr.bf16.mxu1 %v6393_v16  ;;  %v476_v9 = vld [vmem:[#allocation2 + $0x8f0] sm:$0xff] }
 0x188   :  { %v6441_v16 = vcombine.high %v472_v7, %v476_v9  ;;  %v6440_v24 = vcombine.low %v472_v7, %v476_v9  ;;  %v548_v7 = vld [vmem:[#allocation2 + $0xb30] sm:$0xff]  ;;  %v209_v9 = vld [vmem:[#allocation2 + $0x98] sm:$0xff] }
 0x189   :  { %2996 = vmatpush2.bf16.msra.mxu0 %v6232_v17  ;;  %v6545_v17 = vcombine.high %v576_v10, %v580_v11  ;;  %v213_v10 = vld [vmem:[#allocation2 + $0xb8] sm:$0xff]  ;;  %v6520_v11 = vcombine.low %v552_v62, %v556_v63 }
 0x18a   :  { %3031 = vmatpush2.bf16.msra.mxu1 %v6392_v19  ;;  %2997 = vmatprep.subr.bf16.mxu0 %v6225_v20  ;;  %v464_v19 = vld [vmem:[#allocation2 + $0x890] sm:$0xff] }
 0x18b   :  { %3032 = vmatprep.subr.bf16.mxu1 %v6385_v27  ;;  %v468_v20 = vld [vmem:[#allocation2 + $0x8b0] sm:$0xff] }
 0x18c   :  { %v6433_v27 = vcombine.high %v464_v19, %v468_v20  ;;  %v6432_v33 = vcombine.low %v464_v19, %v468_v20  ;;  %v540_v19 = vld [vmem:[#allocation2 + $0xaf0] sm:$0xff]  ;;  %v201_v20 = vld [vmem:[#allocation2 + $0x58] sm:$0xff] }
 0x18d   :  { %2998 = vmatpush2.bf16.msra.mxu0 %v6224_v28  ;;  %v6219_v28 = vcombine.high %v249_v21, %v253_v23 }
 0x18e   :  { %3033 = vmatpush2.bf16.msra.mxu1 %v6384_v31  ;;  %3053 = vmatprep.subr.bf16.mxu0 %v6473_v32  ;;  %v456_v31 = vld [vmem:[#allocation2 + $0x850] sm:$0xff] }
 0x18f   :  { %3034 = vmatprep.subr.bf16.mxu1 %v6377_v38  ;;  %v460_v32 = vld [vmem:[#allocation2 + $0x870] sm:$0xff]  ;;  %v241_v38 = vld [vmem:[#allocation2 + $0x198] sm:$0xff] }
 0x190   :  { %v2657_v46 = vpop.f32.mrf.mxu0  ;;  %3000 = vmatmul.mubr.bf16.vlgmr.msra.gmra.mxu0 %v7974_v47  ;;  %v2700_v51 = vpop.f32.mrf.mxu1  ;;  %v6425_v34 = vcombine.high %v456_v31, %v460_v32 }
 0x191   :  { %v2658_v50 = vadd.f32 %v2657_v46, %v587_v39  ;;  %3054 = vmatpush1.bf16.msra.mxu0 %v6472_v41  ;;  %3085 = vmatprep.mubr.bf16.mxu0 %v7980_v53  ;;  %v6424_v41 = vcombine.low %v456_v31, %v460_v32  ;;  %v237_v46 = vld [vmem:[#allocation2 + $0x178] sm:$0xff]  ;;  %v532_v31 = vld [vmem:[#allocation2 + $0xab0] sm:$0xff] }
 0x192   :  { %3035 = vmatpush2.bf16.msra.mxu1 %v6376_v42  ;;  %v7983_v54 = vpop.f32.mrf.mxu0  ;;  %3055 = vmatprep.subr.bf16.mxu0 %v6465_v43  ;;  %v7987_v12 = vpop.f32.mrf.mxu1  ;;  %v6218_v42 = vcombine.low %v249_v21, %v253_v23  ;;  %v6417_v43 = vcombine.high %v448_v35, %v452_v37  ;;  %v6202_v61 = vcombine.low %v233_v45, %v237_v46  ;;  %v205_v21 = vld [vmem:[#allocation2 + $0x78] sm:$0xff] }
 0x193   :  { %v7985_v58 = vadd.f32 %v2700_v51, %v2658_v50  ;;  %3036 = vmatprep.subr.bf16.mxu1 %v6369_v44  ;;  %v6203_v51 = vcombine.high %v233_v45, %v237_v46  ;;  %v193_v32 = vld [vmem:[#allocation2 + $0x18] sm:$0xff]  ;;  %v6170_v35 = vcombine.low %v201_v20, %v205_v21  ;;  %v512_v46 = vld [vmem:[#allocation2 + $0xa10] sm:$0xff] }
 0x194   :  { %v2661_v15 = vpop.f32.mrf.mxu0  ;;  %v2704_v2 = vpop.f32.mrf.mxu1 }
 0x195   :  { %v2662_v22 = vadd.f32 %v2661_v15, %v587_v39  ;;  %3056 = vmatpush1.bf16.msra.mxu0 %v6464_v52  ;;  %v245_v39 = vld [vmem:[#allocation2 + $0x1b8] sm:$0xff]  ;;  %v560_v52 = vld [vmem:[#allocation2 + $0xb90] sm:$0xff] }
 0x196   :  { %3037 = vmatpush2.bf16.msra.mxu1 %v6368_v55  ;;  %3057 = vmatprep.subr.bf16.mxu0 %v6457_v57  ;;  %v6211_v44 = vcombine.high %v241_v38, %v245_v39  ;;  %v6210_v49 = vcombine.low %v241_v38, %v245_v39  ;;  %v564_v55 = vld [vmem:[#allocation2 + $0xbb0] sm:$0xff]  ;;  %v225_v57 = vld [vmem:[#allocation2 + $0x118] sm:$0xff] }
 0x197   :  { %v7989_v5 = vadd.f32 %v2704_v2, %v2662_v22  ;;  %3038 = vmatprep.subr.bf16.mxu1 %v6361_v60  ;;  %v229_v60 = vld [vmem:[#allocation2 + $0x138] sm:$0xff]  ;;  %v6528_v2 = vcombine.low %v560_v52, %v564_v55  ;;  %v520_v39 = vld [vmem:[#allocation2 + $0xa50] sm:$0xff] }
 0x198   :  { %v6195_v15 = vcombine.high %v225_v57, %v229_v60  ;;  %v217_v22 = vld [vmem:[#allocation2 + $0xd8] sm:$0xff] }
 0x199   :  { %3058 = vmatpush1.bf16.msra.mxu0 %v6456_v1  ;;  %v221_v1 = vld [vmem:[#allocation2 + $0xf8] sm:$0xff] }
 0x19a   :  { %3039 = vmatpush2.bf16.msra.mxu1 %v6360_v3  ;;  %3059 = vmatprep.subr.bf16.mxu0 %v6449_v4  ;;  %v6194_v3 = vcombine.low %v225_v57, %v229_v60  ;;  %v6187_v4 = vcombine.high %v217_v22, %v221_v1  ;;  %v377_v60 = vld [vmem:[#allocation2 + $0x5d8] sm:$0xff] }
 0x19b   :  { %3040 = vmatprep.subr.bf16.mxu1 %v6353_v6  ;;  %v544_v6 = vld [vmem:[#allocation2 + $0xb10] sm:$0xff] }
 0x19c   :  { %v6512_v23 = vcombine.low %v544_v6, %v548_v7 }
 0x19d   :  { %3060 = vmatpush1.bf16.msra.mxu0 %v6448_v13  ;;  %v6186_v13 = vcombine.low %v217_v22, %v221_v1 }
 0x19e   :  { %3041 = vmatpush2.bf16.msra.mxu1 %v6352_v14  ;;  %3061 = vmatprep.subr.bf16.mxu0 %v6441_v16  ;;  %v6513_v14 = vcombine.high %v544_v6, %v548_v7  ;;  %v6179_v16 = vcombine.high %v209_v9, %v213_v10  ;;  %v7998_v7 = vpop.f32.mrf.mxu0 }
 0x19f   :  { %3110 = vmatprep.subr.bf16.mxu1 %v6545_v17  ;;  %v536_v17 = vld [vmem:[#allocation2 + $0xad0] sm:$0xff] }
 0x1a1   :  { %3043 = vmatmul.mubr.bf16.vlgmr.msra.gmra.mxu1 %v7938_v36  ;;  %3062 = vmatpush1.bf16.msra.mxu0 %v6440_v24  ;;  %v572_v36 = vld [vmem:[#allocation2 + $0xbf0] sm:$0xff]  ;;  %v6178_v24 = vcombine.low %v209_v9, %v213_v10 }
 0x1a2   :  { %3111 = vmatpush1.bf16.msra.mxu1 %v6544_v25  ;;  %3063 = vmatprep.subr.bf16.mxu0 %v6433_v27  ;;  %v6537_v50 = vcombine.high %v568_v59, %v572_v36  ;;  %v6536_v56 = vcombine.low %v568_v59, %v572_v36  ;;  %v6505_v25 = vcombine.high %v536_v17, %v540_v19 }
 0x1a3   :  { %3128 = vmatprep.mubr.bf16.mxu1 %v7781_v26  ;;  %3139 = vmatprep.subr.bf16.mxu1 %v6219_v28  ;;  %v6171_v27 = vcombine.high %v201_v20, %v205_v21  ;;  %v528_v28 = vld [vmem:[#allocation2 + $0xa90] sm:$0xff]  ;;  %v281_v20 = vld [vmem:[#allocation2 + $0x2d8] sm:$0xff] }
 0x1a4   :  { %v6497_v37 = vcombine.high %v528_v28, %v532_v31  ;;  %v285_v21 = vld [vmem:[#allocation2 + $0x2f8] sm:$0xff] }
 0x1a5   :  { %3064 = vmatpush1.bf16.msra.mxu0 %v6432_v33  ;;  %v197_v33 = vld [vmem:[#allocation2 + $0x38] sm:$0xff] }
 0x1a6   :  { %3065 = vmatprep.subr.bf16.mxu0 %v6425_v34  ;;  %v6504_v34 = vcombine.low %v536_v17, %v540_v19  ;;  %v6163_v38 = vcombine.high %v193_v32, %v197_v33  ;;  %v6162_v59 = vcombine.low %v193_v32, %v197_v33  ;;  %v8003_v19 = vld [vmem:[%s8146_s0 + $0x10] ss:$28 sps:$4 sm:$0xff]   ;;  %v6251_v33 = vcombine.high %v281_v20, %v285_v21 }
 0x1a9   :  { %6550 = vmatmul.mubr.msk.bf16.vlgmr.msra.gmra.mxu1 %vm2619_vm0, %v7952_v0  ;;  %3066 = vmatpush1.bf16.msra.mxu0 %v6424_v41  ;;  %v6529_v0 = vcombine.high %v560_v52, %v564_v55  ;;  %v524_v41 = vld [vmem:[#allocation2 + $0xa70] sm:$0xff] }
 0x1aa   :  { %3140 = vmatpush1.bf16.msra.mxu1 %v6218_v42  ;;  %3067 = vmatprep.subr.bf16.mxu0 %v6417_v43  ;;  %v313_v42 = vld [vmem:[#allocation2 + $0x3d8] sm:$0xff]  ;;  %v6489_v36 = vcombine.high %v520_v39, %v524_v41 }
 0x1ab   :  { %3141 = vmatprep.subr.bf16.mxu1 %v6211_v44  ;;  %3171 = vmatprep.mubr.bf16.mxu1 %v7944_v40  ;;  %v6521_v40 = vcombine.high %v552_v62, %v556_v63  ;;  %v317_v43 = vld [vmem:[#allocation2 + $0x3f8] sm:$0xff]  ;;  %v6496_v44 = vcombine.low %v528_v28, %v532_v31  ;;  %v7996_v62 = vpop.f32.mrf.mxu1 }
 0x1ac   :  { %v6283_v45 = vcombine.high %v313_v42, %v317_v43  ;;  %v6282_v52 = vcombine.low %v313_v42, %v317_v43  ;;  %v6250_v42 = vcombine.low %v281_v20, %v285_v21 }
 0x1ad   :  { %3068 = vmatpush1.bf16.msra.mxu0 %v6416_v48  ;;  %v516_v48 = vld [vmem:[#allocation2 + $0xa30] sm:$0xff]  ;;  %v2786_v9 = vpop.f32.mrf.mxu1 }
 0x1ae   :  { %3142 = vmatpush1.bf16.msra.mxu1 %v6210_v49  ;;  %3069 = vmatprep.subr.bf16.mxu0 %v6537_v50  ;;  %v305_v49 = vld [vmem:[#allocation2 + $0x398] sm:$0xff]  ;;  %v6481_v55 = vcombine.high %v512_v46, %v516_v48 }
 0x1af   :  { %3143 = vmatprep.subr.bf16.mxu1 %v6203_v51  ;;  %v309_v50 = vld [vmem:[#allocation2 + $0x3b8] sm:$0xff]  ;;  %v6488_v51 = vcombine.low %v520_v39, %v524_v41 }
 0x1b0   :  { %v6275_v57 = vcombine.high %v305_v49, %v309_v50  ;;  %v6274_v63 = vcombine.low %v305_v49, %v309_v50 }
 0x1b1   :  { %3070 = vmatpush2.bf16.msra.mxu0 %v6536_v56  ;;  %v381_v56 = vld [vmem:[#allocation2 + $0x5f8] sm:$0xff] }
 0x1b2   :  { %3144 = vmatpush1.bf16.msra.mxu1 %v6202_v61  ;;  %3071 = vmatprep.subr.bf16.mxu0 %v6529_v0  ;;  %v297_v61 = vld [vmem:[#allocation2 + $0x358] sm:$0xff]  ;;  %v6347_v22 = vcombine.high %v377_v60, %v381_v56  ;;  %v6346_v6 = vcombine.low %v377_v60, %v381_v56 }
 0x1b3   :  { %3145 = vmatprep.subr.bf16.mxu1 %v6195_v15  ;;  %v301_v0 = vld [vmem:[#allocation2 + $0x378] sm:$0xff]  ;;  %v6480_v15 = vcombine.low %v512_v46, %v516_v48 }
 0x1b4   :  { %v6267_v1 = vcombine.high %v297_v61, %v301_v0  ;;  %v6266_v10 = vcombine.low %v297_v61, %v301_v0  ;;  %v265_v46 = vld [vmem:[#allocation2 + $0x258] sm:$0xff] }
 0x1b5   :  { %3072 = vmatpush2.bf16.msra.mxu0 %v6528_v2  ;;  %v369_v2 = vld [vmem:[#allocation2 + $0x598] sm:$0xff] }
 0x1b6   :  { %3146 = vmatpush1.bf16.msra.mxu1 %v6194_v3  ;;  %3073 = vmatprep.subr.bf16.mxu0 %v6521_v40  ;;  %v373_v3 = vld [vmem:[#allocation2 + $0x5b8] sm:$0xff] }
 0x1b7   :  { %3147 = vmatprep.subr.bf16.mxu1 %v6187_v4  ;;  %v289_v40 = vld [vmem:[#allocation2 + $0x318] sm:$0xff] }
 0x1b8   :  { %v293_v4 = vld [vmem:[#allocation2 + $0x338] sm:$0xff] }
 0x1b9   :  { %3074 = vmatpush2.bf16.msra.mxu0 %v6520_v11  ;;  %v6339_v11 = vcombine.high %v369_v2, %v373_v3  ;;  %v269_v48 = vld [vmem:[#allocation2 + $0x278] sm:$0xff] }
 0x1ba   :  { %3148 = vmatpush1.bf16.msra.mxu1 %v6186_v13  ;;  %3075 = vmatprep.subr.bf16.mxu0 %v6513_v14  ;;  %v6259_v13 = vcombine.high %v289_v40, %v293_v4  ;;  %v361_v14 = vld [vmem:[#allocation2 + $0x558] sm:$0xff] }
 0x1bb   :  { %3149 = vmatprep.subr.bf16.mxu1 %v6179_v16  ;;  %v365_v16 = vld [vmem:[#allocation2 + $0x578] sm:$0xff] }
 0x1bc   :  { %v6331_v31 = vcombine.high %v361_v14, %v365_v16  ;;  %v337_v60 = vld [vmem:[#allocation2 + $0x498] sm:$0xff] }
 0x1bd   :  { %3076 = vmatpush2.bf16.msra.mxu0 %v6512_v23  ;;  %v341_v56 = vld [vmem:[#allocation2 + $0x4b8] sm:$0xff] }
 0x1be   :  { %3150 = vmatpush1.bf16.msra.mxu1 %v6178_v24  ;;  %3077 = vmatprep.subr.bf16.mxu0 %v6505_v25  ;;  %v6338_v24 = vcombine.low %v369_v2, %v373_v3  ;;  %v8008_v25 = vpop.f32.mrf.mxu1  ;;  %v257_v61 = vld [vmem:[#allocation2 + $0x218] sm:$0xff] }
 0x1bf   :  { %3151 = vmatprep.subr.bf16.mxu1 %v6171_v27  ;;  %v6258_v27 = vcombine.low %v289_v40, %v293_v4  ;;  %v261_v0 = vld [vmem:[#allocation2 + $0x238] sm:$0xff] }
 0x1c0   :  { %v2790_v41 = vpop.f32.mrf.mxu1  ;;  %v329_v2 = vld [vmem:[#allocation2 + $0x458] sm:$0xff] }
 0x1c1   :  { %3078 = vmatpush2.bf16.msra.mxu0 %v6504_v34  ;;  %v353_v34 = vld [vmem:[#allocation2 + $0x518] sm:$0xff] }
 0x1c2   :  { %3152 = vmatpush1.bf16.msra.mxu1 %v6170_v35  ;;  %3079 = vmatprep.subr.bf16.mxu0 %v6497_v37  ;;  %v357_v35 = vld [vmem:[#allocation2 + $0x538] sm:$0xff] }
 0x1c3   :  { %3153 = vmatprep.subr.bf16.mxu1 %v6163_v38  ;;  %v273_v38 = vld [vmem:[#allocation2 + $0x298] sm:$0xff]  ;;  %v6323_v43 = vcombine.high %v353_v34, %v357_v35 }
 0x1c4   :  { %v333_v3 = vld [vmem:[#allocation2 + $0x478] sm:$0xff] }
 0x1c5   :  { %3080 = vmatpush2.bf16.msra.mxu0 %v6496_v44  ;;  %v505_v40 = vld [vmem:[#allocation2 + $0x9d8] sm:$0xff]  ;;  %v6298_v20 = vcombine.low %v329_v2, %v333_v3 }
 0x1c6   :  { %3154 = vmatpush1.bf16.msra.mxu1 %v6162_v59  ;;  %3081 = vmatprep.subr.bf16.mxu0 %v6489_v36  ;;  %v345_v36 = vld [vmem:[#allocation2 + $0x4d8] sm:$0xff] }
 0x1c7   :  { %3155 = vmatprep.subr.bf16.mxu1 %v6283_v45  ;;  %v349_v45 = vld [vmem:[#allocation2 + $0x4f8] sm:$0xff] }
 0x1c8   :  { %v509_v4 = vld [vmem:[#allocation2 + $0x9f8] sm:$0xff] }
 0x1c9   :  { %3082 = vmatpush2.bf16.msra.mxu0 %v6488_v51  ;;  %v6322_v51 = vcombine.low %v353_v34, %v357_v35  ;;  %v6474_v21 = vcombine.low %v505_v40, %v509_v4 }
 0x1ca   :  { %3156 = vmatpush2.bf16.msra.mxu1 %v6282_v52  ;;  %3083 = vmatprep.subr.bf16.mxu0 %v6481_v55  ;;  %v6315_v52 = vcombine.high %v345_v36, %v349_v45 }
 0x1cb   :  { %3157 = vmatprep.subr.bf16.mxu1 %v6275_v57  ;;  %v6235_v57 = vcombine.high %v265_v46, %v269_v48 }
 0x1cd   :  { %3084 = vmatpush2.bf16.msra.mxu0 %v6480_v15  ;;  %v6314_v15 = vcombine.low %v345_v36, %v349_v45  ;;  %v429_v36 = vld [vmem:[#allocation2 + $0x778] sm:$0xff] }
 0x1ce   :  { %3158 = vmatpush2.bf16.msra.mxu1 %v6274_v63  ;;  %3182 = vmatprep.subr.bf16.mxu0 %v6347_v22  ;;  %v6234_v63 = vcombine.low %v265_v46, %v269_v48  ;;  %v6307_v22 = vcombine.high %v337_v60, %v341_v56  ;;  %v473_v45 = vld [vmem:[#allocation2 + $0x8d8] sm:$0xff] }
 0x1cf   :  { %3159 = vmatprep.subr.bf16.mxu1 %v6267_v1  ;;  %v6227_v1 = vcombine.high %v257_v61, %v261_v0  ;;  %v477_v46 = vld [vmem:[#allocation2 + $0x8f8] sm:$0xff] }
 0x1d0   :  { %v2743_v17 = vpop.f32.mrf.mxu0  ;;  %3086 = vmatmul.mubr.bf16.vlgmr.msra.gmra.mxu0 %v8003_v19 }
 0x1d1   :  { %v2744_v23 = vadd.f32 %v2743_v17, %v7985_v58  ;;  %3183 = vmatpush1.bf16.msra.mxu0 %v6346_v6  ;;  %3214 = vmatprep.mubr.bf16.mxu0 %v7959_v8  ;;  %v277_v58 = vld [vmem:[#allocation2 + $0x2b8] sm:$0xff]  ;;  %v6330_v8 = vcombine.low %v361_v14, %v365_v16  ;;  %v6306_v6 = vcombine.low %v337_v60, %v341_v56 }
 0x1d2   :  { %3160 = vmatpush2.bf16.msra.mxu1 %v6266_v10  ;;  %v8010_v28 = vpop.f32.mrf.mxu0  ;;  %3184 = vmatprep.subr.bf16.mxu0 %v6339_v11  ;;  %v6243_v59 = vcombine.high %v273_v38, %v277_v58  ;;  %v6299_v10 = vcombine.high %v329_v2, %v333_v3  ;;  %v6475_v11 = vcombine.high %v505_v40, %v509_v4  ;;  %v325_v14 = vld [vmem:[#allocation2 + $0x438] sm:$0xff] }
 0x1d3   :  { %v2787_v32 = vadd.f32 %v2786_v9, %v2744_v23  ;;  %3161 = vmatprep.subr.bf16.mxu1 %v6259_v13  ;;  %v6226_v9 = vcombine.low %v257_v61, %v261_v0  ;;  %v321_v13 = vld [vmem:[#allocation2 + $0x418] sm:$0xff]  ;;  %v6442_v56 = vcombine.low %v473_v45, %v477_v46 }
 0x1d4   :  { %v2747_v37 = vpop.f32.mrf.mxu0  ;;  %v497_v16 = vld [vmem:[#allocation2 + $0x998] sm:$0xff]  ;;  %v6291_v23 = vcombine.high %v321_v13, %v325_v14  ;;  %v6290_v34 = vcombine.low %v321_v13, %v325_v14 }
 0x1d5   :  { %v2748_v39 = vadd.f32 %v2747_v37, %v7989_v5  ;;  %3185 = vmatpush1.bf16.msra.mxu0 %v6338_v24  ;;  %v3311_v49 = vmax.f32 %v2787_v32, 0.0  ;;  %v6242_v5 = vcombine.low %v273_v38, %v277_v58  ;;  %v501_v17 = vld [vmem:[#allocation2 + $0x9b8] sm:$0xff] }
 0x1d6   :  { %3162 = vmatpush2.bf16.msra.mxu1 %v6258_v27  ;;  %3186 = vmatprep.subr.bf16.mxu0 %v6331_v31  ;;  %v6467_v24 = vcombine.high %v497_v16, %v501_v17  ;;  %v441_v27 = vld [vmem:[#allocation2 + $0x7d8] sm:$0xff]  ;;  %v6466_v35 = vcombine.low %v497_v16, %v501_v17  ;;  %v8018_v17 = vsub.s32 1, %v7962_v18 }
 0x1d7   :  { %v2791_v44 = vadd.f32 %v2790_v41, %v2748_v39  ;;  %3163 = vmatprep.subr.bf16.mxu1 %v6251_v33  ;;  %v445_v31 = vld [vmem:[#allocation2 + $0x7f8] sm:$0xff] }
 0x1d8   :  { %v489_v32 = vld [vmem:[#allocation2 + $0x958] sm:$0xff]  ;;  %v6411_v37 = vcombine.high %v441_v27, %v445_v31 }
 0x1d9   :  { %v3319_v50 = vmax.f32 %v2791_v44, 0.0  ;;  %3187 = vmatpush1.bf16.msra.mxu0 %v6330_v8  ;;  %v493_v33 = vld [vmem:[#allocation2 + $0x978] sm:$0xff] }
 0x1da   :  { %3164 = vmatpush2.bf16.msra.mxu1 %v6250_v42  ;;  %3188 = vmatprep.subr.bf16.mxu0 %v6323_v43  ;;  %v6459_v38 = vcombine.high %v489_v32, %v493_v33  ;;  %v433_v58 = vld [vmem:[#allocation2 + $0x798] sm:$0xff]  ;;  %v6410_v42 = vcombine.low %v441_v27, %v445_v31  ;;  %v6458_v43 = vcombine.low %v489_v32, %v493_v33 }
 0x1db   :  { %v8013_v55 = vpack.c.bf16 %v3319_v50, %v3311_v49  ;;  %3165 = vmatprep.subr.bf16.mxu1 %v6243_v59  ;;  %v437_v39 = vld [vmem:[#allocation2 + $0x7b8] sm:$0xff]  ;;  %v6443_v50 = vcombine.high %v473_v45, %v477_v46  ;;  %v2749_v46 = vpop.f32.mrf.mxu0 }
 0x1dc   :  { %v481_v8 = vld [vmem:[#allocation2 + $0x918] sm:$0xff]  ;;  %v6402_v48 = vcombine.low %v433_v58, %v437_v39 }
 0x1dd   :  { %3189 = vmatpush1.bf16.msra.mxu0 %v6322_v51  ;;  %v485_v41 = vld [vmem:[#allocation2 + $0x938] sm:$0xff] }
 0x1de   :  { %3166 = vmatpush2.bf16.msra.mxu1 %v6242_v5  ;;  %3190 = vmatprep.subr.bf16.mxu0 %v6315_v52  ;;  %v6451_v44 = vcombine.high %v481_v8, %v485_v41  ;;  %v425_v59 = vld [vmem:[#allocation2 + $0x758] sm:$0xff]  ;;  %v6450_v49 = vcombine.low %v481_v8, %v485_v41 }
 0x1df   :  { %3167 = vmatprep.subr.bf16.mxu1 %v6235_v57  ;;  %v417_v51 = vld [vmem:[#allocation2 + $0x718] sm:$0xff]  ;;  %v6394_v60 = vcombine.low %v425_v59, %v429_v36 }
 0x1e0   :  { %v421_v5 = vld [vmem:[#allocation2 + $0x738] sm:$0xff] }
 0x1e1   :  { %3191 = vmatpush1.bf16.msra.mxu0 %v6314_v15  ;;  %v465_v52 = vld [vmem:[#allocation2 + $0x898] sm:$0xff]  ;;  %v6387_v61 = vcombine.high %v417_v51, %v421_v5  ;;  %v6386_v2 = vcombine.low %v417_v51, %v421_v5 }
 0x1e2   :  { %3168 = vmatpush2.bf16.msra.mxu1 %v6234_v63  ;;  %3192 = vmatprep.subr.bf16.mxu0 %v6307_v22  ;;  %v469_v57 = vld [vmem:[#allocation2 + $0x8b8] sm:$0xff] }
 0x1e3   :  { %3169 = vmatprep.subr.bf16.mxu1 %v6227_v1  ;;  %v6435_v0 = vcombine.high %v465_v52, %v469_v57  ;;  %v409_v15 = vld [vmem:[#allocation2 + $0x6d8] sm:$0xff]  ;;  %v6434_v3 = vcombine.low %v465_v52, %v469_v57 }
 0x1e4   :  { %v413_v63 = vld [vmem:[#allocation2 + $0x6f8] sm:$0xff] }
 0x1e5   :  { %3193 = vmatpush1.bf16.msra.mxu0 %v6306_v6  ;;  %v457_v22 = vld [vmem:[#allocation2 + $0x858] sm:$0xff]  ;;  %v6379_v40 = vcombine.high %v409_v15, %v413_v63  ;;  %v6378_v13 = vcombine.low %v409_v15, %v413_v63 }
 0x1e6   :  { %3170 = vmatpush2.bf16.msra.mxu1 %v6226_v9  ;;  %3194 = vmatprep.subr.bf16.mxu0 %v6299_v10  ;;  %v461_v1 = vld [vmem:[#allocation2 + $0x878] sm:$0xff] }
 0x1e7   :  { %3225 = vmatprep.subr.bf16.mxu1 %v6475_v11  ;;  %v6427_v4 = vcombine.high %v457_v22, %v461_v1  ;;  %v401_v6 = vld [vmem:[#allocation2 + $0x698] sm:$0xff]  ;;  %v6426_v14 = vcombine.low %v457_v22, %v461_v1 }
 0x1e8   :  { %v405_v9 = vld [vmem:[#allocation2 + $0x6b8] sm:$0xff] }
 0x1e9   :  { %3172 = vmatmul.mubr.bf16.vlgmr.msra.gmra.mxu1 %v7974_v47  ;;  %3195 = vmatpush1.bf16.msra.mxu0 %v6298_v20  ;;  %v6403_v47 = vcombine.high %v433_v58, %v437_v39  ;;  %v449_v10 = vld [vmem:[#allocation2 + $0x818] sm:$0xff]  ;;  %v6371_v16 = vcombine.high %v401_v6, %v405_v9  ;;  %v6370_v31 = vcombine.low %v401_v6, %v405_v9 }
 0x1ea   :  { %3226 = vmatpush1.bf16.msra.mxu1 %v6474_v21  ;;  %3196 = vmatprep.subr.bf16.mxu0 %v6291_v23  ;;  %v453_v11 = vld [vmem:[#allocation2 + $0x838] sm:$0xff] }
 0x1eb   :  { %3227 = vmatprep.subr.bf16.mxu1 %v6467_v24  ;;  %3257 = vmatprep.mubr.bf16.mxu1 %v7980_v53  ;;  %v6395_v53 = vcombine.high %v425_v59, %v429_v36  ;;  %v6419_v20 = vcombine.high %v449_v10, %v453_v11  ;;  %v393_v21 = vld [vmem:[#allocation2 + $0x658] sm:$0xff]  ;;  %v6418_v32 = vcombine.low %v449_v10, %v453_v11 }
 0x1ec   :  { %v397_v23 = vld [vmem:[#allocation2 + $0x678] sm:$0xff] }
 0x1ed   :  { %3197 = vmatpush1.bf16.msra.mxu0 %v6290_v34  ;;  %v569_v24 = vld [vmem:[#allocation2 + $0xbd8] sm:$0xff]  ;;  %v6363_v33 = vcombine.high %v393_v21, %v397_v23  ;;  %v591_v34 = vrot.slane %v7964_v29, %v8018_v17  ;;  %v6362_v41 = vcombine.low %v393_v21, %v397_v23 }
 0x1ee   :  { %3228 = vmatpush1.bf16.msra.mxu1 %v6466_v35  ;;  %3198 = vmatprep.subr.bf16.mxu0 %v6411_v37  ;;  %v573_v27 = vld [vmem:[#allocation2 + $0xbf8] sm:$0xff] }
 0x1ef   :  { %3229 = vmatprep.subr.bf16.mxu1 %v6459_v38  ;;  %v6539_v35 = vcombine.high %v569_v24, %v573_v27  ;;  %v385_v37 = vld [vmem:[#allocation2 + $0x618] sm:$0xff]  ;;  %v2664_v8 = vadd.f32 %v7998_v7, %v591_v34  ;;  %v2792_v7 = vpop.f32.mrf.mxu1 }
 0x1f0   :  { %v389_v38 = vld [vmem:[#allocation2 + $0x638] sm:$0xff] }
 0x1f1   :  { %3199 = vmatpush2.bf16.msra.mxu0 %v6410_v42  ;;  %v561_v58 = vld [vmem:[#allocation2 + $0xb98] sm:$0xff]  ;;  %v6538_v42 = vcombine.low %v569_v24, %v573_v27 }
 0x1f2   :  { %3230 = vmatpush1.bf16.msra.mxu1 %v6458_v43  ;;  %3200 = vmatprep.subr.bf16.mxu0 %v6403_v47  ;;  %v565_v39 = vld [vmem:[#allocation2 + $0xbb8] sm:$0xff]  ;;  %v6355_v43 = vcombine.high %v385_v37, %v389_v38  ;;  %v2660_v47 = vadd.f32 %v7983_v54, %v591_v34 }
 0x1f3   :  { %3231 = vmatprep.subr.bf16.mxu1 %v6451_v44  ;;  %v594_v44 = vsub.s32 2, %v7962_v18  ;;  %v6531_v59 = vcombine.high %v561_v58, %v565_v39  ;;  %v577_v36 = vld [vmem:[#allocation2 + $0xc18] sm:$0xff]  ;;  %v6530_v51 = vcombine.low %v561_v58, %v565_v39 }
 0x1f4   :  { %v581_v45 = vld [vmem:[#allocation2 + $0xc38] sm:$0xff]  ;;  %v2703_v54 = vadd.f32 %v7987_v12, %v2660_v47 }
 0x1f5   :  { %3201 = vmatpush2.bf16.msra.mxu0 %v6402_v48  ;;  %v553_v48 = vld [vmem:[#allocation2 + $0xb58] sm:$0xff]  ;;  %v6547_v5 = vcombine.high %v577_v36, %v581_v45  ;;  %v595_v57 = vrot.slane %v7964_v29, %v594_v44  ;;  %v6546_v15 = vcombine.low %v577_v36, %v581_v45 }
 0x1f6   :  { %3232 = vmatpush1.bf16.msra.mxu1 %v6450_v49  ;;  %3202 = vmatprep.subr.bf16.mxu0 %v6395_v53  ;;  %v557_v49 = vld [vmem:[#allocation2 + $0xb78] sm:$0xff]  ;;  %v2707_v53 = vadd.f32 %v7996_v62, %v2664_v8  ;;  %v2746_v62 = vadd.f32 %v8010_v28, %v2703_v54 }
 0x1f7   :  { %3233 = vmatprep.subr.bf16.mxu1 %v6443_v50  ;;  %v6354_v50 = vcombine.low %v385_v37, %v389_v38  ;;  %v6522_v63 = vcombine.low %v553_v48, %v557_v49  ;;  %v7006_v22 = vld [vmem:[#allocation6 + $0xe4] ss:$16 sps:$4 sm:$0xff]   ;;  %v7004_v27 = vld [vmem:[#allocation6 + $0xe0] ss:$16 sps:$4 sm:$0xff]  }
 0x1f8   :  { %v2750_v52 = vadd.f32 %v2749_v46, %v2707_v53  ;;  %v537_v6 = vld [vmem:[#allocation2 + $0xad8] sm:$0xff]  ;;  %v2789_v9 = vadd.f32 %v8008_v25, %v2746_v62 }
 0x1f9   :  { %3203 = vmatpush2.bf16.msra.mxu0 %v6394_v60  ;;  %v2829_v60 = vpop.f32.mrf.mxu1  ;;  %v541_v28 = vld [vmem:[#allocation2 + $0xaf8] sm:$0xff] }
 0x1fa   :  { %3234 = vmatpush1.bf16.msra.mxu1 %v6442_v56  ;;  %3204 = vmatprep.subr.bf16.mxu0 %v6387_v61  ;;  %v6523_v56 = vcombine.high %v553_v48, %v557_v49  ;;  %v545_v61 = vld [vmem:[#allocation2 + $0xb18] sm:$0xff]  ;;  %v2793_v1 = vadd.f32 %v2792_v7, %v2750_v52  ;;  %v2830_v12 = vadd.f32 %v2829_v60, %v595_v57  ;;  %v3312_v23 = vmax.f32 %v2789_v9, 0.0 }
 0x1fb   :  { %3235 = vmatprep.subr.bf16.mxu1 %v6435_v0  ;;  %v549_v0 = vld [vmem:[#allocation2 + $0xb38] sm:$0xff] }
 0x1fc   :  { %v6514_v11 = vcombine.low %v545_v61, %v549_v0  ;;  %v533_v21 = vld [vmem:[#allocation2 + $0xab8] sm:$0xff] }
 0x1fd   :  { %3205 = vmatpush2.bf16.msra.mxu0 %v6386_v2  ;;  %v8031_v2 = vpop.f32.mrf.mxu1  ;;  %v521_v37 = vld [vmem:[#allocation2 + $0xa58] sm:$0xff] }
 0x1fe   :  { %3236 = vmatpush1.bf16.msra.mxu1 %v6434_v3  ;;  %3206 = vmatprep.subr.bf16.mxu0 %v6379_v40  ;;  %v6515_v3 = vcombine.high %v545_v61, %v549_v0  ;;  %v525_v38 = vld [vmem:[#allocation2 + $0xa78] sm:$0xff] }
 0x1ff   :  { %3237 = vmatprep.subr.bf16.mxu1 %v6427_v4  ;;  %v7527_v4 = vld [vmem:[%s8146_s0 + $0x8] ss:$28 sps:$4 sm:$0xff]   ;;  %v7012_v47 = vld [vmem:[#allocation6 + $0xa4] ss:$16 sps:$4 sm:$0xff]   ;;  %v6491_v36 = vcombine.high %v521_v37, %v525_v38 }
 0x200   :  { %v7007_v8 = vld [vmem:[#allocation6 + $0xc0] ss:$16 sps:$4 sm:$0xff]  }
 0x201   :  { %3207 = vmatpush2.bf16.msra.mxu0 %v6378_v13  ;;  %v3320_v13 = vmax.f32 %v2793_v1, 0.0  ;;  %v513_v48 = vld [vmem:[#allocation2 + $0xa18] sm:$0xff] }
 0x202   :  { %3238 = vmatpush1.bf16.msra.mxu1 %v6426_v14  ;;  %3208 = vmatprep.subr.bf16.mxu0 %v6371_v16  ;;  %v2833_v14 = vpop.f32.mrf.mxu1  ;;  %v6507_v16 = vcombine.high %v537_v6, %v541_v28  ;;  %v517_v49 = vld [vmem:[#allocation2 + $0xa38] sm:$0xff] }
 0x203   :  { %3239 = vmatprep.subr.bf16.mxu1 %v6419_v20  ;;  %v529_v20 = vld [vmem:[#allocation2 + $0xa98] sm:$0xff]  ;;  %v8038_v34 = vpack.c.bf16 %v3320_v13, %v3312_v23  ;;  %v6483_v52 = vcombine.high %v513_v48, %v517_v49 }
 0x204   :  { %v2835_v25 = vpop.f32.mrf.mxu1  ;;  %v7010_v7 = vld [vmem:[#allocation6 + $0xa0] ss:$16 sps:$4 sm:$0xff]   ;;  %v7018_v1 = vld [vmem:[#allocation6 + $0x2e4] ss:$16 sps:$4 sm:$0xff]  }
 0x205   :  { %3209 = vmatpush2.bf16.msra.mxu0 %v6370_v31  ;;  %v6506_v31 = vcombine.low %v537_v6, %v541_v28  ;;  %v7013_v61 = vld [vmem:[#allocation6 + $0x80] ss:$16 sps:$4 sm:$0xff]   ;;  %v7024_v13 = vld [vmem:[#allocation6 + $0x2c4] ss:$16 sps:$4 sm:$0xff]  }
 0x206   :  { %3240 = vmatpush1.bf16.msra.mxu1 %v6418_v32  ;;  %3210 = vmatprep.subr.bf16.mxu0 %v6363_v33  ;;  %v7009_v32 = vld [vmem:[#allocation6 + $0xc4] ss:$16 sps:$4 sm:$0xff]   ;;  %v6499_v33 = vcombine.high %v529_v20, %v533_v21  ;;  %v7016_v9 = vld [vmem:[#allocation6 + $0x2e0] ss:$16 sps:$4 sm:$0xff]  }
 0x207   :  { %3241 = vmatprep.subr.bf16.mxu1 %v6539_v35  ;;  %v7528_v35 = vld [vmem:[%s8146_s0 + $0x18] ss:$28 sps:$4 sm:$0xff]  }
 0x209   :  { %3211 = vmatpush2.bf16.msra.mxu0 %v6362_v41  ;;  %v2834_v41 = vadd.f32 %v2833_v14, %v595_v57 }
 0x20a   :  { %3242 = vmatpush2.bf16.msra.mxu1 %v6538_v42  ;;  %3212 = vmatprep.subr.bf16.mxu0 %v6355_v43  ;;  %v6498_v43 = vcombine.low %v529_v20, %v533_v21  ;;  %v7025_v21 = vld [vmem:[#allocation6 + $0x40] ss:$16 sps:$4 sm:$0xff]  }
 0x20b   :  { %3243 = vmatprep.subr.bf16.mxu1 %v6531_v59 }
 0x20d   :  { %3213 = vmatpush2.bf16.msra.mxu0 %v6354_v50 }
 0x20e   :  { %3244 = vmatpush2.bf16.msra.mxu1 %v6530_v51  ;;  %3282 = vmatprep.subr.bf16.mxu0 %v6547_v5  ;;  %v6490_v51 = vcombine.low %v521_v37, %v525_v38  ;;  %v7015_v5 = vld [vmem:[#allocation6 + $0x84] ss:$16 sps:$4 sm:$0xff]  }
 0x20f   :  { %3245 = vmatprep.subr.bf16.mxu1 %v6523_v56  ;;  %v7039_v37 = vld [vmem:[#allocation6 + $0x4] ss:$16 sps:$4 sm:$0xff]  }
 0x210   :  { %v2872_v40 = vpop.f32.mrf.mxu0  ;;  %3215 = vmatmul.mubr.bf16.vlgmr.msra.gmra.mxu0 %v7527_v4  ;;  %v7019_v4 = vld [vmem:[#allocation6 + $0x60] ss:$16 sps:$4 sm:$0xff]   ;;  %v7036_v38 = vld [vmem:[#allocation6 + $0x284] ss:$16 sps:$4 sm:$0xff]  }
 0x211   :  { %v2873_v10 = vadd.f32 %v2872_v40, %v2830_v12  ;;  %3283 = vmatpush1.bf16.msra.mxu0 %v6546_v15  ;;  %3300 = vmatprep.mubr.bf16.mxu0 %v7781_v26  ;;  %v598_v26 = vsub.s32 3, %v7962_v18 }
 0x212   :  { %3246 = vmatpush2.bf16.msra.mxu1 %v6522_v63  ;;  %4893 = vmatprep.subr.bf16.mxu0 %v7006_v22  ;;  %v2874_v24 = vpop.f32.mrf.mxu0  ;;  %v7021_v63 = vld [vmem:[#allocation6 + $0x64] ss:$16 sps:$4 sm:$0xff]  }
 0x213   :  { %3247 = vmatprep.subr.bf16.mxu1 %v6515_v3  ;;  %v599_v45 = vrot.slane %v7964_v29, %v598_v26  ;;  %v6482_v29 = vcombine.low %v513_v48, %v517_v49  ;;  %v7054_v48 = vld [vmem:[#allocation6 + $0x224] ss:$16 sps:$4 sm:$0xff]   ;;  %v7055_v49 = vld [vmem:[#allocation6 + $0x1a0] ss:$16 sps:$4 sm:$0xff]  }
 0x214   :  { %v2876_v58 = vpop.f32.mrf.mxu0 }
 0x215   :  { %v2877_v46 = vadd.f32 %v2876_v58, %v2834_v41  ;;  %v2832_v57 = vadd.f32 %v8031_v2, %v599_v45  ;;  %v2836_v0 = vadd.f32 %v2835_v25, %v599_v45  ;;  %v7033_v25 = vld [vmem:[#allocation6 + $0x24] ss:$16 sps:$4 sm:$0xff]   ;;  %v7037_v58 = vld [vmem:[#allocation6] ss:$16 sps:$4 sm:$0xff]  }
 0x216   :  { %3248 = vmatpush2.bf16.msra.mxu1 %v6514_v11  ;;  %v2878_v60 = vpop.f32.mrf.mxu0  ;;  %v7042_v41 = vld [vmem:[#allocation6 + $0x264] ss:$16 sps:$4 sm:$0xff]   ;;  %v7046_v45 = vld [vmem:[#allocation6 + $0x240] ss:$16 sps:$4 sm:$0xff]  }
 0x217   :  { %3249 = vmatprep.subr.bf16.mxu1 %v6507_v16  ;;  %v2875_v62 = vadd.f32 %v2874_v24, %v2832_v57  ;;  %v2879_v12 = vadd.f32 %v2878_v60, %v2836_v0  ;;  %v7067_v57 = vld [vmem:[#allocation6 + $0x160] ss:$16 sps:$4 sm:$0xff]  }
 0x218   :  { %6551 = vmatmul.mubr.msk.bf16.vlgmr.msra.gmra.mxu0 %vm2619_vm0, %v7528_v35  ;;  %v7031_v35 = vld [vmem:[#allocation6 + $0x20] ss:$16 sps:$4 sm:$0xff]  }
 0x219   :  { %v2915_v39 = vpop.f32.mrf.mxu1  ;;  %4894 = vmatpush1.bf16.msra.mxu0 %v7004_v27  ;;  %4925 = vmatprep.mubr.bf16.mxu0 %v8038_v34  ;;  %v7064_v60 = vld [vmem:[#allocation6 + $0x3e0] ss:$16 sps:$4 sm:$0xff]  }
 0x21a   :  { %3250 = vmatpush2.bf16.msra.mxu1 %v6506_v31  ;;  %v2916_v42 = vadd.f32 %v2915_v39, %v2873_v10  ;;  %4895 = vmatprep.subr.bf16.mxu0 %v7009_v32  ;;  %v7027_v10 = vld [vmem:[#allocation6 + $0x44] ss:$16 sps:$4 sm:$0xff]   ;;  %v7022_v31 = vld [vmem:[#allocation6 + $0x2c0] ss:$16 sps:$4 sm:$0xff]  }
 0x21b   :  { %v2917_v59 = vpop.f32.mrf.mxu1  ;;  %3251 = vmatprep.subr.bf16.mxu1 %v6499_v33  ;;  %v7030_v32 = vld [vmem:[#allocation6 + $0x2a4] ss:$16 sps:$4 sm:$0xff]   ;;  %v7034_v39 = vld [vmem:[#allocation6 + $0x280] ss:$16 sps:$4 sm:$0xff]  }
 0x21c   :  { %v2918_v3 = vadd.f32 %v2917_v59, %v2875_v62  ;;  %v7048_v59 = vld [vmem:[#allocation6 + $0x244] ss:$16 sps:$4 sm:$0xff]   ;;  %v7070_v0 = vld [vmem:[#allocation6 + $0x3c0] ss:$16 sps:$4 sm:$0xff]  }
 0x21d   :  { %v2919_v53 = vpop.f32.mrf.mxu1  ;;  %4896 = vmatpush1.bf16.msra.mxu0 %v7007_v8  ;;  %v7045_v8 = vld [vmem:[#allocation6 + $0x1e4] ss:$16 sps:$4 sm:$0xff]  }
 0x21e   :  { %3252 = vmatpush2.bf16.msra.mxu1 %v6498_v43  ;;  %v2920_v50 = vadd.f32 %v2919_v53, %v2877_v46  ;;  %4897 = vmatprep.subr.bf16.mxu0 %v7012_v47  ;;  %v7040_v43 = vld [vmem:[#allocation6 + $0x260] ss:$16 sps:$4 sm:$0xff]   ;;  %v7051_v47 = vld [vmem:[#allocation6 + $0x1c4] ss:$16 sps:$4 sm:$0xff]  }
 0x21f   :  { %v2921_v54 = vpop.f32.mrf.mxu1  ;;  %3253 = vmatprep.subr.bf16.mxu1 %v6491_v36  ;;  %v7049_v36 = vld [vmem:[#allocation6 + $0x1c0] ss:$16 sps:$4 sm:$0xff]   ;;  %v7057_v46 = vld [vmem:[#allocation6 + $0x1a4] ss:$16 sps:$4 sm:$0xff]  }
 0x220   :  { %v2922_v2 = vadd.f32 %v2921_v54, %v2879_v12  ;;  %v7052_v53 = vld [vmem:[#allocation6 + $0x220] ss:$16 sps:$4 sm:$0xff]   ;;  %v7069_v54 = vld [vmem:[#allocation6 + $0x164] ss:$16 sps:$4 sm:$0xff]  }
 0x221   :  { %v2958_v56 = vpop.f32.mrf.mxu1  ;;  %4898 = vmatpush1.bf16.msra.mxu0 %v7010_v7  ;;  %v7063_v7 = vld [vmem:[#allocation6 + $0x184] ss:$16 sps:$4 sm:$0xff]  }
 0x222   :  { %3254 = vmatpush2.bf16.msra.mxu1 %v6490_v51  ;;  %v2959_v15 = vadd.f32 %v2958_v56, %v2916_v42  ;;  %4899 = vmatprep.subr.bf16.mxu0 %v7015_v5  ;;  %v7043_v42 = vld [vmem:[#allocation6 + $0x1e0] ss:$16 sps:$4 sm:$0xff]   ;;  %v7075_v56 = vld [vmem:[#allocation6 + $0x144] ss:$16 sps:$4 sm:$0xff]  }
 0x223   :  { %v2960_v22 = vpop.f32.mrf.mxu1  ;;  %3255 = vmatprep.subr.bf16.mxu1 %v6483_v52  ;;  %v7061_v51 = vld [vmem:[#allocation6 + $0x180] ss:$16 sps:$4 sm:$0xff]   ;;  %v7066_v52 = vld [vmem:[#allocation6 + $0x3e4] ss:$16 sps:$4 sm:$0xff]  }
 0x224   :  { %v2961_v6 = vadd.f32 %v2960_v22, %v2918_v3  ;;  %v3313_v14 = vmax.f32 %v2959_v15, 0.0  ;;  %v7058_v5 = vld [vmem:[#allocation6 + $0x200] ss:$16 sps:$4 sm:$0xff]   ;;  %v7081_v62 = vld [vmem:[#allocation6 + $0x124] ss:$16 sps:$4 sm:$0xff]  }
 0x225   :  { %v2962_v40 = vpop.f32.mrf.mxu1  ;;  %4900 = vmatpush1.bf16.msra.mxu0 %v7013_v61  ;;  %v7073_v61 = vld [vmem:[#allocation6 + $0x140] ss:$16 sps:$4 sm:$0xff]   ;;  %v7078_v15 = vld [vmem:[#allocation6 + $0x3a4] ss:$16 sps:$4 sm:$0xff]  }
 0x226   :  { %3256 = vmatpush2.bf16.msra.mxu1 %v6482_v29  ;;  %v2963_v28 = vadd.f32 %v2962_v40, %v2920_v50  ;;  %4901 = vmatprep.subr.bf16.mxu0 %v7021_v63  ;;  %v3314_v23 = vmax.f32 %v2961_v6, 0.0  ;;  %v7060_v50 = vld [vmem:[#allocation6 + $0x204] ss:$16 sps:$4 sm:$0xff]   ;;  %v7079_v63 = vld [vmem:[#allocation6 + $0x120] ss:$16 sps:$4 sm:$0xff]  }
 0x227   :  { %v2964_v11 = vpop.f32.mrf.mxu1  ;;  %4936 = vmatprep.subr.bf16.mxu1 %v7018_v1  ;;  %v7072_v29 = vld [vmem:[#allocation6 + $0x3c4] ss:$16 sps:$4 sm:$0xff]   ;;  %v7076_v22 = vld [vmem:[#allocation6 + $0x3a0] ss:$16 sps:$4 sm:$0xff]  }
 0x228   :  { %v3321_v16 = vmax.f32 %v2963_v28, 0.0  ;;  %v2965_v20 = vadd.f32 %v2964_v11, %v2922_v2  ;;  %v7087_v1 = vld [vmem:[#allocation6 + $0x104] ss:$16 sps:$4 sm:$0xff]   ;;  %v7085_v3 = vld [vmem:[#allocation6 + $0x100] ss:$16 sps:$4 sm:$0xff]  }
 0x229   :  { %3258 = vmatmul.mubr.bf16.vlgmr.msra.gmra.mxu1 %v8003_v19  ;;  %4902 = vmatpush1.bf16.msra.mxu0 %v7019_v4  ;;  %v7028_v19 = vld [vmem:[#allocation6 + $0x2a0] ss:$16 sps:$4 sm:$0xff]   ;;  %v7084_v12 = vld [vmem:[#allocation6 + $0x384] ss:$16 sps:$4 sm:$0xff]  }
 0x22a   :  { %v8051_v24 = vpack.c.bf16 %v3321_v16, %v3313_v14  ;;  %v3322_v27 = vmax.f32 %v2965_v20, 0.0  ;;  %4937 = vmatpush1.bf16.msra.mxu1 %v7016_v9  ;;  %4903 = vmatprep.subr.bf16.mxu0 %v7027_v10  ;;  %v7082_v40 = vld [vmem:[#allocation6 + $0x380] ss:$16 sps:$4 sm:$0xff]   ;;  %v7099_v4 = vld [vmem:[#allocation6 + $0x4e4] ss:$16 sps:$4 sm:$0xff]  }
 0x22b   :  { %4938 = vmatprep.subr.bf16.mxu1 %v7024_v13  ;;  %v7090_v2 = vld [vmem:[#allocation6 + $0x364] ss:$16 sps:$4 sm:$0xff]   ;;  %v7097_v6 = vld [vmem:[#allocation6 + $0x4e0] ss:$16 sps:$4 sm:$0xff]  }
 0x22c   :  { %v8053_v33 = vpack.c.bf16 %v3322_v27, %v3314_v23  ;;  %v7088_v28 = vld [vmem:[#allocation6 + $0x360] ss:$16 sps:$4 sm:$0xff]   ;;  %v7105_v9 = vld [vmem:[#allocation6 + $0x4c4] ss:$16 sps:$4 sm:$0xff]  }
 0x22d   :  { %4904 = vmatpush1.bf16.msra.mxu0 %v7025_v21  ;;  %v7093_v10 = vld [vmem:[#allocation6 + $0x344] ss:$16 sps:$4 sm:$0xff]   ;;  %v7103_v11 = vld [vmem:[#allocation6 + $0x4c0] ss:$16 sps:$4 sm:$0xff]  }
 0x22e   :  { %4939 = vmatpush1.bf16.msra.mxu1 %v7022_v31  ;;  %4968 = vmatprep.mubr.bf16.mxu1 %v8053_v33  ;;  %v7091_v13 = vld [vmem:[#allocation6 + $0x340] ss:$16 sps:$4 sm:$0xff]   ;;  %v7108_v14 = vld [vmem:[#allocation6 + $0x4a4] ss:$16 sps:$4 sm:$0xff]  }
 0x22f   :  { %4940 = vmatprep.subr.bf16.mxu1 %v7030_v32  ;;  %4905 = vmatprep.subr.bf16.mxu0 %v7033_v25  ;;  %v7096_v16 = vld [vmem:[#allocation6 + $0x324] ss:$16 sps:$4 sm:$0xff]   ;;  %v7106_v20 = vld [vmem:[#allocation6 + $0x4a0] ss:$16 sps:$4 sm:$0xff]  }
 0x230   :  { %v7094_v21 = vld [vmem:[#allocation6 + $0x320] ss:$16 sps:$4 sm:$0xff]   ;;  %v7111_v23 = vld [vmem:[#allocation6 + $0x484] ss:$16 sps:$4 sm:$0xff]  }
 0x231   :  { %4906 = vmatpush1.bf16.msra.mxu0 %v7031_v35  ;;  %v7102_v27 = vld [vmem:[#allocation6 + $0x304] ss:$16 sps:$4 sm:$0xff]   ;;  %v7109_v31 = vld [vmem:[#allocation6 + $0x480] ss:$16 sps:$4 sm:$0xff]  }
 0x232   :  { %4941 = vmatpush1.bf16.msra.mxu1 %v7028_v19  ;;  %4907 = vmatprep.subr.bf16.mxu0 %v7039_v37  ;;  %v7100_v32 = vld [vmem:[#allocation6 + $0x300] ss:$16 sps:$4 sm:$0xff]   ;;  %v7114_v25 = vld [vmem:[#allocation6 + $0x464] ss:$16 sps:$4 sm:$0xff]  }
 0x233   :  { %4942 = vmatprep.subr.bf16.mxu1 %v7036_v38  ;;  %v7168_v35 = vld [vmem:[#allocation6 + $0x6e4] ss:$16 sps:$4 sm:$0xff]   ;;  %v7112_v19 = vld [vmem:[#allocation6 + $0x460] ss:$16 sps:$4 sm:$0xff]  }
 0x234   :  { %v7117_v37 = vld [vmem:[#allocation6 + $0x444] ss:$16 sps:$4 sm:$0xff]   ;;  %v7166_v38 = vld [vmem:[#allocation6 + $0x6e0] ss:$16 sps:$4 sm:$0xff]  }
 0x235   :  { %4908 = vmatpush1.bf16.msra.mxu0 %v7037_v58  ;;  %v7174_v58 = vld [vmem:[#allocation6 + $0x6c4] ss:$16 sps:$4 sm:$0xff]  }
 0x236   :  { %4943 = vmatpush1.bf16.msra.mxu1 %v7034_v39  ;;  %4909 = vmatprep.subr.bf16.mxu0 %v7045_v8  ;;  %v7115_v39 = vld [vmem:[#allocation6 + $0x440] ss:$16 sps:$4 sm:$0xff]   ;;  %v7120_v8 = vld [vmem:[#allocation6 + $0x424] ss:$16 sps:$4 sm:$0xff]  }
 0x237   :  { %4944 = vmatprep.subr.bf16.mxu1 %v7042_v41  ;;  %v7172_v41 = vld [vmem:[#allocation6 + $0x6c0] ss:$16 sps:$4 sm:$0xff]  }
 0x239   :  { %4910 = vmatpush2.bf16.msra.mxu0 %v7043_v42  ;;  %v7180_v42 = vld [vmem:[#allocation6 + $0x6a4] ss:$16 sps:$4 sm:$0xff]  }
 0x23a   :  { %4945 = vmatpush1.bf16.msra.mxu1 %v7040_v43  ;;  %4911 = vmatprep.subr.bf16.mxu0 %v7051_v47  ;;  %v7118_v43 = vld [vmem:[#allocation6 + $0x420] ss:$16 sps:$4 sm:$0xff]   ;;  %v7123_v47 = vld [vmem:[#allocation6 + $0x404] ss:$16 sps:$4 sm:$0xff]  }
 0x23b   :  { %4946 = vmatprep.subr.bf16.mxu1 %v7048_v59  ;;  %v7178_v59 = vld [vmem:[#allocation6 + $0x6a0] ss:$16 sps:$4 sm:$0xff]  }
 0x23d   :  { %4912 = vmatpush2.bf16.msra.mxu0 %v7049_v36  ;;  %v7186_v36 = vld [vmem:[#allocation6 + $0x684] ss:$16 sps:$4 sm:$0xff]  }
 0x23e   :  { %4947 = vmatpush1.bf16.msra.mxu1 %v7046_v45  ;;  %4913 = vmatprep.subr.bf16.mxu0 %v7057_v46  ;;  %v7121_v45 = vld [vmem:[#allocation6 + $0x400] ss:$16 sps:$4 sm:$0xff]   ;;  %v7126_v46 = vld [vmem:[#allocation6 + $0x5e4] ss:$16 sps:$4 sm:$0xff]  }
 0x23f   :  { %4948 = vmatprep.subr.bf16.mxu1 %v7054_v48  ;;  %v7184_v48 = vld [vmem:[#allocation6 + $0x680] ss:$16 sps:$4 sm:$0xff]  }
 0x241   :  { %4914 = vmatpush2.bf16.msra.mxu0 %v7055_v49  ;;  %v7192_v49 = vld [vmem:[#allocation6 + $0x664] ss:$16 sps:$4 sm:$0xff]  }
 0x242   :  { %4949 = vmatpush1.bf16.msra.mxu1 %v7052_v53  ;;  %4915 = vmatprep.subr.bf16.mxu0 %v7063_v7  ;;  %v7124_v53 = vld [vmem:[#allocation6 + $0x5e0] ss:$16 sps:$4 sm:$0xff]   ;;  %v7129_v7 = vld [vmem:[#allocation6 + $0x5c4] ss:$16 sps:$4 sm:$0xff]  }
 0x243   :  { %4950 = vmatprep.subr.bf16.mxu1 %v7060_v50  ;;  %v7190_v50 = vld [vmem:[#allocation6 + $0x660] ss:$16 sps:$4 sm:$0xff]  }
 0x245   :  { %4916 = vmatpush2.bf16.msra.mxu0 %v7061_v51  ;;  %v7198_v51 = vld [vmem:[#allocation6 + $0x644] ss:$16 sps:$4 sm:$0xff]  }
 0x246   :  { %4951 = vmatpush1.bf16.msra.mxu1 %v7058_v5  ;;  %4917 = vmatprep.subr.bf16.mxu0 %v7069_v54  ;;  %v7127_v5 = vld [vmem:[#allocation6 + $0x5c0] ss:$16 sps:$4 sm:$0xff]   ;;  %v7132_v54 = vld [vmem:[#allocation6 + $0x5a4] ss:$16 sps:$4 sm:$0xff]  }
 0x247   :  { %4952 = vmatprep.subr.bf16.mxu1 %v7066_v52  ;;  %v7196_v52 = vld [vmem:[#allocation6 + $0x640] ss:$16 sps:$4 sm:$0xff]  }
 0x249   :  { %4918 = vmatpush2.bf16.msra.mxu0 %v7067_v57  ;;  %v7204_v57 = vld [vmem:[#allocation6 + $0x624] ss:$16 sps:$4 sm:$0xff]  }
 0x24a   :  { %4953 = vmatpush2.bf16.msra.mxu1 %v7064_v60  ;;  %4919 = vmatprep.subr.bf16.mxu0 %v7075_v56  ;;  %v7130_v56 = vld [vmem:[#allocation6 + $0x5a0] ss:$16 sps:$4 sm:$0xff]  }
 0x24b   :  { %4954 = vmatprep.subr.bf16.mxu1 %v7072_v29  ;;  %v7135_v29 = vld [vmem:[#allocation6 + $0x584] ss:$16 sps:$4 sm:$0xff]  }
 0x24d   :  { %4920 = vmatpush2.bf16.msra.mxu0 %v7073_v61  ;;  %v7202_v61 = vld [vmem:[#allocation6 + $0x620] ss:$16 sps:$4 sm:$0xff]  }
 0x24e   :  { %4955 = vmatpush2.bf16.msra.mxu1 %v7070_v0  ;;  %4921 = vmatprep.subr.bf16.mxu0 %v7081_v62  ;;  %v7210_v0 = vld [vmem:[#allocation6 + $0x604] ss:$16 sps:$4 sm:$0xff]  }
 0x24f   :  { %4956 = vmatprep.subr.bf16.mxu1 %v7078_v15  ;;  %v7133_v15 = vld [vmem:[#allocation6 + $0x580] ss:$16 sps:$4 sm:$0xff]  }
 0x251   :  { %4922 = vmatpush2.bf16.msra.mxu0 %v7079_v63  ;;  %v3001_v63 = vpop.f32.mrf.mxu0 }
 0x252   :  { %4957 = vmatpush2.bf16.msra.mxu1 %v7076_v22  ;;  %4923 = vmatprep.subr.bf16.mxu0 %v7087_v1  ;;  %v7138_v22 = vld [vmem:[#allocation6 + $0x564] ss:$16 sps:$4 sm:$0xff]   ;;  %v7208_v1 = vld [vmem:[#allocation6 + $0x600] ss:$16 sps:$4 sm:$0xff]  }
 0x253   :  { %4958 = vmatprep.subr.bf16.mxu1 %v7084_v12  ;;  %v7216_v12 = vld [vmem:[#allocation6 + $0x7e4] ss:$16 sps:$4 sm:$0xff]  }
 0x255   :  { %4924 = vmatpush2.bf16.msra.mxu0 %v7085_v3 }
 0x256   :  { %4959 = vmatpush2.bf16.msra.mxu1 %v7082_v40  ;;  %4979 = vmatprep.subr.bf16.mxu0 %v7099_v4  ;;  %v606_v40 = vsub.s32 5, %v7962_v18  ;;  %v7136_v4 = vld [vmem:[#allocation6 + $0x560] ss:$16 sps:$4 sm:$0xff]  }
 0x257   :  { %4960 = vmatprep.subr.bf16.mxu1 %v7090_v2  ;;  %v602_v2 = vsub.s32 4, %v7962_v18 }
 0x258   :  { %4926 = vmatmul.mubr.bf16.vlgmr.msra.gmra.mxu0 %v8013_v55 }
 0x259   :  { %4980 = vmatpush1.bf16.msra.mxu0 %v7097_v6  ;;  %v3003_v6 = vpop.f32.mrf.mxu0 }
 0x25a   :  { %4961 = vmatpush2.bf16.msra.mxu1 %v7088_v28  ;;  %4981 = vmatprep.subr.bf16.mxu0 %v7105_v9  ;;  %v7141_v28 = vld [vmem:[#allocation6 + $0x544] ss:$16 sps:$4 sm:$0xff]   ;;  %v7214_v9 = vld [vmem:[#allocation6 + $0x7e0] ss:$16 sps:$4 sm:$0xff]  }
 0x25b   :  { %4962 = vmatprep.subr.bf16.mxu1 %v7093_v10  ;;  %v7222_v10 = vld [vmem:[#allocation6 + $0x7c4] ss:$16 sps:$4 sm:$0xff]  }
 0x25d   :  { %4982 = vmatpush1.bf16.msra.mxu0 %v7103_v11 }
 0x25e   :  { %4963 = vmatpush2.bf16.msra.mxu1 %v7091_v13  ;;  %4983 = vmatprep.subr.bf16.mxu0 %v7108_v14  ;;  %v8060_v13 = vld [vmem:[#allocation4] sm:$0xff] }
 0x25f   :  { %4964 = vmatprep.subr.bf16.mxu1 %v7096_v16  ;;  %v607_v14 = vrot.slane %v8060_v13, %v606_v40  ;;  %v7139_v16 = vld [vmem:[#allocation6 + $0x540] ss:$16 sps:$4 sm:$0xff]   ;;  %v7252_v40 = vld [vmem:[#allocation6 + $0x724] ss:$16 sps:$4 sm:$0xff]  }
 0x261   :  { %4984 = vmatpush1.bf16.msra.mxu0 %v7106_v20  ;;  %v3044_v60 = vpop.f32.mrf.mxu1  ;;  %v603_v20 = vrot.slane %v8060_v13, %v602_v2 }
 0x262   :  { %4965 = vmatpush2.bf16.msra.mxu1 %v7094_v21  ;;  %4985 = vmatprep.subr.bf16.mxu0 %v7111_v23  ;;  %v3005_v21 = vpop.f32.mrf.mxu0  ;;  %v7144_v23 = vld [vmem:[#allocation6 + $0x524] ss:$16 sps:$4 sm:$0xff]  }
 0x263   :  { %4966 = vmatprep.subr.bf16.mxu1 %v7102_v27  ;;  %v3046_v62 = vpop.f32.mrf.mxu1  ;;  %v7220_v27 = vld [vmem:[#allocation6 + $0x7c0] ss:$16 sps:$4 sm:$0xff]  }
 0x265   :  { %4986 = vmatpush1.bf16.msra.mxu0 %v7109_v31  ;;  %v3048_v3 = vpop.f32.mrf.mxu1  ;;  %v7228_v31 = vld [vmem:[#allocation6 + $0x7a4] ss:$16 sps:$4 sm:$0xff]  }
 0x266   :  { %4967 = vmatpush2.bf16.msra.mxu1 %v7100_v32  ;;  %4987 = vmatprep.subr.bf16.mxu0 %v7114_v25  ;;  %v3004_v25 = vadd.f32 %v3003_v6, %v607_v14  ;;  %v7148_v6 = vld [vmem:[#allocation6 + $0xe8] ss:$16 sps:$4 sm:$0xff]  }
 0x267   :  { %5022 = vmatprep.subr.bf16.mxu1 %v7168_v35  ;;  %v3050_v11 = vpop.f32.mrf.mxu1  ;;  %v7142_v35 = vld [vmem:[#allocation6 + $0x520] ss:$16 sps:$4 sm:$0xff]  }
 0x269   :  { %4969 = vmatmul.mubr.bf16.vlgmr.msra.gmra.mxu1 %v8051_v24  ;;  %4988 = vmatpush1.bf16.msra.mxu0 %v7112_v19  ;;  %v3130_v32 = vpop.f32.mrf.mxu1  ;;  %v3002_v19 = vadd.f32 %v3001_v63, %v603_v20 }
 0x26a   :  { %4989 = vmatprep.subr.bf16.mxu0 %v7117_v37  ;;  %5023 = vmatpush1.bf16.msra.mxu1 %v7166_v38  ;;  %v3007_v37 = vpop.f32.mrf.mxu0  ;;  %v7147_v38 = vld [vmem:[#allocation6 + $0x504] ss:$16 sps:$4 sm:$0xff]  }
 0x26b   :  { %5024 = vmatprep.subr.bf16.mxu1 %v7174_v58  ;;  %v7226_v58 = vld [vmem:[#allocation6 + $0x7a0] ss:$16 sps:$4 sm:$0xff]  }
 0x26d   :  { %4990 = vmatpush1.bf16.msra.mxu0 %v7115_v39  ;;  %v3006_v39 = vadd.f32 %v3005_v21, %v603_v20  ;;  %v7256_v20 = vld [vmem:[#allocation6 + $0x700] ss:$16 sps:$4 sm:$0xff]   ;;  %v7264_v21 = vld [vmem:[#allocation6 + $0x2ec] ss:$16 sps:$4 sm:$0xff]  }
 0x26e   :  { %4991 = vmatprep.subr.bf16.mxu0 %v7120_v8  ;;  %5025 = vmatpush1.bf16.msra.mxu1 %v7172_v41  ;;  %v7234_v8 = vld [vmem:[#allocation6 + $0x784] ss:$16 sps:$4 sm:$0xff]   ;;  %v3132_v41 = vpop.f32.mrf.mxu1 }
 0x26f   :  { %5026 = vmatprep.subr.bf16.mxu1 %v7180_v42 }
 0x271   :  { %4992 = vmatpush1.bf16.msra.mxu0 %v7118_v43  ;;  %v3047_v43 = vadd.f32 %v3046_v62, %v3004_v25  ;;  %v7160_v25 = vld [vmem:[#allocation6 + $0x68] ss:$16 sps:$4 sm:$0xff]  }
 0x272   :  { %4993 = vmatprep.subr.bf16.mxu0 %v7123_v47  ;;  %5027 = vmatpush1.bf16.msra.mxu1 %v7178_v59  ;;  %v7145_v47 = vld [vmem:[#allocation6 + $0x500] ss:$16 sps:$4 sm:$0xff]   ;;  %v3045_v59 = vadd.f32 %v3044_v60, %v3002_v19  ;;  %v7171_v19 = vld [vmem:[#allocation6 + $0x2c] ss:$16 sps:$4 sm:$0xff]  }
 0x273   :  { %5028 = vmatprep.subr.bf16.mxu1 %v7186_v36  ;;  %v7238_v60 = vld [vmem:[#allocation6 + $0x760] ss:$16 sps:$4 sm:$0xff]  }
 0x275   :  { %4994 = vmatpush1.bf16.msra.mxu0 %v7121_v45  ;;  %v7150_v45 = vld [vmem:[#allocation6 + $0xec] ss:$16 sps:$4 sm:$0xff]  }
 0x276   :  { %4995 = vmatprep.subr.bf16.mxu0 %v7126_v46  ;;  %5029 = vmatpush1.bf16.msra.mxu1 %v7184_v48  ;;  %v7232_v46 = vld [vmem:[#allocation6 + $0x780] ss:$16 sps:$4 sm:$0xff]   ;;  %v3008_v48 = vadd.f32 %v3007_v37, %v607_v14  ;;  %v7151_v14 = vld [vmem:[#allocation6 + $0xc8] ss:$16 sps:$4 sm:$0xff]  }
 0x277   :  { %5030 = vmatprep.subr.bf16.mxu1 %v7192_v49  ;;  %v3049_v49 = vadd.f32 %v3048_v3, %v3006_v39  ;;  %v7169_v37 = vld [vmem:[#allocation6 + $0x28] ss:$16 sps:$4 sm:$0xff]   ;;  %v7183_v39 = vld [vmem:[#allocation6 + $0x1ec] ss:$16 sps:$4 sm:$0xff]  }
 0x279   :  { %4996 = vmatpush2.bf16.msra.mxu0 %v7124_v53 }
 0x27a   :  { %4997 = vmatprep.subr.bf16.mxu0 %v7129_v7  ;;  %5031 = vmatpush1.bf16.msra.mxu1 %v7190_v50  ;;  %v7240_v7 = vld [vmem:[#allocation6 + $0x764] ss:$16 sps:$4 sm:$0xff]   ;;  %v3134_v50 = vpop.f32.mrf.mxu1 }
 0x27b   :  { %5032 = vmatprep.subr.bf16.mxu1 %v7198_v51 }
 0x27c   :  { %v3136_v62 = vpop.f32.mrf.mxu1 }
 0x27d   :  { %4998 = vmatpush2.bf16.msra.mxu0 %v7127_v5 }
 0x27e   :  { %4999 = vmatprep.subr.bf16.mxu0 %v7132_v54  ;;  %5033 = vmatpush1.bf16.msra.mxu1 %v7196_v52  ;;  %v3051_v54 = vadd.f32 %v3050_v11, %v3008_v48  ;;  %v7258_v11 = vld [vmem:[#allocation6 + $0x704] ss:$16 sps:$4 sm:$0xff]   ;;  %v7213_v48 = vld [vmem:[#allocation6 + $0x14c] ss:$16 sps:$4 sm:$0xff]  }
 0x27f   :  { %5034 = vmatprep.subr.bf16.mxu1 %v7204_v57 }
 0x281   :  { %5000 = vmatpush2.bf16.msra.mxu0 %v7130_v56 }
 0x282   :  { %5001 = vmatprep.subr.bf16.mxu0 %v7135_v29  ;;  %5035 = vmatpush1.bf16.msra.mxu1 %v7202_v61 }
 0x283   :  { %5036 = vmatprep.subr.bf16.mxu1 %v7210_v0  ;;  %v7246_v0 = vld [vmem:[#allocation6 + $0x744] ss:$16 sps:$4 sm:$0xff]  }
 0x285   :  { %5002 = vmatpush2.bf16.msra.mxu0 %v7133_v15 }
 0x286   :  { %5003 = vmatprep.subr.bf16.mxu0 %v7138_v22  ;;  %5037 = vmatpush1.bf16.msra.mxu1 %v7208_v1  ;;  %v7244_v1 = vld [vmem:[#allocation6 + $0x740] ss:$16 sps:$4 sm:$0xff]  }
 0x287   :  { %5038 = vmatprep.subr.bf16.mxu1 %v7216_v12 }
 0x289   :  { %5004 = vmatpush2.bf16.msra.mxu0 %v7136_v4 }
 0x28a   :  { %5005 = vmatprep.subr.bf16.mxu0 %v7141_v28  ;;  %5039 = vmatpush2.bf16.msra.mxu1 %v7214_v9  ;;  %v7153_v9 = vld [vmem:[#allocation6 + $0xcc] ss:$16 sps:$4 sm:$0xff]  }
 0x28b   :  { %5040 = vmatprep.subr.bf16.mxu1 %v7222_v10  ;;  %v7250_v10 = vld [vmem:[#allocation6 + $0x720] ss:$16 sps:$4 sm:$0xff]  }
 0x28d   :  { %5006 = vmatpush2.bf16.msra.mxu0 %v7139_v16  ;;  %v7156_v16 = vld [vmem:[#allocation6 + $0xac] ss:$16 sps:$4 sm:$0xff]  }
 0x28e   :  { %5007 = vmatprep.subr.bf16.mxu0 %v7144_v23  ;;  %5041 = vmatpush2.bf16.msra.mxu1 %v7220_v27  ;;  %v7154_v23 = vld [vmem:[#allocation6 + $0xa8] ss:$16 sps:$4 sm:$0xff]   ;;  %v7159_v27 = vld [vmem:[#allocation6 + $0x8c] ss:$16 sps:$4 sm:$0xff]  }
 0x28f   :  { %5042 = vmatprep.subr.bf16.mxu1 %v7228_v31  ;;  %v7157_v31 = vld [vmem:[#allocation6 + $0x88] ss:$16 sps:$4 sm:$0xff]  }
 0x290   :  { %v3087_v42 = vpop.f32.mrf.mxu0 }
 0x291   :  { %5008 = vmatpush2.bf16.msra.mxu0 %v7142_v35  ;;  %v3088_v51 = vadd.f32 %v3087_v42, %v3045_v59  ;;  %v7163_v35 = vld [vmem:[#allocation6 + $0x48] ss:$16 sps:$4 sm:$0xff]   ;;  %v7201_v59 = vld [vmem:[#allocation6 + $0x18c] ss:$16 sps:$4 sm:$0xff]  }
 0x292   :  { %v3089_v36 = vpop.f32.mrf.mxu0  ;;  %5009 = vmatprep.subr.bf16.mxu0 %v7147_v38  ;;  %5043 = vmatpush2.bf16.msra.mxu1 %v7226_v58  ;;  %v7177_v38 = vld [vmem:[#allocation6 + $0xc] ss:$16 sps:$4 sm:$0xff]   ;;  %v7175_v58 = vld [vmem:[#allocation6 + $0x8] ss:$16 sps:$4 sm:$0xff]  }
 0x293   :  { %v3090_v53 = vadd.f32 %v3089_v36, %v3047_v43  ;;  %5044 = vmatprep.subr.bf16.mxu1 %v7234_v8  ;;  %v3131_v15 = vadd.f32 %v3130_v32, %v3088_v51  ;;  %v7162_v32 = vld [vmem:[#allocation6 + $0x6c] ss:$16 sps:$4 sm:$0xff]   ;;  %v7181_v8 = vld [vmem:[#allocation6 + $0x1e8] ss:$16 sps:$4 sm:$0xff]  }
 0x294   :  { %v3091_v5 = vpop.f32.mrf.mxu0  ;;  %v7187_v42 = vld [vmem:[#allocation6 + $0x1c8] ss:$16 sps:$4 sm:$0xff]   ;;  %v7195_v43 = vld [vmem:[#allocation6 + $0x1ac] ss:$16 sps:$4 sm:$0xff]  }
 0x295   :  { %v3092_v52 = vadd.f32 %v3091_v5, %v3049_v49  ;;  %5010 = vmatpush2.bf16.msra.mxu0 %v7145_v47  ;;  %v3133_v56 = vadd.f32 %v3132_v41, %v3090_v53  ;;  %v3315_v4 = vmax.f32 %v3131_v15, 0.0  ;;  %v7189_v41 = vld [vmem:[#allocation6 + $0x1cc] ss:$16 sps:$4 sm:$0xff]   ;;  %v7193_v47 = vld [vmem:[#allocation6 + $0x1a8] ss:$16 sps:$4 sm:$0xff]  }
 0x296   :  { %v3093_v57 = vpop.f32.mrf.mxu0  ;;  %5065 = vmatprep.subr.bf16.mxu0 %v7150_v45  ;;  %5045 = vmatpush2.bf16.msra.mxu1 %v7232_v46  ;;  %v7199_v36 = vld [vmem:[#allocation6 + $0x188] ss:$16 sps:$4 sm:$0xff]   ;;  %v7207_v45 = vld [vmem:[#allocation6 + $0x16c] ss:$16 sps:$4 sm:$0xff]  }
 0x297   :  { %v3135_v29 = vadd.f32 %v3134_v50, %v3092_v52  ;;  %v3094_v61 = vadd.f32 %v3093_v57, %v3051_v54  ;;  %5046 = vmatprep.subr.bf16.mxu1 %v7240_v7  ;;  %v3316_v12 = vmax.f32 %v3133_v56, 0.0  ;;  %v7205_v46 = vld [vmem:[#allocation6 + $0x168] ss:$16 sps:$4 sm:$0xff]   ;;  %v7219_v53 = vld [vmem:[#allocation6 + $0x12c] ss:$16 sps:$4 sm:$0xff]  }
 0x298   :  { %v7211_v49 = vld [vmem:[#allocation6 + $0x148] ss:$16 sps:$4 sm:$0xff]   ;;  %v7225_v50 = vld [vmem:[#allocation6 + $0x10c] ss:$16 sps:$4 sm:$0xff]  }
 0x299   :  { %v3137_v63 = vadd.f32 %v3136_v62, %v3094_v61  ;;  %v3323_v22 = vmax.f32 %v3135_v29, 0.0  ;;  %v7217_v7 = vld [vmem:[#allocation6 + $0x128] ss:$16 sps:$4 sm:$0xff]   ;;  %v7231_v54 = vld [vmem:[#allocation6 + $0x4ec] ss:$16 sps:$4 sm:$0xff]   ;;  %v610_v62 = vsub.s32 6, %v7962_v18 }
 0x29a   :  { %5047 = vmatpush2.bf16.msra.mxu1 %v7238_v60  ;;  %v7223_v5 = vld [vmem:[#allocation6 + $0x108] ss:$16 sps:$4 sm:$0xff]   ;;  %v7237_v56 = vld [vmem:[#allocation6 + $0x4cc] ss:$16 sps:$4 sm:$0xff]  }
 0x29b   :  { %v3324_v3 = vmax.f32 %v3137_v63, 0.0  ;;  %5048 = vmatprep.subr.bf16.mxu1 %v7246_v0  ;;  %v8066_v28 = vpack.c.bf16 %v3323_v22, %v3315_v4  ;;  %v7229_v60 = vld [vmem:[#allocation6 + $0x4e8] ss:$16 sps:$4 sm:$0xff]   ;;  %v614_v0 = vsub.s32 7, %v7962_v18  ;;  %v7243_v63 = vld [vmem:[#allocation6 + $0x4ac] ss:$16 sps:$4 sm:$0xff]  }
 0x29c   :  { %v7235_v15 = vld [vmem:[#allocation6 + $0x4c8] ss:$16 sps:$4 sm:$0xff]  }
 0x29d   :  { %v8064_v2 = vpack.c.bf16 %v3324_v3, %v3316_v12  ;;  %v615_v12 = vrot.slane %v8060_v13, %v614_v0  ;;  %v611_v3 = vrot.slane %v8060_v13, %v610_v62  ;;  %v7241_v4 = vld [vmem:[#allocation6 + $0x4a8] ss:$16 sps:$4 sm:$0xff]   ;;  %v7285_v62 = vld [vmem:[#allocation6 + $0x5cc] ss:$16 sps:$4 sm:$0xff]  }
 0x29e   :  { %5049 = vmatpush2.bf16.msra.mxu1 %v7244_v1  ;;  %v7274_v0 = vld [vmem:[#allocation6 + $0x2a8] ss:$16 sps:$4 sm:$0xff]  }
 0x29f   :  { %5011 = vmatprep.mubr.bf16.mxu0 %v8064_v2  ;;  %5050 = vmatprep.subr.bf16.mxu1 %v7252_v40 }
 0x2a0   :  { %5012 = vmatmul.mubr.bf16.vlgmr.msra.gmra.mxu0 %v8066_v28 }
 0x2a1   :  { %5066 = vmatpush1.bf16.msra.mxu0 %v7148_v6  ;;  %5097 = vmatprep.mubr.bf16.mxu0 %v8038_v34  ;;  %v7165_v34 = vld [vmem:[#allocation6 + $0x4c] ss:$16 sps:$4 sm:$0xff]  }
 0x2a2   :  { %5067 = vmatprep.subr.bf16.mxu0 %v7153_v9  ;;  %5051 = vmatpush2.bf16.msra.mxu1 %v7250_v10  ;;  %v7249_v6 = vld [vmem:[#allocation6 + $0x48c] ss:$16 sps:$4 sm:$0xff]  }
 0x2a3   :  { %5052 = vmatprep.subr.bf16.mxu1 %v7258_v11 }
 0x2a5   :  { %5068 = vmatpush1.bf16.msra.mxu0 %v7151_v14 }
 0x2a6   :  { %5069 = vmatprep.subr.bf16.mxu0 %v7156_v16  ;;  %5053 = vmatpush2.bf16.msra.mxu1 %v7256_v20 }
 0x2a7   :  { %5108 = vmatprep.subr.bf16.mxu1 %v7264_v21  ;;  %v7255_v21 = vld [vmem:[#allocation6 + $0x46c] ss:$16 sps:$4 sm:$0xff]  }
 0x2a9   :  { %5070 = vmatpush1.bf16.msra.mxu0 %v7154_v23  ;;  %v3173_v52 = vpop.f32.mrf.mxu1 }
 0x2aa   :  { %5071 = vmatprep.subr.bf16.mxu0 %v7159_v27  ;;  %v3174_v10 = vadd.f32 %v3173_v52, %v611_v3  ;;  %v7273_v52 = vld [vmem:[#allocation6 + $0x40c] ss:$16 sps:$4 sm:$0xff]  }
 0x2ab   :  { %v3175_v29 = vpop.f32.mrf.mxu1 }
 0x2ac   :  { %v3176_v9 = vadd.f32 %v3175_v29, %v615_v12  ;;  %v7276_v29 = vld [vmem:[#allocation6 + $0x2ac] ss:$16 sps:$4 sm:$0xff]  }
 0x2ad   :  { %5072 = vmatpush1.bf16.msra.mxu0 %v7157_v31  ;;  %v3177_v22 = vpop.f32.mrf.mxu1 }
 0x2ae   :  { %5073 = vmatprep.subr.bf16.mxu0 %v7162_v32  ;;  %v3178_v16 = vadd.f32 %v3177_v22, %v611_v3  ;;  %v7280_v22 = vld [vmem:[#allocation6 + $0x288] ss:$16 sps:$4 sm:$0xff]  }
 0x2af   :  { %v7286_v3 = vld [vmem:[#allocation6 + $0x268] ss:$16 sps:$4 sm:$0xff]  }
 0x2b1   :  { %5074 = vmatpush1.bf16.msra.mxu0 %v7160_v25 }
 0x2b2   :  { %5075 = vmatprep.subr.bf16.mxu0 %v7165_v34 }
 0x2b5   :  { %5076 = vmatpush1.bf16.msra.mxu0 %v7163_v35 }
 0x2b6   :  { %5077 = vmatprep.subr.bf16.mxu0 %v7171_v19  ;;  %v7253_v19 = vld [vmem:[#allocation6 + $0x468] ss:$16 sps:$4 sm:$0xff]  }
 0x2b9   :  { %5078 = vmatpush1.bf16.msra.mxu0 %v7169_v37 }
 0x2ba   :  { %5079 = vmatprep.subr.bf16.mxu0 %v7177_v38 }
 0x2bd   :  { %5080 = vmatpush1.bf16.msra.mxu0 %v7175_v58  ;;  %v7261_v58 = vld [vmem:[#allocation6 + $0x44c] ss:$16 sps:$4 sm:$0xff]  }
 0x2be   :  { %5081 = vmatprep.subr.bf16.mxu0 %v7183_v39 }
 0x2c1   :  { %5082 = vmatpush2.bf16.msra.mxu0 %v7181_v8 }
 0x2c2   :  { %5083 = vmatprep.subr.bf16.mxu0 %v7189_v41 }
 0x2c5   :  { %5084 = vmatpush2.bf16.msra.mxu0 %v7187_v42 }
 0x2c6   :  { %5085 = vmatprep.subr.bf16.mxu0 %v7195_v43 }
 0x2c9   :  { %5086 = vmatpush2.bf16.msra.mxu0 %v7193_v47 }
 0x2ca   :  { %5087 = vmatprep.subr.bf16.mxu0 %v7201_v59  ;;  %v7259_v59 = vld [vmem:[#allocation6 + $0x448] ss:$16 sps:$4 sm:$0xff]  }
 0x2cd   :  { %5088 = vmatpush2.bf16.msra.mxu0 %v7199_v36 }
 0x2ce   :  { %5089 = vmatprep.subr.bf16.mxu0 %v7207_v45  ;;  %v7267_v45 = vld [vmem:[#allocation6 + $0x42c] ss:$16 sps:$4 sm:$0xff]  }
 0x2d0   :  { %v3216_v51 = vpop.f32.mrf.mxu0 }
 0x2d1   :  { %5090 = vmatpush2.bf16.msra.mxu0 %v7205_v46  ;;  %v3217_v23 = vadd.f32 %v3216_v51, %v3174_v10  ;;  %v7262_v51 = vld [vmem:[#allocation6 + $0x2e8] ss:$16 sps:$4 sm:$0xff]   ;;  %v7300_v10 = vld [vmem:[#allocation6 + $0x22c] ss:$16 sps:$4 sm:$0xff]  }
 0x2d2   :  { %5091 = vmatprep.subr.bf16.mxu0 %v7213_v48  ;;  %v3218_v57 = vpop.f32.mrf.mxu0 }
 0x2d3   :  { %v3219_v20 = vadd.f32 %v3218_v57, %v3176_v9  ;;  %v7271_v57 = vld [vmem:[#allocation6 + $0x408] ss:$16 sps:$4 sm:$0xff]   ;;  %v7303_v9 = vld [vmem:[#allocation6 + $0x56c] ss:$16 sps:$4 sm:$0xff]  }
 0x2d4   :  { %v3220_v61 = vpop.f32.mrf.mxu0 }
 0x2d5   :  { %5092 = vmatpush2.bf16.msra.mxu0 %v7211_v49  ;;  %v3221_v13 = vadd.f32 %v3220_v61, %v3178_v16  ;;  %v7277_v61 = vld [vmem:[#allocation6 + $0x5e8] ss:$16 sps:$4 sm:$0xff]   ;;  %v7306_v16 = vld [vmem:[#allocation6 + $0x20c] ss:$16 sps:$4 sm:$0xff]  }
 0x2d6   :  { %5093 = vmatprep.subr.bf16.mxu0 %v7219_v53  ;;  %v3222_v1 = vpop.f32.mrf.mxu0 }
 0x2d8   :  { %v3302_v40 = vpop.f32.mrf.mxu0 }
 0x2d9   :  { %5094 = vmatpush2.bf16.msra.mxu0 %v7217_v7  ;;  %v7265_v7 = vld [vmem:[#allocation6 + $0x428] ss:$16 sps:$4 sm:$0xff]  }
 0x2da   :  { %5095 = vmatprep.subr.bf16.mxu0 %v7225_v50  ;;  %v3304_v11 = vpop.f32.mrf.mxu0 }
 0x2dc   :  { %v3306_v34 = vpop.f32.mrf.mxu0 }
 0x2dd   :  { %5096 = vmatpush2.bf16.msra.mxu0 %v7223_v5 }
 0x2de   :  { %5151 = vmatprep.subr.bf16.mxu0 %v7231_v54  ;;  %v3308_v47 = vpop.f32.mrf.mxu0  ;;  %v7270_v54 = vld [vmem:[#allocation6 + $0x2cc] ss:$16 sps:$4 sm:$0xff]  }
 0x2e0   :  { %5098 = vmatmul.mubr.bf16.vlgmr.msra.gmra.mxu0 %v8013_v55  ;;  %v3179_v55 = vpop.f32.mrf.mxu1 }
 0x2e1   :  { %5152 = vmatpush1.bf16.msra.mxu0 %v7229_v60  ;;  %5183 = vmatprep.mubr.bf16.mxu0 %v8064_v2  ;;  %v7247_v2 = vld [vmem:[#allocation6 + $0x488] ss:$16 sps:$4 sm:$0xff]   ;;  %v3180_v31 = vadd.f32 %v3179_v55, %v615_v12 }
 0x2e2   :  { %5153 = vmatprep.subr.bf16.mxu0 %v7237_v56  ;;  %v7268_v60 = vld [vmem:[#allocation6 + $0x2c8] ss:$16 sps:$4 sm:$0xff]   ;;  %v7279_v56 = vld [vmem:[#allocation6 + $0x5ec] ss:$16 sps:$4 sm:$0xff]  }
 0x2e3   :  { %v3223_v37 = vadd.f32 %v3222_v1, %v3180_v31  ;;  %v7291_v1 = vld [vmem:[#allocation6 + $0x5ac] ss:$16 sps:$4 sm:$0xff]   ;;  %v7289_v12 = vld [vmem:[#allocation6 + $0x5a8] ss:$16 sps:$4 sm:$0xff]  }
 0x2e4   :  { %v7292_v55 = vld [vmem:[#allocation6 + $0x248] ss:$16 sps:$4 sm:$0xff]  }
 0x2e5   :  { %5154 = vmatpush1.bf16.msra.mxu0 %v7235_v15  ;;  %v7282_v15 = vld [vmem:[#allocation6 + $0x28c] ss:$16 sps:$4 sm:$0xff]   ;;  %v7313_v31 = vld [vmem:[#allocation6 + $0x528] ss:$16 sps:$4 sm:$0xff]  }
 0x2e6   :  { %5155 = vmatprep.subr.bf16.mxu0 %v7243_v63  ;;  %v7283_v63 = vld [vmem:[#allocation6 + $0x5c8] ss:$16 sps:$4 sm:$0xff]  }
 0x2e9   :  { %v3259_v14 = vpop.f32.mrf.mxu1  ;;  %5156 = vmatpush1.bf16.msra.mxu0 %v7241_v4  ;;  %v7294_v4 = vld [vmem:[#allocation6 + $0x24c] ss:$16 sps:$4 sm:$0xff]  }
 0x2ea   :  { %5157 = vmatprep.subr.bf16.mxu0 %v7249_v6  ;;  %v3260_v25 = vadd.f32 %v3259_v14, %v3217_v23  ;;  %v7295_v6 = vld [vmem:[#allocation6 + $0x588] ss:$16 sps:$4 sm:$0xff]   ;;  %v7315_v23 = vld [vmem:[#allocation6 + $0x52c] ss:$16 sps:$4 sm:$0xff]  }
 0x2eb   :  { %v3261_v27 = vpop.f32.mrf.mxu1  ;;  %v7298_v14 = vld [vmem:[#allocation6 + $0x228] ss:$16 sps:$4 sm:$0xff]  }
 0x2ec   :  { %v3262_v32 = vadd.f32 %v3261_v27, %v3219_v20  ;;  %v3303_v43 = vadd.f32 %v3302_v40, %v3260_v25  ;;  %v7297_v40 = vld [vmem:[#allocation6 + $0x58c] ss:$16 sps:$4 sm:$0xff]   ;;  %v7307_v20 = vld [vmem:[#allocation6 + $0x548] ss:$16 sps:$4 sm:$0xff]  }
 0x2ed   :  { %v3263_v35 = vpop.f32.mrf.mxu1  ;;  %5158 = vmatpush1.bf16.msra.mxu0 %v7247_v2  ;;  %v7309_v2 = vld [vmem:[#allocation6 + $0x54c] ss:$16 sps:$4 sm:$0xff]  }
 0x2ee   :  { %v3264_v38 = vadd.f32 %v3263_v35, %v3221_v13  ;;  %5159 = vmatprep.subr.bf16.mxu0 %v7255_v21  ;;  %v3305_v8 = vadd.f32 %v3304_v11, %v3262_v32  ;;  %v3317_v53 = vmax.f32 %v3303_v43, 0.0  ;;  %v7301_v11 = vld [vmem:[#allocation6 + $0x568] ss:$16 sps:$4 sm:$0xff]   ;;  %v7312_v27 = vld [vmem:[#allocation6 + $0x3ec] ss:$16 sps:$4 sm:$0xff]  }
 0x2ef   :  { %v3265_v39 = vpop.f32.mrf.mxu1  ;;  %v7304_v21 = vld [vmem:[#allocation6 + $0x208] ss:$16 sps:$4 sm:$0xff]   ;;  %v7321_v32 = vld [vmem:[#allocation6 + $0x50c] ss:$16 sps:$4 sm:$0xff]  }
 0x2f0   :  { %v3307_v41 = vadd.f32 %v3306_v34, %v3264_v38  ;;  %v3266_v42 = vadd.f32 %v3265_v39, %v3223_v37  ;;  %v3318_v48 = vmax.f32 %v3305_v8, 0.0  ;;  %v7310_v13 = vld [vmem:[#allocation6 + $0x3e8] ss:$16 sps:$4 sm:$0xff]   ;;  %v7318_v25 = vld [vmem:[#allocation6 + $0x3cc] ss:$16 sps:$4 sm:$0xff]  }
 0x2f1   :  { %5160 = vmatpush1.bf16.msra.mxu0 %v7253_v19  ;;  %v7319_v34 = vld [vmem:[#allocation6 + $0x508] ss:$16 sps:$4 sm:$0xff]   ;;  %v7324_v37 = vld [vmem:[#allocation6 + $0x3ac] ss:$16 sps:$4 sm:$0xff]  }
 0x2f2   :  { %v3309_v36 = vadd.f32 %v3308_v47, %v3266_v42  ;;  %5161 = vmatprep.subr.bf16.mxu0 %v7261_v58  ;;  %v3325_v46 = vmax.f32 %v3307_v41, 0.0  ;;  %v7316_v35 = vld [vmem:[#allocation6 + $0x3c8] ss:$16 sps:$4 sm:$0xff]   ;;  %v7388_v38 = vld [vmem:[#allocation9 + $0x70] ss:$8 sps:$4 sm:$0xff]  }
 0x2f3   :  { %v7390_v19 = vld [vmem:[#allocation9 + $0x74] ss:$8 sps:$4 sm:$0xff]   ;;  %v7393_v39 = vld [vmem:[#allocation9 + $0x64] ss:$8 sps:$4 sm:$0xff]   ;;  %v7327_v8 = vld [vmem:[#allocation6 + $0x38c] ss:$16 sps:$4 sm:$0xff]  }
 0x2f4   :  { %v3326_v49 = vmax.f32 %v3309_v36, 0.0  ;;  %v8079_v5 = vpack.c.bf16 %v3325_v46, %v3317_v53  ;;  %v7322_v58 = vld [vmem:[#allocation6 + $0x3a8] ss:$16 sps:$4 sm:$0xff]   ;;  %v7391_v41 = vld [vmem:[#allocation9 + $0x60] ss:$8 sps:$4 sm:$0xff]  }
 0x2f5   :  { %5162 = vmatpush1.bf16.msra.mxu0 %v7259_v59  ;;  %v7325_v42 = vld [vmem:[#allocation6 + $0x388] ss:$16 sps:$4 sm:$0xff]   ;;  %v7330_v47 = vld [vmem:[#allocation6 + $0x36c] ss:$16 sps:$4 sm:$0xff]  }
 0x2f6   :  { %v8077_v50 = vpack.c.bf16 %v3326_v49, %v3318_v48  ;;  %5163 = vmatprep.subr.bf16.mxu0 %v7267_v45  ;;  %v7396_v43 = vld [vmem:[#allocation9 + $0x54] ss:$8 sps:$4 sm:$0xff]   ;;  %v7394_v59 = vld [vmem:[#allocation9 + $0x50] ss:$8 sps:$4 sm:$0xff]   ;;  %v7399_v45 = vld [vmem:[#allocation9 + $0x44] ss:$8 sps:$4 sm:$0xff]  }
 0x2f7   :  { %v7328_v36 = vld [vmem:[#allocation6 + $0x368] ss:$16 sps:$4 sm:$0xff]   ;;  %v7333_v46 = vld [vmem:[#allocation6 + $0x34c] ss:$16 sps:$4 sm:$0xff]  }
 0x2f8   :  { %5054 = vmatprep.mubr.bf16.mxu1 %v8077_v50  ;;  %v7397_v48 = vld [vmem:[#allocation9 + $0x40] ss:$8 sps:$4 sm:$0xff]   ;;  %v7402_v49 = vld [vmem:[#allocation9 + $0x34] ss:$8 sps:$4 sm:$0xff]  }
 0x2f9   :  { %5055 = vmatmul.mubr.bf16.vlgmr.msra.gmra.mxu1 %v8079_v5  ;;  %5164 = vmatpush1.bf16.msra.mxu0 %v7265_v7  ;;  %v7336_v53 = vld [vmem:[#allocation6 + $0x32c] ss:$16 sps:$4 sm:$0xff]  }
 0x2fa   :  { %5109 = vmatpush1.bf16.msra.mxu1 %v7262_v51  ;;  %5140 = vmatprep.mubr.bf16.mxu1 %v8053_v33  ;;  %v7288_v33 = vld [vmem:[#allocation6 + $0x26c] ss:$16 sps:$4 sm:$0xff]   ;;  %v7334_v51 = vld [vmem:[#allocation6 + $0x328] ss:$16 sps:$4 sm:$0xff]  }
 0x2fb   :  { %5110 = vmatprep.subr.bf16.mxu1 %v7270_v54  ;;  %5165 = vmatprep.subr.bf16.mxu0 %v7273_v52  ;;  %v7400_v7 = vld [vmem:[#allocation9 + $0x30] ss:$8 sps:$4 sm:$0xff]   ;;  %v7405_v54 = vld [vmem:[#allocation9 + $0x24] ss:$8 sps:$4 sm:$0xff]  }
 0x2fc   :  { %v7339_v52 = vld [vmem:[#allocation6 + $0x30c] ss:$16 sps:$4 sm:$0xff]  }
 0x2fd   :  { %5166 = vmatpush1.bf16.msra.mxu0 %v7271_v57  ;;  %v7403_v57 = vld [vmem:[#allocation9 + $0x20] ss:$8 sps:$4 sm:$0xff]  }
 0x2fe   :  { %5111 = vmatpush1.bf16.msra.mxu1 %v7268_v60  ;;  %5167 = vmatprep.subr.bf16.mxu0 %v7279_v56  ;;  %v7337_v60 = vld [vmem:[#allocation6 + $0x308] ss:$16 sps:$4 sm:$0xff]  }
 0x2ff   :  { %5112 = vmatprep.subr.bf16.mxu1 %v7276_v29  ;;  %v7408_v56 = vld [vmem:[#allocation9 + $0x14] ss:$8 sps:$4 sm:$0xff]   ;;  %v7342_v29 = vld [vmem:[#allocation6 + $0x6ec] ss:$16 sps:$4 sm:$0xff]  }
 0x301   :  { %5168 = vmatpush2.bf16.msra.mxu0 %v7277_v61  ;;  %v7406_v61 = vld [vmem:[#allocation9 + $0x10] ss:$8 sps:$4 sm:$0xff]  }
 0x302   :  { %5113 = vmatpush1.bf16.msra.mxu1 %v7274_v0  ;;  %5169 = vmatprep.subr.bf16.mxu0 %v7285_v62  ;;  %v7340_v0 = vld [vmem:[#allocation6 + $0x6e8] ss:$16 sps:$4 sm:$0xff]   ;;  %v7345_v62 = vld [vmem:[#allocation6 + $0x6cc] ss:$16 sps:$4 sm:$0xff]  }
 0x303   :  { %5114 = vmatprep.subr.bf16.mxu1 %v7282_v15  ;;  %v7411_v15 = vld [vmem:[#allocation9 + $0x4] ss:$8 sps:$4 sm:$0xff]  }
 0x305   :  { %5170 = vmatpush2.bf16.msra.mxu0 %v7283_v63  ;;  %v7409_v63 = vld [vmem:[#allocation9] ss:$8 sps:$4 sm:$0xff]  }
 0x306   :  { %5115 = vmatpush1.bf16.msra.mxu1 %v7280_v22  ;;  %5171 = vmatprep.subr.bf16.mxu0 %v7291_v1  ;;  %v7343_v22 = vld [vmem:[#allocation6 + $0x6c8] ss:$16 sps:$4 sm:$0xff]  }
 0x307   :  { %5116 = vmatprep.subr.bf16.mxu1 %v7288_v33  ;;  %v7414_v1 = vld [vmem:[#allocation9 + $0xf4] ss:$8 sps:$4 sm:$0xff]   ;;  %v7348_v33 = vld [vmem:[#allocation6 + $0x6ac] ss:$16 sps:$4 sm:$0xff]  }
 0x309   :  { %5172 = vmatpush2.bf16.msra.mxu0 %v7289_v12  ;;  %v7412_v12 = vld [vmem:[#allocation9 + $0xf0] ss:$8 sps:$4 sm:$0xff]  }
 0x30a   :  { %5117 = vmatpush1.bf16.msra.mxu1 %v7286_v3  ;;  %5173 = vmatprep.subr.bf16.mxu0 %v7297_v40  ;;  %v7346_v3 = vld [vmem:[#allocation6 + $0x6a8] ss:$16 sps:$4 sm:$0xff]  }
 0x30b   :  { %5118 = vmatprep.subr.bf16.mxu1 %v7294_v4  ;;  %v7417_v40 = vld [vmem:[#allocation9 + $0xe4] ss:$8 sps:$4 sm:$0xff]   ;;  %v7351_v4 = vld [vmem:[#allocation6 + $0x68c] ss:$16 sps:$4 sm:$0xff]  }
 0x30d   :  { %5174 = vmatpush2.bf16.msra.mxu0 %v7295_v6  ;;  %v7349_v6 = vld [vmem:[#allocation6 + $0x688] ss:$16 sps:$4 sm:$0xff]  }
 0x30e   :  { %5119 = vmatpush1.bf16.msra.mxu1 %v7292_v55  ;;  %5175 = vmatprep.subr.bf16.mxu0 %v7303_v9  ;;  %v7420_v55 = vld [vmem:[#allocation9 + $0xd4] ss:$8 sps:$4 sm:$0xff]   ;;  %v7418_v9 = vld [vmem:[#allocation9 + $0xd0] ss:$8 sps:$4 sm:$0xff]  }
 0x30f   :  { %5120 = vmatprep.subr.bf16.mxu1 %v7300_v10  ;;  %v7352_v10 = vld [vmem:[#allocation6 + $0x668] ss:$16 sps:$4 sm:$0xff]  }
 0x311   :  { %5176 = vmatpush2.bf16.msra.mxu0 %v7301_v11  ;;  %v7423_v11 = vld [vmem:[#allocation9 + $0xc4] ss:$8 sps:$4 sm:$0xff]  }
 0x312   :  { %5121 = vmatpush1.bf16.msra.mxu1 %v7298_v14  ;;  %5177 = vmatprep.subr.bf16.mxu0 %v7309_v2  ;;  %v7357_v14 = vld [vmem:[#allocation6 + $0x64c] ss:$16 sps:$4 sm:$0xff]  }
 0x313   :  { %5122 = vmatprep.subr.bf16.mxu1 %v7306_v16  ;;  %v7421_v2 = vld [vmem:[#allocation9 + $0xc0] ss:$8 sps:$4 sm:$0xff]   ;;  %v7355_v16 = vld [vmem:[#allocation6 + $0x648] ss:$16 sps:$4 sm:$0xff]  }
 0x315   :  { %5178 = vmatpush2.bf16.msra.mxu0 %v7307_v20  ;;  %v7426_v20 = vld [vmem:[#allocation9 + $0xb4] ss:$8 sps:$4 sm:$0xff]  }
 0x316   :  { %5123 = vmatpush1.bf16.msra.mxu1 %v7304_v21  ;;  %5179 = vmatprep.subr.bf16.mxu0 %v7315_v23  ;;  %v7360_v21 = vld [vmem:[#allocation6 + $0x62c] ss:$16 sps:$4 sm:$0xff]  }
 0x317   :  { %5124 = vmatprep.subr.bf16.mxu1 %v7312_v27  ;;  %v7424_v23 = vld [vmem:[#allocation9 + $0xb0] ss:$8 sps:$4 sm:$0xff]   ;;  %v7358_v27 = vld [vmem:[#allocation6 + $0x628] ss:$16 sps:$4 sm:$0xff]  }
 0x319   :  { %5180 = vmatpush2.bf16.msra.mxu0 %v7313_v31  ;;  %v7429_v31 = vld [vmem:[#allocation9 + $0xa4] ss:$8 sps:$4 sm:$0xff]  }
 0x31a   :  { %5125 = vmatpush2.bf16.msra.mxu1 %v7310_v13  ;;  %5181 = vmatprep.subr.bf16.mxu0 %v7321_v32  ;;  %v7363_v13 = vld [vmem:[#allocation6 + $0x60c] ss:$16 sps:$4 sm:$0xff]  }
 0x31b   :  { %5126 = vmatprep.subr.bf16.mxu1 %v7318_v25  ;;  %v7427_v32 = vld [vmem:[#allocation9 + $0xa0] ss:$8 sps:$4 sm:$0xff]   ;;  %v7361_v25 = vld [vmem:[#allocation6 + $0x608] ss:$16 sps:$4 sm:$0xff]  }
 0x31d   :  { %5182 = vmatpush2.bf16.msra.mxu0 %v7319_v34  ;;  %v7432_v34 = vld [vmem:[#allocation9 + $0x94] ss:$8 sps:$4 sm:$0xff]  }
 0x31e   :  { %5127 = vmatpush2.bf16.msra.mxu1 %v7316_v35  ;;  %5645 = vmatprep.subr.bf16.mxu0 %v7390_v19  ;;  %v7366_v35 = vld [vmem:[#allocation6 + $0x7ec] ss:$16 sps:$4 sm:$0xff]  }
 0x31f   :  { %5128 = vmatprep.subr.bf16.mxu1 %v7324_v37  ;;  %v7430_v19 = vld [vmem:[#allocation9 + $0x90] ss:$8 sps:$4 sm:$0xff]   ;;  %v7364_v37 = vld [vmem:[#allocation6 + $0x7e8] ss:$16 sps:$4 sm:$0xff]  }
 0x320   :  { %5184 = vmatmul.mubr.bf16.vlgmr.msra.gmra.mxu0 %v8066_v28  ;;  %v7331_v28 = vld [vmem:[#allocation6 + $0x348] ss:$16 sps:$4 sm:$0xff]  }
 0x321   :  { %5646 = vmatpush1.bf16.msra.mxu0 %v7388_v38  ;;  %v7435_v38 = vld [vmem:[#allocation9 + $0x84] ss:$8 sps:$4 sm:$0xff]  }
 0x322   :  { %5129 = vmatpush2.bf16.msra.mxu1 %v7322_v58  ;;  %5647 = vmatprep.subr.bf16.mxu0 %v7393_v39  ;;  %v7369_v58 = vld [vmem:[#allocation6 + $0x7cc] ss:$16 sps:$4 sm:$0xff]  }
 0x323   :  { %5130 = vmatprep.subr.bf16.mxu1 %v7327_v8  ;;  %v7433_v39 = vld [vmem:[#allocation9 + $0x80] ss:$8 sps:$4 sm:$0xff]   ;;  %v7367_v8 = vld [vmem:[#allocation6 + $0x7c8] ss:$16 sps:$4 sm:$0xff]  }
 0x325   :  { %5648 = vmatpush1.bf16.msra.mxu0 %v7391_v41  ;;  %v7372_v41 = vld [vmem:[#allocation6 + $0x7ac] ss:$16 sps:$4 sm:$0xff]  }
 0x326   :  { %5131 = vmatpush2.bf16.msra.mxu1 %v7325_v42  ;;  %5649 = vmatprep.subr.bf16.mxu0 %v7396_v43  ;;  %v7370_v42 = vld [vmem:[#allocation6 + $0x7a8] ss:$16 sps:$4 sm:$0xff]   ;;  %v7375_v43 = vld [vmem:[#allocation6 + $0x78c] ss:$16 sps:$4 sm:$0xff]  }
 0x327   :  { %5132 = vmatprep.subr.bf16.mxu1 %v7330_v47  ;;  %v7373_v47 = vld [vmem:[#allocation6 + $0x788] ss:$16 sps:$4 sm:$0xff]  }
 0x329   :  { %5650 = vmatpush1.bf16.msra.mxu0 %v7394_v59  ;;  %v7378_v59 = vld [vmem:[#allocation6 + $0x76c] ss:$16 sps:$4 sm:$0xff]  }
 0x32a   :  { %5133 = vmatpush2.bf16.msra.mxu1 %v7328_v36  ;;  %5651 = vmatprep.subr.bf16.mxu0 %v7399_v45  ;;  %v7376_v36 = vld [vmem:[#allocation6 + $0x768] ss:$16 sps:$4 sm:$0xff]   ;;  %v7381_v45 = vld [vmem:[#allocation6 + $0x74c] ss:$16 sps:$4 sm:$0xff]  }
 0x32b   :  { %5134 = vmatprep.subr.bf16.mxu1 %v7333_v46  ;;  %v7379_v46 = vld [vmem:[#allocation6 + $0x748] ss:$16 sps:$4 sm:$0xff]  }
 0x32d   :  { %5652 = vmatpush1.bf16.msra.mxu0 %v7397_v48  ;;  %v7384_v48 = vld [vmem:[#allocation6 + $0x72c] ss:$16 sps:$4 sm:$0xff]  }
 0x32e   :  { %5135 = vmatpush2.bf16.msra.mxu1 %v7331_v28  ;;  %5653 = vmatprep.subr.bf16.mxu0 %v7402_v49  ;;  %v7382_v28 = vld [vmem:[#allocation6 + $0x728] ss:$16 sps:$4 sm:$0xff]   ;;  %v7387_v49 = vld [vmem:[#allocation6 + $0x70c] ss:$16 sps:$4 sm:$0xff]  }
 0x32f   :  { %5136 = vmatprep.subr.bf16.mxu1 %v7336_v53  ;;  %v7385_v53 = vld [vmem:[#allocation6 + $0x708] ss:$16 sps:$4 sm:$0xff]  }
 0x331   :  { %5654 = vmatpush1.bf16.msra.mxu0 %v7400_v7  ;;  %v7436_v7 = vld [vmem:[#allocation9 + $0x170] ss:$8 sps:$4 sm:$0xff]  }
 0x332   :  { %5137 = vmatpush2.bf16.msra.mxu1 %v7334_v51  ;;  %5655 = vmatprep.subr.bf16.mxu0 %v7405_v54  ;;  %v7438_v51 = vld [vmem:[#allocation9 + $0x174] ss:$8 sps:$4 sm:$0xff]   ;;  %v7441_v54 = vld [vmem:[#allocation9 + $0x164] ss:$8 sps:$4 sm:$0xff]  }
 0x333   :  { %5138 = vmatprep.subr.bf16.mxu1 %v7339_v52  ;;  %v7439_v52 = vld [vmem:[#allocation9 + $0x160] ss:$8 sps:$4 sm:$0xff]  }
 0x335   :  { %5656 = vmatpush1.bf16.msra.mxu0 %v7403_v57  ;;  %v7444_v57 = vld [vmem:[#allocation9 + $0x154] ss:$8 sps:$4 sm:$0xff]  }
 0x336   :  { %5139 = vmatpush2.bf16.msra.mxu1 %v7337_v60  ;;  %5657 = vmatprep.subr.bf16.mxu0 %v7408_v56  ;;  %v7442_v60 = vld [vmem:[#allocation9 + $0x150] ss:$8 sps:$4 sm:$0xff]   ;;  %v7447_v56 = vld [vmem:[#allocation9 + $0x144] ss:$8 sps:$4 sm:$0xff]  }
 0x337   :  { %5194 = vmatprep.subr.bf16.mxu1 %v7342_v29  ;;  %v7445_v29 = vld [vmem:[#allocation9 + $0x140] ss:$8 sps:$4 sm:$0xff]  }
 0x339   :  { %5141 = vmatmul.mubr.bf16.vlgmr.msra.gmra.mxu1 %v8051_v24  ;;  %5658 = vmatpush1.bf16.msra.mxu0 %v7406_v61  ;;  %v7415_v24 = vld [vmem:[#allocation9 + $0xe0] ss:$8 sps:$4 sm:$0xff]   ;;  %v7450_v61 = vld [vmem:[#allocation9 + $0x134] ss:$8 sps:$4 sm:$0xff]  }
 0x33a   :  { %5195 = vmatpush1.bf16.msra.mxu1 %v7340_v0  ;;  %5226 = vmatprep.mubr.bf16.mxu1 %v8077_v50  ;;  %v7354_v50 = vld [vmem:[#allocation6 + $0x66c] ss:$16 sps:$4 sm:$0xff]  }
 0x33b   :  { %5196 = vmatprep.subr.bf16.mxu1 %v7345_v62  ;;  %5659 = vmatprep.subr.bf16.mxu0 %v7411_v15  ;;  %v7448_v0 = vld [vmem:[#allocation9 + $0x130] ss:$8 sps:$4 sm:$0xff]   ;;  %v7451_v62 = vld [vmem:[#allocation9 + $0x120] ss:$8 sps:$4 sm:$0xff]   ;;  %v7456_v15 = vld [vmem:[#allocation9 + $0x114] ss:$8 sps:$4 sm:$0xff]  }
 0x33d   :  { %5660 = vmatpush1.bf16.msra.mxu0 %v7409_v63  ;;  %v7454_v63 = vld [vmem:[#allocation9 + $0x110] ss:$8 sps:$4 sm:$0xff]  }
 0x33e   :  { %5197 = vmatpush1.bf16.msra.mxu1 %v7343_v22  ;;  %5661 = vmatprep.subr.bf16.mxu0 %v7414_v1  ;;  %v7459_v22 = vld [vmem:[#allocation9 + $0x104] ss:$8 sps:$4 sm:$0xff]   ;;  %v7457_v1 = vld [vmem:[#allocation9 + $0x100] ss:$8 sps:$4 sm:$0xff]  }
 0x33f   :  { %5198 = vmatprep.subr.bf16.mxu1 %v7348_v33  ;;  %v7462_v33 = vld [vmem:[#allocation9 + $0x1f4] ss:$8 sps:$4 sm:$0xff]  }
 0x341   :  { %5662 = vmatpush2.bf16.msra.mxu0 %v7412_v12  ;;  %v7460_v12 = vld [vmem:[#allocation9 + $0x1f0] ss:$8 sps:$4 sm:$0xff]  }
 0x342   :  { %5199 = vmatpush1.bf16.msra.mxu1 %v7346_v3  ;;  %5663 = vmatprep.subr.bf16.mxu0 %v7417_v40  ;;  %v7465_v3 = vld [vmem:[#allocation9 + $0x1e4] ss:$8 sps:$4 sm:$0xff]   ;;  %v4927_v40 = vpop.f32.mrf.mxu0 }
 0x343   :  { %5200 = vmatprep.subr.bf16.mxu1 %v7351_v4  ;;  %v7463_v4 = vld [vmem:[#allocation9 + $0x1e0] ss:$8 sps:$4 sm:$0xff]  }
 0x345   :  { %5664 = vmatpush2.bf16.msra.mxu0 %v7415_v24  ;;  %v7468_v24 = vld [vmem:[#allocation9 + $0x1d4] ss:$8 sps:$4 sm:$0xff]  }
 0x346   :  { %5201 = vmatpush1.bf16.msra.mxu1 %v7349_v6  ;;  %5665 = vmatprep.subr.bf16.mxu0 %v7420_v55  ;;  %v4929_v6 = vpop.f32.mrf.mxu0  ;;  %v7466_v55 = vld [vmem:[#allocation9 + $0x1d0] ss:$8 sps:$4 sm:$0xff]  }
 0x347   :  { %5202 = vmatprep.subr.bf16.mxu1 %v7354_v50  ;;  %v7471_v50 = vld [vmem:[#allocation9 + $0x1c4] ss:$8 sps:$4 sm:$0xff]  }
 0x349   :  { %5666 = vmatpush2.bf16.msra.mxu0 %v7418_v9  ;;  %v4931_v9 = vpop.f32.mrf.mxu0 }
 0x34a   :  { %5203 = vmatpush1.bf16.msra.mxu1 %v7352_v10  ;;  %5667 = vmatprep.subr.bf16.mxu0 %v7423_v11  ;;  %v4970_v10 = vpop.f32.mrf.mxu1  ;;  %v7469_v11 = vld [vmem:[#allocation9 + $0x1c0] ss:$8 sps:$4 sm:$0xff]  }
 0x34b   :  { %5204 = vmatprep.subr.bf16.mxu1 %v7357_v14  ;;  %v7474_v14 = vld [vmem:[#allocation9 + $0x1b4] ss:$8 sps:$4 sm:$0xff]  }
 0x34d   :  { %5668 = vmatpush2.bf16.msra.mxu0 %v7421_v2  ;;  %v4933_v2 = vpop.f32.mrf.mxu0 }
 0x34e   :  { %5205 = vmatpush1.bf16.msra.mxu1 %v7355_v16  ;;  %5669 = vmatprep.subr.bf16.mxu0 %v7426_v20  ;;  %v4972_v16 = vpop.f32.mrf.mxu1 }
 0x34f   :  { %5206 = vmatprep.subr.bf16.mxu1 %v7360_v21  ;;  %v7472_v21 = vld [vmem:[#allocation9 + $0x1b0] ss:$8 sps:$4 sm:$0xff]  }
 0x351   :  { %5670 = vmatpush2.bf16.msra.mxu0 %v7424_v23  ;;  %v8088_v23 = vld [vmem:[#allocation7] sm:$0xf] }
 0x352   :  { %5207 = vmatpush1.bf16.msra.mxu1 %v7358_v27  ;;  %5671 = vmatprep.subr.bf16.mxu0 %v7429_v31  ;;  %v4974_v27 = vpop.f32.mrf.mxu1 }
 0x353   :  { %5208 = vmatprep.subr.bf16.mxu1 %v7363_v13  ;;  %v3600_v13 = vrot.slane %v8088_v23, %v8018_v17 }
 0x355   :  { %5672 = vmatpush2.bf16.msra.mxu0 %v7427_v32  ;;  %v3596_v32 = vrot.slane %v8088_v23, %v7967_v30 }
 0x356   :  { %5209 = vmatpush1.bf16.msra.mxu1 %v7361_v25  ;;  %5673 = vmatprep.subr.bf16.mxu0 %v7432_v34  ;;  %v4976_v25 = vpop.f32.mrf.mxu1 }
 0x357   :  { %5210 = vmatprep.subr.bf16.mxu1 %v7366_v35  ;;  %v4930_v35 = vadd.f32 %v4929_v6, %v3600_v13  ;;  %v7492_v6 = vld [vmem:[#allocation12 + $0x58] sm:$0xff]  }
 0x359   :  { %5674 = vmatpush2.bf16.msra.mxu0 %v7430_v19  ;;  %v4932_v19 = vadd.f32 %v4931_v9, %v3596_v32 }
 0x35a   :  { %5211 = vmatpush2.bf16.msra.mxu1 %v7364_v37  ;;  %5675 = vmatprep.subr.bf16.mxu0 %v7435_v38  ;;  %v4928_v37 = vadd.f32 %v4927_v40, %v3596_v32  ;;  %v7489_v40 = vld [vmem:[#allocation12 + $0x28] sm:$0xff]  }
 0x35b   :  { %5212 = vmatprep.subr.bf16.mxu1 %v7369_v58  ;;  %v7477_v58 = vld [vmem:[#allocation9 + $0x1a4] ss:$8 sps:$4 sm:$0xff]  }
 0x35d   :  { %5676 = vmatpush2.bf16.msra.mxu0 %v7433_v39  ;;  %v4934_v39 = vadd.f32 %v4933_v2, %v3600_v13 }
 0x35e   :  { %5213 = vmatpush2.bf16.msra.mxu1 %v7367_v8  ;;  %v4973_v8 = vadd.f32 %v4972_v16, %v4930_v35 }
 0x35f   :  { %5214 = vmatprep.subr.bf16.mxu1 %v7372_v41  ;;  %v4975_v41 = vadd.f32 %v4974_v27, %v4932_v19 }
 0x360   :  { %v5013_v20 = vpop.f32.mrf.mxu0 }
 0x362   :  { %5215 = vmatpush2.bf16.msra.mxu1 %v7370_v42  ;;  %v5015_v31 = vpop.f32.mrf.mxu0  ;;  %v7475_v42 = vld [vmem:[#allocation9 + $0x1a0] ss:$8 sps:$4 sm:$0xff]  }
 0x363   :  { %5216 = vmatprep.subr.bf16.mxu1 %v7375_v43  ;;  %v4971_v43 = vadd.f32 %v4970_v10, %v4928_v37 }
 0x364   :  { %v5017_v34 = vpop.f32.mrf.mxu0 }
 0x366   :  { %5217 = vmatpush2.bf16.msra.mxu1 %v7373_v47  ;;  %v5019_v47 = vpop.f32.mrf.mxu0 }
 0x367   :  { %5218 = vmatprep.subr.bf16.mxu1 %v7378_v59 }
 0x36a   :  { %5219 = vmatpush2.bf16.msra.mxu1 %v7376_v36  ;;  %v4977_v36 = vadd.f32 %v4976_v25, %v4934_v39 }
 0x36b   :  { %5220 = vmatprep.subr.bf16.mxu1 %v7381_v45  ;;  %v5016_v45 = vadd.f32 %v5015_v31, %v4973_v8 }
 0x36e   :  { %5221 = vmatpush2.bf16.msra.mxu1 %v7379_v46  ;;  %v5018_v46 = vadd.f32 %v5017_v34, %v4975_v41 }
 0x36f   :  { %5222 = vmatprep.subr.bf16.mxu1 %v7384_v48  ;;  %v5014_v48 = vadd.f32 %v5013_v20, %v4971_v43  ;;  %v3608_v20 = vrot.slane %v8088_v23, %v598_v26 }
 0x372   :  { %5223 = vmatpush2.bf16.msra.mxu1 %v7382_v28 }
 0x373   :  { %5224 = vmatprep.subr.bf16.mxu1 %v7387_v49  ;;  %v7480_v49 = vld [vmem:[#allocation9 + $0x194] ss:$8 sps:$4 sm:$0xff]  }
 0x376   :  { %5225 = vmatpush2.bf16.msra.mxu1 %v7385_v53  ;;  %v5020_v53 = vadd.f32 %v5019_v47, %v4977_v36 }
 0x377   :  { %5688 = vmatprep.subr.bf16.mxu1 %v7438_v51 }
 0x379   :  { %5227 = vmatmul.mubr.bf16.vlgmr.msra.gmra.mxu1 %v8079_v5  ;;  %v7453_v5 = vld [vmem:[#allocation9 + $0x124] ss:$8 sps:$4 sm:$0xff]  }
 0x37a   :  { %5689 = vmatpush1.bf16.msra.mxu1 %v7436_v7 }
 0x37b   :  { %5690 = vmatprep.subr.bf16.mxu1 %v7441_v54  ;;  %v7478_v54 = vld [vmem:[#allocation9 + $0x190] ss:$8 sps:$4 sm:$0xff]  }
 0x37e   :  { %5691 = vmatpush1.bf16.msra.mxu1 %v7439_v52 }
 0x37f   :  { %5692 = vmatprep.subr.bf16.mxu1 %v7444_v57 }
 0x382   :  { %5693 = vmatpush1.bf16.msra.mxu1 %v7442_v60 }
 0x383   :  { %5694 = vmatprep.subr.bf16.mxu1 %v7447_v56 }
 0x386   :  { %5695 = vmatpush1.bf16.msra.mxu1 %v7445_v29  ;;  %v7483_v29 = vld [vmem:[#allocation9 + $0x184] ss:$8 sps:$4 sm:$0xff]  }
 0x387   :  { %5696 = vmatprep.subr.bf16.mxu1 %v7450_v61 }
 0x38a   :  { %5697 = vmatpush1.bf16.msra.mxu1 %v7448_v0 }
 0x38b   :  { %5698 = vmatprep.subr.bf16.mxu1 %v7453_v5  ;;  %v7481_v5 = vld [vmem:[#allocation9 + $0x180] ss:$8 sps:$4 sm:$0xff]  }
 0x38e   :  { %5699 = vmatpush1.bf16.msra.mxu1 %v7451_v62 }
 0x38f   :  { %5700 = vmatprep.subr.bf16.mxu1 %v7456_v15 }
 0x392   :  { %5701 = vmatpush1.bf16.msra.mxu1 %v7454_v63 }
 0x393   :  { %5702 = vmatprep.subr.bf16.mxu1 %v7459_v22  ;;  %v7484_v22 = vld [vmem:[#allocation12 + $0x78] sm:$0xff]  }
 0x394   :  { %6904 = vmatprep.subr.bf16.mxu0 %v7484_v22 }
 0x396   :  { %5703 = vmatpush1.bf16.msra.mxu1 %v7457_v1  ;;  %v7485_v1 = vld [vmem:[#allocation12 + $0x38] sm:$0xff]  }
 0x397   :  { %5704 = vmatprep.subr.bf16.mxu1 %v7462_v33  ;;  %v7486_v33 = vld [vmem:[#allocation12 + $0x70] sm:$0xff]  }
 0x39a   :  { %5705 = vmatpush2.bf16.msra.mxu1 %v7460_v12  ;;  %v7487_v12 = vld [vmem:[#allocation12 + $0x30] sm:$0xff]  }
 0x39b   :  { %5706 = vmatprep.subr.bf16.mxu1 %v7465_v3  ;;  %v7488_v3 = vld [vmem:[#allocation12 + $0x68] sm:$0xff]  }
 0x39e   :  { %5707 = vmatpush2.bf16.msra.mxu1 %v7463_v4  ;;  %v7490_v4 = vld [vmem:[#allocation12 + $0x60] sm:$0xff]  }
 0x39f   :  { %5708 = vmatprep.subr.bf16.mxu1 %v7468_v24  ;;  %v7491_v24 = vld [vmem:[#allocation12 + $0x20] sm:$0xff]  }
 0x3a2   :  { %5709 = vmatpush2.bf16.msra.mxu1 %v7466_v55  ;;  %v7493_v55 = vld [vmem:[#allocation12 + $0x18] sm:$0xff]  }
 0x3a3   :  { %5710 = vmatprep.subr.bf16.mxu1 %v7471_v50  ;;  %v5099_v50 = vpop.f32.mrf.mxu0 }
 0x3a5   :  { %v5101_v9 = vpop.f32.mrf.mxu0 }
 0x3a6   :  { %5711 = vmatpush2.bf16.msra.mxu1 %v7469_v11  ;;  %v5102_v13 = vadd.f32 %v5101_v9, %v3608_v20 }
 0x3a7   :  { %5712 = vmatprep.subr.bf16.mxu1 %v7474_v14  ;;  %v5103_v10 = vpop.f32.mrf.mxu0 }
 0x3a9   :  { %v5105_v14 = vpop.f32.mrf.mxu0 }
 0x3aa   :  { %5713 = vmatpush2.bf16.msra.mxu1 %v7472_v21  ;;  %v3604_v21 = vrot.slane %v8088_v23, %v594_v44  ;;  %v5106_v35 = vadd.f32 %v5105_v14, %v3608_v20 }
 0x3ab   :  { %5714 = vmatprep.subr.bf16.mxu1 %v7477_v58 }
 0x3ac   :  { %v5104_v32 = vadd.f32 %v5103_v10, %v3604_v21  ;;  %v5100_v25 = vadd.f32 %v5099_v50, %v3604_v21 }
 0x3ae   :  { %5715 = vmatpush2.bf16.msra.mxu1 %v7475_v42 }
 0x3af   :  { %5716 = vmatprep.subr.bf16.mxu1 %v7480_v49 }
 0x3b2   :  { %5717 = vmatpush2.bf16.msra.mxu1 %v7478_v54  ;;  %v7494_v54 = vld [vmem:[#allocation12 + $0x50] sm:$0xff]  }
 0x3b3   :  { %5718 = vmatprep.subr.bf16.mxu1 %v7483_v29  ;;  %v7499_v29 = vld [vmem:[#allocation12] sm:$0xff]  }
 0x3b6   :  { %5719 = vmatpush2.bf16.msra.mxu1 %v7481_v5  ;;  %v7501_v5 = vld [vmem:[%s8155_s9 + $0x30] sm:$0xff]  }
 0x3b9   :  { %v5056_v38 = vpop.f32.mrf.mxu1 }
 0x3ba   :  { %v5057_v52 = vadd.f32 %v5056_v38, %v5014_v48 }
 0x3bb   :  { %v5058_v59 = vpop.f32.mrf.mxu1 }
 0x3bc   :  { %v5059_v7 = vadd.f32 %v5058_v59, %v5016_v45  ;;  %v5237_v62 = vmax.f32 %v5057_v52, 0.0  ;;  %v7495_v52 = vld [vmem:[#allocation12 + $0x10] sm:$0xff]  }
 0x3bd   :  { %v5060_v28 = vpop.f32.mrf.mxu1 }
 0x3be   :  { %v5061_v51 = vadd.f32 %v5060_v28, %v5018_v46  ;;  %v5238_v61 = vmax.f32 %v5059_v7, 0.0 }
 0x3bf   :  { %v5062_v57 = vpop.f32.mrf.mxu1 }
 0x3c0   :  { %v5063_v60 = vadd.f32 %v5062_v57, %v5020_v53  ;;  %v5241_v56 = vmax.f32 %v5061_v51, 0.0  ;;  %v7496_v57 = vld [vmem:[#allocation12 + $0x48] sm:$0xff]  }
 0x3c2   :  { %v5242_v0 = vmax.f32 %v5063_v60, 0.0  ;;  %v5245_v63 = vpack.c.bf16 %v5241_v56, %v5237_v62  ;;  %v7497_v60 = vld [vmem:[#allocation12 + $0x8] sm:$0xff]   ;;  %v7498_v56 = vld [vmem:[#allocation12 + $0x40] sm:$0xff]  }
 0x3c3   :  { %v7502_v62 = vld [vmem:[%s8155_s9 + $0x28] sm:$0xff]  }
 0x3c4   :  { %v5246_v15 = vpack.c.bf16 %v5242_v0, %v5238_v61  ;;  %v7500_v61 = vld [vmem:[%s8155_s9 + $0x38] sm:$0xff]   ;;  %v7782_v0 = vmov 0.0  }
 0x3c5   :  { %6940 = vmatprep.subr.bf16.mxu1 %v7782_v0 }
 0x3c6   :  { %5677 = vmatprep.mubr.bf16.mxu0 %v5246_v15  ;;  %v7503_v15 = vld [vmem:[%s8155_s9 + $0x20] sm:$0xff]  }
 0x3c7   :  { %5678 = vmatmul.mubr.bf16.vlgmr.msra.gmra.mxu0 %v5245_v63 }
 0x3c8   :  { %6905 = vmatpush3.bf16.msra.mxu0 %v7485_v1  ;;  %v5313_v1 = vld [vmem:[#allocation10] sm:$0x3] }
 0x3c9   :  { %6906 = vmatprep.subr.bf16.mxu0 %v7486_v33 }
 0x3cc   :  { %6907 = vmatpush3.bf16.msra.mxu0 %v7487_v12  ;;  %v5322_v12 = vrot.slane %v5313_v1, %v8018_v17 }
 0x3cd   :  { %6908 = vmatprep.subr.bf16.mxu0 %v7488_v3  ;;  %v5318_v3 = vrot.slane %v5313_v1, %v7967_v30  ;;  %v7504_v30 = vld [vmem:[%s8155_s9 + $0x18] sm:$0xff]  }
 0x3d0   :  { %6909 = vmatpush3.bf16.msra.mxu0 %v7489_v40 }
 0x3d1   :  { %6910 = vmatprep.subr.bf16.mxu0 %v7490_v4 }
 0x3d4   :  { %6911 = vmatpush3.bf16.msra.mxu0 %v7491_v24 }
 0x3d5   :  { %6912 = vmatprep.subr.bf16.mxu0 %v7492_v6 }
 0x3d8   :  { %6913 = vmatpush3.bf16.msra.mxu0 %v7493_v55 }
 0x3d9   :  { %6914 = vmatprep.subr.bf16.mxu0 %v7494_v54 }
 0x3dc   :  { %6915 = vmatpush3.bf16.msra.mxu0 %v7495_v52 }
 0x3dd   :  { %6916 = vmatprep.subr.bf16.mxu0 %v7496_v57  ;;  %v6898_v57 = vld [vmem:[#allocation18] ss:$0 sm:$0xff] }
 0x3e0   :  { %v5185_v16 = vpop.f32.mrf.mxu0  ;;  %6917 = vmatpush3.bf16.msra.mxu0 %v7497_v60 }
 0x3e1   :  { %6918 = vmatprep.subr.bf16.mxu0 %v7498_v56 }
 0x3e2   :  { %v5187_v31 = vpop.f32.mrf.mxu0 }
 0x3e4   :  { %v5189_v38 = vpop.f32.mrf.mxu0  ;;  %6919 = vmatpush3.bf16.msra.mxu0 %v7499_v29 }
 0x3e5   :  { %6960 = vmatprep.subr.bf16.mxu0 %v7782_v0 }
 0x3e6   :  { %v5191_v43 = vpop.f32.mrf.mxu0 }
 0x3f9   :  { %v5142_v11 = vpop.f32.mrf.mxu1 }
 0x3fa   :  { %v5143_v58 = vadd.f32 %v5142_v11, %v5100_v25  ;;  %v7505_v25 = vld [vmem:[%s8155_s9 + $0x10] sm:$0xff]  }
 0x3fb   :  { %v5144_v2 = vpop.f32.mrf.mxu1 }
 0x3fc   :  { %v5145_v19 = vadd.f32 %v5144_v2, %v5102_v13  ;;  %v5186_v18 = vadd.f32 %v5185_v16, %v5143_v58 }
 0x3fd   :  { %v5146_v27 = vpop.f32.mrf.mxu1 }
 0x3fe   :  { %v5147_v37 = vadd.f32 %v5146_v27, %v5104_v32  ;;  %v5188_v42 = vadd.f32 %v5187_v31, %v5145_v19  ;;  %v7508_v19 = vld [vmem:[#allocation16 + $0x18] sm:$0xff]  }
 0x3ff   :  { %v5148_v34 = vpop.f32.mrf.mxu1 }
 0x400   :  { %v5149_v8 = vadd.f32 %v5148_v34, %v5106_v35  ;;  %v5190_v26 = vadd.f32 %v5189_v38, %v5147_v37  ;;  %v7506_v34 = vld [vmem:[%s8155_s9 + $0x8] sm:$0xff]   ;;  %v7507_v35 = vld [vmem:[%s8155_s9] sm:$0xff]  }
 0x402   :  { %v5192_v59 = vadd.f32 %v5191_v43, %v5149_v8 }
 0x439   :  { %v5228_v39 = vpop.f32.mrf.mxu1 }
 0x43a   :  { %v5229_v36 = vadd.f32 %v5228_v39, %v5186_v18  ;;  %v6872_v39 = vld [vmem:[#allocation13] ss:$0 sm:$0xff] }
 0x43b   :  { %v5230_v41 = vpop.f32.mrf.mxu1 }
 0x43c   :  { %v5231_v44 = vadd.f32 %v5230_v41, %v5188_v42  ;;  %v5239_v53 = vmax.f32 %v5229_v36, 0.0  ;;  %v7511_v36 = vld [vmem:[#allocation16] sm:$0xff]  }
 0x43d   :  { %v5232_v47 = vpop.f32.mrf.mxu1 }
 0x43e   :  { %v5233_v23 = vadd.f32 %v5232_v47, %v5190_v26  ;;  %v5240_v28 = vmax.f32 %v5231_v44, 0.0 }
 0x43f   :  { %v5234_v45 = vpop.f32.mrf.mxu1 }
 0x440   :  { %v5235_v46 = vadd.f32 %v5234_v45, %v5192_v59  ;;  %v5243_v48 = vmax.f32 %v5233_v23, 0.0  ;;  %v7509_v23 = vld [vmem:[#allocation16 + $0x10] sm:$0xff]   ;;  %v7510_v59 = vld [vmem:[#allocation16 + $0x8] sm:$0xff]   ;;  %v6889_v45 = vld [vmem:[#allocation15] ss:$0 sm:$0xff] }
 0x442   :  { %v5244_v49 = vmax.f32 %v5235_v46, 0.0  ;;  %v5247_v51 = vpack.c.bf16 %v5243_v48, %v5239_v53 }
 0x444   :  { %v5248_v7 = vpack.c.bf16 %v5244_v49, %v5240_v28 }
 0x446   :  { %5720 = vmatprep.mubr.bf16.mxu1 %v5248_v7 }
 0x447   :  { %5721 = vmatmul.mubr.bf16.vlgmr.msra.gmra.mxu1 %v5247_v51 }
 0x448   :  { %6941 = vmatpush3.bf16.msra.mxu1 %v7500_v61  ;;  %6956 = vmatprep.mubr.msk.bf16.mxu1 %vm7783_vm1, %v7782_v0 }
 0x449   :  { %6942 = vmatprep.subr.bf16.mxu1 %v7782_v0 }
 0x44c   :  { %6943 = vmatpush3.bf16.msra.mxu1 %v7501_v5 }
 0x44d   :  { %6944 = vmatprep.subr.bf16.mxu1 %v7782_v0 }
 0x450   :  { %6945 = vmatpush3.bf16.msra.mxu1 %v7502_v62 }
 0x451   :  { %6946 = vmatprep.subr.bf16.mxu1 %v7782_v0 }
 0x454   :  { %6947 = vmatpush3.bf16.msra.mxu1 %v7503_v15 }
 0x455   :  { %6948 = vmatprep.subr.bf16.mxu1 %v7782_v0 }
 0x458   :  { %6949 = vmatpush3.bf16.msra.mxu1 %v7504_v30 }
 0x459   :  { %6950 = vmatprep.subr.bf16.mxu1 %v7782_v0 }
 0x45c   :  { %6951 = vmatpush3.bf16.msra.mxu1 %v7505_v25 }
 0x45d   :  { %6952 = vmatprep.subr.bf16.mxu1 %v7782_v0 }
 0x460   :  { %6953 = vmatpush3.bf16.msra.mxu1 %v7506_v34 }
 0x461   :  { %6954 = vmatprep.subr.bf16.mxu1 %v7782_v0 }
 0x464   :  { %6955 = vmatpush3.bf16.msra.mxu1 %v7507_v35 }
 0x487   :  { %v5679_v63 = vpop.f32.mrf.mxu0 }
 0x488   :  { %v5680_v50 = vadd.f32 %v5679_v63, %v5318_v3 }
 0x489   :  { %v5681_v22 = vpop.f32.mrf.mxu0 }
 0x48a   :  { %v5682_v6 = vadd.f32 %v5681_v22, %v5322_v12 }
 0x48b   :  { %v5683_v33 = vpop.f32.mrf.mxu0 }
 0x48c   :  { %v5684_v55 = vadd.f32 %v5683_v33, %v5318_v3 }
 0x48d   :  { %v5685_v4 = vpop.f32.mrf.mxu0 }
 0x48e   :  { %v5686_v10 = vadd.f32 %v5685_v4, %v5322_v12 }
 0x507   :  { %v5722_v40 = vpop.f32.mrf.mxu1 }
 0x508   :  { %v5723_v2 = vadd.f32 %v5722_v40, %v5680_v50 }
 0x509   :  { %v5724_v24 = vpop.f32.mrf.mxu1 }
 0x50a   :  { %v5725_v11 = vadd.f32 %v5724_v24, %v5682_v6  ;;  %v5731_v13 = vmax.f32 %v5723_v2, 0.0 }
 0x50b   :  { %v5726_v9 = vpop.f32.mrf.mxu1 }
 0x50c   :  { %v5727_v14 = vadd.f32 %v5726_v9, %v5684_v55  ;;  %v5732_v27 = vmax.f32 %v5725_v11, 0.0 }
 0x50d   :  { %v5728_v16 = vpop.f32.mrf.mxu1 }
 0x50e   :  { %v5729_v20 = vadd.f32 %v5728_v16, %v5686_v10  ;;  %v5733_v21 = vmax.f32 %v5727_v14, 0.0 }
 0x510   :  { %v5734_v31 = vmax.f32 %v5729_v20, 0.0  ;;  %v5735_v32 = vpack.c.bf16 %v5733_v21, %v5731_v13 }
 0x512   :  { %v5736_v17 = vpack.c.bf16 %v5734_v31, %v5732_v27 }
 0x514   :  { %5904 = vmatprep.mubr.bf16.mxu0 %v5736_v17 }
 0x515   :  { %5905 = vmatmul.mubr.bf16.vlgmr.msra.gmra.mxu0 %v5735_v32 }
 0x516   :  { %6968 = vmatprep.mubr.msk.bf16.mxu0 %vm7783_vm1, %v7782_v0  ;;  %6961 = vmatpush3.bf16.msra.mxu0 %v7508_v19 }
 0x517   :  { %6962 = vmatprep.subr.bf16.mxu0 %v7782_v0 }
 0x51a   :  { %6963 = vmatpush3.bf16.msra.mxu0 %v7509_v23 }
 0x51b   :  { %6964 = vmatprep.subr.bf16.mxu0 %v7782_v0 }
 0x51e   :  { %6965 = vmatpush3.bf16.msra.mxu0 %v7510_v59 }
 0x51f   :  { %6966 = vmatprep.subr.bf16.mxu0 %v7782_v0 }
 0x522   :  { %6967 = vmatpush3.bf16.msra.mxu0 %v7511_v36 }
 0x5d5   :  { %v6920_v37 = vpop.f32.mrf.mxu0 }
 0x5d7   :  { %v6921_v38 = vpop.f32.mrf.mxu0 }
 0x5d8   :  { %v6922_v58 = vadd.f32 %v6921_v38, %v6920_v37 }
 0x5d9   :  { %v6923_v8 = vpop.f32.mrf.mxu0 }
 0x5da   :  { %v5907_v42 = vadd.f32 %v6922_v58, %v6872_v39 }
 0x5db   :  { %v6924_v41 = vpop.f32.mrf.mxu0 }
 0x5dc   :  { %v6925_v26 = vadd.f32 %v6924_v41, %v6923_v8  ;;  %v5913_v18 = vmax.f32 %v5907_v42, 0.0 }
 0x5de   :  { %v5910_v43 = vadd.f32 %v6925_v26, %v6872_v39 }
 0x5e0   :  { %v5914_v47 = vmax.f32 %v5910_v43, 0.0 }
 0x5e2   :  { %v5915_v44 = vpack.c.bf16 %v5914_v47, %v5913_v18 }
 0x5e4   :  { %6957 = vmatmul.mubr.bf16.vlgmr.msra.gmra.mxu1 %v5915_v44 }
 0x6a4   :  { %v6021_v46 = vpop.f32.mrf.mxu1 }
 0x6a5   :  { %v6022_v28 = vadd.f32 %v6889_v45, %v6021_v46 }
 0x6a6   :  { %v6958_v48 = vpop.f32.mrf.mxu1 }
 0x6a7   :  { %v6028_v51 = vmax.f32 %v6022_v28, 0.0 }
 0x6a8   :  { %v6024_v49 = vpop.f32.mrf.mxu1 }
 0x6a9   :  { %v6025_v53 = vadd.f32 %v6889_v45, %v6024_v49 }
 0x6aa   :  { %v6959_v7 = vpop.f32.mrf.mxu1 }
 0x6ab   :  { %v6029_v54 = vmax.f32 %v6025_v53, 0.0 }
 0x6ad   :  { %v6030_v52 = vpack.c.bf16 %v6029_v54, %v6028_v51 }
 0x6af   :  { %6969 = vmatmul.mubr.msk.bf16.vlgmr.msra.gmra.mxu0 %vm6070_vm2, %v6030_v52 }
 0x76f   :  { %v6108_v60 = vpop.f32.mrf.mxu0 }
 0x770   :  { %v6109_v56 = vadd.f32 %v6898_v57, %v6108_v60 }
 0x771   :  { %v6970_v29 = vpop.f32.mrf.mxu0 }
 0x772   :  { %6115 = vmax.xlane.f32.xlu0 %v6109_v56 }
 0x773   :  { %v6111_v61 = vpop.f32.mrf.mxu0 }
 0x774   :  { %v6112_v0 = vadd.f32 %v6898_v57, %v6111_v61 }
 0x775   :  { %v6971_v5 = vpop.f32.mrf.mxu0 }
 0x776   :  { %6117 = vmax.xlane.f32.xlu0 %v6112_v0 }
 0x7fb   :  { %v6116_v62 = vpop.xlane.xlu0 %6115 }
 0x7fc   :  { %v6119_v15 = vsub.f32 %v6109_v56, %v6116_v62 }
 0x7fe   :  { %v6121_v63 = vmul.f32 1.442695, %v6119_v15 }
 0x7ff   :  { %v6118_v22 = vpop.xlane.xlu0 %6117 }
 0x800   :  { %7512 = vpow2.f32 %v6121_v63  ;;  %v6120_v1 = vsub.f32 %v6112_v0, %v6118_v22 }
 0x802   :  { %v6123_v33 = vmul.f32 1.442695, %v6120_v1 }
 0x804   :  { %7514 = vpow2.f32 %v6123_v33 }
 0x80d   :  { %v7513_v12 = vpop.eup %7512 }
 0x80e   :  { %6125 = vadd.xlane.f32.xlu1 %v7513_v12 }
 0x811   :  { %v7515_v3 = vpop.eup %7514 }
 0x812   :  { %6127 = vadd.xlane.f32.xlu1 %v7515_v3 }
 0x897   :  { %v6126_v40 = vpop.xlane.xlu1 %6125 }
 0x898   :  { %7516 = vlog2.f32 %v6126_v40 }
 0x89b   :  { %v6128_v4 = vpop.xlane.xlu1 %6127 }
 0x89c   :  { %7518 = vlog2.f32 %v6128_v4 }
 0x8a5   :  { %v7517_v24 = vpop.eup %7516 }
 0x8a6   :  { %v6130_v6 = vmul.f32 0.6931472, %v7517_v24 }
 0x8a8   :  { %v6133_v55 = vadd.f32 %v6130_v6, %v6116_v62 }
 0x8a9   :  { %v7519_v50 = vpop.eup %7518 }
 0x8aa   :  { %v6135_v9 = vsub.f32 %v6109_v56, %v6133_v55  ;;  %v6132_v10 = vmul.f32 0.6931472, %v7519_v50 }
 0x8ac   :  { %6137 = vst [vmem:[%s8159_s13] sm:$0xff] %v6135_v9  ;;  %v6134_v11 = vadd.f32 %v6132_v10, %v6118_v22 }
 0x8ae   :  { %v6136_v14 = vsub.f32 %v6112_v0, %v6134_v11 }
 0x8b0   :  { %6138 = vst [vmem:[%s8159_s13 + $0x8] sm:$0xff] %v6136_v14 }
 0x8b1   :  { %6143 = vsyncpa [#allocation3], 1 }
 0x8b2   :  { %6144 = vsyncpa [#allocation5], 1 }
 0x8b3   :  { %6145 = vsyncpa [#allocation8], 1 }
 0x8b4   :  { %6146 = vsyncpa [#allocation11], 1 }
 0x8b5   :  { %6147 = vsyncpa [#allocation14], 1 }
 0x8b6   :  { %6148 = vsyncpa [#allocation17], 1 }

// kernel: _mlp_forward.1
= control target key start
LH: loop header
LB: loop body
LE: loop exit
PB: predicated region body
PF: predicated region fallthrough
CT: control target
= control target key end

     0   :  { %18 = vsyncpa [#allocation3], 0  ;;  %s8146_s0 = inlined_call_operand.vmem [shape: bf16[16,784], index: 0, kind: input, shape index: {}]   ;;  %s8147_s1 = inlined_call_operand.hbm [shape: bf16[784,1024], index: 1, kind: input, shape index: {}]   ;;  %s8148_s2 = inlined_call_operand.hbm [shape: f32[1,1024], index: 2, kind: input, shape index: {}]   ;;  %s8149_s3 = inlined_call_operand.hbm [shape: bf16[1024,512], index: 3, kind: input, shape index: {}]   ;;  %s8150_s4 = inlined_call_operand.hbm [shape: f32[1,512], index: 4, kind: input, shape index: {}]   ;;  %s8151_s5 = inlined_call_operand.hbm [shape: bf16[512,256], index: 5, kind: input, shape index: {}]   ;;  %s8152_s6 = inlined_call_operand.hbm [shape: f32[1,256], index: 6, kind: input, shape index: {}]   ;;  %s8153_s7 = inlined_call_operand.hbm [shape: bf16[256,128], index: 7, kind: input, shape index: {}]   ;;  %s8154_s8 = inlined_call_operand.hbm [shape: f32[1,128], index: 8, kind: input, shape index: {}]   ;;  %s8155_s9 = inlined_call_operand.vmem [shape: bf16[128,64], index: 9, kind: input, shape index: {}]   ;;  %s8156_s10 = inlined_call_operand.hbm [shape: f32[1,64], index: 10, kind: input, shape index: {}]   ;;  %s8157_s11 = inlined_call_operand.hbm [shape: bf16[64,128], index: 11, kind: input, shape index: {}]   ;;  %s8158_s12 = inlined_call_operand.hbm [shape: f32[1,128], index: 12, kind: input, shape index: {}]   ;;  %s8159_s13 = inlined_call_operand.vmem [shape: f32[16,128], index: 13, kind: output, shape index: {}]  }
   0x1   :  { %19 = vsyncpa [#allocation5], 0 }
   0x2   :  { %20 = vsyncpa [#allocation8], 0 }
   0x3   :  { %21 = vsyncpa [#allocation11], 0 }
   0x4   :  { %22 = vsyncpa [#allocation14], 0 }
   0x5   :  { %23 = vsyncpa [#allocation17], 0  ;;  %s7762_s25 = smov [#allocation4]   ;;  %s7763_s27 = smov [#allocation7]  }
   0x6   :  { %s44_s26 = sshll.u32 %s7762_s25, 4  ;;  %s66_s28 = sshll.u32 %s7763_s27, 4  ;;  %s45_s26 = int_to_ptr.vmem [resolvable:$true] %s44_s26  ;;  %s67_s28 = int_to_ptr.vmem [resolvable:$true] %s66_s28 }
   0x7   :  { %s7538_s29 = scalar_lea.vmem %s45_s26, 128  ;;  %p7543_p1 = scmp.lt.s32.totalorder %s45_s26, %s45_s26 }
   0x8   :  { %p7539_p0 = scmp.ne.s32.totalorder %s45_s26, %s7538_s29  ;;  %p7544_p2 = scmp.lt.s32.totalorder %s7538_s29, %s7538_s29 }
   0xa   :  { %p7545_p3 = por %p7544_p2, %p7543_p1 }
   0xc   :  { %p7546_p4 = pnand %p7545_p3, %p7539_p0 }
   0xe   :  { %7549 = shalt.err (!%p7546_p4)
}
   0xf   :  { %47 = dma.hbm_to_vmem [thread:$0]  %s8148_s2, 128, %s45_s26, [#allocation5]  }
  0x10   :  { %s7558_s15 = scalar_lea.vmem %s67_s28, 64  ;;  %p7563_p6 = scmp.lt.s32.totalorder %s67_s28, %s67_s28 }
  0x11   :  { %p7559_p5 = scmp.ne.s32.totalorder %s67_s28, %s7558_s15  ;;  %p7564_p7 = scmp.lt.s32.totalorder %s7558_s15, %s7558_s15 }
  0x13   :  { %p7565_p8 = por %p7564_p7, %p7563_p6 }
  0x15   :  { %p7566_p9 = pnand %p7565_p8, %p7559_p5 }
  0x17   :  { %7569 = shalt.err (!%p7566_p9)
}
  0x18   :  { %69 = dma.hbm_to_vmem [thread:$0]  %s8150_s4, 64, %s67_s28, [#allocation8]  }
  0x19   :  { %s7764_s18 = smov [#allocation10]   ;;  %s7765_s20 = smov [#allocation13]  }
  0x1a   :  { %s88_s19 = sshll.u32 %s7764_s18, 4  ;;  %s110_s21 = sshll.u32 %s7765_s20, 4  ;;  %s89_s19 = int_to_ptr.vmem [resolvable:$true] %s88_s19  ;;  %s111_s21 = int_to_ptr.vmem [resolvable:$true] %s110_s21 }
  0x1b   :  { %s7578_s22 = scalar_lea.vmem %s89_s19, 32  ;;  %p7583_p11 = scmp.lt.s32.totalorder %s89_s19, %s89_s19 }
  0x1c   :  { %p7579_p10 = scmp.ne.s32.totalorder %s89_s19, %s7578_s22  ;;  %p7584_p12 = scmp.lt.s32.totalorder %s7578_s22, %s7578_s22 }
  0x1e   :  { %p7585_p13 = por %p7584_p12, %p7583_p11 }
  0x20   :  { %p7586_p0 = pnand %p7585_p13, %p7579_p10 }
  0x22   :  { %7589 = shalt.err (!%p7586_p0)
}
  0x23   :  { %91 = dma.hbm_to_vmem [thread:$0]  %s8152_s6, 32, %s89_s19, [#allocation11]  }
  0x24   :  { %s7598_s24 = scalar_lea.vmem %s111_s21, 16  ;;  %s7602_s4 = scalar_lea.vmem %s111_s21, 32 }
  0x25   :  { %p7599_p1 = scmp.ne.s32.totalorder %s111_s21, %s7598_s24  ;;  %p7603_p2 = scmp.lt.s32.totalorder %s111_s21, %s111_s21 }
  0x26   :  { %p7604_p3 = scmp.lt.s32.totalorder %s7602_s4, %s7598_s24 }
  0x28   :  { %p7605_p4 = por %p7604_p3, %p7603_p2 }
  0x2a   :  { %p7606_p5 = pnand %p7605_p4, %p7599_p1 }
  0x2c   :  { %7609 = shalt.err (!%p7606_p5)
}
  0x2d   :  { %113 = dma.hbm_to_vmem [thread:$0]  %s8154_s8, 16, %s111_s21, [#allocation14]  }
  0x2e   :  { %s7766_s27 = smov [#allocation16]   ;;  %s7767_s29 = smov [#allocation2]  }
  0x2f   :  { %s131_s28 = sshll.u32 %s7766_s27, 4  ;;  %s31_s30 = sshll.u32 %s7767_s29, 4  ;;  %s132_s28 = int_to_ptr.vmem [resolvable:$true] %s131_s28  ;;  %s32_s30 = int_to_ptr.vmem [resolvable:$true] %s31_s30 }
  0x30   :  { %s7618_s14 = scalar_lea.vmem %s132_s28, 512  ;;  %p7623_p7 = scmp.lt.s32.totalorder %s132_s28, %s132_s28 }
  0x31   :  { %p7619_p6 = scmp.ne.s32.totalorder %s132_s28, %s7618_s14  ;;  %p7624_p8 = scmp.lt.s32.totalorder %s7618_s14, %s7618_s14 }
  0x33   :  { %p7625_p9 = por %p7624_p8, %p7623_p7 }
  0x35   :  { %p7626_p10 = pnand %p7625_p9, %p7619_p6 }
  0x37   :  { %7629 = shalt.err (!%p7626_p10)
}
  0x38   :  { %s7768_s6 = smov 64   ;;  %s7769_s15 = smov 4  }
  0x39   :  { %137 = dma.hbm_to_vmem [thread:$0]  %s8157_s11, 512, %s132_s28, [#allocation17], %s7768_s6, %s7768_s6, %s7769_s15  }
  0x3a   :  { %s7638_s17 = scalar_lea.vmem %s32_s30, 50176  ;;  %p7643_p12 = scmp.lt.s32.totalorder %s32_s30, %s32_s30 }
  0x3b   :  { %p7639_p11 = scmp.ne.s32.totalorder %s32_s30, %s7638_s17  ;;  %p7644_p13 = scmp.lt.s32.totalorder %s7638_s17, %s7638_s17 }
  0x3d   :  { %p7645_p0 = por %p7644_p13, %p7643_p12 }
  0x3f   :  { %p7646_p1 = pnand %p7645_p0, %p7639_p11 }
  0x41   :  { %7649 = shalt.err (!%p7646_p1)
}
  0x42   :  { %s7770_s18 = smov 512   ;;  %s7771_s19 = smov 32  }
  0x43   :  { %37 = dma.hbm_to_vmem [thread:$0]  %s8147_s1, 50176, %s32_s30, [#allocation3], %s7770_s18, %s7770_s18, %s7771_s19  }
  0x44   :  { %s7772_s22 = smov [#allocation6]  }
  0x45   :  { %s53_s2 = sshll.u32 %s7772_s22, 4  ;;  %s54_s2 = int_to_ptr.vmem [resolvable:$true] %s53_s2 }
  0x46   :  { %s7658_s23 = scalar_lea.vmem %s54_s2, 32768  ;;  %p7663_p3 = scmp.lt.s32.totalorder %s54_s2, %s54_s2 }
  0x47   :  { %p7659_p2 = scmp.ne.s32.totalorder %s54_s2, %s7658_s23  ;;  %p7664_p4 = scmp.lt.s32.totalorder %s7658_s23, %s7658_s23 }
  0x49   :  { %p7665_p5 = por %p7664_p4, %p7663_p3 }
  0x4b   :  { %p7666_p6 = pnand %p7665_p5, %p7659_p2 }
  0x4d   :  { %7669 = shalt.err (!%p7666_p6)
}
  0x4e   :  { %s7773_s11 = smov 256   ;;  %s7774_s24 = smov 16  }
  0x4f   :  { %59 = dma.hbm_to_vmem [thread:$0]  %s8149_s3, 32768, %s54_s2, [#allocation5], %s7773_s11, %s7773_s11, %s7774_s24  }
  0x50   :  { %s7775_s26 = smov [#allocation9]  }
  0x51   :  { %s75_s27 = sshll.u32 %s7775_s26, 4  ;;  %s76_s27 = int_to_ptr.vmem [resolvable:$true] %s75_s27 }
  0x52   :  { %s7678_s1 = scalar_lea.vmem %s76_s27, 8192  ;;  %p7683_p8 = scmp.lt.s32.totalorder %s76_s27, %s76_s27 }
  0x53   :  { %p7679_p7 = scmp.ne.s32.totalorder %s76_s27, %s7678_s1  ;;  %p7684_p9 = scmp.lt.s32.totalorder %s7678_s1, %s7678_s1 }
  0x55   :  { %p7685_p10 = por %p7684_p9, %p7683_p8 }
  0x57   :  { %p7686_p11 = pnand %p7685_p10, %p7679_p7 }
  0x59   :  { %7689 = shalt.err (!%p7686_p11)
}
  0x5a   :  { %s7776_s28 = smov 128   ;;  %s7777_s29 = smov 8  }
  0x5b   :  { %81 = dma.hbm_to_vmem [thread:$0]  %s8151_s5, 8192, %s76_s27, [#allocation8], %s7776_s28, %s7776_s28, %s7777_s29  }
  0x5c   :  { %s7778_s16 = smov [#allocation12]   ;;  %s7779_s17 = smov [#allocation15]  }
  0x5d   :  { %s97_s8 = sshll.u32 %s7778_s16, 4  ;;  %s122_s3 = sshll.u32 %s7779_s17, 4  ;;  %s98_s8 = int_to_ptr.vmem [resolvable:$true] %s97_s8  ;;  %s123_s3 = int_to_ptr.vmem [resolvable:$true] %s122_s3 }
  0x5e   :  { %s7698_s18 = scalar_lea.vmem %s98_s8, 2048  ;;  %p7703_p13 = scmp.lt.s32.totalorder %s98_s8, %s98_s8 }
  0x5f   :  { %p7699_p12 = scmp.ne.s32.totalorder %s98_s8, %s7698_s18  ;;  %p7704_p0 = scmp.lt.s32.totalorder %s7698_s18, %s7698_s18 }
  0x61   :  { %p7705_p1 = por %p7704_p0, %p7703_p13 }
  0x63   :  { %p7706_p2 = pnand %p7705_p1, %p7699_p12 }
  0x65   :  { %7709 = shalt.err (!%p7706_p2)
}
  0x66   :  { %103 = dma.hbm_to_vmem [thread:$0]  %s8153_s7, 2048, %s98_s8, [#allocation11], %s7768_s6, %s7768_s6, %s7769_s15  }
  0x67   :  { %s7718_s5 = scalar_lea.vmem %s123_s3, 16  ;;  %s7722_s21 = scalar_lea.vmem %s123_s3, 32 }
  0x68   :  { %p7719_p3 = scmp.ne.s32.totalorder %s123_s3, %s7718_s5  ;;  %p7723_p4 = scmp.lt.s32.totalorder %s123_s3, %s123_s3 }
  0x69   :  { %p7724_p5 = scmp.lt.s32.totalorder %s7722_s21, %s7718_s5 }
  0x6b   :  { %p7725_p6 = por %p7724_p5, %p7723_p4 }
  0x6d   :  { %p7726_p7 = pnand %p7725_p6, %p7719_p3 }
  0x6f   :  { %7729 = shalt.err (!%p7726_p7)
}
  0x70   :  { %125 = dma.hbm_to_vmem [thread:$0]  %s8156_s10, 16, %s123_s3, [#allocation14]  }
  0x71   :  { %s7780_s23 = smov [#allocation18]  }
  0x72   :  { %s144_s11 = sshll.u32 %s7780_s23, 4  ;;  %s145_s11 = int_to_ptr.vmem [resolvable:$true] %s144_s11 }
  0x73   :  { %s7738_s24 = scalar_lea.vmem %s145_s11, 16  ;;  %s7742_s4 = scalar_lea.vmem %s145_s11, 32 }
  0x74   :  { %p7739_p8 = scmp.ne.s32.totalorder %s145_s11, %s7738_s24  ;;  %p7743_p9 = scmp.lt.s32.totalorder %s145_s11, %s145_s11 }
  0x75   :  { %p7744_p10 = scmp.lt.s32.totalorder %s7742_s4, %s7738_s24 }
  0x77   :  { %p7745_p11 = por %p7744_p10, %p7743_p9 }
  0x79   :  { %p7746_p12 = pnand %p7745_p11, %p7739_p8 }
  0x7b   :  { %7749 = shalt.err (!%p7746_p12)
}
  0x7c   :  { %147 = dma.hbm_to_vmem [thread:$0]  %s8158_s12, 16, %s145_s11, [#allocation17]  }
  0x7d   :  { %7750 = dma.done.wait [#allocation3], 50176  }
  0x7e   :  { %7751 = vsyncadd [#allocation3], 4294917120 }
  0x7f   :  { %7752 = dma.done.wait [#allocation5], 32896  }
  0x80   :  { %7753 = vsyncadd [#allocation5], 4294934400 }
  0x81   :  { %7754 = dma.done.wait [#allocation8], 8256  }
  0x82   :  { %7755 = vsyncadd [#allocation8], 4294959040 }
  0x83   :  { %7756 = dma.done.wait [#allocation11], 2080  }
  0x84   :  { %7757 = vsyncadd [#allocation11], 4294965216 }
  0x85   :  { %7758 = dma.done.wait [#allocation14], 32  }
  0x86   :  { %7759 = vsyncadd [#allocation14], 4294967264 }
  0x87   :  { %7760 = dma.done.wait [#allocation17], 528  }
  0x88   :  { %7761 = vsyncadd [#allocation17], 4294966768  ;;  %v246_v0 = vld [vmem:[#allocation2 + $0x1c0] sm:$0xff]  ;;  %v7901_v59 = vld [vmem:[%s8146_s0 + $0xc] ss:$28 sps:$4 sm:$0xff]   ;;  %vm2619_vm0 = vcmask 130048  }
  0x89   :  { %v250_v1 = vld [vmem:[#allocation2 + $0x1e0] sm:$0xff]  ;;  %2698 = vmatprep.mubr.bf16.mxu1 %v7901_v59  ;;  %vm7783_vm1 = vmmov 0   ;;  %vm6070_vm2 = vcmask 523264  }
  0x8a   :  { %v374_v2 = vld [vmem:[#allocation2 + $0x5c0] sm:$0xff]  ;;  %v6213_v3 = vcombine.high %v246_v0, %v250_v1  ;;  %v6212_v5 = vcombine.low %v246_v0, %v250_v1 }
  0x8b   :  { %v378_v4 = vld [vmem:[#allocation2 + $0x5e0] sm:$0xff] }
  0x8c   :  { %v238_v6 = vld [vmem:[#allocation2 + $0x180] sm:$0xff]  ;;  %v6341_v8 = vcombine.high %v374_v2, %v378_v4  ;;  %v6340_v9 = vcombine.low %v374_v2, %v378_v4  ;;  %2623 = vmatprep.subr.bf16.mxu0 %v6213_v3 }
  0x8d   :  { %v242_v7 = vld [vmem:[#allocation2 + $0x1a0] sm:$0xff]  ;;  %2624 = vmatpush1.bf16.msra.mxu0 %v6212_v5 }
  0x8e   :  { %v6205_v10 = vcombine.high %v238_v6, %v242_v7  ;;  %v366_v11 = vld [vmem:[#allocation2 + $0x580] sm:$0xff]  ;;  %2666 = vmatprep.subr.bf16.mxu1 %v6341_v8  ;;  %v6204_v18 = vcombine.low %v238_v6, %v242_v7 }
  0x8f   :  { %v370_v12 = vld [vmem:[#allocation2 + $0x5a0] sm:$0xff]  ;;  %2667 = vmatpush1.bf16.msra.mxu1 %v6340_v9 }
  0x90   :  { %v230_v13 = vld [vmem:[#allocation2 + $0x140] sm:$0xff]  ;;  %v6333_v14 = vcombine.high %v366_v11, %v370_v12  ;;  %2625 = vmatprep.subr.bf16.mxu0 %v6205_v10  ;;  %v6332_v19 = vcombine.low %v366_v11, %v370_v12 }
  0x91   :  { %v234_v15 = vld [vmem:[#allocation2 + $0x160] sm:$0xff]  ;;  %2626 = vmatpush1.bf16.msra.mxu0 %v6204_v18 }
  0x92   :  { %v358_v16 = vld [vmem:[#allocation2 + $0x540] sm:$0xff]  ;;  %v6197_v20 = vcombine.high %v230_v13, %v234_v15  ;;  %2668 = vmatprep.subr.bf16.mxu1 %v6333_v14  ;;  %v6196_v26 = vcombine.low %v230_v13, %v234_v15 }
  0x93   :  { %v362_v17 = vld [vmem:[#allocation2 + $0x560] sm:$0xff]  ;;  %2669 = vmatpush1.bf16.msra.mxu1 %v6332_v19 }
  0x94   :  { %v6325_v21 = vcombine.high %v358_v16, %v362_v17  ;;  %v222_v22 = vld [vmem:[#allocation2 + $0x100] sm:$0xff]  ;;  %2627 = vmatprep.subr.bf16.mxu0 %v6197_v20  ;;  %v6324_v27 = vcombine.low %v358_v16, %v362_v17 }
  0x95   :  { %v226_v23 = vld [vmem:[#allocation2 + $0x120] sm:$0xff]  ;;  %2628 = vmatpush1.bf16.msra.mxu0 %v6196_v26 }
  0x96   :  { %v350_v24 = vld [vmem:[#allocation2 + $0x500] sm:$0xff]  ;;  %v6189_v28 = vcombine.high %v222_v22, %v226_v23  ;;  %2670 = vmatprep.subr.bf16.mxu1 %v6325_v21  ;;  %v6188_v34 = vcombine.low %v222_v22, %v226_v23 }
  0x97   :  { %v354_v25 = vld [vmem:[#allocation2 + $0x520] sm:$0xff]  ;;  %2671 = vmatpush1.bf16.msra.mxu1 %v6324_v27 }
  0x98   :  { %v6317_v29 = vcombine.high %v350_v24, %v354_v25  ;;  %v214_v30 = vld [vmem:[#allocation2 + $0xc0] sm:$0xff]  ;;  %2629 = vmatprep.subr.bf16.mxu0 %v6189_v28  ;;  %v6316_v35 = vcombine.low %v350_v24, %v354_v25 }
  0x99   :  { %v218_v31 = vld [vmem:[#allocation2 + $0xe0] sm:$0xff]  ;;  %2630 = vmatpush1.bf16.msra.mxu0 %v6188_v34 }
  0x9a   :  { %v342_v32 = vld [vmem:[#allocation2 + $0x4c0] sm:$0xff]  ;;  %v6181_v36 = vcombine.high %v214_v30, %v218_v31  ;;  %2672 = vmatprep.subr.bf16.mxu1 %v6317_v29  ;;  %v6180_v42 = vcombine.low %v214_v30, %v218_v31 }
  0x9b   :  { %v346_v33 = vld [vmem:[#allocation2 + $0x4e0] sm:$0xff]  ;;  %2673 = vmatpush1.bf16.msra.mxu1 %v6316_v35 }
  0x9c   :  { %v6309_v37 = vcombine.high %v342_v32, %v346_v33  ;;  %v206_v38 = vld [vmem:[#allocation2 + $0x80] sm:$0xff]  ;;  %2631 = vmatprep.subr.bf16.mxu0 %v6181_v36  ;;  %v6308_v43 = vcombine.low %v342_v32, %v346_v33 }
  0x9d   :  { %v210_v39 = vld [vmem:[#allocation2 + $0xa0] sm:$0xff]  ;;  %2632 = vmatpush1.bf16.msra.mxu0 %v6180_v42 }
  0x9e   :  { %v334_v40 = vld [vmem:[#allocation2 + $0x480] sm:$0xff]  ;;  %v6173_v44 = vcombine.high %v206_v38, %v210_v39  ;;  %2674 = vmatprep.subr.bf16.mxu1 %v6309_v37  ;;  %v6172_v50 = vcombine.low %v206_v38, %v210_v39 }
  0x9f   :  { %v338_v41 = vld [vmem:[#allocation2 + $0x4a0] sm:$0xff]  ;;  %2675 = vmatpush1.bf16.msra.mxu1 %v6308_v43 }
  0xa0   :  { %v6301_v45 = vcombine.high %v334_v40, %v338_v41  ;;  %v198_v46 = vld [vmem:[#allocation2 + $0x40] sm:$0xff]  ;;  %2633 = vmatprep.subr.bf16.mxu0 %v6173_v44  ;;  %v6300_v52 = vcombine.low %v334_v40, %v338_v41 }
  0xa1   :  { %v202_v47 = vld [vmem:[#allocation2 + $0x60] sm:$0xff]  ;;  %2634 = vmatpush1.bf16.msra.mxu0 %v6172_v50 }
  0xa2   :  { %v326_v48 = vld [vmem:[#allocation2 + $0x440] sm:$0xff]  ;;  %v6165_v53 = vcombine.high %v198_v46, %v202_v47  ;;  %2676 = vmatprep.subr.bf16.mxu1 %v6301_v45  ;;  %v6164_v60 = vcombine.low %v198_v46, %v202_v47 }
  0xa3   :  { %v330_v49 = vld [vmem:[#allocation2 + $0x460] sm:$0xff]  ;;  %2677 = vmatpush1.bf16.msra.mxu1 %v6300_v52 }
  0xa4   :  { %v190_v51 = vld [vmem:[#allocation2] sm:$0xff]  ;;  %v6293_v55 = vcombine.high %v326_v48, %v330_v49  ;;  %2635 = vmatprep.subr.bf16.mxu0 %v6165_v53  ;;  %v6292_v61 = vcombine.low %v326_v48, %v330_v49 }
  0xa5   :  { %v194_v54 = vld [vmem:[#allocation2 + $0x20] sm:$0xff]  ;;  %2636 = vmatpush1.bf16.msra.mxu0 %v6164_v60 }
  0xa6   :  { %v7896_v56 = vld [vmem:[%s8146_s0 + $0x4] ss:$28 sps:$4 sm:$0xff]   ;;  %v6157_v62 = vcombine.high %v190_v51, %v194_v54  ;;  %2678 = vmatprep.subr.bf16.mxu1 %v6293_v55  ;;  %v6156_v4 = vcombine.low %v190_v51, %v194_v54 }
  0xa7   :  { %v318_v57 = vld [vmem:[#allocation2 + $0x400] sm:$0xff]  ;;  %2655 = vmatprep.mubr.bf16.mxu0 %v7896_v56  ;;  %2679 = vmatpush1.bf16.msra.mxu1 %v6292_v61 }
  0xa8   :  { %v322_v58 = vld [vmem:[#allocation2 + $0x420] sm:$0xff]  ;;  %2637 = vmatprep.subr.bf16.mxu0 %v6157_v62 }
  0xa9   :  { %v6285_v63 = vcombine.high %v318_v57, %v322_v58  ;;  %v310_v0 = vld [vmem:[#allocation2 + $0x3c0] sm:$0xff]  ;;  %v6284_v5 = vcombine.low %v318_v57, %v322_v58  ;;  %2638 = vmatpush1.bf16.msra.mxu0 %v6156_v4 }
  0xaa   :  { %v314_v1 = vld [vmem:[#allocation2 + $0x3e0] sm:$0xff] }
  0xab   :  { %v438_v2 = vld [vmem:[#allocation2 + $0x7c0] sm:$0xff]  ;;  %v6277_v6 = vcombine.high %v310_v0, %v314_v1  ;;  %2680 = vmatprep.subr.bf16.mxu1 %v6285_v63  ;;  %v6276_v12 = vcombine.low %v310_v0, %v314_v1 }
  0xac   :  { %v442_v3 = vld [vmem:[#allocation2 + $0x7e0] sm:$0xff]  ;;  %2681 = vmatpush1.bf16.msra.mxu1 %v6284_v5 }
  0xad   :  { %v6405_v7 = vcombine.high %v438_v2, %v442_v3  ;;  %v302_v8 = vld [vmem:[#allocation2 + $0x380] sm:$0xff]  ;;  %2639 = vmatprep.subr.bf16.mxu0 %v6277_v6  ;;  %v6404_v13 = vcombine.low %v438_v2, %v442_v3 }
  0xae   :  { %v306_v9 = vld [vmem:[#allocation2 + $0x3a0] sm:$0xff]  ;;  %2640 = vmatpush2.bf16.msra.mxu0 %v6276_v12 }
  0xaf   :  { %v430_v10 = vld [vmem:[#allocation2 + $0x780] sm:$0xff]  ;;  %v6269_v14 = vcombine.high %v302_v8, %v306_v9  ;;  %2682 = vmatprep.subr.bf16.mxu1 %v6405_v7  ;;  %v6268_v20 = vcombine.low %v302_v8, %v306_v9 }
  0xb0   :  { %v434_v11 = vld [vmem:[#allocation2 + $0x7a0] sm:$0xff]  ;;  %2683 = vmatpush2.bf16.msra.mxu1 %v6404_v13  ;;  %v247_v13 = vld [vmem:[#allocation2 + $0x1c8] sm:$0xff] }
  0xb1   :  { %v6397_v15 = vcombine.high %v430_v10, %v434_v11  ;;  %v294_v16 = vld [vmem:[#allocation2 + $0x340] sm:$0xff]  ;;  %2641 = vmatprep.subr.bf16.mxu0 %v6269_v14  ;;  %v6396_v21 = vcombine.low %v430_v10, %v434_v11  ;;  %v251_v14 = vld [vmem:[#allocation2 + $0x1e8] sm:$0xff] }
  0xb2   :  { %v298_v17 = vld [vmem:[#allocation2 + $0x360] sm:$0xff]  ;;  %2642 = vmatpush2.bf16.msra.mxu0 %v6268_v20 }
  0xb3   :  { %v422_v18 = vld [vmem:[#allocation2 + $0x740] sm:$0xff]  ;;  %v6261_v22 = vcombine.high %v294_v16, %v298_v17  ;;  %2684 = vmatprep.subr.bf16.mxu1 %v6397_v15  ;;  %v6260_v28 = vcombine.low %v294_v16, %v298_v17 }
  0xb4   :  { %v426_v19 = vld [vmem:[#allocation2 + $0x760] sm:$0xff]  ;;  %2685 = vmatpush2.bf16.msra.mxu1 %v6396_v21 }
  0xb5   :  { %v6389_v23 = vcombine.high %v422_v18, %v426_v19  ;;  %v286_v24 = vld [vmem:[#allocation2 + $0x300] sm:$0xff]  ;;  %2643 = vmatprep.subr.bf16.mxu0 %v6261_v22  ;;  %v6388_v29 = vcombine.low %v422_v18, %v426_v19  ;;  %v6215_v19 = vcombine.high %v247_v13, %v251_v14  ;;  %v7917_v22 = vld [vmem:[%s8146_s0 + $0x14] ss:$28 sps:$4 sm:$0xff]  }
  0xb6   :  { %v290_v25 = vld [vmem:[#allocation2 + $0x320] sm:$0xff]  ;;  %2644 = vmatpush2.bf16.msra.mxu0 %v6260_v28  ;;  %v243_v28 = vld [vmem:[#allocation2 + $0x1a8] sm:$0xff] }
  0xb7   :  { %v414_v26 = vld [vmem:[#allocation2 + $0x700] sm:$0xff]  ;;  %v6253_v30 = vcombine.high %v286_v24, %v290_v25  ;;  %2686 = vmatprep.subr.bf16.mxu1 %v6389_v23  ;;  %v6252_v36 = vcombine.low %v286_v24, %v290_v25  ;;  %v239_v25 = vld [vmem:[#allocation2 + $0x188] sm:$0xff] }
  0xb8   :  { %v418_v27 = vld [vmem:[#allocation2 + $0x720] sm:$0xff]  ;;  %2687 = vmatpush2.bf16.msra.mxu1 %v6388_v29 }
  0xb9   :  { %v6381_v31 = vcombine.high %v414_v26, %v418_v27  ;;  %v278_v32 = vld [vmem:[#allocation2 + $0x2c0] sm:$0xff]  ;;  %2645 = vmatprep.subr.bf16.mxu0 %v6253_v30  ;;  %v6380_v37 = vcombine.low %v414_v26, %v418_v27  ;;  %v7781_v26 = vmov 0   ;;  %v7000_v27 = vld [vmem:[%s8146_s0 + $0x18] ss:$28 sps:$4 sm:$0xff]  }
  0xba   :  { %v282_v33 = vld [vmem:[#allocation2 + $0x2e0] sm:$0xff]  ;;  %2646 = vmatpush2.bf16.msra.mxu0 %v6252_v36  ;;  %v6207_v36 = vcombine.high %v239_v25, %v243_v28 }
  0xbb   :  { %v406_v34 = vld [vmem:[#allocation2 + $0x6c0] sm:$0xff]  ;;  %v6245_v38 = vcombine.high %v278_v32, %v282_v33  ;;  %2688 = vmatprep.subr.bf16.mxu1 %v6381_v31  ;;  %v6244_v44 = vcombine.low %v278_v32, %v282_v33  ;;  %v6214_v32 = vcombine.low %v247_v13, %v251_v14 }
  0xbc   :  { %v410_v35 = vld [vmem:[#allocation2 + $0x6e0] sm:$0xff]  ;;  %2689 = vmatpush2.bf16.msra.mxu1 %v6380_v37 }
  0xbd   :  { %v6373_v39 = vcombine.high %v406_v34, %v410_v35  ;;  %v270_v40 = vld [vmem:[#allocation2 + $0x280] sm:$0xff]  ;;  %2647 = vmatprep.subr.bf16.mxu0 %v6245_v38  ;;  %v6372_v45 = vcombine.low %v406_v34, %v410_v35  ;;  %v231_v34 = vld [vmem:[#allocation2 + $0x148] sm:$0xff] }
  0xbe   :  { %v274_v41 = vld [vmem:[#allocation2 + $0x2a0] sm:$0xff]  ;;  %2648 = vmatpush2.bf16.msra.mxu0 %v6244_v44  ;;  %v235_v35 = vld [vmem:[#allocation2 + $0x168] sm:$0xff] }
  0xbf   :  { %v398_v42 = vld [vmem:[#allocation2 + $0x680] sm:$0xff]  ;;  %v6237_v46 = vcombine.high %v270_v40, %v274_v41  ;;  %2690 = vmatprep.subr.bf16.mxu1 %v6373_v39  ;;  %v6236_v52 = vcombine.low %v270_v40, %v274_v41  ;;  %v6206_v40 = vcombine.low %v239_v25, %v243_v28  ;;  %v315_v25 = vld [vmem:[#allocation2 + $0x3e8] sm:$0xff] }
  0xc0   :  { %v402_v43 = vld [vmem:[#allocation2 + $0x6a0] sm:$0xff]  ;;  %2691 = vmatpush2.bf16.msra.mxu1 %v6372_v45 }
  0xc1   :  { %v6365_v47 = vcombine.high %v398_v42, %v402_v43  ;;  %v262_v48 = vld [vmem:[#allocation2 + $0x240] sm:$0xff]  ;;  %2649 = vmatprep.subr.bf16.mxu0 %v6237_v46  ;;  %v6364_v53 = vcombine.low %v398_v42, %v402_v43  ;;  %v223_v42 = vld [vmem:[#allocation2 + $0x108] sm:$0xff]  ;;  %v6199_v46 = vcombine.high %v231_v34, %v235_v35 }
  0xc2   :  { %v266_v49 = vld [vmem:[#allocation2 + $0x260] sm:$0xff]  ;;  %2650 = vmatpush2.bf16.msra.mxu0 %v6236_v52  ;;  %v227_v43 = vld [vmem:[#allocation2 + $0x128] sm:$0xff] }
  0xc3   :  { %v390_v50 = vld [vmem:[#allocation2 + $0x640] sm:$0xff]  ;;  %v6229_v54 = vcombine.high %v262_v48, %v266_v49  ;;  %2692 = vmatprep.subr.bf16.mxu1 %v6365_v47  ;;  %v6228_v62 = vcombine.low %v262_v48, %v266_v49  ;;  %v6191_v52 = vcombine.high %v223_v42, %v227_v43 }
  0xc4   :  { %v394_v51 = vld [vmem:[#allocation2 + $0x660] sm:$0xff]  ;;  %2693 = vmatpush2.bf16.msra.mxu1 %v6364_v53  ;;  %v215_v53 = vld [vmem:[#allocation2 + $0xc8] sm:$0xff] }
  0xc5   :  { %v6357_v55 = vcombine.high %v390_v50, %v394_v51  ;;  %v254_v57 = vld [vmem:[#allocation2 + $0x200] sm:$0xff]  ;;  %2651 = vmatprep.subr.bf16.mxu0 %v6229_v54  ;;  %v6356_v63 = vcombine.low %v390_v50, %v394_v51  ;;  %v6198_v50 = vcombine.low %v231_v34, %v235_v35  ;;  %v219_v54 = vld [vmem:[#allocation2 + $0xe8] sm:$0xff] }
  0xc6   :  { %v258_v58 = vld [vmem:[#allocation2 + $0x220] sm:$0xff]  ;;  %2652 = vmatpush2.bf16.msra.mxu0 %v6228_v62  ;;  %v207_v62 = vld [vmem:[#allocation2 + $0x88] sm:$0xff] }
  0xc7   :  { %v382_v60 = vld [vmem:[#allocation2 + $0x600] sm:$0xff]  ;;  %v6221_v0 = vcombine.high %v254_v57, %v258_v58  ;;  %2694 = vmatprep.subr.bf16.mxu1 %v6357_v55  ;;  %v6220_v6 = vcombine.low %v254_v57, %v258_v58  ;;  %v6190_v57 = vcombine.low %v223_v42, %v227_v43  ;;  %v307_v34 = vld [vmem:[#allocation2 + $0x3a8] sm:$0xff] }
  0xc8   :  { %v386_v61 = vld [vmem:[#allocation2 + $0x620] sm:$0xff]  ;;  %2695 = vmatpush2.bf16.msra.mxu1 %v6356_v63  ;;  %v211_v63 = vld [vmem:[#allocation2 + $0xa8] sm:$0xff] }
  0xc9   :  { %v6349_v1 = vcombine.high %v382_v60, %v386_v61  ;;  %v502_v2 = vld [vmem:[#allocation2 + $0x9c0] sm:$0xff]  ;;  %2653 = vmatprep.subr.bf16.mxu0 %v6221_v0  ;;  %v6348_v7 = vcombine.low %v382_v60, %v386_v61  ;;  %v6183_v61 = vcombine.high %v215_v53, %v219_v54  ;;  %v299_v42 = vld [vmem:[#allocation2 + $0x368] sm:$0xff] }
  0xca   :  { %v506_v3 = vld [vmem:[#allocation2 + $0x9e0] sm:$0xff]  ;;  %2654 = vmatpush2.bf16.msra.mxu0 %v6220_v6  ;;  %v199_v6 = vld [vmem:[#allocation2 + $0x48] sm:$0xff] }
  0xcb   :  { %v574_v4 = vld [vmem:[#allocation2 + $0xc00] sm:$0xff]  ;;  %v6469_v8 = vcombine.high %v502_v2, %v506_v3  ;;  %2696 = vmatprep.subr.bf16.mxu1 %v6349_v1  ;;  %v6468_v16 = vcombine.low %v502_v2, %v506_v3  ;;  %v6182_v1 = vcombine.low %v215_v53, %v219_v54 }
  0xcc   :  { %v578_v5 = vld [vmem:[#allocation2 + $0xc20] sm:$0xff]  ;;  %2697 = vmatpush2.bf16.msra.mxu1 %v6348_v7  ;;  %v203_v7 = vld [vmem:[#allocation2 + $0x68] sm:$0xff] }
  0xcd   :  { %v6541_v9 = vcombine.high %v574_v4, %v578_v5  ;;  %v494_v10 = vld [vmem:[#allocation2 + $0x980] sm:$0xff]  ;;  %2709 = vmatprep.subr.bf16.mxu0 %v6469_v8  ;;  %v6540_v17 = vcombine.low %v574_v4, %v578_v5  ;;  %v6175_v5 = vcombine.high %v207_v62, %v211_v63  ;;  %v6167_v14 = vcombine.high %v199_v6, %v203_v7 }
  0xce   :  { %v498_v11 = vld [vmem:[#allocation2 + $0x9a0] sm:$0xff] }
  0xcf   :  { %v7908_v12 = vld [vmem:[%s8146_s0] ss:$28 sps:$4 sm:$0xff]   ;;  %v6999_v15 = vld [vmem:[%s8146_s0 + $0x8] ss:$28 sps:$4 sm:$0xff]   ;;  %v6461_v18 = vcombine.high %v494_v10, %v498_v11  ;;  %2766 = vmatprep.subr.bf16.mxu1 %v6541_v9  ;;  %v6460_v23 = vcombine.low %v494_v10, %v498_v11  ;;  %v6174_v9 = vcombine.low %v207_v62, %v211_v63 }
  0xd0   :  { %v486_v20 = vld [vmem:[#allocation2 + $0x940] sm:$0xff]  ;;  %2656 = vmatmul.mubr.bf16.vlgmr.msra.gmra.mxu0 %v7908_v12  ;;  %2699 = vmatmul.mubr.bf16.vlgmr.msra.gmra.mxu1 %v6999_v15  ;;  %v191_v15 = vld [vmem:[#allocation2 + $0x8] sm:$0xff] }
  0xd1   :  { %v490_v21 = vld [vmem:[#allocation2 + $0x960] sm:$0xff]  ;;  %2710 = vmatpush1.bf16.msra.mxu0 %v6468_v16  ;;  %2767 = vmatpush1.bf16.msra.mxu1 %v6540_v17  ;;  %v195_v16 = vld [vmem:[#allocation2 + $0x28] sm:$0xff] }
  0xd2   :  { %2711 = vmatprep.subr.bf16.mxu0 %v6461_v18  ;;  %v6453_v24 = vcombine.high %v486_v20, %v490_v21  ;;  %2784 = vmatprep.mubr.bf16.mxu1 %v7781_v26  ;;  %v478_v29 = vld [vmem:[#allocation2 + $0x900] sm:$0xff]  ;;  %v6452_v31 = vcombine.low %v486_v20, %v490_v21  ;;  %v6166_v18 = vcombine.low %v199_v6, %v203_v7  ;;  %v375_v7 = vld [vmem:[#allocation2 + $0x5c8] sm:$0xff] }
  0xd3   :  { %2795 = vmatprep.subr.bf16.mxu1 %v6215_v19  ;;  %v482_v30 = vld [vmem:[#allocation2 + $0x920] sm:$0xff]  ;;  %2741 = vmatprep.mubr.bf16.mxu0 %v7917_v22  ;;  %v6158_v28 = vcombine.low %v191_v15, %v195_v16 }
  0xd4   :  { %v6445_v33 = vcombine.high %v478_v29, %v482_v30  ;;  %v470_v37 = vld [vmem:[#allocation2 + $0x8c0] sm:$0xff]  ;;  %v6444_v39 = vcombine.low %v478_v29, %v482_v30 }
  0xd5   :  { %2712 = vmatpush1.bf16.msra.mxu0 %v6460_v23  ;;  %v474_v38 = vld [vmem:[#allocation2 + $0x8e0] sm:$0xff]  ;;  %v6159_v23 = vcombine.high %v191_v15, %v195_v16  ;;  %v7929_v15 = vld [vmem:[%s8146_s0 + $0x10] ss:$28 sps:$4 sm:$0xff]  }
  0xd6   :  { %2713 = vmatprep.subr.bf16.mxu0 %v6453_v24  ;;  %v6437_v41 = vcombine.high %v470_v37, %v474_v38  ;;  %v462_v44 = vld [vmem:[#allocation2 + $0x880] sm:$0xff]  ;;  %v6436_v47 = vcombine.low %v470_v37, %v474_v38  ;;  %v311_v24 = vld [vmem:[#allocation2 + $0x3c8] sm:$0xff] }
  0xd7   :  { %v466_v45 = vld [vmem:[#allocation2 + $0x8a0] sm:$0xff] }
  0xd8   :  { %6548 = vmatmul.mubr.msk.bf16.vlgmr.msra.gmra.mxu1 %vm2619_vm0, %v7000_v27  ;;  %v454_v48 = vld [vmem:[#allocation2 + $0x840] sm:$0xff]  ;;  %v6429_v51 = vcombine.high %v462_v44, %v466_v45  ;;  %v6428_v55 = vcombine.low %v462_v44, %v466_v45 }
  0xd9   :  { %2714 = vmatpush1.bf16.msra.mxu0 %v6452_v31  ;;  %2796 = vmatpush1.bf16.msra.mxu1 %v6214_v32  ;;  %v458_v49 = vld [vmem:[#allocation2 + $0x860] sm:$0xff]  ;;  %v6279_v32 = vcombine.high %v311_v24, %v315_v25 }
  0xda   :  { %2715 = vmatprep.subr.bf16.mxu0 %v6445_v33  ;;  %2797 = vmatprep.subr.bf16.mxu1 %v6207_v36  ;;  %v6421_v58 = vcombine.high %v454_v48, %v458_v49  ;;  %v446_v60 = vld [vmem:[#allocation2 + $0x800] sm:$0xff]  ;;  %v6420_v0 = vcombine.low %v454_v48, %v458_v49  ;;  %v303_v33 = vld [vmem:[#allocation2 + $0x388] sm:$0xff]  ;;  %v6278_v36 = vcombine.low %v311_v24, %v315_v25 }
  0xdb   :  { %2827 = vmatprep.mubr.bf16.mxu1 %v7896_v56  ;;  %v450_v56 = vld [vmem:[#allocation2 + $0x820] sm:$0xff]  ;;  %v6270_v44 = vcombine.low %v303_v33, %v307_v34  ;;  %v287_v49 = vld [vmem:[#allocation2 + $0x308] sm:$0xff] }
  0xdc   :  { %v6413_v2 = vcombine.high %v446_v60, %v450_v56  ;;  %v566_v3 = vld [vmem:[#allocation2 + $0xbc0] sm:$0xff]  ;;  %v6412_v8 = vcombine.low %v446_v60, %v450_v56  ;;  %v283_v60 = vld [vmem:[#allocation2 + $0x2e8] sm:$0xff] }
  0xdd   :  { %2716 = vmatpush1.bf16.msra.mxu0 %v6444_v39  ;;  %2798 = vmatpush1.bf16.msra.mxu1 %v6206_v40  ;;  %v570_v4 = vld [vmem:[#allocation2 + $0xbe0] sm:$0xff]  ;;  %v6271_v40 = vcombine.high %v303_v33, %v307_v34 }
  0xde   :  { %2717 = vmatprep.subr.bf16.mxu0 %v6437_v41  ;;  %2799 = vmatprep.subr.bf16.mxu1 %v6199_v46  ;;  %v6533_v10 = vcombine.high %v566_v3, %v570_v4  ;;  %v558_v11 = vld [vmem:[#allocation2 + $0xb80] sm:$0xff]  ;;  %v6532_v17 = vcombine.low %v566_v3, %v570_v4  ;;  %v295_v41 = vld [vmem:[#allocation2 + $0x348] sm:$0xff] }
  0xdf   :  { %v562_v13 = vld [vmem:[#allocation2 + $0xba0] sm:$0xff]  ;;  %v6263_v48 = vcombine.high %v295_v41, %v299_v42  ;;  %v275_v3 = vld [vmem:[#allocation2 + $0x2a8] sm:$0xff] }
  0xe0   :  { %v6525_v19 = vcombine.high %v558_v11, %v562_v13  ;;  %v550_v20 = vld [vmem:[#allocation2 + $0xb40] sm:$0xff]  ;;  %v6524_v27 = vcombine.low %v558_v11, %v562_v13  ;;  %v267_v11 = vld [vmem:[#allocation2 + $0x268] sm:$0xff] }
  0xe1   :  { %2718 = vmatpush1.bf16.msra.mxu0 %v6436_v47  ;;  %2800 = vmatpush1.bf16.msra.mxu1 %v6198_v50  ;;  %v554_v21 = vld [vmem:[#allocation2 + $0xb60] sm:$0xff]  ;;  %v291_v50 = vld [vmem:[#allocation2 + $0x328] sm:$0xff] }
  0xe2   :  { %2719 = vmatprep.subr.bf16.mxu0 %v6429_v51  ;;  %2801 = vmatprep.subr.bf16.mxu1 %v6191_v52  ;;  %v6517_v29 = vcombine.high %v550_v20, %v554_v21  ;;  %v542_v30 = vld [vmem:[#allocation2 + $0xb00] sm:$0xff]  ;;  %v6516_v35 = vcombine.low %v550_v20, %v554_v21  ;;  %v6262_v52 = vcombine.low %v295_v41, %v299_v42  ;;  %v255_v20 = vld [vmem:[#allocation2 + $0x208] sm:$0xff] }
  0xe3   :  { %v546_v31 = vld [vmem:[#allocation2 + $0xb20] sm:$0xff]  ;;  %v259_v21 = vld [vmem:[#allocation2 + $0x228] sm:$0xff] }
  0xe4   :  { %v6509_v37 = vcombine.high %v542_v30, %v546_v31  ;;  %v534_v38 = vld [vmem:[#allocation2 + $0xac0] sm:$0xff]  ;;  %v6508_v43 = vcombine.low %v542_v30, %v546_v31  ;;  %v503_v30 = vld [vmem:[#allocation2 + $0x9c8] sm:$0xff]  ;;  %v6222_v33 = vcombine.low %v255_v20, %v259_v21 }
  0xe5   :  { %2720 = vmatpush1.bf16.msra.mxu0 %v6428_v55  ;;  %2802 = vmatpush1.bf16.msra.mxu1 %v6190_v57  ;;  %v538_v39 = vld [vmem:[#allocation2 + $0xae0] sm:$0xff]  ;;  %v6255_v57 = vcombine.high %v287_v49, %v291_v50  ;;  %v507_v31 = vld [vmem:[#allocation2 + $0x9e8] sm:$0xff] }
  0xe6   :  { %2721 = vmatprep.subr.bf16.mxu0 %v6421_v58  ;;  %2803 = vmatprep.subr.bf16.mxu1 %v6183_v61  ;;  %v6501_v45 = vcombine.high %v534_v38, %v538_v39  ;;  %v526_v46 = vld [vmem:[#allocation2 + $0xa80] sm:$0xff]  ;;  %v6500_v51 = vcombine.low %v534_v38, %v538_v39  ;;  %v279_v58 = vld [vmem:[#allocation2 + $0x2c8] sm:$0xff]  ;;  %v6254_v61 = vcombine.low %v287_v49, %v291_v50 }
  0xe7   :  { %v530_v47 = vld [vmem:[#allocation2 + $0xaa0] sm:$0xff]  ;;  %v495_v38 = vld [vmem:[#allocation2 + $0x988] sm:$0xff]  ;;  %v6470_v41 = vcombine.low %v503_v30, %v507_v31 }
  0xe8   :  { %v6493_v53 = vcombine.high %v526_v46, %v530_v47  ;;  %v518_v54 = vld [vmem:[#allocation2 + $0xa40] sm:$0xff]  ;;  %v6492_v56 = vcombine.low %v526_v46, %v530_v47  ;;  %v499_v39 = vld [vmem:[#allocation2 + $0x9a8] sm:$0xff] }
  0xe9   :  { %2722 = vmatpush1.bf16.msra.mxu0 %v6420_v0  ;;  %2804 = vmatpush1.bf16.msra.mxu1 %v6182_v1  ;;  %v522_v55 = vld [vmem:[#allocation2 + $0xa60] sm:$0xff]  ;;  %v6247_v1 = vcombine.high %v279_v58, %v283_v60  ;;  %v491_v46 = vld [vmem:[#allocation2 + $0x968] sm:$0xff] }
  0xea   :  { %2723 = vmatprep.subr.bf16.mxu0 %v6413_v2  ;;  %2805 = vmatprep.subr.bf16.mxu1 %v6175_v5  ;;  %v6485_v62 = vcombine.high %v518_v54, %v522_v55  ;;  %v510_v63 = vld [vmem:[#allocation2 + $0xa00] sm:$0xff]  ;;  %v271_v2 = vld [vmem:[#allocation2 + $0x288] sm:$0xff]  ;;  %v6484_v4 = vcombine.low %v518_v54, %v522_v55  ;;  %v6246_v5 = vcombine.low %v279_v58, %v283_v60 }
  0xeb   :  { %v514_v0 = vld [vmem:[#allocation2 + $0xa20] sm:$0xff]  ;;  %v335_v50 = vld [vmem:[#allocation2 + $0x488] sm:$0xff] }
  0xec   :  { %v6477_v6 = vcombine.high %v510_v63, %v514_v0  ;;  %v6476_v13 = vcombine.low %v510_v63, %v514_v0  ;;  %v483_v54 = vld [vmem:[#allocation2 + $0x928] sm:$0xff] }
  0xed   :  { %2724 = vmatpush1.bf16.msra.mxu0 %v6412_v8  ;;  %2806 = vmatpush1.bf16.msra.mxu1 %v6174_v9  ;;  %v379_v8 = vld [vmem:[#allocation2 + $0x5e8] sm:$0xff]  ;;  %v6239_v9 = vcombine.high %v271_v2, %v275_v3 }
  0xee   :  { %2725 = vmatprep.subr.bf16.mxu0 %v6533_v10  ;;  %2807 = vmatprep.subr.bf16.mxu1 %v6167_v14  ;;  %v263_v10 = vld [vmem:[#allocation2 + $0x248] sm:$0xff]  ;;  %v6238_v14 = vcombine.low %v271_v2, %v275_v3  ;;  %v6343_v16 = vcombine.high %v375_v7, %v379_v8 }
  0xef   :  { %v6230_v24 = vcombine.low %v263_v10, %v267_v11  ;;  %v331_v58 = vld [vmem:[#allocation2 + $0x468] sm:$0xff] }
  0xf0   :  { %v467_v2 = vld [vmem:[#allocation2 + $0x8a8] sm:$0xff] }
  0xf1   :  { %2726 = vmatpush2.bf16.msra.mxu0 %v6532_v17  ;;  %2808 = vmatpush1.bf16.msra.mxu1 %v6166_v18  ;;  %v367_v17 = vld [vmem:[#allocation2 + $0x588] sm:$0xff] }
  0xf2   :  { %2727 = vmatprep.subr.bf16.mxu0 %v6525_v19  ;;  %2809 = vmatprep.subr.bf16.mxu1 %v6159_v23  ;;  %v371_v18 = vld [vmem:[#allocation2 + $0x5a8] sm:$0xff]  ;;  %v6231_v19 = vcombine.high %v263_v10, %v267_v11  ;;  %v6342_v23 = vcombine.low %v375_v7, %v379_v8 }
  0xf3   :  { %v6335_v25 = vcombine.high %v367_v17, %v371_v18  ;;  %v319_v3 = vld [vmem:[#allocation2 + $0x408] sm:$0xff] }
  0xf4   :  { %v439_v7 = vld [vmem:[#allocation2 + $0x7c8] sm:$0xff] }
  0xf5   :  { %2728 = vmatpush2.bf16.msra.mxu0 %v6524_v27  ;;  %2810 = vmatpush1.bf16.msra.mxu1 %v6158_v28  ;;  %v359_v27 = vld [vmem:[#allocation2 + $0x548] sm:$0xff] }
  0xf6   :  { %2729 = vmatprep.subr.bf16.mxu0 %v6517_v29  ;;  %2811 = vmatprep.subr.bf16.mxu1 %v6279_v32  ;;  %v363_v28 = vld [vmem:[#allocation2 + $0x568] sm:$0xff]  ;;  %v6223_v29 = vcombine.high %v255_v20, %v259_v21  ;;  %v6334_v32 = vcombine.low %v367_v17, %v371_v18 }
  0xf7   :  { %v6327_v34 = vcombine.high %v359_v27, %v363_v28  ;;  %v443_v8 = vld [vmem:[#allocation2 + $0x7e8] sm:$0xff] }
  0xf8   :  { %v455_v11 = vld [vmem:[#allocation2 + $0x848] sm:$0xff]  ;;  %v6407_v18 = vcombine.high %v439_v7, %v443_v8 }
  0xf9   :  { %2730 = vmatpush2.bf16.msra.mxu0 %v6516_v35  ;;  %2812 = vmatpush2.bf16.msra.mxu1 %v6278_v36  ;;  %v351_v35 = vld [vmem:[#allocation2 + $0x508] sm:$0xff] }
  0xfa   :  { %2731 = vmatprep.subr.bf16.mxu0 %v6509_v37  ;;  %2813 = vmatprep.subr.bf16.mxu1 %v6271_v40  ;;  %v355_v36 = vld [vmem:[#allocation2 + $0x528] sm:$0xff]  ;;  %v6471_v37 = vcombine.high %v503_v30, %v507_v31  ;;  %v6326_v40 = vcombine.low %v359_v27, %v363_v28 }
  0xfb   :  { %v6319_v42 = vcombine.high %v351_v35, %v355_v36  ;;  %v6318_v47 = vcombine.low %v351_v35, %v355_v36  ;;  %v451_v20 = vld [vmem:[#allocation2 + $0x828] sm:$0xff] }
  0xfc   :  { %v431_v21 = vld [vmem:[#allocation2 + $0x788] sm:$0xff] }
  0xfd   :  { %2732 = vmatpush2.bf16.msra.mxu0 %v6508_v43  ;;  %2814 = vmatpush2.bf16.msra.mxu1 %v6270_v44  ;;  %v343_v43 = vld [vmem:[#allocation2 + $0x4c8] sm:$0xff] }
  0xfe   :  { %2733 = vmatprep.subr.bf16.mxu0 %v6501_v45  ;;  %2815 = vmatprep.subr.bf16.mxu1 %v6263_v48  ;;  %v347_v44 = vld [vmem:[#allocation2 + $0x4e8] sm:$0xff]  ;;  %v6462_v48 = vcombine.low %v495_v38, %v499_v39 }
  0xff   :  { %v487_v45 = vld [vmem:[#allocation2 + $0x948] sm:$0xff]  ;;  %v6311_v49 = vcombine.high %v343_v43, %v347_v44  ;;  %v6310_v55 = vcombine.low %v343_v43, %v347_v44 }
 0x100   :  { %v571_v30 = vld [vmem:[#allocation2 + $0xbe8] sm:$0xff] }
 0x101   :  { %2734 = vmatpush2.bf16.msra.mxu0 %v6500_v51  ;;  %2816 = vmatpush2.bf16.msra.mxu1 %v6262_v52  ;;  %v339_v51 = vld [vmem:[#allocation2 + $0x4a8] sm:$0xff]  ;;  %v6455_v52 = vcombine.high %v487_v45, %v491_v46 }
 0x102   :  { %2735 = vmatprep.subr.bf16.mxu0 %v6493_v53  ;;  %2817 = vmatprep.subr.bf16.mxu1 %v6255_v57  ;;  %v479_v53 = vld [vmem:[#allocation2 + $0x908] sm:$0xff]  ;;  %v6303_v60 = vcombine.high %v335_v50, %v339_v51  ;;  %v6302_v63 = vcombine.low %v335_v50, %v339_v51 }
 0x103   :  { %v327_v57 = vld [vmem:[#allocation2 + $0x448] sm:$0xff]  ;;  %v6446_v0 = vcombine.low %v479_v53, %v483_v54 }
 0x104   :  { %v423_v31 = vld [vmem:[#allocation2 + $0x748] sm:$0xff] }
 0x105   :  { %2736 = vmatpush2.bf16.msra.mxu0 %v6492_v56  ;;  %2818 = vmatpush2.bf16.msra.mxu1 %v6254_v61  ;;  %v6447_v56 = vcombine.high %v479_v53, %v483_v54  ;;  %v471_v61 = vld [vmem:[#allocation2 + $0x8c8] sm:$0xff] }
 0x106   :  { %2737 = vmatprep.subr.bf16.mxu0 %v6485_v62  ;;  %2819 = vmatprep.subr.bf16.mxu1 %v6247_v1  ;;  %v475_v62 = vld [vmem:[#allocation2 + $0x8e8] sm:$0xff] }
 0x107   :  { %v463_v1 = vld [vmem:[#allocation2 + $0x888] sm:$0xff] }
 0x108   :  { %v6430_v17 = vcombine.low %v463_v1, %v467_v2  ;;  %v547_v53 = vld [vmem:[#allocation2 + $0xb28] sm:$0xff] }
 0x109   :  { %2738 = vmatpush2.bf16.msra.mxu0 %v6484_v4  ;;  %2820 = vmatpush2.bf16.msra.mxu1 %v6246_v5  ;;  %v323_v4 = vld [vmem:[#allocation2 + $0x428] sm:$0xff]  ;;  %v6439_v5 = vcombine.high %v471_v61, %v475_v62 }
 0x10a   :  { %2739 = vmatprep.subr.bf16.mxu0 %v6477_v6  ;;  %2821 = vmatprep.subr.bf16.mxu1 %v6239_v9  ;;  %v6294_v6 = vcombine.low %v327_v57, %v331_v58  ;;  %v6438_v9 = vcombine.low %v471_v61, %v475_v62  ;;  %v6287_v10 = vcombine.high %v319_v3, %v323_v4  ;;  %v399_v54 = vld [vmem:[#allocation2 + $0x688] sm:$0xff] }
 0x10b   :  { %v539_v61 = vld [vmem:[#allocation2 + $0xae8] sm:$0xff] }
 0x10c   :  { %v391_v62 = vld [vmem:[#allocation2 + $0x648] sm:$0xff] }
 0x10d   :  { %2740 = vmatpush2.bf16.msra.mxu0 %v6476_v13  ;;  %2822 = vmatpush2.bf16.msra.mxu1 %v6238_v14  ;;  %v459_v13 = vld [vmem:[#allocation2 + $0x868] sm:$0xff]  ;;  %v6431_v14 = vcombine.high %v463_v1, %v467_v2 }
 0x10e   :  { %2838 = vmatprep.subr.bf16.mxu0 %v6343_v16  ;;  %2823 = vmatprep.subr.bf16.mxu1 %v6231_v19  ;;  %v6286_v16 = vcombine.low %v319_v3, %v323_v4  ;;  %v447_v19 = vld [vmem:[#allocation2 + $0x808] sm:$0xff]  ;;  %v6422_v27 = vcombine.low %v455_v11, %v459_v13 }
 0x10f   :  { %v6414_v35 = vcombine.low %v447_v19, %v451_v20  ;;  %v527_v3 = vld [vmem:[#allocation2 + $0xa88] sm:$0xff] }
 0x110   :  { %2742 = vmatmul.mubr.bf16.vlgmr.msra.gmra.mxu0 %v7929_v15  ;;  %v531_v4 = vld [vmem:[#allocation2 + $0xaa8] sm:$0xff] }
 0x111   :  { %2839 = vmatpush1.bf16.msra.mxu0 %v6342_v23  ;;  %2870 = vmatprep.mubr.bf16.mxu0 %v7901_v59  ;;  %v6463_v59 = vcombine.high %v495_v38, %v499_v39  ;;  %v435_v23 = vld [vmem:[#allocation2 + $0x7a8] sm:$0xff] }
 0x112   :  { %2824 = vmatpush2.bf16.msra.mxu1 %v6230_v24  ;;  %2840 = vmatprep.subr.bf16.mxu0 %v6335_v25  ;;  %v6423_v24 = vcombine.high %v455_v11, %v459_v13  ;;  %v6406_v25 = vcombine.low %v439_v7, %v443_v8  ;;  %v6399_v28 = vcombine.high %v431_v21, %v435_v23  ;;  %v563_v38 = vld [vmem:[#allocation2 + $0xba8] sm:$0xff] }
 0x113   :  { %2825 = vmatprep.subr.bf16.mxu1 %v6223_v29  ;;  %v567_v29 = vld [vmem:[#allocation2 + $0xbc8] sm:$0xff] }
 0x114   :  { %v415_v39 = vld [vmem:[#allocation2 + $0x708] sm:$0xff]  ;;  %v6534_v43 = vcombine.low %v567_v29, %v571_v30 }
 0x115   :  { %2841 = vmatpush1.bf16.msra.mxu0 %v6334_v32  ;;  %v427_v32 = vld [vmem:[#allocation2 + $0x768] sm:$0xff] }
 0x116   :  { %2826 = vmatpush2.bf16.msra.mxu1 %v6222_v33  ;;  %2842 = vmatprep.subr.bf16.mxu0 %v6327_v34  ;;  %v6415_v33 = vcombine.high %v447_v19, %v451_v20  ;;  %v6398_v34 = vcombine.low %v431_v21, %v435_v23  ;;  %v6391_v36 = vcombine.high %v423_v31, %v427_v32  ;;  %v519_v11 = vld [vmem:[#allocation2 + $0xa48] sm:$0xff] }
 0x117   :  { %2881 = vmatprep.subr.bf16.mxu1 %v6471_v37  ;;  %v559_v37 = vld [vmem:[#allocation2 + $0xb88] sm:$0xff]  ;;  %v6494_v19 = vcombine.low %v527_v3, %v531_v4 }
 0x118   :  { %v6526_v50 = vcombine.low %v559_v37, %v563_v38  ;;  %v523_v13 = vld [vmem:[#allocation2 + $0xa68] sm:$0xff] }
 0x119   :  { %2828 = vmatmul.mubr.bf16.vlgmr.msra.gmra.mxu1 %v7908_v12  ;;  %2843 = vmatpush1.bf16.msra.mxu0 %v6326_v40  ;;  %v6454_v12 = vcombine.low %v487_v45, %v491_v46  ;;  %v419_v40 = vld [vmem:[#allocation2 + $0x728] sm:$0xff] }
 0x11a   :  { %2882 = vmatpush1.bf16.msra.mxu1 %v6470_v41  ;;  %2844 = vmatprep.subr.bf16.mxu0 %v6319_v42  ;;  %v6535_v41 = vcombine.high %v567_v29, %v571_v30  ;;  %v6390_v42 = vcombine.low %v423_v31, %v427_v32  ;;  %v6383_v44 = vcombine.high %v415_v39, %v419_v40  ;;  %v555_v45 = vld [vmem:[#allocation2 + $0xb68] sm:$0xff]  ;;  %v232_v29 = vld [vmem:[#allocation2 + $0x150] sm:$0xff] }
 0x11b   :  { %2883 = vmatprep.subr.bf16.mxu1 %v6463_v59  ;;  %2913 = vmatprep.mubr.bf16.mxu1 %v7917_v22  ;;  %v6295_v22 = vcombine.high %v327_v57, %v331_v58  ;;  %v551_v59 = vld [vmem:[#allocation2 + $0xb48] sm:$0xff]  ;;  %v236_v30 = vld [vmem:[#allocation2 + $0x170] sm:$0xff]  ;;  %v6486_v31 = vcombine.low %v519_v11, %v523_v13 }
 0x11c   :  { %v407_v46 = vld [vmem:[#allocation2 + $0x6c8] sm:$0xff]  ;;  %v6519_v57 = vcombine.high %v551_v59, %v555_v45 }
 0x11d   :  { %2845 = vmatpush1.bf16.msra.mxu0 %v6318_v47  ;;  %v411_v47 = vld [vmem:[#allocation2 + $0x6e8] sm:$0xff] }
 0x11e   :  { %2884 = vmatpush1.bf16.msra.mxu1 %v6462_v48  ;;  %2846 = vmatprep.subr.bf16.mxu0 %v6311_v49  ;;  %v6527_v48 = vcombine.high %v559_v37, %v563_v38  ;;  %v6382_v49 = vcombine.low %v415_v39, %v419_v40  ;;  %v6375_v51 = vcombine.high %v407_v46, %v411_v47  ;;  %v511_v21 = vld [vmem:[#allocation2 + $0xa08] sm:$0xff]  ;;  %v224_v38 = vld [vmem:[#allocation2 + $0x110] sm:$0xff]  ;;  %v7944_v40 = vld [vmem:[%s8146_s0 + $0x4] ss:$28 sps:$4 sm:$0xff]  }
 0x11f   :  { %2885 = vmatprep.subr.bf16.mxu1 %v6455_v52  ;;  %v543_v52 = vld [vmem:[#allocation2 + $0xb08] sm:$0xff]  ;;  %v6374_v58 = vcombine.low %v407_v46, %v411_v47  ;;  %v228_v39 = vld [vmem:[#allocation2 + $0x130] sm:$0xff] }
 0x120   :  { %v6510_v1 = vcombine.low %v543_v52, %v547_v53  ;;  %v515_v23 = vld [vmem:[#allocation2 + $0xa28] sm:$0xff]  ;;  %v6193_v47 = vcombine.high %v224_v38, %v228_v39 }
 0x121   :  { %2847 = vmatpush1.bf16.msra.mxu0 %v6310_v55  ;;  %v403_v55 = vld [vmem:[#allocation2 + $0x6a8] sm:$0xff] }
 0x122   :  { %2886 = vmatpush1.bf16.msra.mxu1 %v6454_v12  ;;  %2848 = vmatprep.subr.bf16.mxu0 %v6303_v60  ;;  %v6518_v12 = vcombine.low %v551_v59, %v555_v45  ;;  %v6367_v60 = vcombine.high %v399_v54, %v403_v55  ;;  %v6200_v45 = vcombine.low %v232_v29, %v236_v30 }
 0x123   :  { %2887 = vmatprep.subr.bf16.mxu1 %v6447_v56  ;;  %v535_v56 = vld [vmem:[#allocation2 + $0xac8] sm:$0xff] }
 0x124   :  { %v6503_v7 = vcombine.high %v535_v56, %v539_v61 }
 0x125   :  { %2849 = vmatpush1.bf16.msra.mxu0 %v6302_v63  ;;  %v395_v63 = vld [vmem:[#allocation2 + $0x668] sm:$0xff] }
 0x126   :  { %2888 = vmatpush1.bf16.msra.mxu1 %v6446_v0  ;;  %2850 = vmatprep.subr.bf16.mxu0 %v6295_v22  ;;  %v6511_v0 = vcombine.high %v543_v52, %v547_v53  ;;  %v6366_v22 = vcombine.low %v399_v54, %v403_v55  ;;  %v6359_v2 = vcombine.high %v391_v62, %v395_v63  ;;  %v368_v53 = vld [vmem:[#allocation2 + $0x590] sm:$0xff] }
 0x127   :  { %2889 = vmatprep.subr.bf16.mxu1 %v6439_v5  ;;  %v383_v5 = vld [vmem:[#allocation2 + $0x608] sm:$0xff]  ;;  %v6358_v8 = vcombine.low %v391_v62, %v395_v63  ;;  %v372_v54 = vld [vmem:[#allocation2 + $0x5b0] sm:$0xff] }
 0x128   :  { %v208_v55 = vld [vmem:[#allocation2 + $0x90] sm:$0xff]  ;;  %v6337_v63 = vcombine.high %v368_v53, %v372_v54 }
 0x129   :  { %2851 = vmatpush1.bf16.msra.mxu0 %v6294_v6  ;;  %v387_v6 = vld [vmem:[#allocation2 + $0x628] sm:$0xff]  ;;  %v204_v62 = vld [vmem:[#allocation2 + $0x70] sm:$0xff] }
 0x12a   :  { %2890 = vmatpush1.bf16.msra.mxu1 %v6438_v9  ;;  %2852 = vmatprep.subr.bf16.mxu0 %v6287_v10  ;;  %v6502_v9 = vcombine.low %v535_v56, %v539_v61  ;;  %v6351_v10 = vcombine.high %v383_v5, %v387_v6  ;;  %v360_v56 = vld [vmem:[#allocation2 + $0x550] sm:$0xff] }
 0x12b   :  { %2891 = vmatprep.subr.bf16.mxu1 %v6431_v14  ;;  %v248_v14 = vld [vmem:[#allocation2 + $0x1d0] sm:$0xff] }
 0x12c   :  { %v364_v61 = vld [vmem:[#allocation2 + $0x570] sm:$0xff] }
 0x12d   :  { %2853 = vmatpush1.bf16.msra.mxu0 %v6286_v16  ;;  %v252_v16 = vld [vmem:[#allocation2 + $0x1f0] sm:$0xff] }
 0x12e   :  { %2892 = vmatpush1.bf16.msra.mxu1 %v6430_v17  ;;  %2854 = vmatprep.subr.bf16.mxu0 %v6407_v18  ;;  %v6495_v17 = vcombine.high %v527_v3, %v531_v4  ;;  %v6350_v18 = vcombine.low %v383_v5, %v387_v6  ;;  %v6217_v20 = vcombine.high %v248_v14, %v252_v16  ;;  %v352_v3 = vld [vmem:[#allocation2 + $0x510] sm:$0xff] }
 0x12f   :  { %2893 = vmatprep.subr.bf16.mxu1 %v6423_v24  ;;  %v240_v24 = vld [vmem:[#allocation2 + $0x190] sm:$0xff] }
 0x130   :  { %v356_v4 = vld [vmem:[#allocation2 + $0x530] sm:$0xff] }
 0x131   :  { %2855 = vmatpush2.bf16.msra.mxu0 %v6406_v25  ;;  %v244_v25 = vld [vmem:[#allocation2 + $0x1b0] sm:$0xff] }
 0x132   :  { %2894 = vmatpush1.bf16.msra.mxu1 %v6422_v27  ;;  %2856 = vmatprep.subr.bf16.mxu0 %v6399_v28  ;;  %v6487_v27 = vcombine.high %v519_v11, %v523_v13  ;;  %v6216_v28 = vcombine.low %v248_v14, %v252_v16  ;;  %v6209_v32 = vcombine.high %v240_v24, %v244_v25  ;;  %v192_v5 = vld [vmem:[#allocation2 + $0x10] sm:$0xff] }
 0x133   :  { %2895 = vmatprep.subr.bf16.mxu1 %v6415_v33  ;;  %v575_v33 = vld [vmem:[#allocation2 + $0xc08] sm:$0xff]  ;;  %v6208_v37 = vcombine.low %v240_v24, %v244_v25  ;;  %v196_v6 = vld [vmem:[#allocation2 + $0x30] sm:$0xff] }
 0x134   :  { %v6161_v11 = vcombine.high %v192_v5, %v196_v6  ;;  %v344_v13 = vld [vmem:[#allocation2 + $0x4d0] sm:$0xff] }
 0x135   :  { %2857 = vmatpush2.bf16.msra.mxu0 %v6398_v34  ;;  %v579_v34 = vld [vmem:[#allocation2 + $0xc28] sm:$0xff]  ;;  %v348_v14 = vld [vmem:[#allocation2 + $0x4f0] sm:$0xff] }
 0x136   :  { %2896 = vmatpush1.bf16.msra.mxu1 %v6414_v35  ;;  %2858 = vmatprep.subr.bf16.mxu0 %v6391_v36  ;;  %v6479_v35 = vcombine.high %v511_v21, %v515_v23  ;;  %v7938_v36 = vld [vmem:[%s8146_s0 + $0x8] ss:$28 sps:$4 sm:$0xff]   ;;  %v6543_v59 = vcombine.high %v575_v33, %v579_v34  ;;  %v6542_v46 = vcombine.low %v575_v33, %v579_v34  ;;  %v312_v16 = vld [vmem:[#allocation2 + $0x3d0] sm:$0xff] }
 0x137   :  { %2897 = vmatprep.subr.bf16.mxu1 %v6535_v41  ;;  %v6478_v41 = vcombine.low %v511_v21, %v515_v23  ;;  %v336_v23 = vld [vmem:[#allocation2 + $0x490] sm:$0xff] }
 0x138   :  { %v340_v24 = vld [vmem:[#allocation2 + $0x4b0] sm:$0xff] }
 0x139   :  { %2859 = vmatpush2.bf16.msra.mxu0 %v6390_v42  ;;  %v6201_v42 = vcombine.high %v232_v29, %v236_v30  ;;  %v304_v25 = vld [vmem:[#allocation2 + $0x390] sm:$0xff]  ;;  %v6312_v30 = vcombine.low %v344_v13, %v348_v14 }
 0x13a   :  { %2898 = vmatpush2.bf16.msra.mxu1 %v6534_v43  ;;  %2860 = vmatprep.subr.bf16.mxu0 %v6383_v44  ;;  %v376_v43 = vld [vmem:[#allocation2 + $0x5d0] sm:$0xff] }
 0x13b   :  { %2899 = vmatprep.subr.bf16.mxu1 %v6527_v48  ;;  %v380_v44 = vld [vmem:[#allocation2 + $0x5f0] sm:$0xff] }
 0x13c   :  { %v216_v48 = vld [vmem:[#allocation2 + $0xd0] sm:$0xff] }
 0x13d   :  { %2861 = vmatpush2.bf16.msra.mxu0 %v6382_v49  ;;  %v220_v49 = vld [vmem:[#allocation2 + $0xf0] sm:$0xff] }
 0x13e   :  { %2900 = vmatpush2.bf16.msra.mxu1 %v6526_v50  ;;  %2862 = vmatprep.subr.bf16.mxu0 %v6375_v51  ;;  %v6345_v50 = vcombine.high %v376_v43, %v380_v44  ;;  %v6192_v51 = vcombine.low %v224_v38, %v228_v39  ;;  %v6185_v52 = vcombine.high %v216_v48, %v220_v49  ;;  %v332_v33 = vld [vmem:[#allocation2 + $0x470] sm:$0xff] }
 0x13f   :  { %2901 = vmatprep.subr.bf16.mxu1 %v6519_v57  ;;  %v212_v57 = vld [vmem:[#allocation2 + $0xb0] sm:$0xff]  ;;  %v6304_v39 = vcombine.low %v336_v23, %v340_v24 }
 0x140   :  { %v296_v34 = vld [vmem:[#allocation2 + $0x350] sm:$0xff] }
 0x141   :  { %2863 = vmatpush2.bf16.msra.mxu0 %v6374_v58  ;;  %v6184_v58 = vcombine.low %v216_v48, %v220_v49  ;;  %v440_v49 = vld [vmem:[#allocation2 + $0x7d0] sm:$0xff] }
 0x142   :  { %2902 = vmatpush2.bf16.msra.mxu1 %v6518_v12  ;;  %2864 = vmatprep.subr.bf16.mxu0 %v6367_v60  ;;  %v6344_v12 = vcombine.low %v376_v43, %v380_v44  ;;  %v6177_v60 = vcombine.high %v208_v55, %v212_v57  ;;  %v324_v43 = vld [vmem:[#allocation2 + $0x430] sm:$0xff] }
 0x143   :  { %2903 = vmatprep.subr.bf16.mxu1 %v6511_v0  ;;  %v7952_v0 = vld [vmem:[%s8146_s0 + $0x18] ss:$28 sps:$4 sm:$0xff]  }
 0x144   :  { %v288_v44 = vld [vmem:[#allocation2 + $0x310] sm:$0xff] }
 0x145   :  { %2865 = vmatpush2.bf16.msra.mxu0 %v6366_v22  ;;  %v6176_v22 = vcombine.low %v208_v55, %v212_v57 }
 0x146   :  { %2904 = vmatpush2.bf16.msra.mxu1 %v6510_v1  ;;  %2866 = vmatprep.subr.bf16.mxu0 %v6359_v2  ;;  %v6336_v1 = vcombine.low %v368_v53, %v372_v54 }
 0x147   :  { %2905 = vmatprep.subr.bf16.mxu1 %v6503_v7  ;;  %v6329_v7 = vcombine.high %v360_v56, %v364_v61 }
 0x149   :  { %2867 = vmatpush2.bf16.msra.mxu0 %v6358_v8  ;;  %v7959_v8 = vld [vmem:[%s8146_s0 + $0xc] ss:$28 sps:$4 sm:$0xff]  }
 0x14a   :  { %2906 = vmatpush2.bf16.msra.mxu1 %v6502_v9  ;;  %2868 = vmatprep.subr.bf16.mxu0 %v6351_v10  ;;  %v6328_v10 = vcombine.low %v360_v56, %v364_v61  ;;  %v276_v56 = vld [vmem:[#allocation2 + $0x2b0] sm:$0xff] }
 0x14b   :  { %2907 = vmatprep.subr.bf16.mxu1 %v6495_v17  ;;  %v316_v17 = vld [vmem:[#allocation2 + $0x3f0] sm:$0xff] }
 0x14c   :  { %v6281_v21 = vcombine.high %v312_v16, %v316_v17  ;;  %v6280_v29 = vcombine.low %v312_v16, %v316_v17 }
 0x14d   :  { %2869 = vmatpush2.bf16.msra.mxu0 %v6350_v18  ;;  %v6321_v18 = vcombine.high %v352_v3, %v356_v4 }
 0x14e   :  { %2908 = vmatpush2.bf16.msra.mxu1 %v6494_v19  ;;  %2967 = vmatprep.subr.bf16.mxu0 %v6217_v20  ;;  %v6160_v19 = vcombine.low %v192_v5, %v196_v6  ;;  %v6320_v20 = vcombine.low %v352_v3, %v356_v4  ;;  %v268_v3 = vld [vmem:[#allocation2 + $0x270] sm:$0xff]  ;;  %v584_v6 = vlaneseq }
 0x14f   :  { %2909 = vmatprep.subr.bf16.mxu1 %v6487_v27  ;;  %v308_v27 = vld [vmem:[#allocation2 + $0x3b0] sm:$0xff] }
 0x150   :  { %2871 = vmatmul.mubr.bf16.vlgmr.msra.gmra.mxu0 %v7938_v36  ;;  %v6272_v38 = vcombine.low %v304_v25, %v308_v27 }
 0x151   :  { %2968 = vmatpush1.bf16.msra.mxu0 %v6216_v28  ;;  %2999 = vmatprep.mubr.bf16.mxu0 %v7944_v40  ;;  %v6313_v28 = vcombine.high %v344_v13, %v348_v14  ;;  %v256_v13 = vld [vmem:[#allocation2 + $0x210] sm:$0xff] }
 0x152   :  { %2910 = vmatpush2.bf16.msra.mxu1 %v6486_v31  ;;  %2969 = vmatprep.subr.bf16.mxu0 %v6209_v32  ;;  %v6273_v31 = vcombine.high %v304_v25, %v308_v27  ;;  %v328_v32 = vld [vmem:[#allocation2 + $0x450] sm:$0xff] }
 0x153   :  { %2911 = vmatprep.subr.bf16.mxu1 %v6479_v35  ;;  %v300_v35 = vld [vmem:[#allocation2 + $0x370] sm:$0xff] }
 0x154   :  { %v260_v14 = vld [vmem:[#allocation2 + $0x230] sm:$0xff] }
 0x155   :  { %2970 = vmatpush1.bf16.msra.mxu0 %v6208_v37  ;;  %v6305_v37 = vcombine.high %v336_v23, %v340_v24  ;;  %v412_v23 = vld [vmem:[#allocation2 + $0x6f0] sm:$0xff] }
 0x156   :  { %2912 = vmatpush2.bf16.msra.mxu1 %v6478_v41  ;;  %2971 = vmatprep.subr.bf16.mxu0 %v6201_v42  ;;  %v6265_v41 = vcombine.high %v296_v34, %v300_v35  ;;  %v320_v42 = vld [vmem:[#allocation2 + $0x410] sm:$0xff] }
 0x157   :  { %2938 = vmatprep.subr.bf16.mxu1 %v6543_v59  ;;  %v292_v59 = vld [vmem:[#allocation2 + $0x330] sm:$0xff]  ;;  %v6289_v53 = vcombine.high %v320_v42, %v324_v43  ;;  %v6288_v55 = vcombine.low %v320_v42, %v324_v43 }
 0x158   :  { %v6257_v48 = vcombine.high %v288_v44, %v292_v59  ;;  %v6256_v54 = vcombine.low %v288_v44, %v292_v59  ;;  %v504_v24 = vld [vmem:[#allocation2 + $0x9d0] sm:$0xff] }
 0x159   :  { %2914 = vmatmul.mubr.bf16.vlgmr.msra.gmra.mxu1 %v7929_v15  ;;  %2972 = vmatpush1.bf16.msra.mxu0 %v6200_v45  ;;  %v200_v15 = vld [vmem:[#allocation2 + $0x50] sm:$0xff]  ;;  %v6297_v45 = vcombine.high %v328_v32, %v332_v33 }
 0x15a   :  { %2939 = vmatpush1.bf16.msra.mxu1 %v6542_v46  ;;  %2973 = vmatprep.subr.bf16.mxu0 %v6193_v47  ;;  %v6169_v2 = vcombine.high %v200_v15, %v204_v62  ;;  %v6168_v9 = vcombine.low %v200_v15, %v204_v62  ;;  %v6264_v46 = vcombine.low %v296_v34, %v300_v35  ;;  %v508_v25 = vld [vmem:[#allocation2 + $0x9f0] sm:$0xff] }
 0x15b   :  { %2956 = vmatprep.mubr.bf16.mxu1 %v7781_v26  ;;  %3010 = vmatprep.subr.bf16.mxu1 %v6345_v50  ;;  %v6296_v47 = vcombine.low %v328_v32, %v332_v33  ;;  %v444_v50 = vld [vmem:[#allocation2 + $0x7f0] sm:$0xff]  ;;  %v6473_v32 = vcombine.high %v504_v24, %v508_v25 }
 0x15c   :  { %v6409_v61 = vcombine.high %v440_v49, %v444_v50  ;;  %v6408_v62 = vcombine.low %v440_v49, %v444_v50  ;;  %v400_v33 = vld [vmem:[#allocation2 + $0x690] sm:$0xff] }
 0x15d   :  { %2974 = vmatpush1.bf16.msra.mxu0 %v6192_v51  ;;  %v280_v51 = vld [vmem:[#allocation2 + $0x2d0] sm:$0xff] }
 0x15e   :  { %2975 = vmatprep.subr.bf16.mxu0 %v6185_v52  ;;  %v284_v52 = vld [vmem:[#allocation2 + $0x2f0] sm:$0xff] }
 0x15f   :  { %v6249_v57 = vcombine.high %v280_v51, %v284_v52  ;;  %v6248_v15 = vcombine.low %v280_v51, %v284_v52  ;;  %v404_v34 = vld [vmem:[#allocation2 + $0x6b0] sm:$0xff] }
 0x160   :  { %v496_v35 = vld [vmem:[#allocation2 + $0x990] sm:$0xff]  ;;  %v6369_v44 = vcombine.high %v400_v33, %v404_v34 }
 0x161   :  { %6549 = vmatmul.mubr.msk.bf16.vlgmr.msra.gmra.mxu1 %vm2619_vm0, %v7952_v0  ;;  %2976 = vmatpush1.bf16.msra.mxu0 %v6184_v58  ;;  %v432_v58 = vld [vmem:[#allocation2 + $0x790] sm:$0xff] }
 0x162   :  { %3011 = vmatpush1.bf16.msra.mxu1 %v6344_v12  ;;  %2977 = vmatprep.subr.bf16.mxu0 %v6177_v60  ;;  %v436_v12 = vld [vmem:[#allocation2 + $0x7b0] sm:$0xff] }
 0x163   :  { %3012 = vmatprep.subr.bf16.mxu1 %v6337_v63  ;;  %3042 = vmatprep.mubr.bf16.mxu1 %v7959_v8  ;;  %v272_v60 = vld [vmem:[#allocation2 + $0x290] sm:$0xff]  ;;  %v6401_v4 = vcombine.high %v432_v58, %v436_v12 }
 0x164   :  { %v6241_v63 = vcombine.high %v272_v60, %v276_v56  ;;  %v6240_v5 = vcombine.low %v272_v60, %v276_v56  ;;  %v488_v59 = vld [vmem:[#allocation2 + $0x950] sm:$0xff] }
 0x165   :  { %2978 = vmatpush1.bf16.msra.mxu0 %v6176_v22  ;;  %v424_v22 = vld [vmem:[#allocation2 + $0x750] sm:$0xff] }
 0x166   :  { %3013 = vmatpush1.bf16.msra.mxu1 %v6336_v1  ;;  %2979 = vmatprep.subr.bf16.mxu0 %v6169_v2  ;;  %v428_v1 = vld [vmem:[#allocation2 + $0x770] sm:$0xff] }
 0x167   :  { %3014 = vmatprep.subr.bf16.mxu1 %v6329_v7  ;;  %v264_v2 = vld [vmem:[#allocation2 + $0x250] sm:$0xff]  ;;  %v6400_v7 = vcombine.low %v432_v58, %v436_v12  ;;  %v6393_v16 = vcombine.high %v424_v22, %v428_v1 }
 0x168   :  { %v6232_v17 = vcombine.low %v264_v2, %v268_v3  ;;  %v396_v49 = vld [vmem:[#allocation2 + $0x670] sm:$0xff] }
 0x169   :  { %2980 = vmatpush1.bf16.msra.mxu0 %v6168_v9  ;;  %v6233_v9 = vcombine.high %v264_v2, %v268_v3  ;;  %v480_v56 = vld [vmem:[#allocation2 + $0x910] sm:$0xff] }
 0x16a   :  { %3015 = vmatpush1.bf16.msra.mxu1 %v6328_v10  ;;  %2981 = vmatprep.subr.bf16.mxu0 %v6161_v11  ;;  %v416_v10 = vld [vmem:[#allocation2 + $0x710] sm:$0xff] }
 0x16b   :  { %3016 = vmatprep.subr.bf16.mxu1 %v6321_v18  ;;  %v420_v11 = vld [vmem:[#allocation2 + $0x730] sm:$0xff]  ;;  %v7962_v18 = vshrl.u32 %v584_v6, 7 }
 0x16c   :  { %v6385_v27 = vcombine.high %v416_v10, %v420_v11 }
 0x16d   :  { %2982 = vmatpush1.bf16.msra.mxu0 %v6160_v19  ;;  %v6392_v19 = vcombine.low %v424_v22, %v428_v1 }
 0x16e   :  { %3017 = vmatpush1.bf16.msra.mxu1 %v6320_v20  ;;  %2983 = vmatprep.subr.bf16.mxu0 %v6281_v21  ;;  %v6225_v20 = vcombine.high %v256_v13, %v260_v14  ;;  %v408_v21 = vld [vmem:[#allocation2 + $0x6d0] sm:$0xff] }
 0x16f   :  { %3018 = vmatprep.subr.bf16.mxu1 %v6313_v28  ;;  %v6224_v28 = vcombine.low %v256_v13, %v260_v14  ;;  %v6376_v42 = vcombine.low %v408_v21, %v412_v23 }
 0x171   :  { %2984 = vmatpush2.bf16.msra.mxu0 %v6280_v29  ;;  %v7964_v29 = vld [vmem:[#allocation4] sm:$0xff] }
 0x172   :  { %3019 = vmatpush1.bf16.msra.mxu1 %v6312_v30  ;;  %2985 = vmatprep.subr.bf16.mxu0 %v6273_v31  ;;  %v7967_v30 = vsub.s32 0, %v7962_v18  ;;  %v6384_v31 = vcombine.low %v416_v10, %v420_v11  ;;  %v576_v10 = vld [vmem:[#allocation2 + $0xc10] sm:$0xff] }
 0x173   :  { %3020 = vmatprep.subr.bf16.mxu1 %v6305_v37  ;;  %v500_v37 = vld [vmem:[#allocation2 + $0x9b0] sm:$0xff] }
 0x174   :  { %v6465_v43 = vcombine.high %v496_v35, %v500_v37  ;;  %v6464_v52 = vcombine.low %v496_v35, %v500_v37  ;;  %v580_v11 = vld [vmem:[#allocation2 + $0xc30] sm:$0xff] }
 0x175   :  { %2986 = vmatpush2.bf16.msra.mxu0 %v6272_v38  ;;  %v6377_v38 = vcombine.high %v408_v21, %v412_v23  ;;  %v249_v21 = vld [vmem:[#allocation2 + $0x1d8] sm:$0xff]  ;;  %v448_v35 = vld [vmem:[#allocation2 + $0x810] sm:$0xff] }
 0x176   :  { %3021 = vmatpush1.bf16.msra.mxu1 %v6304_v39  ;;  %2987 = vmatprep.subr.bf16.mxu0 %v6265_v41  ;;  %v587_v39 = vrot.slane %v7964_v29, %v7967_v30  ;;  %v6472_v41 = vcombine.low %v504_v24, %v508_v25  ;;  %v253_v23 = vld [vmem:[#allocation2 + $0x1f8] sm:$0xff]  ;;  %v6544_v25 = vcombine.low %v576_v10, %v580_v11  ;;  %v452_v37 = vld [vmem:[#allocation2 + $0x830] sm:$0xff] }
 0x177   :  { %3022 = vmatprep.subr.bf16.mxu1 %v6297_v45  ;;  %v492_v45 = vld [vmem:[#allocation2 + $0x970] sm:$0xff] }
 0x178   :  { %v6456_v1 = vcombine.low %v488_v59, %v492_v45 }
 0x179   :  { %2988 = vmatpush2.bf16.msra.mxu0 %v6264_v46 }
 0x17a   :  { %3023 = vmatpush1.bf16.msra.mxu1 %v6296_v47  ;;  %2989 = vmatprep.subr.bf16.mxu0 %v6257_v48  ;;  %v7974_v47 = vld [vmem:[%s8146_s0] ss:$28 sps:$4 sm:$0xff]   ;;  %v392_v48 = vld [vmem:[#allocation2 + $0x650] sm:$0xff] }
 0x17b   :  { %3024 = vmatprep.subr.bf16.mxu1 %v6289_v53  ;;  %v7980_v53 = vld [vmem:[%s8146_s0 + $0x14] ss:$28 sps:$4 sm:$0xff]   ;;  %v6361_v60 = vcombine.high %v392_v48, %v396_v49  ;;  %v6360_v3 = vcombine.low %v392_v48, %v396_v49  ;;  %v6416_v48 = vcombine.low %v448_v35, %v452_v37 }
 0x17d   :  { %2990 = vmatpush2.bf16.msra.mxu0 %v6256_v54 }
 0x17e   :  { %3025 = vmatpush1.bf16.msra.mxu1 %v6288_v55  ;;  %2991 = vmatprep.subr.bf16.mxu0 %v6249_v57  ;;  %v6368_v55 = vcombine.low %v400_v33, %v404_v34  ;;  %v6457_v57 = vcombine.high %v488_v59, %v492_v45  ;;  %v568_v59 = vld [vmem:[#allocation2 + $0xbd0] sm:$0xff]  ;;  %v233_v45 = vld [vmem:[#allocation2 + $0x158] sm:$0xff] }
 0x17f   :  { %3026 = vmatprep.subr.bf16.mxu1 %v6409_v61  ;;  %v484_v61 = vld [vmem:[#allocation2 + $0x930] sm:$0xff] }
 0x180   :  { %v6448_v13 = vcombine.low %v480_v56, %v484_v61 }
 0x181   :  { %2992 = vmatpush2.bf16.msra.mxu0 %v6248_v15 }
 0x182   :  { %3027 = vmatpush2.bf16.msra.mxu1 %v6408_v62  ;;  %2993 = vmatprep.subr.bf16.mxu0 %v6241_v63  ;;  %v384_v62 = vld [vmem:[#allocation2 + $0x610] sm:$0xff] }
 0x183   :  { %3028 = vmatprep.subr.bf16.mxu1 %v6401_v4  ;;  %v388_v63 = vld [vmem:[#allocation2 + $0x630] sm:$0xff]  ;;  %v6449_v4 = vcombine.high %v480_v56, %v484_v61 }
 0x184   :  { %v6353_v6 = vcombine.high %v384_v62, %v388_v63  ;;  %v6352_v14 = vcombine.low %v384_v62, %v388_v63  ;;  %v552_v62 = vld [vmem:[#allocation2 + $0xb50] sm:$0xff] }
 0x185   :  { %2994 = vmatpush2.bf16.msra.mxu0 %v6240_v5  ;;  %v556_v63 = vld [vmem:[#allocation2 + $0xb70] sm:$0xff] }
 0x186   :  { %3029 = vmatpush2.bf16.msra.mxu1 %v6400_v7  ;;  %2995 = vmatprep.subr.bf16.mxu0 %v6233_v9  ;;  %v472_v7 = vld [vmem:[#allocation2 + $0x8d0] sm:$0xff] }
 0x187   :  { %3030 = vmatprep.subr.bf16.mxu1 %v6393_v16  ;;  %v476_v9 = vld [vmem:[#allocation2 + $0x8f0] sm:$0xff] }
 0x188   :  { %v6441_v16 = vcombine.high %v472_v7, %v476_v9  ;;  %v6440_v24 = vcombine.low %v472_v7, %v476_v9  ;;  %v548_v7 = vld [vmem:[#allocation2 + $0xb30] sm:$0xff]  ;;  %v209_v9 = vld [vmem:[#allocation2 + $0x98] sm:$0xff] }
 0x189   :  { %2996 = vmatpush2.bf16.msra.mxu0 %v6232_v17  ;;  %v6545_v17 = vcombine.high %v576_v10, %v580_v11  ;;  %v213_v10 = vld [vmem:[#allocation2 + $0xb8] sm:$0xff]  ;;  %v6520_v11 = vcombine.low %v552_v62, %v556_v63 }
 0x18a   :  { %3031 = vmatpush2.bf16.msra.mxu1 %v6392_v19  ;;  %2997 = vmatprep.subr.bf16.mxu0 %v6225_v20  ;;  %v464_v19 = vld [vmem:[#allocation2 + $0x890] sm:$0xff] }
 0x18b   :  { %3032 = vmatprep.subr.bf16.mxu1 %v6385_v27  ;;  %v468_v20 = vld [vmem:[#allocation2 + $0x8b0] sm:$0xff] }
 0x18c   :  { %v6433_v27 = vcombine.high %v464_v19, %v468_v20  ;;  %v6432_v33 = vcombine.low %v464_v19, %v468_v20  ;;  %v540_v19 = vld [vmem:[#allocation2 + $0xaf0] sm:$0xff]  ;;  %v201_v20 = vld [vmem:[#allocation2 + $0x58] sm:$0xff] }
 0x18d   :  { %2998 = vmatpush2.bf16.msra.mxu0 %v6224_v28  ;;  %v6219_v28 = vcombine.high %v249_v21, %v253_v23 }
 0x18e   :  { %3033 = vmatpush2.bf16.msra.mxu1 %v6384_v31  ;;  %3053 = vmatprep.subr.bf16.mxu0 %v6473_v32  ;;  %v456_v31 = vld [vmem:[#allocation2 + $0x850] sm:$0xff] }
 0x18f   :  { %3034 = vmatprep.subr.bf16.mxu1 %v6377_v38  ;;  %v460_v32 = vld [vmem:[#allocation2 + $0x870] sm:$0xff]  ;;  %v241_v38 = vld [vmem:[#allocation2 + $0x198] sm:$0xff] }
 0x190   :  { %v2657_v46 = vpop.f32.mrf.mxu0  ;;  %3000 = vmatmul.mubr.bf16.vlgmr.msra.gmra.mxu0 %v7974_v47  ;;  %v2700_v51 = vpop.f32.mrf.mxu1  ;;  %v6425_v34 = vcombine.high %v456_v31, %v460_v32 }
 0x191   :  { %v2658_v50 = vadd.f32 %v2657_v46, %v587_v39  ;;  %3054 = vmatpush1.bf16.msra.mxu0 %v6472_v41  ;;  %3085 = vmatprep.mubr.bf16.mxu0 %v7980_v53  ;;  %v6424_v41 = vcombine.low %v456_v31, %v460_v32  ;;  %v237_v46 = vld [vmem:[#allocation2 + $0x178] sm:$0xff]  ;;  %v532_v31 = vld [vmem:[#allocation2 + $0xab0] sm:$0xff] }
 0x192   :  { %3035 = vmatpush2.bf16.msra.mxu1 %v6376_v42  ;;  %v7983_v54 = vpop.f32.mrf.mxu0  ;;  %3055 = vmatprep.subr.bf16.mxu0 %v6465_v43  ;;  %v7987_v12 = vpop.f32.mrf.mxu1  ;;  %v6218_v42 = vcombine.low %v249_v21, %v253_v23  ;;  %v6417_v43 = vcombine.high %v448_v35, %v452_v37  ;;  %v6202_v61 = vcombine.low %v233_v45, %v237_v46  ;;  %v205_v21 = vld [vmem:[#allocation2 + $0x78] sm:$0xff] }
 0x193   :  { %v7985_v58 = vadd.f32 %v2700_v51, %v2658_v50  ;;  %3036 = vmatprep.subr.bf16.mxu1 %v6369_v44  ;;  %v6203_v51 = vcombine.high %v233_v45, %v237_v46  ;;  %v193_v32 = vld [vmem:[#allocation2 + $0x18] sm:$0xff]  ;;  %v6170_v35 = vcombine.low %v201_v20, %v205_v21  ;;  %v512_v46 = vld [vmem:[#allocation2 + $0xa10] sm:$0xff] }
 0x194   :  { %v2661_v15 = vpop.f32.mrf.mxu0  ;;  %v2704_v2 = vpop.f32.mrf.mxu1 }
 0x195   :  { %v2662_v22 = vadd.f32 %v2661_v15, %v587_v39  ;;  %3056 = vmatpush1.bf16.msra.mxu0 %v6464_v52  ;;  %v245_v39 = vld [vmem:[#allocation2 + $0x1b8] sm:$0xff]  ;;  %v560_v52 = vld [vmem:[#allocation2 + $0xb90] sm:$0xff] }
 0x196   :  { %3037 = vmatpush2.bf16.msra.mxu1 %v6368_v55  ;;  %3057 = vmatprep.subr.bf16.mxu0 %v6457_v57  ;;  %v6211_v44 = vcombine.high %v241_v38, %v245_v39  ;;  %v6210_v49 = vcombine.low %v241_v38, %v245_v39  ;;  %v564_v55 = vld [vmem:[#allocation2 + $0xbb0] sm:$0xff]  ;;  %v225_v57 = vld [vmem:[#allocation2 + $0x118] sm:$0xff] }
 0x197   :  { %v7989_v5 = vadd.f32 %v2704_v2, %v2662_v22  ;;  %3038 = vmatprep.subr.bf16.mxu1 %v6361_v60  ;;  %v229_v60 = vld [vmem:[#allocation2 + $0x138] sm:$0xff]  ;;  %v6528_v2 = vcombine.low %v560_v52, %v564_v55  ;;  %v520_v39 = vld [vmem:[#allocation2 + $0xa50] sm:$0xff] }
 0x198   :  { %v6195_v15 = vcombine.high %v225_v57, %v229_v60  ;;  %v217_v22 = vld [vmem:[#allocation2 + $0xd8] sm:$0xff] }
 0x199   :  { %3058 = vmatpush1.bf16.msra.mxu0 %v6456_v1  ;;  %v221_v1 = vld [vmem:[#allocation2 + $0xf8] sm:$0xff] }
 0x19a   :  { %3039 = vmatpush2.bf16.msra.mxu1 %v6360_v3  ;;  %3059 = vmatprep.subr.bf16.mxu0 %v6449_v4  ;;  %v6194_v3 = vcombine.low %v225_v57, %v229_v60  ;;  %v6187_v4 = vcombine.high %v217_v22, %v221_v1  ;;  %v377_v60 = vld [vmem:[#allocation2 + $0x5d8] sm:$0xff] }
 0x19b   :  { %3040 = vmatprep.subr.bf16.mxu1 %v6353_v6  ;;  %v544_v6 = vld [vmem:[#allocation2 + $0xb10] sm:$0xff] }
 0x19c   :  { %v6512_v23 = vcombine.low %v544_v6, %v548_v7 }
 0x19d   :  { %3060 = vmatpush1.bf16.msra.mxu0 %v6448_v13  ;;  %v6186_v13 = vcombine.low %v217_v22, %v221_v1 }
 0x19e   :  { %3041 = vmatpush2.bf16.msra.mxu1 %v6352_v14  ;;  %3061 = vmatprep.subr.bf16.mxu0 %v6441_v16  ;;  %v6513_v14 = vcombine.high %v544_v6, %v548_v7  ;;  %v6179_v16 = vcombine.high %v209_v9, %v213_v10  ;;  %v7998_v7 = vpop.f32.mrf.mxu0 }
 0x19f   :  { %3110 = vmatprep.subr.bf16.mxu1 %v6545_v17  ;;  %v536_v17 = vld [vmem:[#allocation2 + $0xad0] sm:$0xff] }
 0x1a1   :  { %3043 = vmatmul.mubr.bf16.vlgmr.msra.gmra.mxu1 %v7938_v36  ;;  %3062 = vmatpush1.bf16.msra.mxu0 %v6440_v24  ;;  %v572_v36 = vld [vmem:[#allocation2 + $0xbf0] sm:$0xff]  ;;  %v6178_v24 = vcombine.low %v209_v9, %v213_v10 }
 0x1a2   :  { %3111 = vmatpush1.bf16.msra.mxu1 %v6544_v25  ;;  %3063 = vmatprep.subr.bf16.mxu0 %v6433_v27  ;;  %v6537_v50 = vcombine.high %v568_v59, %v572_v36  ;;  %v6536_v56 = vcombine.low %v568_v59, %v572_v36  ;;  %v6505_v25 = vcombine.high %v536_v17, %v540_v19 }
 0x1a3   :  { %3128 = vmatprep.mubr.bf16.mxu1 %v7781_v26  ;;  %3139 = vmatprep.subr.bf16.mxu1 %v6219_v28  ;;  %v6171_v27 = vcombine.high %v201_v20, %v205_v21  ;;  %v528_v28 = vld [vmem:[#allocation2 + $0xa90] sm:$0xff]  ;;  %v281_v20 = vld [vmem:[#allocation2 + $0x2d8] sm:$0xff] }
 0x1a4   :  { %v6497_v37 = vcombine.high %v528_v28, %v532_v31  ;;  %v285_v21 = vld [vmem:[#allocation2 + $0x2f8] sm:$0xff] }
 0x1a5   :  { %3064 = vmatpush1.bf16.msra.mxu0 %v6432_v33  ;;  %v197_v33 = vld [vmem:[#allocation2 + $0x38] sm:$0xff] }
 0x1a6   :  { %3065 = vmatprep.subr.bf16.mxu0 %v6425_v34  ;;  %v6504_v34 = vcombine.low %v536_v17, %v540_v19  ;;  %v6163_v38 = vcombine.high %v193_v32, %v197_v33  ;;  %v6162_v59 = vcombine.low %v193_v32, %v197_v33  ;;  %v8003_v19 = vld [vmem:[%s8146_s0 + $0x10] ss:$28 sps:$4 sm:$0xff]   ;;  %v6251_v33 = vcombine.high %v281_v20, %v285_v21 }
 0x1a9   :  { %6550 = vmatmul.mubr.msk.bf16.vlgmr.msra.gmra.mxu1 %vm2619_vm0, %v7952_v0  ;;  %3066 = vmatpush1.bf16.msra.mxu0 %v6424_v41  ;;  %v6529_v0 = vcombine.high %v560_v52, %v564_v55  ;;  %v524_v41 = vld [vmem:[#allocation2 + $0xa70] sm:$0xff] }
 0x1aa   :  { %3140 = vmatpush1.bf16.msra.mxu1 %v6218_v42  ;;  %3067 = vmatprep.subr.bf16.mxu0 %v6417_v43  ;;  %v313_v42 = vld [vmem:[#allocation2 + $0x3d8] sm:$0xff]  ;;  %v6489_v36 = vcombine.high %v520_v39, %v524_v41 }
 0x1ab   :  { %3141 = vmatprep.subr.bf16.mxu1 %v6211_v44  ;;  %3171 = vmatprep.mubr.bf16.mxu1 %v7944_v40  ;;  %v6521_v40 = vcombine.high %v552_v62, %v556_v63  ;;  %v317_v43 = vld [vmem:[#allocation2 + $0x3f8] sm:$0xff]  ;;  %v6496_v44 = vcombine.low %v528_v28, %v532_v31  ;;  %v7996_v62 = vpop.f32.mrf.mxu1 }
 0x1ac   :  { %v6283_v45 = vcombine.high %v313_v42, %v317_v43  ;;  %v6282_v52 = vcombine.low %v313_v42, %v317_v43  ;;  %v6250_v42 = vcombine.low %v281_v20, %v285_v21 }
 0x1ad   :  { %3068 = vmatpush1.bf16.msra.mxu0 %v6416_v48  ;;  %v516_v48 = vld [vmem:[#allocation2 + $0xa30] sm:$0xff]  ;;  %v2786_v9 = vpop.f32.mrf.mxu1 }
 0x1ae   :  { %3142 = vmatpush1.bf16.msra.mxu1 %v6210_v49  ;;  %3069 = vmatprep.subr.bf16.mxu0 %v6537_v50  ;;  %v305_v49 = vld [vmem:[#allocation2 + $0x398] sm:$0xff]  ;;  %v6481_v55 = vcombine.high %v512_v46, %v516_v48 }
 0x1af   :  { %3143 = vmatprep.subr.bf16.mxu1 %v6203_v51  ;;  %v309_v50 = vld [vmem:[#allocation2 + $0x3b8] sm:$0xff]  ;;  %v6488_v51 = vcombine.low %v520_v39, %v524_v41 }
 0x1b0   :  { %v6275_v57 = vcombine.high %v305_v49, %v309_v50  ;;  %v6274_v63 = vcombine.low %v305_v49, %v309_v50 }
 0x1b1   :  { %3070 = vmatpush2.bf16.msra.mxu0 %v6536_v56  ;;  %v381_v56 = vld [vmem:[#allocation2 + $0x5f8] sm:$0xff] }
 0x1b2   :  { %3144 = vmatpush1.bf16.msra.mxu1 %v6202_v61  ;;  %3071 = vmatprep.subr.bf16.mxu0 %v6529_v0  ;;  %v297_v61 = vld [vmem:[#allocation2 + $0x358] sm:$0xff]  ;;  %v6347_v22 = vcombine.high %v377_v60, %v381_v56  ;;  %v6346_v6 = vcombine.low %v377_v60, %v381_v56 }
 0x1b3   :  { %3145 = vmatprep.subr.bf16.mxu1 %v6195_v15  ;;  %v301_v0 = vld [vmem:[#allocation2 + $0x378] sm:$0xff]  ;;  %v6480_v15 = vcombine.low %v512_v46, %v516_v48 }
 0x1b4   :  { %v6267_v1 = vcombine.high %v297_v61, %v301_v0  ;;  %v6266_v10 = vcombine.low %v297_v61, %v301_v0  ;;  %v265_v46 = vld [vmem:[#allocation2 + $0x258] sm:$0xff] }
 0x1b5   :  { %3072 = vmatpush2.bf16.msra.mxu0 %v6528_v2  ;;  %v369_v2 = vld [vmem:[#allocation2 + $0x598] sm:$0xff] }
 0x1b6   :  { %3146 = vmatpush1.bf16.msra.mxu1 %v6194_v3  ;;  %3073 = vmatprep.subr.bf16.mxu0 %v6521_v40  ;;  %v373_v3 = vld [vmem:[#allocation2 + $0x5b8] sm:$0xff] }
 0x1b7   :  { %3147 = vmatprep.subr.bf16.mxu1 %v6187_v4  ;;  %v289_v40 = vld [vmem:[#allocation2 + $0x318] sm:$0xff] }
 0x1b8   :  { %v293_v4 = vld [vmem:[#allocation2 + $0x338] sm:$0xff] }
 0x1b9   :  { %3074 = vmatpush2.bf16.msra.mxu0 %v6520_v11  ;;  %v6339_v11 = vcombine.high %v369_v2, %v373_v3  ;;  %v269_v48 = vld [vmem:[#allocation2 + $0x278] sm:$0xff] }
 0x1ba   :  { %3148 = vmatpush1.bf16.msra.mxu1 %v6186_v13  ;;  %3075 = vmatprep.subr.bf16.mxu0 %v6513_v14  ;;  %v6259_v13 = vcombine.high %v289_v40, %v293_v4  ;;  %v361_v14 = vld [vmem:[#allocation2 + $0x558] sm:$0xff] }
 0x1bb   :  { %3149 = vmatprep.subr.bf16.mxu1 %v6179_v16  ;;  %v365_v16 = vld [vmem:[#allocation2 + $0x578] sm:$0xff] }
 0x1bc   :  { %v6331_v31 = vcombine.high %v361_v14, %v365_v16  ;;  %v337_v60 = vld [vmem:[#allocation2 + $0x498] sm:$0xff] }
 0x1bd   :  { %3076 = vmatpush2.bf16.msra.mxu0 %v6512_v23  ;;  %v341_v56 = vld [vmem:[#allocation2 + $0x4b8] sm:$0xff] }
 0x1be   :  { %3150 = vmatpush1.bf16.msra.mxu1 %v6178_v24  ;;  %3077 = vmatprep.subr.bf16.mxu0 %v6505_v25  ;;  %v6338_v24 = vcombine.low %v369_v2, %v373_v3  ;;  %v8008_v25 = vpop.f32.mrf.mxu1  ;;  %v257_v61 = vld [vmem:[#allocation2 + $0x218] sm:$0xff] }
 0x1bf   :  { %3151 = vmatprep.subr.bf16.mxu1 %v6171_v27  ;;  %v6258_v27 = vcombine.low %v289_v40, %v293_v4  ;;  %v261_v0 = vld [vmem:[#allocation2 + $0x238] sm:$0xff] }
 0x1c0   :  { %v2790_v41 = vpop.f32.mrf.mxu1  ;;  %v329_v2 = vld [vmem:[#allocation2 + $0x458] sm:$0xff] }
 0x1c1   :  { %3078 = vmatpush2.bf16.msra.mxu0 %v6504_v34  ;;  %v353_v34 = vld [vmem:[#allocation2 + $0x518] sm:$0xff] }
 0x1c2   :  { %3152 = vmatpush1.bf16.msra.mxu1 %v6170_v35  ;;  %3079 = vmatprep.subr.bf16.mxu0 %v6497_v37  ;;  %v357_v35 = vld [vmem:[#allocation2 + $0x538] sm:$0xff] }
 0x1c3   :  { %3153 = vmatprep.subr.bf16.mxu1 %v6163_v38  ;;  %v273_v38 = vld [vmem:[#allocation2 + $0x298] sm:$0xff]  ;;  %v6323_v43 = vcombine.high %v353_v34, %v357_v35 }
 0x1c4   :  { %v333_v3 = vld [vmem:[#allocation2 + $0x478] sm:$0xff] }
 0x1c5   :  { %3080 = vmatpush2.bf16.msra.mxu0 %v6496_v44  ;;  %v505_v40 = vld [vmem:[#allocation2 + $0x9d8] sm:$0xff]  ;;  %v6298_v20 = vcombine.low %v329_v2, %v333_v3 }
 0x1c6   :  { %3154 = vmatpush1.bf16.msra.mxu1 %v6162_v59  ;;  %3081 = vmatprep.subr.bf16.mxu0 %v6489_v36  ;;  %v345_v36 = vld [vmem:[#allocation2 + $0x4d8] sm:$0xff] }
 0x1c7   :  { %3155 = vmatprep.subr.bf16.mxu1 %v6283_v45  ;;  %v349_v45 = vld [vmem:[#allocation2 + $0x4f8] sm:$0xff] }
 0x1c8   :  { %v509_v4 = vld [vmem:[#allocation2 + $0x9f8] sm:$0xff] }
 0x1c9   :  { %3082 = vmatpush2.bf16.msra.mxu0 %v6488_v51  ;;  %v6322_v51 = vcombine.low %v353_v34, %v357_v35  ;;  %v6474_v21 = vcombine.low %v505_v40, %v509_v4 }
 0x1ca   :  { %3156 = vmatpush2.bf16.msra.mxu1 %v6282_v52  ;;  %3083 = vmatprep.subr.bf16.mxu0 %v6481_v55  ;;  %v6315_v52 = vcombine.high %v345_v36, %v349_v45 }
 0x1cb   :  { %3157 = vmatprep.subr.bf16.mxu1 %v6275_v57  ;;  %v6235_v57 = vcombine.high %v265_v46, %v269_v48 }
 0x1cd   :  { %3084 = vmatpush2.bf16.msra.mxu0 %v6480_v15  ;;  %v6314_v15 = vcombine.low %v345_v36, %v349_v45  ;;  %v429_v36 = vld [vmem:[#allocation2 + $0x778] sm:$0xff] }
 0x1ce   :  { %3158 = vmatpush2.bf16.msra.mxu1 %v6274_v63  ;;  %3182 = vmatprep.subr.bf16.mxu0 %v6347_v22  ;;  %v6234_v63 = vcombine.low %v265_v46, %v269_v48  ;;  %v6307_v22 = vcombine.high %v337_v60, %v341_v56  ;;  %v473_v45 = vld [vmem:[#allocation2 + $0x8d8] sm:$0xff] }
 0x1cf   :  { %3159 = vmatprep.subr.bf16.mxu1 %v6267_v1  ;;  %v6227_v1 = vcombine.high %v257_v61, %v261_v0  ;;  %v477_v46 = vld [vmem:[#allocation2 + $0x8f8] sm:$0xff] }
 0x1d0   :  { %v2743_v17 = vpop.f32.mrf.mxu0  ;;  %3086 = vmatmul.mubr.bf16.vlgmr.msra.gmra.mxu0 %v8003_v19 }
 0x1d1   :  { %v2744_v23 = vadd.f32 %v2743_v17, %v7985_v58  ;;  %3183 = vmatpush1.bf16.msra.mxu0 %v6346_v6  ;;  %3214 = vmatprep.mubr.bf16.mxu0 %v7959_v8  ;;  %v277_v58 = vld [vmem:[#allocation2 + $0x2b8] sm:$0xff]  ;;  %v6330_v8 = vcombine.low %v361_v14, %v365_v16  ;;  %v6306_v6 = vcombine.low %v337_v60, %v341_v56 }
 0x1d2   :  { %3160 = vmatpush2.bf16.msra.mxu1 %v6266_v10  ;;  %v8010_v28 = vpop.f32.mrf.mxu0  ;;  %3184 = vmatprep.subr.bf16.mxu0 %v6339_v11  ;;  %v6243_v59 = vcombine.high %v273_v38, %v277_v58  ;;  %v6299_v10 = vcombine.high %v329_v2, %v333_v3  ;;  %v6475_v11 = vcombine.high %v505_v40, %v509_v4  ;;  %v325_v14 = vld [vmem:[#allocation2 + $0x438] sm:$0xff] }
 0x1d3   :  { %v2787_v32 = vadd.f32 %v2786_v9, %v2744_v23  ;;  %3161 = vmatprep.subr.bf16.mxu1 %v6259_v13  ;;  %v6226_v9 = vcombine.low %v257_v61, %v261_v0  ;;  %v321_v13 = vld [vmem:[#allocation2 + $0x418] sm:$0xff]  ;;  %v6442_v56 = vcombine.low %v473_v45, %v477_v46 }
 0x1d4   :  { %v2747_v37 = vpop.f32.mrf.mxu0  ;;  %v497_v16 = vld [vmem:[#allocation2 + $0x998] sm:$0xff]  ;;  %v6291_v23 = vcombine.high %v321_v13, %v325_v14  ;;  %v6290_v34 = vcombine.low %v321_v13, %v325_v14 }
 0x1d5   :  { %v2748_v39 = vadd.f32 %v2747_v37, %v7989_v5  ;;  %3185 = vmatpush1.bf16.msra.mxu0 %v6338_v24  ;;  %v3311_v49 = vmax.f32 %v2787_v32, 0.0  ;;  %v6242_v5 = vcombine.low %v273_v38, %v277_v58  ;;  %v501_v17 = vld [vmem:[#allocation2 + $0x9b8] sm:$0xff] }
 0x1d6   :  { %3162 = vmatpush2.bf16.msra.mxu1 %v6258_v27  ;;  %3186 = vmatprep.subr.bf16.mxu0 %v6331_v31  ;;  %v6467_v24 = vcombine.high %v497_v16, %v501_v17  ;;  %v441_v27 = vld [vmem:[#allocation2 + $0x7d8] sm:$0xff]  ;;  %v6466_v35 = vcombine.low %v497_v16, %v501_v17  ;;  %v8018_v17 = vsub.s32 1, %v7962_v18 }
 0x1d7   :  { %v2791_v44 = vadd.f32 %v2790_v41, %v2748_v39  ;;  %3163 = vmatprep.subr.bf16.mxu1 %v6251_v33  ;;  %v445_v31 = vld [vmem:[#allocation2 + $0x7f8] sm:$0xff] }
 0x1d8   :  { %v489_v32 = vld [vmem:[#allocation2 + $0x958] sm:$0xff]  ;;  %v6411_v37 = vcombine.high %v441_v27, %v445_v31 }
 0x1d9   :  { %v3319_v50 = vmax.f32 %v2791_v44, 0.0  ;;  %3187 = vmatpush1.bf16.msra.mxu0 %v6330_v8  ;;  %v493_v33 = vld [vmem:[#allocation2 + $0x978] sm:$0xff] }
 0x1da   :  { %3164 = vmatpush2.bf16.msra.mxu1 %v6250_v42  ;;  %3188 = vmatprep.subr.bf16.mxu0 %v6323_v43  ;;  %v6459_v38 = vcombine.high %v489_v32, %v493_v33  ;;  %v433_v58 = vld [vmem:[#allocation2 + $0x798] sm:$0xff]  ;;  %v6410_v42 = vcombine.low %v441_v27, %v445_v31  ;;  %v6458_v43 = vcombine.low %v489_v32, %v493_v33 }
 0x1db   :  { %v8013_v55 = vpack.c.bf16 %v3319_v50, %v3311_v49  ;;  %3165 = vmatprep.subr.bf16.mxu1 %v6243_v59  ;;  %v437_v39 = vld [vmem:[#allocation2 + $0x7b8] sm:$0xff]  ;;  %v6443_v50 = vcombine.high %v473_v45, %v477_v46  ;;  %v2749_v46 = vpop.f32.mrf.mxu0 }
 0x1dc   :  { %v481_v8 = vld [vmem:[#allocation2 + $0x918] sm:$0xff]  ;;  %v6402_v48 = vcombine.low %v433_v58, %v437_v39 }
 0x1dd   :  { %3189 = vmatpush1.bf16.msra.mxu0 %v6322_v51  ;;  %v485_v41 = vld [vmem:[#allocation2 + $0x938] sm:$0xff] }
 0x1de   :  { %3166 = vmatpush2.bf16.msra.mxu1 %v6242_v5  ;;  %3190 = vmatprep.subr.bf16.mxu0 %v6315_v52  ;;  %v6451_v44 = vcombine.high %v481_v8, %v485_v41  ;;  %v425_v59 = vld [vmem:[#allocation2 + $0x758] sm:$0xff]  ;;  %v6450_v49 = vcombine.low %v481_v8, %v485_v41 }
 0x1df   :  { %3167 = vmatprep.subr.bf16.mxu1 %v6235_v57  ;;  %v417_v51 = vld [vmem:[#allocation2 + $0x718] sm:$0xff]  ;;  %v6394_v60 = vcombine.low %v425_v59, %v429_v36 }
 0x1e0   :  { %v421_v5 = vld [vmem:[#allocation2 + $0x738] sm:$0xff] }
 0x1e1   :  { %3191 = vmatpush1.bf16.msra.mxu0 %v6314_v15  ;;  %v465_v52 = vld [vmem:[#allocation2 + $0x898] sm:$0xff]  ;;  %v6387_v61 = vcombine.high %v417_v51, %v421_v5  ;;  %v6386_v2 = vcombine.low %v417_v51, %v421_v5 }
 0x1e2   :  { %3168 = vmatpush2.bf16.msra.mxu1 %v6234_v63  ;;  %3192 = vmatprep.subr.bf16.mxu0 %v6307_v22  ;;  %v469_v57 = vld [vmem:[#allocation2 + $0x8b8] sm:$0xff] }
 0x1e3   :  { %3169 = vmatprep.subr.bf16.mxu1 %v6227_v1  ;;  %v6435_v0 = vcombine.high %v465_v52, %v469_v57  ;;  %v409_v15 = vld [vmem:[#allocation2 + $0x6d8] sm:$0xff]  ;;  %v6434_v3 = vcombine.low %v465_v52, %v469_v57 }
 0x1e4   :  { %v413_v63 = vld [vmem:[#allocation2 + $0x6f8] sm:$0xff] }
 0x1e5   :  { %3193 = vmatpush1.bf16.msra.mxu0 %v6306_v6  ;;  %v457_v22 = vld [vmem:[#allocation2 + $0x858] sm:$0xff]  ;;  %v6379_v40 = vcombine.high %v409_v15, %v413_v63  ;;  %v6378_v13 = vcombine.low %v409_v15, %v413_v63 }
 0x1e6   :  { %3170 = vmatpush2.bf16.msra.mxu1 %v6226_v9  ;;  %3194 = vmatprep.subr.bf16.mxu0 %v6299_v10  ;;  %v461_v1 = vld [vmem:[#allocation2 + $0x878] sm:$0xff] }
 0x1e7   :  { %3225 = vmatprep.subr.bf16.mxu1 %v6475_v11  ;;  %v6427_v4 = vcombine.high %v457_v22, %v461_v1  ;;  %v401_v6 = vld [vmem:[#allocation2 + $0x698] sm:$0xff]  ;;  %v6426_v14 = vcombine.low %v457_v22, %v461_v1 }
 0x1e8   :  { %v405_v9 = vld [vmem:[#allocation2 + $0x6b8] sm:$0xff] }
 0x1e9   :  { %3172 = vmatmul.mubr.bf16.vlgmr.msra.gmra.mxu1 %v7974_v47  ;;  %3195 = vmatpush1.bf16.msra.mxu0 %v6298_v20  ;;  %v6403_v47 = vcombine.high %v433_v58, %v437_v39  ;;  %v449_v10 = vld [vmem:[#allocation2 + $0x818] sm:$0xff]  ;;  %v6371_v16 = vcombine.high %v401_v6, %v405_v9  ;;  %v6370_v31 = vcombine.low %v401_v6, %v405_v9 }
 0x1ea   :  { %3226 = vmatpush1.bf16.msra.mxu1 %v6474_v21  ;;  %3196 = vmatprep.subr.bf16.mxu0 %v6291_v23  ;;  %v453_v11 = vld [vmem:[#allocation2 + $0x838] sm:$0xff] }
 0x1eb   :  { %3227 = vmatprep.subr.bf16.mxu1 %v6467_v24  ;;  %3257 = vmatprep.mubr.bf16.mxu1 %v7980_v53  ;;  %v6395_v53 = vcombine.high %v425_v59, %v429_v36  ;;  %v6419_v20 = vcombine.high %v449_v10, %v453_v11  ;;  %v393_v21 = vld [vmem:[#allocation2 + $0x658] sm:$0xff]  ;;  %v6418_v32 = vcombine.low %v449_v10, %v453_v11 }
 0x1ec   :  { %v397_v23 = vld [vmem:[#allocation2 + $0x678] sm:$0xff] }
 0x1ed   :  { %3197 = vmatpush1.bf16.msra.mxu0 %v6290_v34  ;;  %v569_v24 = vld [vmem:[#allocation2 + $0xbd8] sm:$0xff]  ;;  %v6363_v33 = vcombine.high %v393_v21, %v397_v23  ;;  %v591_v34 = vrot.slane %v7964_v29, %v8018_v17  ;;  %v6362_v41 = vcombine.low %v393_v21, %v397_v23 }
 0x1ee   :  { %3228 = vmatpush1.bf16.msra.mxu1 %v6466_v35  ;;  %3198 = vmatprep.subr.bf16.mxu0 %v6411_v37  ;;  %v573_v27 = vld [vmem:[#allocation2 + $0xbf8] sm:$0xff] }
 0x1ef   :  { %3229 = vmatprep.subr.bf16.mxu1 %v6459_v38  ;;  %v6539_v35 = vcombine.high %v569_v24, %v573_v27  ;;  %v385_v37 = vld [vmem:[#allocation2 + $0x618] sm:$0xff]  ;;  %v2664_v8 = vadd.f32 %v7998_v7, %v591_v34  ;;  %v2792_v7 = vpop.f32.mrf.mxu1 }
 0x1f0   :  { %v389_v38 = vld [vmem:[#allocation2 + $0x638] sm:$0xff] }
 0x1f1   :  { %3199 = vmatpush2.bf16.msra.mxu0 %v6410_v42  ;;  %v561_v58 = vld [vmem:[#allocation2 + $0xb98] sm:$0xff]  ;;  %v6538_v42 = vcombine.low %v569_v24, %v573_v27 }
 0x1f2   :  { %3230 = vmatpush1.bf16.msra.mxu1 %v6458_v43  ;;  %3200 = vmatprep.subr.bf16.mxu0 %v6403_v47  ;;  %v565_v39 = vld [vmem:[#allocation2 + $0xbb8] sm:$0xff]  ;;  %v6355_v43 = vcombine.high %v385_v37, %v389_v38  ;;  %v2660_v47 = vadd.f32 %v7983_v54, %v591_v34 }
 0x1f3   :  { %3231 = vmatprep.subr.bf16.mxu1 %v6451_v44  ;;  %v594_v44 = vsub.s32 2, %v7962_v18  ;;  %v6531_v59 = vcombine.high %v561_v58, %v565_v39  ;;  %v577_v36 = vld [vmem:[#allocation2 + $0xc18] sm:$0xff]  ;;  %v6530_v51 = vcombine.low %v561_v58, %v565_v39 }
 0x1f4   :  { %v581_v45 = vld [vmem:[#allocation2 + $0xc38] sm:$0xff]  ;;  %v2703_v54 = vadd.f32 %v7987_v12, %v2660_v47 }
 0x1f5   :  { %3201 = vmatpush2.bf16.msra.mxu0 %v6402_v48  ;;  %v553_v48 = vld [vmem:[#allocation2 + $0xb58] sm:$0xff]  ;;  %v6547_v5 = vcombine.high %v577_v36, %v581_v45  ;;  %v595_v57 = vrot.slane %v7964_v29, %v594_v44  ;;  %v6546_v15 = vcombine.low %v577_v36, %v581_v45 }
 0x1f6   :  { %3232 = vmatpush1.bf16.msra.mxu1 %v6450_v49  ;;  %3202 = vmatprep.subr.bf16.mxu0 %v6395_v53  ;;  %v557_v49 = vld [vmem:[#allocation2 + $0xb78] sm:$0xff]  ;;  %v2707_v53 = vadd.f32 %v7996_v62, %v2664_v8  ;;  %v2746_v62 = vadd.f32 %v8010_v28, %v2703_v54 }
 0x1f7   :  { %3233 = vmatprep.subr.bf16.mxu1 %v6443_v50  ;;  %v6354_v50 = vcombine.low %v385_v37, %v389_v38  ;;  %v6522_v63 = vcombine.low %v553_v48, %v557_v49  ;;  %v7006_v22 = vld [vmem:[#allocation6 + $0xe4] ss:$16 sps:$4 sm:$0xff]   ;;  %v7004_v27 = vld [vmem:[#allocation6 + $0xe0] ss:$16 sps:$4 sm:$0xff]  }
 0x1f8   :  { %v2750_v52 = vadd.f32 %v2749_v46, %v2707_v53  ;;  %v537_v6 = vld [vmem:[#allocation2 + $0xad8] sm:$0xff]  ;;  %v2789_v9 = vadd.f32 %v8008_v25, %v2746_v62 }
 0x1f9   :  { %3203 = vmatpush2.bf16.msra.mxu0 %v6394_v60  ;;  %v2829_v60 = vpop.f32.mrf.mxu1  ;;  %v541_v28 = vld [vmem:[#allocation2 + $0xaf8] sm:$0xff] }
 0x1fa   :  { %3234 = vmatpush1.bf16.msra.mxu1 %v6442_v56  ;;  %3204 = vmatprep.subr.bf16.mxu0 %v6387_v61  ;;  %v6523_v56 = vcombine.high %v553_v48, %v557_v49  ;;  %v545_v61 = vld [vmem:[#allocation2 + $0xb18] sm:$0xff]  ;;  %v2793_v1 = vadd.f32 %v2792_v7, %v2750_v52  ;;  %v2830_v12 = vadd.f32 %v2829_v60, %v595_v57  ;;  %v3312_v23 = vmax.f32 %v2789_v9, 0.0 }
 0x1fb   :  { %3235 = vmatprep.subr.bf16.mxu1 %v6435_v0  ;;  %v549_v0 = vld [vmem:[#allocation2 + $0xb38] sm:$0xff] }
 0x1fc   :  { %v6514_v11 = vcombine.low %v545_v61, %v549_v0  ;;  %v533_v21 = vld [vmem:[#allocation2 + $0xab8] sm:$0xff] }
 0x1fd   :  { %3205 = vmatpush2.bf16.msra.mxu0 %v6386_v2  ;;  %v8031_v2 = vpop.f32.mrf.mxu1  ;;  %v521_v37 = vld [vmem:[#allocation2 + $0xa58] sm:$0xff] }
 0x1fe   :  { %3236 = vmatpush1.bf16.msra.mxu1 %v6434_v3  ;;  %3206 = vmatprep.subr.bf16.mxu0 %v6379_v40  ;;  %v6515_v3 = vcombine.high %v545_v61, %v549_v0  ;;  %v525_v38 = vld [vmem:[#allocation2 + $0xa78] sm:$0xff] }
 0x1ff   :  { %3237 = vmatprep.subr.bf16.mxu1 %v6427_v4  ;;  %v7527_v4 = vld [vmem:[%s8146_s0 + $0x8] ss:$28 sps:$4 sm:$0xff]   ;;  %v7012_v47 = vld [vmem:[#allocation6 + $0xa4] ss:$16 sps:$4 sm:$0xff]   ;;  %v6491_v36 = vcombine.high %v521_v37, %v525_v38 }
 0x200   :  { %v7007_v8 = vld [vmem:[#allocation6 + $0xc0] ss:$16 sps:$4 sm:$0xff]  }
 0x201   :  { %3207 = vmatpush2.bf16.msra.mxu0 %v6378_v13  ;;  %v3320_v13 = vmax.f32 %v2793_v1, 0.0  ;;  %v513_v48 = vld [vmem:[#allocation2 + $0xa18] sm:$0xff] }
 0x202   :  { %3238 = vmatpush1.bf16.msra.mxu1 %v6426_v14  ;;  %3208 = vmatprep.subr.bf16.mxu0 %v6371_v16  ;;  %v2833_v14 = vpop.f32.mrf.mxu1  ;;  %v6507_v16 = vcombine.high %v537_v6, %v541_v28  ;;  %v517_v49 = vld [vmem:[#allocation2 + $0xa38] sm:$0xff] }
 0x203   :  { %3239 = vmatprep.subr.bf16.mxu1 %v6419_v20  ;;  %v529_v20 = vld [vmem:[#allocation2 + $0xa98] sm:$0xff]  ;;  %v8038_v34 = vpack.c.bf16 %v3320_v13, %v3312_v23  ;;  %v6483_v52 = vcombine.high %v513_v48, %v517_v49 }
 0x204   :  { %v2835_v25 = vpop.f32.mrf.mxu1  ;;  %v7010_v7 = vld [vmem:[#allocation6 + $0xa0] ss:$16 sps:$4 sm:$0xff]   ;;  %v7018_v1 = vld [vmem:[#allocation6 + $0x2e4] ss:$16 sps:$4 sm:$0xff]  }
 0x205   :  { %3209 = vmatpush2.bf16.msra.mxu0 %v6370_v31  ;;  %v6506_v31 = vcombine.low %v537_v6, %v541_v28  ;;  %v7013_v61 = vld [vmem:[#allocation6 + $0x80] ss:$16 sps:$4 sm:$0xff]   ;;  %v7024_v13 = vld [vmem:[#allocation6 + $0x2c4] ss:$16 sps:$4 sm:$0xff]  }
 0x206   :  { %3240 = vmatpush1.bf16.msra.mxu1 %v6418_v32  ;;  %3210 = vmatprep.subr.bf16.mxu0 %v6363_v33  ;;  %v7009_v32 = vld [vmem:[#allocation6 + $0xc4] ss:$16 sps:$4 sm:$0xff]   ;;  %v6499_v33 = vcombine.high %v529_v20, %v533_v21  ;;  %v7016_v9 = vld [vmem:[#allocation6 + $0x2e0] ss:$16 sps:$4 sm:$0xff]  }
 0x207   :  { %3241 = vmatprep.subr.bf16.mxu1 %v6539_v35  ;;  %v7528_v35 = vld [vmem:[%s8146_s0 + $0x18] ss:$28 sps:$4 sm:$0xff]  }
 0x209   :  { %3211 = vmatpush2.bf16.msra.mxu0 %v6362_v41  ;;  %v2834_v41 = vadd.f32 %v2833_v14, %v595_v57 }
 0x20a   :  { %3242 = vmatpush2.bf16.msra.mxu1 %v6538_v42  ;;  %3212 = vmatprep.subr.bf16.mxu0 %v6355_v43  ;;  %v6498_v43 = vcombine.low %v529_v20, %v533_v21  ;;  %v7025_v21 = vld [vmem:[#allocation6 + $0x40] ss:$16 sps:$4 sm:$0xff]  }
 0x20b   :  { %3243 = vmatprep.subr.bf16.mxu1 %v6531_v59 }
 0x20d   :  { %3213 = vmatpush2.bf16.msra.mxu0 %v6354_v50 }
 0x20e   :  { %3244 = vmatpush2.bf16.msra.mxu1 %v6530_v51  ;;  %3282 = vmatprep.subr.bf16.mxu0 %v6547_v5  ;;  %v6490_v51 = vcombine.low %v521_v37, %v525_v38  ;;  %v7015_v5 = vld [vmem:[#allocation6 + $0x84] ss:$16 sps:$4 sm:$0xff]  }
 0x20f   :  { %3245 = vmatprep.subr.bf16.mxu1 %v6523_v56  ;;  %v7039_v37 = vld [vmem:[#allocation6 + $0x4] ss:$16 sps:$4 sm:$0xff]  }
 0x210   :  { %v2872_v40 = vpop.f32.mrf.mxu0  ;;  %3215 = vmatmul.mubr.bf16.vlgmr.msra.gmra.mxu0 %v7527_v4  ;;  %v7019_v4 = vld [vmem:[#allocation6 + $0x60] ss:$16 sps:$4 sm:$0xff]   ;;  %v7036_v38 = vld [vmem:[#allocation6 + $0x284] ss:$16 sps:$4 sm:$0xff]  }
 0x211   :  { %v2873_v10 = vadd.f32 %v2872_v40, %v2830_v12  ;;  %3283 = vmatpush1.bf16.msra.mxu0 %v6546_v15  ;;  %3300 = vmatprep.mubr.bf16.mxu0 %v7781_v26  ;;  %v598_v26 = vsub.s32 3, %v7962_v18 }
 0x212   :  { %3246 = vmatpush2.bf16.msra.mxu1 %v6522_v63  ;;  %4893 = vmatprep.subr.bf16.mxu0 %v7006_v22  ;;  %v2874_v24 = vpop.f32.mrf.mxu0  ;;  %v7021_v63 = vld [vmem:[#allocation6 + $0x64] ss:$16 sps:$4 sm:$0xff]  }
 0x213   :  { %3247 = vmatprep.subr.bf16.mxu1 %v6515_v3  ;;  %v599_v45 = vrot.slane %v7964_v29, %v598_v26  ;;  %v6482_v29 = vcombine.low %v513_v48, %v517_v49  ;;  %v7054_v48 = vld [vmem:[#allocation6 + $0x224] ss:$16 sps:$4 sm:$0xff]   ;;  %v7055_v49 = vld [vmem:[#allocation6 + $0x1a0] ss:$16 sps:$4 sm:$0xff]  }
 0x214   :  { %v2876_v58 = vpop.f32.mrf.mxu0 }
 0x215   :  { %v2877_v46 = vadd.f32 %v2876_v58, %v2834_v41  ;;  %v2832_v57 = vadd.f32 %v8031_v2, %v599_v45  ;;  %v2836_v0 = vadd.f32 %v2835_v25, %v599_v45  ;;  %v7033_v25 = vld [vmem:[#allocation6 + $0x24] ss:$16 sps:$4 sm:$0xff]   ;;  %v7037_v58 = vld [vmem:[#allocation6] ss:$16 sps:$4 sm:$0xff]  }
 0x216   :  { %3248 = vmatpush2.bf16.msra.mxu1 %v6514_v11  ;;  %v2878_v60 = vpop.f32.mrf.mxu0  ;;  %v7042_v41 = vld [vmem:[#allocation6 + $0x264] ss:$16 sps:$4 sm:$0xff]   ;;  %v7046_v45 = vld [vmem:[#allocation6 + $0x240] ss:$16 sps:$4 sm:$0xff]  }
 0x217   :  { %3249 = vmatprep.subr.bf16.mxu1 %v6507_v16  ;;  %v2875_v62 = vadd.f32 %v2874_v24, %v2832_v57  ;;  %v2879_v12 = vadd.f32 %v2878_v60, %v2836_v0  ;;  %v7067_v57 = vld [vmem:[#allocation6 + $0x160] ss:$16 sps:$4 sm:$0xff]  }
 0x218   :  { %6551 = vmatmul.mubr.msk.bf16.vlgmr.msra.gmra.mxu0 %vm2619_vm0, %v7528_v35  ;;  %v7031_v35 = vld [vmem:[#allocation6 + $0x20] ss:$16 sps:$4 sm:$0xff]  }
 0x219   :  { %v2915_v39 = vpop.f32.mrf.mxu1  ;;  %4894 = vmatpush1.bf16.msra.mxu0 %v7004_v27  ;;  %4925 = vmatprep.mubr.bf16.mxu0 %v8038_v34  ;;  %v7064_v60 = vld [vmem:[#allocation6 + $0x3e0] ss:$16 sps:$4 sm:$0xff]  }
 0x21a   :  { %3250 = vmatpush2.bf16.msra.mxu1 %v6506_v31  ;;  %v2916_v42 = vadd.f32 %v2915_v39, %v2873_v10  ;;  %4895 = vmatprep.subr.bf16.mxu0 %v7009_v32  ;;  %v7027_v10 = vld [vmem:[#allocation6 + $0x44] ss:$16 sps:$4 sm:$0xff]   ;;  %v7022_v31 = vld [vmem:[#allocation6 + $0x2c0] ss:$16 sps:$4 sm:$0xff]  }
 0x21b   :  { %v2917_v59 = vpop.f32.mrf.mxu1  ;;  %3251 = vmatprep.subr.bf16.mxu1 %v6499_v33  ;;  %v7030_v32 = vld [vmem:[#allocation6 + $0x2a4] ss:$16 sps:$4 sm:$0xff]   ;;  %v7034_v39 = vld [vmem:[#allocation6 + $0x280] ss:$16 sps:$4 sm:$0xff]  }
 0x21c   :  { %v2918_v3 = vadd.f32 %v2917_v59, %v2875_v62  ;;  %v7048_v59 = vld [vmem:[#allocation6 + $0x244] ss:$16 sps:$4 sm:$0xff]   ;;  %v7070_v0 = vld [vmem:[#allocation6 + $0x3c0] ss:$16 sps:$4 sm:$0xff]  }
 0x21d   :  { %v2919_v53 = vpop.f32.mrf.mxu1  ;;  %4896 = vmatpush1.bf16.msra.mxu0 %v7007_v8  ;;  %v7045_v8 = vld [vmem:[#allocation6 + $0x1e4] ss:$16 sps:$4 sm:$0xff]  }
 0x21e   :  { %3252 = vmatpush2.bf16.msra.mxu1 %v6498_v43  ;;  %v2920_v50 = vadd.f32 %v2919_v53, %v2877_v46  ;;  %4897 = vmatprep.subr.bf16.mxu0 %v7012_v47  ;;  %v7040_v43 = vld [vmem:[#allocation6 + $0x260] ss:$16 sps:$4 sm:$0xff]   ;;  %v7051_v47 = vld [vmem:[#allocation6 + $0x1c4] ss:$16 sps:$4 sm:$0xff]  }
 0x21f   :  { %v2921_v54 = vpop.f32.mrf.mxu1  ;;  %3253 = vmatprep.subr.bf16.mxu1 %v6491_v36  ;;  %v7049_v36 = vld [vmem:[#allocation6 + $0x1c0] ss:$16 sps:$4 sm:$0xff]   ;;  %v7057_v46 = vld [vmem:[#allocation6 + $0x1a4] ss:$16 sps:$4 sm:$0xff]  }
 0x220   :  { %v2922_v2 = vadd.f32 %v2921_v54, %v2879_v12  ;;  %v7052_v53 = vld [vmem:[#allocation6 + $0x220] ss:$16 sps:$4 sm:$0xff]   ;;  %v7069_v54 = vld [vmem:[#allocation6 + $0x164] ss:$16 sps:$4 sm:$0xff]  }
 0x221   :  { %v2958_v56 = vpop.f32.mrf.mxu1  ;;  %4898 = vmatpush1.bf16.msra.mxu0 %v7010_v7  ;;  %v7063_v7 = vld [vmem:[#allocation6 + $0x184] ss:$16 sps:$4 sm:$0xff]  }
 0x222   :  { %3254 = vmatpush2.bf16.msra.mxu1 %v6490_v51  ;;  %v2959_v15 = vadd.f32 %v2958_v56, %v2916_v42  ;;  %4899 = vmatprep.subr.bf16.mxu0 %v7015_v5  ;;  %v7043_v42 = vld [vmem:[#allocation6 + $0x1e0] ss:$16 sps:$4 sm:$0xff]   ;;  %v7075_v56 = vld [vmem:[#allocation6 + $0x144] ss:$16 sps:$4 sm:$0xff]  }
 0x223   :  { %v2960_v22 = vpop.f32.mrf.mxu1  ;;  %3255 = vmatprep.subr.bf16.mxu1 %v6483_v52  ;;  %v7061_v51 = vld [vmem:[#allocation6 + $0x180] ss:$16 sps:$4 sm:$0xff]   ;;  %v7066_v52 = vld [vmem:[#allocation6 + $0x3e4] ss:$16 sps:$4 sm:$0xff]  }
 0x224   :  { %v2961_v6 = vadd.f32 %v2960_v22, %v2918_v3  ;;  %v3313_v14 = vmax.f32 %v2959_v15, 0.0  ;;  %v7058_v5 = vld [vmem:[#allocation6 + $0x200] ss:$16 sps:$4 sm:$0xff]   ;;  %v7081_v62 = vld [vmem:[#allocation6 + $0x124] ss:$16 sps:$4 sm:$0xff]  }
 0x225   :  { %v2962_v40 = vpop.f32.mrf.mxu1  ;;  %4900 = vmatpush1.bf16.msra.mxu0 %v7013_v61  ;;  %v7073_v61 = vld [vmem:[#allocation6 + $0x140] ss:$16 sps:$4 sm:$0xff]   ;;  %v7078_v15 = vld [vmem:[#allocation6 + $0x3a4] ss:$16 sps:$4 sm:$0xff]  }
 0x226   :  { %3256 = vmatpush2.bf16.msra.mxu1 %v6482_v29  ;;  %v2963_v28 = vadd.f32 %v2962_v40, %v2920_v50  ;;  %4901 = vmatprep.subr.bf16.mxu0 %v7021_v63  ;;  %v3314_v23 = vmax.f32 %v2961_v6, 0.0  ;;  %v7060_v50 = vld [vmem:[#allocation6 + $0x204] ss:$16 sps:$4 sm:$0xff]   ;;  %v7079_v63 = vld [vmem:[#allocation6 + $0x120] ss:$16 sps:$4 sm:$0xff]  }
 0x227   :  { %v2964_v11 = vpop.f32.mrf.mxu1  ;;  %4936 = vmatprep.subr.bf16.mxu1 %v7018_v1  ;;  %v7072_v29 = vld [vmem:[#allocation6 + $0x3c4] ss:$16 sps:$4 sm:$0xff]   ;;  %v7076_v22 = vld [vmem:[#allocation6 + $0x3a0] ss:$16 sps:$4 sm:$0xff]  }
 0x228   :  { %v3321_v16 = vmax.f32 %v2963_v28, 0.0  ;;  %v2965_v20 = vadd.f32 %v2964_v11, %v2922_v2  ;;  %v7087_v1 = vld [vmem:[#allocation6 + $0x104] ss:$16 sps:$4 sm:$0xff]   ;;  %v7085_v3 = vld [vmem:[#allocation6 + $0x100] ss:$16 sps:$4 sm:$0xff]  }
 0x229   :  { %3258 = vmatmul.mubr.bf16.vlgmr.msra.gmra.mxu1 %v8003_v19  ;;  %4902 = vmatpush1.bf16.msra.mxu0 %v7019_v4  ;;  %v7028_v19 = vld [vmem:[#allocation6 + $0x2a0] ss:$16 sps:$4 sm:$0xff]   ;;  %v7084_v12 = vld [vmem:[#allocation6 + $0x384] ss:$16 sps:$4 sm:$0xff]  }
 0x22a   :  { %v8051_v24 = vpack.c.bf16 %v3321_v16, %v3313_v14  ;;  %v3322_v27 = vmax.f32 %v2965_v20, 0.0  ;;  %4937 = vmatpush1.bf16.msra.mxu1 %v7016_v9  ;;  %4903 = vmatprep.subr.bf16.mxu0 %v7027_v10  ;;  %v7082_v40 = vld [vmem:[#allocation6 + $0x380] ss:$16 sps:$4 sm:$0xff]   ;;  %v7099_v4 = vld [vmem:[#allocation6 + $0x4e4] ss:$16 sps:$4 sm:$0xff]  }
 0x22b   :  { %4938 = vmatprep.subr.bf16.mxu1 %v7024_v13  ;;  %v7090_v2 = vld [vmem:[#allocation6 + $0x364] ss:$16 sps:$4 sm:$0xff]   ;;  %v7097_v6 = vld [vmem:[#allocation6 + $0x4e0] ss:$16 sps:$4 sm:$0xff]  }
 0x22c   :  { %v8053_v33 = vpack.c.bf16 %v3322_v27, %v3314_v23  ;;  %v7088_v28 = vld [vmem:[#allocation6 + $0x360] ss:$16 sps:$4 sm:$0xff]   ;;  %v7105_v9 = vld [vmem:[#allocation6 + $0x4c4] ss:$16 sps:$4 sm:$0xff]  }
 0x22d   :  { %4904 = vmatpush1.bf16.msra.mxu0 %v7025_v21  ;;  %v7093_v10 = vld [vmem:[#allocation6 + $0x344] ss:$16 sps:$4 sm:$0xff]   ;;  %v7103_v11 = vld [vmem:[#allocation6 + $0x4c0] ss:$16 sps:$4 sm:$0xff]  }
 0x22e   :  { %4939 = vmatpush1.bf16.msra.mxu1 %v7022_v31  ;;  %4968 = vmatprep.mubr.bf16.mxu1 %v8053_v33  ;;  %v7091_v13 = vld [vmem:[#allocation6 + $0x340] ss:$16 sps:$4 sm:$0xff]   ;;  %v7108_v14 = vld [vmem:[#allocation6 + $0x4a4] ss:$16 sps:$4 sm:$0xff]  }
 0x22f   :  { %4940 = vmatprep.subr.bf16.mxu1 %v7030_v32  ;;  %4905 = vmatprep.subr.bf16.mxu0 %v7033_v25  ;;  %v7096_v16 = vld [vmem:[#allocation6 + $0x324] ss:$16 sps:$4 sm:$0xff]   ;;  %v7106_v20 = vld [vmem:[#allocation6 + $0x4a0] ss:$16 sps:$4 sm:$0xff]  }
 0x230   :  { %v7094_v21 = vld [vmem:[#allocation6 + $0x320] ss:$16 sps:$4 sm:$0xff]   ;;  %v7111_v23 = vld [vmem:[#allocation6 + $0x484] ss:$16 sps:$4 sm:$0xff]  }
 0x231   :  { %4906 = vmatpush1.bf16.msra.mxu0 %v7031_v35  ;;  %v7102_v27 = vld [vmem:[#allocation6 + $0x304] ss:$16 sps:$4 sm:$0xff]   ;;  %v7109_v31 = vld [vmem:[#allocation6 + $0x480] ss:$16 sps:$4 sm:$0xff]  }
 0x232   :  { %4941 = vmatpush1.bf16.msra.mxu1 %v7028_v19  ;;  %4907 = vmatprep.subr.bf16.mxu0 %v7039_v37  ;;  %v7100_v32 = vld [vmem:[#allocation6 + $0x300] ss:$16 sps:$4 sm:$0xff]   ;;  %v7114_v25 = vld [vmem:[#allocation6 + $0x464] ss:$16 sps:$4 sm:$0xff]  }
 0x233   :  { %4942 = vmatprep.subr.bf16.mxu1 %v7036_v38  ;;  %v7168_v35 = vld [vmem:[#allocation6 + $0x6e4] ss:$16 sps:$4 sm:$0xff]   ;;  %v7112_v19 = vld [vmem:[#allocation6 + $0x460] ss:$16 sps:$4 sm:$0xff]  }
 0x234   :  { %v7117_v37 = vld [vmem:[#allocation6 + $0x444] ss:$16 sps:$4 sm:$0xff]   ;;  %v7166_v38 = vld [vmem:[#allocation6 + $0x6e0] ss:$16 sps:$4 sm:$0xff]  }
 0x235   :  { %4908 = vmatpush1.bf16.msra.mxu0 %v7037_v58  ;;  %v7174_v58 = vld [vmem:[#allocation6 + $0x6c4] ss:$16 sps:$4 sm:$0xff]  }
 0x236   :  { %4943 = vmatpush1.bf16.msra.mxu1 %v7034_v39  ;;  %4909 = vmatprep.subr.bf16.mxu0 %v7045_v8  ;;  %v7115_v39 = vld [vmem:[#allocation6 + $0x440] ss:$16 sps:$4 sm:$0xff]   ;;  %v7120_v8 = vld [vmem:[#allocation6 + $0x424] ss:$16 sps:$4 sm:$0xff]  }
 0x237   :  { %4944 = vmatprep.subr.bf16.mxu1 %v7042_v41  ;;  %v7172_v41 = vld [vmem:[#allocation6 + $0x6c0] ss:$16 sps:$4 sm:$0xff]  }
 0x239   :  { %4910 = vmatpush2.bf16.msra.mxu0 %v7043_v42  ;;  %v7180_v42 = vld [vmem:[#allocation6 + $0x6a4] ss:$16 sps:$4 sm:$0xff]  }
 0x23a   :  { %4945 = vmatpush1.bf16.msra.mxu1 %v7040_v43  ;;  %4911 = vmatprep.subr.bf16.mxu0 %v7051_v47  ;;  %v7118_v43 = vld [vmem:[#allocation6 + $0x420] ss:$16 sps:$4 sm:$0xff]   ;;  %v7123_v47 = vld [vmem:[#allocation6 + $0x404] ss:$16 sps:$4 sm:$0xff]  }
 0x23b   :  { %4946 = vmatprep.subr.bf16.mxu1 %v7048_v59  ;;  %v7178_v59 = vld [vmem:[#allocation6 + $0x6a0] ss:$16 sps:$4 sm:$0xff]  }
 0x23d   :  { %4912 = vmatpush2.bf16.msra.mxu0 %v7049_v36  ;;  %v7186_v36 = vld [vmem:[#allocation6 + $0x684] ss:$16 sps:$4 sm:$0xff]  }
 0x23e   :  { %4947 = vmatpush1.bf16.msra.mxu1 %v7046_v45  ;;  %4913 = vmatprep.subr.bf16.mxu0 %v7057_v46  ;;  %v7121_v45 = vld [vmem:[#allocation6 + $0x400] ss:$16 sps:$4 sm:$0xff]   ;;  %v7126_v46 = vld [vmem:[#allocation6 + $0x5e4] ss:$16 sps:$4 sm:$0xff]  }
 0x23f   :  { %4948 = vmatprep.subr.bf16.mxu1 %v7054_v48  ;;  %v7184_v48 = vld [vmem:[#allocation6 + $0x680] ss:$16 sps:$4 sm:$0xff]  }
 0x241   :  { %4914 = vmatpush2.bf16.msra.mxu0 %v7055_v49  ;;  %v7192_v49 = vld [vmem:[#allocation6 + $0x664] ss:$16 sps:$4 sm:$0xff]  }
 0x242   :  { %4949 = vmatpush1.bf16.msra.mxu1 %v7052_v53  ;;  %4915 = vmatprep.subr.bf16.mxu0 %v7063_v7  ;;  %v7124_v53 = vld [vmem:[#allocation6 + $0x5e0] ss:$16 sps:$4 sm:$0xff]   ;;  %v7129_v7 = vld [vmem:[#allocation6 + $0x5c4] ss:$16 sps:$4 sm:$0xff]  }
 0x243   :  { %4950 = vmatprep.subr.bf16.mxu1 %v7060_v50  ;;  %v7190_v50 = vld [vmem:[#allocation6 + $0x660] ss:$16 sps:$4 sm:$0xff]  }
 0x245   :  { %4916 = vmatpush2.bf16.msra.mxu0 %v7061_v51  ;;  %v7198_v51 = vld [vmem:[#allocation6 + $0x644] ss:$16 sps:$4 sm:$0xff]  }
 0x246   :  { %4951 = vmatpush1.bf16.msra.mxu1 %v7058_v5  ;;  %4917 = vmatprep.subr.bf16.mxu0 %v7069_v54  ;;  %v7127_v5 = vld [vmem:[#allocation6 + $0x5c0] ss:$16 sps:$4 sm:$0xff]   ;;  %v7132_v54 = vld [vmem:[#allocation6 + $0x5a4] ss:$16 sps:$4 sm:$0xff]  }
 0x247   :  { %4952 = vmatprep.subr.bf16.mxu1 %v7066_v52  ;;  %v7196_v52 = vld [vmem:[#allocation6 + $0x640] ss:$16 sps:$4 sm:$0xff]  }
 0x249   :  { %4918 = vmatpush2.bf16.msra.mxu0 %v7067_v57  ;;  %v7204_v57 = vld [vmem:[#allocation6 + $0x624] ss:$16 sps:$4 sm:$0xff]  }
 0x24a   :  { %4953 = vmatpush2.bf16.msra.mxu1 %v7064_v60  ;;  %4919 = vmatprep.subr.bf16.mxu0 %v7075_v56  ;;  %v7130_v56 = vld [vmem:[#allocation6 + $0x5a0] ss:$16 sps:$4 sm:$0xff]  }
 0x24b   :  { %4954 = vmatprep.subr.bf16.mxu1 %v7072_v29  ;;  %v7135_v29 = vld [vmem:[#allocation6 + $0x584] ss:$16 sps:$4 sm:$0xff]  }
 0x24d   :  { %4920 = vmatpush2.bf16.msra.mxu0 %v7073_v61  ;;  %v7202_v61 = vld [vmem:[#allocation6 + $0x620] ss:$16 sps:$4 sm:$0xff]  }
 0x24e   :  { %4955 = vmatpush2.bf16.msra.mxu1 %v7070_v0  ;;  %4921 = vmatprep.subr.bf16.mxu0 %v7081_v62  ;;  %v7210_v0 = vld [vmem:[#allocation6 + $0x604] ss:$16 sps:$4 sm:$0xff]  }
 0x24f   :  { %4956 = vmatprep.subr.bf16.mxu1 %v7078_v15  ;;  %v7133_v15 = vld [vmem:[#allocation6 + $0x580] ss:$16 sps:$4 sm:$0xff]  }
 0x251   :  { %4922 = vmatpush2.bf16.msra.mxu0 %v7079_v63  ;;  %v3001_v63 = vpop.f32.mrf.mxu0 }
 0x252   :  { %4957 = vmatpush2.bf16.msra.mxu1 %v7076_v22  ;;  %4923 = vmatprep.subr.bf16.mxu0 %v7087_v1  ;;  %v7138_v22 = vld [vmem:[#allocation6 + $0x564] ss:$16 sps:$4 sm:$0xff]   ;;  %v7208_v1 = vld [vmem:[#allocation6 + $0x600] ss:$16 sps:$4 sm:$0xff]  }
 0x253   :  { %4958 = vmatprep.subr.bf16.mxu1 %v7084_v12  ;;  %v7216_v12 = vld [vmem:[#allocation6 + $0x7e4] ss:$16 sps:$4 sm:$0xff]  }
 0x255   :  { %4924 = vmatpush2.bf16.msra.mxu0 %v7085_v3 }
 0x256   :  { %4959 = vmatpush2.bf16.msra.mxu1 %v7082_v40  ;;  %4979 = vmatprep.subr.bf16.mxu0 %v7099_v4  ;;  %v606_v40 = vsub.s32 5, %v7962_v18  ;;  %v7136_v4 = vld [vmem:[#allocation6 + $0x560] ss:$16 sps:$4 sm:$0xff]  }
 0x257   :  { %4960 = vmatprep.subr.bf16.mxu1 %v7090_v2  ;;  %v602_v2 = vsub.s32 4, %v7962_v18 }
 0x258   :  { %4926 = vmatmul.mubr.bf16.vlgmr.msra.gmra.mxu0 %v8013_v55 }
 0x259   :  { %4980 = vmatpush1.bf16.msra.mxu0 %v7097_v6  ;;  %v3003_v6 = vpop.f32.mrf.mxu0 }
 0x25a   :  { %4961 = vmatpush2.bf16.msra.mxu1 %v7088_v28  ;;  %4981 = vmatprep.subr.bf16.mxu0 %v7105_v9  ;;  %v7141_v28 = vld [vmem:[#allocation6 + $0x544] ss:$16 sps:$4 sm:$0xff]   ;;  %v7214_v9 = vld [vmem:[#allocation6 + $0x7e0] ss:$16 sps:$4 sm:$0xff]  }
 0x25b   :  { %4962 = vmatprep.subr.bf16.mxu1 %v7093_v10  ;;  %v7222_v10 = vld [vmem:[#allocation6 + $0x7c4] ss:$16 sps:$4 sm:$0xff]  }
 0x25d   :  { %4982 = vmatpush1.bf16.msra.mxu0 %v7103_v11 }
 0x25e   :  { %4963 = vmatpush2.bf16.msra.mxu1 %v7091_v13  ;;  %4983 = vmatprep.subr.bf16.mxu0 %v7108_v14  ;;  %v8060_v13 = vld [vmem:[#allocation4] sm:$0xff] }
 0x25f   :  { %4964 = vmatprep.subr.bf16.mxu1 %v7096_v16  ;;  %v607_v14 = vrot.slane %v8060_v13, %v606_v40  ;;  %v7139_v16 = vld [vmem:[#allocation6 + $0x540] ss:$16 sps:$4 sm:$0xff]   ;;  %v7252_v40 = vld [vmem:[#allocation6 + $0x724] ss:$16 sps:$4 sm:$0xff]  }
 0x261   :  { %4984 = vmatpush1.bf16.msra.mxu0 %v7106_v20  ;;  %v3044_v60 = vpop.f32.mrf.mxu1  ;;  %v603_v20 = vrot.slane %v8060_v13, %v602_v2 }
 0x262   :  { %4965 = vmatpush2.bf16.msra.mxu1 %v7094_v21  ;;  %4985 = vmatprep.subr.bf16.mxu0 %v7111_v23  ;;  %v3005_v21 = vpop.f32.mrf.mxu0  ;;  %v7144_v23 = vld [vmem:[#allocation6 + $0x524] ss:$16 sps:$4 sm:$0xff]  }
 0x263   :  { %4966 = vmatprep.subr.bf16.mxu1 %v7102_v27  ;;  %v3046_v62 = vpop.f32.mrf.mxu1  ;;  %v7220_v27 = vld [vmem:[#allocation6 + $0x7c0] ss:$16 sps:$4 sm:$0xff]  }
 0x265   :  { %4986 = vmatpush1.bf16.msra.mxu0 %v7109_v31  ;;  %v3048_v3 = vpop.f32.mrf.mxu1  ;;  %v7228_v31 = vld [vmem:[#allocation6 + $0x7a4] ss:$16 sps:$4 sm:$0xff]  }
 0x266   :  { %4967 = vmatpush2.bf16.msra.mxu1 %v7100_v32  ;;  %4987 = vmatprep.subr.bf16.mxu0 %v7114_v25  ;;  %v3004_v25 = vadd.f32 %v3003_v6, %v607_v14  ;;  %v7148_v6 = vld [vmem:[#allocation6 + $0xe8] ss:$16 sps:$4 sm:$0xff]  }
 0x267   :  { %5022 = vmatprep.subr.bf16.mxu1 %v7168_v35  ;;  %v3050_v11 = vpop.f32.mrf.mxu1  ;;  %v7142_v35 = vld [vmem:[#allocation6 + $0x520] ss:$16 sps:$4 sm:$0xff]  }
 0x269   :  { %4969 = vmatmul.mubr.bf16.vlgmr.msra.gmra.mxu1 %v8051_v24  ;;  %4988 = vmatpush1.bf16.msra.mxu0 %v7112_v19  ;;  %v3130_v32 = vpop.f32.mrf.mxu1  ;;  %v3002_v19 = vadd.f32 %v3001_v63, %v603_v20 }
 0x26a   :  { %4989 = vmatprep.subr.bf16.mxu0 %v7117_v37  ;;  %5023 = vmatpush1.bf16.msra.mxu1 %v7166_v38  ;;  %v3007_v37 = vpop.f32.mrf.mxu0  ;;  %v7147_v38 = vld [vmem:[#allocation6 + $0x504] ss:$16 sps:$4 sm:$0xff]  }
 0x26b   :  { %5024 = vmatprep.subr.bf16.mxu1 %v7174_v58  ;;  %v7226_v58 = vld [vmem:[#allocation6 + $0x7a0] ss:$16 sps:$4 sm:$0xff]  }
 0x26d   :  { %4990 = vmatpush1.bf16.msra.mxu0 %v7115_v39  ;;  %v3006_v39 = vadd.f32 %v3005_v21, %v603_v20  ;;  %v7256_v20 = vld [vmem:[#allocation6 + $0x700] ss:$16 sps:$4 sm:$0xff]   ;;  %v7264_v21 = vld [vmem:[#allocation6 + $0x2ec] ss:$16 sps:$4 sm:$0xff]  }
 0x26e   :  { %4991 = vmatprep.subr.bf16.mxu0 %v7120_v8  ;;  %5025 = vmatpush1.bf16.msra.mxu1 %v7172_v41  ;;  %v7234_v8 = vld [vmem:[#allocation6 + $0x784] ss:$16 sps:$4 sm:$0xff]   ;;  %v3132_v41 = vpop.f32.mrf.mxu1 }
 0x26f   :  { %5026 = vmatprep.subr.bf16.mxu1 %v7180_v42 }
 0x271   :  { %4992 = vmatpush1.bf16.msra.mxu0 %v7118_v43  ;;  %v3047_v43 = vadd.f32 %v3046_v62, %v3004_v25  ;;  %v7160_v25 = vld [vmem:[#allocation6 + $0x68] ss:$16 sps:$4 sm:$0xff]  }
 0x272   :  { %4993 = vmatprep.subr.bf16.mxu0 %v7123_v47  ;;  %5027 = vmatpush1.bf16.msra.mxu1 %v7178_v59  ;;  %v7145_v47 = vld [vmem:[#allocation6 + $0x500] ss:$16 sps:$4 sm:$0xff]   ;;  %v3045_v59 = vadd.f32 %v3044_v60, %v3002_v19  ;;  %v7171_v19 = vld [vmem:[#allocation6 + $0x2c] ss:$16 sps:$4 sm:$0xff]  }
 0x273   :  { %5028 = vmatprep.subr.bf16.mxu1 %v7186_v36  ;;  %v7238_v60 = vld [vmem:[#allocation6 + $0x760] ss:$16 sps:$4 sm:$0xff]  }
 0x275   :  { %4994 = vmatpush1.bf16.msra.mxu0 %v7121_v45  ;;  %v7150_v45 = vld [vmem:[#allocation6 + $0xec] ss:$16 sps:$4 sm:$0xff]  }
 0x276   :  { %4995 = vmatprep.subr.bf16.mxu0 %v7126_v46  ;;  %5029 = vmatpush1.bf16.msra.mxu1 %v7184_v48  ;;  %v7232_v46 = vld [vmem:[#allocation6 + $0x780] ss:$16 sps:$4 sm:$0xff]   ;;  %v3008_v48 = vadd.f32 %v3007_v37, %v607_v14  ;;  %v7151_v14 = vld [vmem:[#allocation6 + $0xc8] ss:$16 sps:$4 sm:$0xff]  }
 0x277   :  { %5030 = vmatprep.subr.bf16.mxu1 %v7192_v49  ;;  %v3049_v49 = vadd.f32 %v3048_v3, %v3006_v39  ;;  %v7169_v37 = vld [vmem:[#allocation6 + $0x28] ss:$16 sps:$4 sm:$0xff]   ;;  %v7183_v39 = vld [vmem:[#allocation6 + $0x1ec] ss:$16 sps:$4 sm:$0xff]  }
 0x279   :  { %4996 = vmatpush2.bf16.msra.mxu0 %v7124_v53 }
 0x27a   :  { %4997 = vmatprep.subr.bf16.mxu0 %v7129_v7  ;;  %5031 = vmatpush1.bf16.msra.mxu1 %v7190_v50  ;;  %v7240_v7 = vld [vmem:[#allocation6 + $0x764] ss:$16 sps:$4 sm:$0xff]   ;;  %v3134_v50 = vpop.f32.mrf.mxu1 }
 0x27b   :  { %5032 = vmatprep.subr.bf16.mxu1 %v7198_v51 }
 0x27c   :  { %v3136_v62 = vpop.f32.mrf.mxu1 }
 0x27d   :  { %4998 = vmatpush2.bf16.msra.mxu0 %v7127_v5 }
 0x27e   :  { %4999 = vmatprep.subr.bf16.mxu0 %v7132_v54  ;;  %5033 = vmatpush1.bf16.msra.mxu1 %v7196_v52  ;;  %v3051_v54 = vadd.f32 %v3050_v11, %v3008_v48  ;;  %v7258_v11 = vld [vmem:[#allocation6 + $0x704] ss:$16 sps:$4 sm:$0xff]   ;;  %v7213_v48 = vld [vmem:[#allocation6 + $0x14c] ss:$16 sps:$4 sm:$0xff]  }
 0x27f   :  { %5034 = vmatprep.subr.bf16.mxu1 %v7204_v57 }
 0x281   :  { %5000 = vmatpush2.bf16.msra.mxu0 %v7130_v56 }
 0x282   :  { %5001 = vmatprep.subr.bf16.mxu0 %v7135_v29  ;;  %5035 = vmatpush1.bf16.msra.mxu1 %v7202_v61 }
 0x283   :  { %5036 = vmatprep.subr.bf16.mxu1 %v7210_v0  ;;  %v7246_v0 = vld [vmem:[#allocation6 + $0x744] ss:$16 sps:$4 sm:$0xff]  }
 0x285   :  { %5002 = vmatpush2.bf16.msra.mxu0 %v7133_v15 }
 0x286   :  { %5003 = vmatprep.subr.bf16.mxu0 %v7138_v22  ;;  %5037 = vmatpush1.bf16.msra.mxu1 %v7208_v1  ;;  %v7244_v1 = vld [vmem:[#allocation6 + $0x740] ss:$16 sps:$4 sm:$0xff]  }
 0x287   :  { %5038 = vmatprep.subr.bf16.mxu1 %v7216_v12 }
 0x289   :  { %5004 = vmatpush2.bf16.msra.mxu0 %v7136_v4 }
 0x28a   :  { %5005 = vmatprep.subr.bf16.mxu0 %v7141_v28  ;;  %5039 = vmatpush2.bf16.msra.mxu1 %v7214_v9  ;;  %v7153_v9 = vld [vmem:[#allocation6 + $0xcc] ss:$16 sps:$4 sm:$0xff]  }
 0x28b   :  { %5040 = vmatprep.subr.bf16.mxu1 %v7222_v10  ;;  %v7250_v10 = vld [vmem:[#allocation6 + $0x720] ss:$16 sps:$4 sm:$0xff]  }
 0x28d   :  { %5006 = vmatpush2.bf16.msra.mxu0 %v7139_v16  ;;  %v7156_v16 = vld [vmem:[#allocation6 + $0xac] ss:$16 sps:$4 sm:$0xff]  }
 0x28e   :  { %5007 = vmatprep.subr.bf16.mxu0 %v7144_v23  ;;  %5041 = vmatpush2.bf16.msra.mxu1 %v7220_v27  ;;  %v7154_v23 = vld [vmem:[#allocation6 + $0xa8] ss:$16 sps:$4 sm:$0xff]   ;;  %v7159_v27 = vld [vmem:[#allocation6 + $0x8c] ss:$16 sps:$4 sm:$0xff]  }
 0x28f   :  { %5042 = vmatprep.subr.bf16.mxu1 %v7228_v31  ;;  %v7157_v31 = vld [vmem:[#allocation6 + $0x88] ss:$16 sps:$4 sm:$0xff]  }
 0x290   :  { %v3087_v42 = vpop.f32.mrf.mxu0 }
 0x291   :  { %5008 = vmatpush2.bf16.msra.mxu0 %v7142_v35  ;;  %v3088_v51 = vadd.f32 %v3087_v42, %v3045_v59  ;;  %v7163_v35 = vld [vmem:[#allocation6 + $0x48] ss:$16 sps:$4 sm:$0xff]   ;;  %v7201_v59 = vld [vmem:[#allocation6 + $0x18c] ss:$16 sps:$4 sm:$0xff]  }
 0x292   :  { %v3089_v36 = vpop.f32.mrf.mxu0  ;;  %5009 = vmatprep.subr.bf16.mxu0 %v7147_v38  ;;  %5043 = vmatpush2.bf16.msra.mxu1 %v7226_v58  ;;  %v7177_v38 = vld [vmem:[#allocation6 + $0xc] ss:$16 sps:$4 sm:$0xff]   ;;  %v7175_v58 = vld [vmem:[#allocation6 + $0x8] ss:$16 sps:$4 sm:$0xff]  }
 0x293   :  { %v3090_v53 = vadd.f32 %v3089_v36, %v3047_v43  ;;  %5044 = vmatprep.subr.bf16.mxu1 %v7234_v8  ;;  %v3131_v15 = vadd.f32 %v3130_v32, %v3088_v51  ;;  %v7162_v32 = vld [vmem:[#allocation6 + $0x6c] ss:$16 sps:$4 sm:$0xff]   ;;  %v7181_v8 = vld [vmem:[#allocation6 + $0x1e8] ss:$16 sps:$4 sm:$0xff]  }
 0x294   :  { %v3091_v5 = vpop.f32.mrf.mxu0  ;;  %v7187_v42 = vld [vmem:[#allocation6 + $0x1c8] ss:$16 sps:$4 sm:$0xff]   ;;  %v7195_v43 = vld [vmem:[#allocation6 + $0x1ac] ss:$16 sps:$4 sm:$0xff]  }
 0x295   :  { %v3092_v52 = vadd.f32 %v3091_v5, %v3049_v49  ;;  %5010 = vmatpush2.bf16.msra.mxu0 %v7145_v47  ;;  %v3133_v56 = vadd.f32 %v3132_v41, %v3090_v53  ;;  %v3315_v4 = vmax.f32 %v3131_v15, 0.0  ;;  %v7189_v41 = vld [vmem:[#allocation6 + $0x1cc] ss:$16 sps:$4 sm:$0xff]   ;;  %v7193_v47 = vld [vmem:[#allocation6 + $0x1a8] ss:$16 sps:$4 sm:$0xff]  }
 0x296   :  { %v3093_v57 = vpop.f32.mrf.mxu0  ;;  %5065 = vmatprep.subr.bf16.mxu0 %v7150_v45  ;;  %5045 = vmatpush2.bf16.msra.mxu1 %v7232_v46  ;;  %v7199_v36 = vld [vmem:[#allocation6 + $0x188] ss:$16 sps:$4 sm:$0xff]   ;;  %v7207_v45 = vld [vmem:[#allocation6 + $0x16c] ss:$16 sps:$4 sm:$0xff]  }
 0x297   :  { %v3135_v29 = vadd.f32 %v3134_v50, %v3092_v52  ;;  %v3094_v61 = vadd.f32 %v3093_v57, %v3051_v54  ;;  %5046 = vmatprep.subr.bf16.mxu1 %v7240_v7  ;;  %v3316_v12 = vmax.f32 %v3133_v56, 0.0  ;;  %v7205_v46 = vld [vmem:[#allocation6 + $0x168] ss:$16 sps:$4 sm:$0xff]   ;;  %v7219_v53 = vld [vmem:[#allocation6 + $0x12c] ss:$16 sps:$4 sm:$0xff]  }
 0x298   :  { %v7211_v49 = vld [vmem:[#allocation6 + $0x148] ss:$16 sps:$4 sm:$0xff]   ;;  %v7225_v50 = vld [vmem:[#allocation6 + $0x10c] ss:$16 sps:$4 sm:$0xff]  }
 0x299   :  { %v3137_v63 = vadd.f32 %v3136_v62, %v3094_v61  ;;  %v3323_v22 = vmax.f32 %v3135_v29, 0.0  ;;  %v7217_v7 = vld [vmem:[#allocation6 + $0x128] ss:$16 sps:$4 sm:$0xff]   ;;  %v7231_v54 = vld [vmem:[#allocation6 + $0x4ec] ss:$16 sps:$4 sm:$0xff]   ;;  %v610_v62 = vsub.s32 6, %v7962_v18 }
 0x29a   :  { %5047 = vmatpush2.bf16.msra.mxu1 %v7238_v60  ;;  %v7223_v5 = vld [vmem:[#allocation6 + $0x108] ss:$16 sps:$4 sm:$0xff]   ;;  %v7237_v56 = vld [vmem:[#allocation6 + $0x4cc] ss:$16 sps:$4 sm:$0xff]  }
 0x29b   :  { %v3324_v3 = vmax.f32 %v3137_v63, 0.0  ;;  %5048 = vmatprep.subr.bf16.mxu1 %v7246_v0  ;;  %v8066_v28 = vpack.c.bf16 %v3323_v22, %v3315_v4  ;;  %v7229_v60 = vld [vmem:[#allocation6 + $0x4e8] ss:$16 sps:$4 sm:$0xff]   ;;  %v614_v0 = vsub.s32 7, %v7962_v18  ;;  %v7243_v63 = vld [vmem:[#allocation6 + $0x4ac] ss:$16 sps:$4 sm:$0xff]  }
 0x29c   :  { %v7235_v15 = vld [vmem:[#allocation6 + $0x4c8] ss:$16 sps:$4 sm:$0xff]  }
 0x29d   :  { %v8064_v2 = vpack.c.bf16 %v3324_v3, %v3316_v12  ;;  %v615_v12 = vrot.slane %v8060_v13, %v614_v0  ;;  %v611_v3 = vrot.slane %v8060_v13, %v610_v62  ;;  %v7241_v4 = vld [vmem:[#allocation6 + $0x4a8] ss:$16 sps:$4 sm:$0xff]   ;;  %v7285_v62 = vld [vmem:[#allocation6 + $0x5cc] ss:$16 sps:$4 sm:$0xff]  }
 0x29e   :  { %5049 = vmatpush2.bf16.msra.mxu1 %v7244_v1  ;;  %v7274_v0 = vld [vmem:[#allocation6 + $0x2a8] ss:$16 sps:$4 sm:$0xff]  }
 0x29f   :  { %5011 = vmatprep.mubr.bf16.mxu0 %v8064_v2  ;;  %5050 = vmatprep.subr.bf16.mxu1 %v7252_v40 }
 0x2a0   :  { %5012 = vmatmul.mubr.bf16.vlgmr.msra.gmra.mxu0 %v8066_v28 }
 0x2a1   :  { %5066 = vmatpush1.bf16.msra.mxu0 %v7148_v6  ;;  %5097 = vmatprep.mubr.bf16.mxu0 %v8038_v34  ;;  %v7165_v34 = vld [vmem:[#allocation6 + $0x4c] ss:$16 sps:$4 sm:$0xff]  }
 0x2a2   :  { %5067 = vmatprep.subr.bf16.mxu0 %v7153_v9  ;;  %5051 = vmatpush2.bf16.msra.mxu1 %v7250_v10  ;;  %v7249_v6 = vld [vmem:[#allocation6 + $0x48c] ss:$16 sps:$4 sm:$0xff]  }
 0x2a3   :  { %5052 = vmatprep.subr.bf16.mxu1 %v7258_v11 }
 0x2a5   :  { %5068 = vmatpush1.bf16.msra.mxu0 %v7151_v14 }
 0x2a6   :  { %5069 = vmatprep.subr.bf16.mxu0 %v7156_v16  ;;  %5053 = vmatpush2.bf16.msra.mxu1 %v7256_v20 }
 0x2a7   :  { %5108 = vmatprep.subr.bf16.mxu1 %v7264_v21  ;;  %v7255_v21 = vld [vmem:[#allocation6 + $0x46c] ss:$16 sps:$4 sm:$0xff]  }
 0x2a9   :  { %5070 = vmatpush1.bf16.msra.mxu0 %v7154_v23  ;;  %v3173_v52 = vpop.f32.mrf.mxu1 }
 0x2aa   :  { %5071 = vmatprep.subr.bf16.mxu0 %v7159_v27  ;;  %v3174_v10 = vadd.f32 %v3173_v52, %v611_v3  ;;  %v7273_v52 = vld [vmem:[#allocation6 + $0x40c] ss:$16 sps:$4 sm:$0xff]  }
 0x2ab   :  { %v3175_v29 = vpop.f32.mrf.mxu1 }
 0x2ac   :  { %v3176_v9 = vadd.f32 %v3175_v29, %v615_v12  ;;  %v7276_v29 = vld [vmem:[#allocation6 + $0x2ac] ss:$16 sps:$4 sm:$0xff]  }
 0x2ad   :  { %5072 = vmatpush1.bf16.msra.mxu0 %v7157_v31  ;;  %v3177_v22 = vpop.f32.mrf.mxu1 }
 0x2ae   :  { %5073 = vmatprep.subr.bf16.mxu0 %v7162_v32  ;;  %v3178_v16 = vadd.f32 %v3177_v22, %v611_v3  ;;  %v7280_v22 = vld [vmem:[#allocation6 + $0x288] ss:$16 sps:$4 sm:$0xff]  }
 0x2af   :  { %v7286_v3 = vld [vmem:[#allocation6 + $0x268] ss:$16 sps:$4 sm:$0xff]  }
 0x2b1   :  { %5074 = vmatpush1.bf16.msra.mxu0 %v7160_v25 }
 0x2b2   :  { %5075 = vmatprep.subr.bf16.mxu0 %v7165_v34 }
 0x2b5   :  { %5076 = vmatpush1.bf16.msra.mxu0 %v7163_v35 }
 0x2b6   :  { %5077 = vmatprep.subr.bf16.mxu0 %v7171_v19  ;;  %v7253_v19 = vld [vmem:[#allocation6 + $0x468] ss:$16 sps:$4 sm:$0xff]  }
 0x2b9   :  { %5078 = vmatpush1.bf16.msra.mxu0 %v7169_v37 }
 0x2ba   :  { %5079 = vmatprep.subr.bf16.mxu0 %v7177_v38 }
 0x2bd   :  { %5080 = vmatpush1.bf16.msra.mxu0 %v7175_v58  ;;  %v7261_v58 = vld [vmem:[#allocation6 + $0x44c] ss:$16 sps:$4 sm:$0xff]  }
 0x2be   :  { %5081 = vmatprep.subr.bf16.mxu0 %v7183_v39 }
 0x2c1   :  { %5082 = vmatpush2.bf16.msra.mxu0 %v7181_v8 }
 0x2c2   :  { %5083 = vmatprep.subr.bf16.mxu0 %v7189_v41 }
 0x2c5   :  { %5084 = vmatpush2.bf16.msra.mxu0 %v7187_v42 }
 0x2c6   :  { %5085 = vmatprep.subr.bf16.mxu0 %v7195_v43 }
 0x2c9   :  { %5086 = vmatpush2.bf16.msra.mxu0 %v7193_v47 }
 0x2ca   :  { %5087 = vmatprep.subr.bf16.mxu0 %v7201_v59  ;;  %v7259_v59 = vld [vmem:[#allocation6 + $0x448] ss:$16 sps:$4 sm:$0xff]  }
 0x2cd   :  { %5088 = vmatpush2.bf16.msra.mxu0 %v7199_v36 }
 0x2ce   :  { %5089 = vmatprep.subr.bf16.mxu0 %v7207_v45  ;;  %v7267_v45 = vld [vmem:[#allocation6 + $0x42c] ss:$16 sps:$4 sm:$0xff]  }
 0x2d0   :  { %v3216_v51 = vpop.f32.mrf.mxu0 }
 0x2d1   :  { %5090 = vmatpush2.bf16.msra.mxu0 %v7205_v46  ;;  %v3217_v23 = vadd.f32 %v3216_v51, %v3174_v10  ;;  %v7262_v51 = vld [vmem:[#allocation6 + $0x2e8] ss:$16 sps:$4 sm:$0xff]   ;;  %v7300_v10 = vld [vmem:[#allocation6 + $0x22c] ss:$16 sps:$4 sm:$0xff]  }
 0x2d2   :  { %5091 = vmatprep.subr.bf16.mxu0 %v7213_v48  ;;  %v3218_v57 = vpop.f32.mrf.mxu0 }
 0x2d3   :  { %v3219_v20 = vadd.f32 %v3218_v57, %v3176_v9  ;;  %v7271_v57 = vld [vmem:[#allocation6 + $0x408] ss:$16 sps:$4 sm:$0xff]   ;;  %v7303_v9 = vld [vmem:[#allocation6 + $0x56c] ss:$16 sps:$4 sm:$0xff]  }
 0x2d4   :  { %v3220_v61 = vpop.f32.mrf.mxu0 }
 0x2d5   :  { %5092 = vmatpush2.bf16.msra.mxu0 %v7211_v49  ;;  %v3221_v13 = vadd.f32 %v3220_v61, %v3178_v16  ;;  %v7277_v61 = vld [vmem:[#allocation6 + $0x5e8] ss:$16 sps:$4 sm:$0xff]   ;;  %v7306_v16 = vld [vmem:[#allocation6 + $0x20c] ss:$16 sps:$4 sm:$0xff]  }
 0x2d6   :  { %5093 = vmatprep.subr.bf16.mxu0 %v7219_v53  ;;  %v3222_v1 = vpop.f32.mrf.mxu0 }
 0x2d8   :  { %v3302_v40 = vpop.f32.mrf.mxu0 }
 0x2d9   :  { %5094 = vmatpush2.bf16.msra.mxu0 %v7217_v7  ;;  %v7265_v7 = vld [vmem:[#allocation6 + $0x428] ss:$16 sps:$4 sm:$0xff]  }
 0x2da   :  { %5095 = vmatprep.subr.bf16.mxu0 %v7225_v50  ;;  %v3304_v11 = vpop.f32.mrf.mxu0 }
 0x2dc   :  { %v3306_v34 = vpop.f32.mrf.mxu0 }
 0x2dd   :  { %5096 = vmatpush2.bf16.msra.mxu0 %v7223_v5 }
 0x2de   :  { %5151 = vmatprep.subr.bf16.mxu0 %v7231_v54  ;;  %v3308_v47 = vpop.f32.mrf.mxu0  ;;  %v7270_v54 = vld [vmem:[#allocation6 + $0x2cc] ss:$16 sps:$4 sm:$0xff]  }
 0x2e0   :  { %5098 = vmatmul.mubr.bf16.vlgmr.msra.gmra.mxu0 %v8013_v55  ;;  %v3179_v55 = vpop.f32.mrf.mxu1 }
 0x2e1   :  { %5152 = vmatpush1.bf16.msra.mxu0 %v7229_v60  ;;  %5183 = vmatprep.mubr.bf16.mxu0 %v8064_v2  ;;  %v7247_v2 = vld [vmem:[#allocation6 + $0x488] ss:$16 sps:$4 sm:$0xff]   ;;  %v3180_v31 = vadd.f32 %v3179_v55, %v615_v12 }
 0x2e2   :  { %5153 = vmatprep.subr.bf16.mxu0 %v7237_v56  ;;  %v7268_v60 = vld [vmem:[#allocation6 + $0x2c8] ss:$16 sps:$4 sm:$0xff]   ;;  %v7279_v56 = vld [vmem:[#allocation6 + $0x5ec] ss:$16 sps:$4 sm:$0xff]  }
 0x2e3   :  { %v3223_v37 = vadd.f32 %v3222_v1, %v3180_v31  ;;  %v7291_v1 = vld [vmem:[#allocation6 + $0x5ac] ss:$16 sps:$4 sm:$0xff]   ;;  %v7289_v12 = vld [vmem:[#allocation6 + $0x5a8] ss:$16 sps:$4 sm:$0xff]  }
 0x2e4   :  { %v7292_v55 = vld [vmem:[#allocation6 + $0x248] ss:$16 sps:$4 sm:$0xff]  }
 0x2e5   :  { %5154 = vmatpush1.bf16.msra.mxu0 %v7235_v15  ;;  %v7282_v15 = vld [vmem:[#allocation6 + $0x28c] ss:$16 sps:$4 sm:$0xff]   ;;  %v7313_v31 = vld [vmem:[#allocation6 + $0x528] ss:$16 sps:$4 sm:$0xff]  }
 0x2e6   :  { %5155 = vmatprep.subr.bf16.mxu0 %v7243_v63  ;;  %v7283_v63 = vld [vmem:[#allocation6 + $0x5c8] ss:$16 sps:$4 sm:$0xff]  }
 0x2e9   :  { %v3259_v14 = vpop.f32.mrf.mxu1  ;;  %5156 = vmatpush1.bf16.msra.mxu0 %v7241_v4  ;;  %v7294_v4 = vld [vmem:[#allocation6 + $0x24c] ss:$16 sps:$4 sm:$0xff]  }
 0x2ea   :  { %5157 = vmatprep.subr.bf16.mxu0 %v7249_v6  ;;  %v3260_v25 = vadd.f32 %v3259_v14, %v3217_v23  ;;  %v7295_v6 = vld [vmem:[#allocation6 + $0x588] ss:$16 sps:$4 sm:$0xff]   ;;  %v7315_v23 = vld [vmem:[#allocation6 + $0x52c] ss:$16 sps:$4 sm:$0xff]  }
 0x2eb   :  { %v3261_v27 = vpop.f32.mrf.mxu1  ;;  %v7298_v14 = vld [vmem:[#allocation6 + $0x228] ss:$16 sps:$4 sm:$0xff]  }
 0x2ec   :  { %v3262_v32 = vadd.f32 %v3261_v27, %v3219_v20  ;;  %v3303_v43 = vadd.f32 %v3302_v40, %v3260_v25  ;;  %v7297_v40 = vld [vmem:[#allocation6 + $0x58c] ss:$16 sps:$4 sm:$0xff]   ;;  %v7307_v20 = vld [vmem:[#allocation6 + $0x548] ss:$16 sps:$4 sm:$0xff]  }
 0x2ed   :  { %v3263_v35 = vpop.f32.mrf.mxu1  ;;  %5158 = vmatpush1.bf16.msra.mxu0 %v7247_v2  ;;  %v7309_v2 = vld [vmem:[#allocation6 + $0x54c] ss:$16 sps:$4 sm:$0xff]  }
 0x2ee   :  { %v3264_v38 = vadd.f32 %v3263_v35, %v3221_v13  ;;  %5159 = vmatprep.subr.bf16.mxu0 %v7255_v21  ;;  %v3305_v8 = vadd.f32 %v3304_v11, %v3262_v32  ;;  %v3317_v53 = vmax.f32 %v3303_v43, 0.0  ;;  %v7301_v11 = vld [vmem:[#allocation6 + $0x568] ss:$16 sps:$4 sm:$0xff]   ;;  %v7312_v27 = vld [vmem:[#allocation6 + $0x3ec] ss:$16 sps:$4 sm:$0xff]  }
 0x2ef   :  { %v3265_v39 = vpop.f32.mrf.mxu1  ;;  %v7304_v21 = vld [vmem:[#allocation6 + $0x208] ss:$16 sps:$4 sm:$0xff]   ;;  %v7321_v32 = vld [vmem:[#allocation6 + $0x50c] ss:$16 sps:$4 sm:$0xff]  }
 0x2f0   :  { %v3307_v41 = vadd.f32 %v3306_v34, %v3264_v38  ;;  %v3266_v42 = vadd.f32 %v3265_v39, %v3223_v37  ;;  %v3318_v48 = vmax.f32 %v3305_v8, 0.0  ;;  %v7310_v13 = vld [vmem:[#allocation6 + $0x3e8] ss:$16 sps:$4 sm:$0xff]   ;;  %v7318_v25 = vld [vmem:[#allocation6 + $0x3cc] ss:$16 sps:$4 sm:$0xff]  }
 0x2f1   :  { %5160 = vmatpush1.bf16.msra.mxu0 %v7253_v19  ;;  %v7319_v34 = vld [vmem:[#allocation6 + $0x508] ss:$16 sps:$4 sm:$0xff]   ;;  %v7324_v37 = vld [vmem:[#allocation6 + $0x3ac] ss:$16 sps:$4 sm:$0xff]  }
 0x2f2   :  { %v3309_v36 = vadd.f32 %v3308_v47, %v3266_v42  ;;  %5161 = vmatprep.subr.bf16.mxu0 %v7261_v58  ;;  %v3325_v46 = vmax.f32 %v3307_v41, 0.0  ;;  %v7316_v35 = vld [vmem:[#allocation6 + $0x3c8] ss:$16 sps:$4 sm:$0xff]   ;;  %v7388_v38 = vld [vmem:[#allocation9 + $0x70] ss:$8 sps:$4 sm:$0xff]  }
 0x2f3   :  { %v7390_v19 = vld [vmem:[#allocation9 + $0x74] ss:$8 sps:$4 sm:$0xff]   ;;  %v7393_v39 = vld [vmem:[#allocation9 + $0x64] ss:$8 sps:$4 sm:$0xff]   ;;  %v7327_v8 = vld [vmem:[#allocation6 + $0x38c] ss:$16 sps:$4 sm:$0xff]  }
 0x2f4   :  { %v3326_v49 = vmax.f32 %v3309_v36, 0.0  ;;  %v8079_v5 = vpack.c.bf16 %v3325_v46, %v3317_v53  ;;  %v7322_v58 = vld [vmem:[#allocation6 + $0x3a8] ss:$16 sps:$4 sm:$0xff]   ;;  %v7391_v41 = vld [vmem:[#allocation9 + $0x60] ss:$8 sps:$4 sm:$0xff]  }
 0x2f5   :  { %5162 = vmatpush1.bf16.msra.mxu0 %v7259_v59  ;;  %v7325_v42 = vld [vmem:[#allocation6 + $0x388] ss:$16 sps:$4 sm:$0xff]   ;;  %v7330_v47 = vld [vmem:[#allocation6 + $0x36c] ss:$16 sps:$4 sm:$0xff]  }
 0x2f6   :  { %v8077_v50 = vpack.c.bf16 %v3326_v49, %v3318_v48  ;;  %5163 = vmatprep.subr.bf16.mxu0 %v7267_v45  ;;  %v7396_v43 = vld [vmem:[#allocation9 + $0x54] ss:$8 sps:$4 sm:$0xff]   ;;  %v7394_v59 = vld [vmem:[#allocation9 + $0x50] ss:$8 sps:$4 sm:$0xff]   ;;  %v7399_v45 = vld [vmem:[#allocation9 + $0x44] ss:$8 sps:$4 sm:$0xff]  }
 0x2f7   :  { %v7328_v36 = vld [vmem:[#allocation6 + $0x368] ss:$16 sps:$4 sm:$0xff]   ;;  %v7333_v46 = vld [vmem:[#allocation6 + $0x34c] ss:$16 sps:$4 sm:$0xff]  }
 0x2f8   :  { %5054 = vmatprep.mubr.bf16.mxu1 %v8077_v50  ;;  %v7397_v48 = vld [vmem:[#allocation9 + $0x40] ss:$8 sps:$4 sm:$0xff]   ;;  %v7402_v49 = vld [vmem:[#allocation9 + $0x34] ss:$8 sps:$4 sm:$0xff]  }
 0x2f9   :  { %5055 = vmatmul.mubr.bf16.vlgmr.msra.gmra.mxu1 %v8079_v5  ;;  %5164 = vmatpush1.bf16.msra.mxu0 %v7265_v7  ;;  %v7336_v53 = vld [vmem:[#allocation6 + $0x32c] ss:$16 sps:$4 sm:$0xff]  }
 0x2fa   :  { %5109 = vmatpush1.bf16.msra.mxu1 %v7262_v51  ;;  %5140 = vmatprep.mubr.bf16.mxu1 %v8053_v33  ;;  %v7288_v33 = vld [vmem:[#allocation6 + $0x26c] ss:$16 sps:$4 sm:$0xff]   ;;  %v7334_v51 = vld [vmem:[#allocation6 + $0x328] ss:$16 sps:$4 sm:$0xff]  }
 0x2fb   :  { %5110 = vmatprep.subr.bf16.mxu1 %v7270_v54  ;;  %5165 = vmatprep.subr.bf16.mxu0 %v7273_v52  ;;  %v7400_v7 = vld [vmem:[#allocation9 + $0x30] ss:$8 sps:$4 sm:$0xff]   ;;  %v7405_v54 = vld [vmem:[#allocation9 + $0x24] ss:$8 sps:$4 sm:$0xff]  }
 0x2fc   :  { %v7339_v52 = vld [vmem:[#allocation6 + $0x30c] ss:$16 sps:$4 sm:$0xff]  }
 0x2fd   :  { %5166 = vmatpush1.bf16.msra.mxu0 %v7271_v57  ;;  %v7403_v57 = vld [vmem:[#allocation9 + $0x20] ss:$8 sps:$4 sm:$0xff]  }
 0x2fe   :  { %5111 = vmatpush1.bf16.msra.mxu1 %v7268_v60  ;;  %5167 = vmatprep.subr.bf16.mxu0 %v7279_v56  ;;  %v7337_v60 = vld [vmem:[#allocation6 + $0x308] ss:$16 sps:$4 sm:$0xff]  }
 0x2ff   :  { %5112 = vmatprep.subr.bf16.mxu1 %v7276_v29  ;;  %v7408_v56 = vld [vmem:[#allocation9 + $0x14] ss:$8 sps:$4 sm:$0xff]   ;;  %v7342_v29 = vld [vmem:[#allocation6 + $0x6ec] ss:$16 sps:$4 sm:$0xff]  }
 0x301   :  { %5168 = vmatpush2.bf16.msra.mxu0 %v7277_v61  ;;  %v7406_v61 = vld [vmem:[#allocation9 + $0x10] ss:$8 sps:$4 sm:$0xff]  }
 0x302   :  { %5113 = vmatpush1.bf16.msra.mxu1 %v7274_v0  ;;  %5169 = vmatprep.subr.bf16.mxu0 %v7285_v62  ;;  %v7340_v0 = vld [vmem:[#allocation6 + $0x6e8] ss:$16 sps:$4 sm:$0xff]   ;;  %v7345_v62 = vld [vmem:[#allocation6 + $0x6cc] ss:$16 sps:$4 sm:$0xff]  }
 0x303   :  { %5114 = vmatprep.subr.bf16.mxu1 %v7282_v15  ;;  %v7411_v15 = vld [vmem:[#allocation9 + $0x4] ss:$8 sps:$4 sm:$0xff]  }
 0x305   :  { %5170 = vmatpush2.bf16.msra.mxu0 %v7283_v63  ;;  %v7409_v63 = vld [vmem:[#allocation9] ss:$8 sps:$4 sm:$0xff]  }
 0x306   :  { %5115 = vmatpush1.bf16.msra.mxu1 %v7280_v22  ;;  %5171 = vmatprep.subr.bf16.mxu0 %v7291_v1  ;;  %v7343_v22 = vld [vmem:[#allocation6 + $0x6c8] ss:$16 sps:$4 sm:$0xff]  }
 0x307   :  { %5116 = vmatprep.subr.bf16.mxu1 %v7288_v33  ;;  %v7414_v1 = vld [vmem:[#allocation9 + $0xf4] ss:$8 sps:$4 sm:$0xff]   ;;  %v7348_v33 = vld [vmem:[#allocation6 + $0x6ac] ss:$16 sps:$4 sm:$0xff]  }
 0x309   :  { %5172 = vmatpush2.bf16.msra.mxu0 %v7289_v12  ;;  %v7412_v12 = vld [vmem:[#allocation9 + $0xf0] ss:$8 sps:$4 sm:$0xff]  }
 0x30a   :  { %5117 = vmatpush1.bf16.msra.mxu1 %v7286_v3  ;;  %5173 = vmatprep.subr.bf16.mxu0 %v7297_v40  ;;  %v7346_v3 = vld [vmem:[#allocation6 + $0x6a8] ss:$16 sps:$4 sm:$0xff]  }
 0x30b   :  { %5118 = vmatprep.subr.bf16.mxu1 %v7294_v4  ;;  %v7417_v40 = vld [vmem:[#allocation9 + $0xe4] ss:$8 sps:$4 sm:$0xff]   ;;  %v7351_v4 = vld [vmem:[#allocation6 + $0x68c] ss:$16 sps:$4 sm:$0xff]  }
 0x30d   :  { %5174 = vmatpush2.bf16.msra.mxu0 %v7295_v6  ;;  %v7349_v6 = vld [vmem:[#allocation6 + $0x688] ss:$16 sps:$4 sm:$0xff]  }
 0x30e   :  { %5119 = vmatpush1.bf16.msra.mxu1 %v7292_v55  ;;  %5175 = vmatprep.subr.bf16.mxu0 %v7303_v9  ;;  %v7420_v55 = vld [vmem:[#allocation9 + $0xd4] ss:$8 sps:$4 sm:$0xff]   ;;  %v7418_v9 = vld [vmem:[#allocation9 + $0xd0] ss:$8 sps:$4 sm:$0xff]  }
 0x30f   :  { %5120 = vmatprep.subr.bf16.mxu1 %v7300_v10  ;;  %v7352_v10 = vld [vmem:[#allocation6 + $0x668] ss:$16 sps:$4 sm:$0xff]  }
 0x311   :  { %5176 = vmatpush2.bf16.msra.mxu0 %v7301_v11  ;;  %v7423_v11 = vld [vmem:[#allocation9 + $0xc4] ss:$8 sps:$4 sm:$0xff]  }
 0x312   :  { %5121 = vmatpush1.bf16.msra.mxu1 %v7298_v14  ;;  %5177 = vmatprep.subr.bf16.mxu0 %v7309_v2  ;;  %v7357_v14 = vld [vmem:[#allocation6 + $0x64c] ss:$16 sps:$4 sm:$0xff]  }
 0x313   :  { %5122 = vmatprep.subr.bf16.mxu1 %v7306_v16  ;;  %v7421_v2 = vld [vmem:[#allocation9 + $0xc0] ss:$8 sps:$4 sm:$0xff]   ;;  %v7355_v16 = vld [vmem:[#allocation6 + $0x648] ss:$16 sps:$4 sm:$0xff]  }
 0x315   :  { %5178 = vmatpush2.bf16.msra.mxu0 %v7307_v20  ;;  %v7426_v20 = vld [vmem:[#allocation9 + $0xb4] ss:$8 sps:$4 sm:$0xff]  }
 0x316   :  { %5123 = vmatpush1.bf16.msra.mxu1 %v7304_v21  ;;  %5179 = vmatprep.subr.bf16.mxu0 %v7315_v23  ;;  %v7360_v21 = vld [vmem:[#allocation6 + $0x62c] ss:$16 sps:$4 sm:$0xff]  }
 0x317   :  { %5124 = vmatprep.subr.bf16.mxu1 %v7312_v27  ;;  %v7424_v23 = vld [vmem:[#allocation9 + $0xb0] ss:$8 sps:$4 sm:$0xff]   ;;  %v7358_v27 = vld [vmem:[#allocation6 + $0x628] ss:$16 sps:$4 sm:$0xff]  }
 0x319   :  { %5180 = vmatpush2.bf16.msra.mxu0 %v7313_v31  ;;  %v7429_v31 = vld [vmem:[#allocation9 + $0xa4] ss:$8 sps:$4 sm:$0xff]  }
 0x31a   :  { %5125 = vmatpush2.bf16.msra.mxu1 %v7310_v13  ;;  %5181 = vmatprep.subr.bf16.mxu0 %v7321_v32  ;;  %v7363_v13 = vld [vmem:[#allocation6 + $0x60c] ss:$16 sps:$4 sm:$0xff]  }
 0x31b   :  { %5126 = vmatprep.subr.bf16.mxu1 %v7318_v25  ;;  %v7427_v32 = vld [vmem:[#allocation9 + $0xa0] ss:$8 sps:$4 sm:$0xff]   ;;  %v7361_v25 = vld [vmem:[#allocation6 + $0x608] ss:$16 sps:$4 sm:$0xff]  }
 0x31d   :  { %5182 = vmatpush2.bf16.msra.mxu0 %v7319_v34  ;;  %v7432_v34 = vld [vmem:[#allocation9 + $0x94] ss:$8 sps:$4 sm:$0xff]  }
 0x31e   :  { %5127 = vmatpush2.bf16.msra.mxu1 %v7316_v35  ;;  %5645 = vmatprep.subr.bf16.mxu0 %v7390_v19  ;;  %v7366_v35 = vld [vmem:[#allocation6 + $0x7ec] ss:$16 sps:$4 sm:$0xff]  }
 0x31f   :  { %5128 = vmatprep.subr.bf16.mxu1 %v7324_v37  ;;  %v7430_v19 = vld [vmem:[#allocation9 + $0x90] ss:$8 sps:$4 sm:$0xff]   ;;  %v7364_v37 = vld [vmem:[#allocation6 + $0x7e8] ss:$16 sps:$4 sm:$0xff]  }
 0x320   :  { %5184 = vmatmul.mubr.bf16.vlgmr.msra.gmra.mxu0 %v8066_v28  ;;  %v7331_v28 = vld [vmem:[#allocation6 + $0x348] ss:$16 sps:$4 sm:$0xff]  }
 0x321   :  { %5646 = vmatpush1.bf16.msra.mxu0 %v7388_v38  ;;  %v7435_v38 = vld [vmem:[#allocation9 + $0x84] ss:$8 sps:$4 sm:$0xff]  }
 0x322   :  { %5129 = vmatpush2.bf16.msra.mxu1 %v7322_v58  ;;  %5647 = vmatprep.subr.bf16.mxu0 %v7393_v39  ;;  %v7369_v58 = vld [vmem:[#allocation6 + $0x7cc] ss:$16 sps:$4 sm:$0xff]  }
 0x323   :  { %5130 = vmatprep.subr.bf16.mxu1 %v7327_v8  ;;  %v7433_v39 = vld [vmem:[#allocation9 + $0x80] ss:$8 sps:$4 sm:$0xff]   ;;  %v7367_v8 = vld [vmem:[#allocation6 + $0x7c8] ss:$16 sps:$4 sm:$0xff]  }
 0x325   :  { %5648 = vmatpush1.bf16.msra.mxu0 %v7391_v41  ;;  %v7372_v41 = vld [vmem:[#allocation6 + $0x7ac] ss:$16 sps:$4 sm:$0xff]  }
 0x326   :  { %5131 = vmatpush2.bf16.msra.mxu1 %v7325_v42  ;;  %5649 = vmatprep.subr.bf16.mxu0 %v7396_v43  ;;  %v7370_v42 = vld [vmem:[#allocation6 + $0x7a8] ss:$16 sps:$4 sm:$0xff]   ;;  %v7375_v43 = vld [vmem:[#allocation6 + $0x78c] ss:$16 sps:$4 sm:$0xff]  }
 0x327   :  { %5132 = vmatprep.subr.bf16.mxu1 %v7330_v47  ;;  %v7373_v47 = vld [vmem:[#allocation6 + $0x788] ss:$16 sps:$4 sm:$0xff]  }
 0x329   :  { %5650 = vmatpush1.bf16.msra.mxu0 %v7394_v59  ;;  %v7378_v59 = vld [vmem:[#allocation6 + $0x76c] ss:$16 sps:$4 sm:$0xff]  }
 0x32a   :  { %5133 = vmatpush2.bf16.msra.mxu1 %v7328_v36  ;;  %5651 = vmatprep.subr.bf16.mxu0 %v7399_v45  ;;  %v7376_v36 = vld [vmem:[#allocation6 + $0x768] ss:$16 sps:$4 sm:$0xff]   ;;  %v7381_v45 = vld [vmem:[#allocation6 + $0x74c] ss:$16 sps:$4 sm:$0xff]  }
 0x32b   :  { %5134 = vmatprep.subr.bf16.mxu1 %v7333_v46  ;;  %v7379_v46 = vld [vmem:[#allocation6 + $0x748] ss:$16 sps:$4 sm:$0xff]  }
 0x32d   :  { %5652 = vmatpush1.bf16.msra.mxu0 %v7397_v48  ;;  %v7384_v48 = vld [vmem:[#allocation6 + $0x72c] ss:$16 sps:$4 sm:$0xff]  }
 0x32e   :  { %5135 = vmatpush2.bf16.msra.mxu1 %v7331_v28  ;;  %5653 = vmatprep.subr.bf16.mxu0 %v7402_v49  ;;  %v7382_v28 = vld [vmem:[#allocation6 + $0x728] ss:$16 sps:$4 sm:$0xff]   ;;  %v7387_v49 = vld [vmem:[#allocation6 + $0x70c] ss:$16 sps:$4 sm:$0xff]  }
 0x32f   :  { %5136 = vmatprep.subr.bf16.mxu1 %v7336_v53  ;;  %v7385_v53 = vld [vmem:[#allocation6 + $0x708] ss:$16 sps:$4 sm:$0xff]  }
 0x331   :  { %5654 = vmatpush1.bf16.msra.mxu0 %v7400_v7  ;;  %v7436_v7 = vld [vmem:[#allocation9 + $0x170] ss:$8 sps:$4 sm:$0xff]  }
 0x332   :  { %5137 = vmatpush2.bf16.msra.mxu1 %v7334_v51  ;;  %5655 = vmatprep.subr.bf16.mxu0 %v7405_v54  ;;  %v7438_v51 = vld [vmem:[#allocation9 + $0x174] ss:$8 sps:$4 sm:$0xff]   ;;  %v7441_v54 = vld [vmem:[#allocation9 + $0x164] ss:$8 sps:$4 sm:$0xff]  }
 0x333   :  { %5138 = vmatprep.subr.bf16.mxu1 %v7339_v52  ;;  %v7439_v52 = vld [vmem:[#allocation9 + $0x160] ss:$8 sps:$4 sm:$0xff]  }
 0x335   :  { %5656 = vmatpush1.bf16.msra.mxu0 %v7403_v57  ;;  %v7444_v57 = vld [vmem:[#allocation9 + $0x154] ss:$8 sps:$4 sm:$0xff]  }
 0x336   :  { %5139 = vmatpush2.bf16.msra.mxu1 %v7337_v60  ;;  %5657 = vmatprep.subr.bf16.mxu0 %v7408_v56  ;;  %v7442_v60 = vld [vmem:[#allocation9 + $0x150] ss:$8 sps:$4 sm:$0xff]   ;;  %v7447_v56 = vld [vmem:[#allocation9 + $0x144] ss:$8 sps:$4 sm:$0xff]  }
 0x337   :  { %5194 = vmatprep.subr.bf16.mxu1 %v7342_v29  ;;  %v7445_v29 = vld [vmem:[#allocation9 + $0x140] ss:$8 sps:$4 sm:$0xff]  }
 0x339   :  { %5141 = vmatmul.mubr.bf16.vlgmr.msra.gmra.mxu1 %v8051_v24  ;;  %5658 = vmatpush1.bf16.msra.mxu0 %v7406_v61  ;;  %v7415_v24 = vld [vmem:[#allocation9 + $0xe0] ss:$8 sps:$4 sm:$0xff]   ;;  %v7450_v61 = vld [vmem:[#allocation9 + $0x134] ss:$8 sps:$4 sm:$0xff]  }
 0x33a   :  { %5195 = vmatpush1.bf16.msra.mxu1 %v7340_v0  ;;  %5226 = vmatprep.mubr.bf16.mxu1 %v8077_v50  ;;  %v7354_v50 = vld [vmem:[#allocation6 + $0x66c] ss:$16 sps:$4 sm:$0xff]  }
 0x33b   :  { %5196 = vmatprep.subr.bf16.mxu1 %v7345_v62  ;;  %5659 = vmatprep.subr.bf16.mxu0 %v7411_v15  ;;  %v7448_v0 = vld [vmem:[#allocation9 + $0x130] ss:$8 sps:$4 sm:$0xff]   ;;  %v7451_v62 = vld [vmem:[#allocation9 + $0x120] ss:$8 sps:$4 sm:$0xff]   ;;  %v7456_v15 = vld [vmem:[#allocation9 + $0x114] ss:$8 sps:$4 sm:$0xff]  }
 0x33d   :  { %5660 = vmatpush1.bf16.msra.mxu0 %v7409_v63  ;;  %v7454_v63 = vld [vmem:[#allocation9 + $0x110] ss:$8 sps:$4 sm:$0xff]  }
 0x33e   :  { %5197 = vmatpush1.bf16.msra.mxu1 %v7343_v22  ;;  %5661 = vmatprep.subr.bf16.mxu0 %v7414_v1  ;;  %v7459_v22 = vld [vmem:[#allocation9 + $0x104] ss:$8 sps:$4 sm:$0xff]   ;;  %v7457_v1 = vld [vmem:[#allocation9 + $0x100] ss:$8 sps:$4 sm:$0xff]  }
 0x33f   :  { %5198 = vmatprep.subr.bf16.mxu1 %v7348_v33  ;;  %v7462_v33 = vld [vmem:[#allocation9 + $0x1f4] ss:$8 sps:$4 sm:$0xff]  }
 0x341   :  { %5662 = vmatpush2.bf16.msra.mxu0 %v7412_v12  ;;  %v7460_v12 = vld [vmem:[#allocation9 + $0x1f0] ss:$8 sps:$4 sm:$0xff]  }
 0x342   :  { %5199 = vmatpush1.bf16.msra.mxu1 %v7346_v3  ;;  %5663 = vmatprep.subr.bf16.mxu0 %v7417_v40  ;;  %v7465_v3 = vld [vmem:[#allocation9 + $0x1e4] ss:$8 sps:$4 sm:$0xff]   ;;  %v4927_v40 = vpop.f32.mrf.mxu0 }
 0x343   :  { %5200 = vmatprep.subr.bf16.mxu1 %v7351_v4  ;;  %v7463_v4 = vld [vmem:[#allocation9 + $0x1e0] ss:$8 sps:$4 sm:$0xff]  }
 0x345   :  { %5664 = vmatpush2.bf16.msra.mxu0 %v7415_v24  ;;  %v7468_v24 = vld [vmem:[#allocation9 + $0x1d4] ss:$8 sps:$4 sm:$0xff]  }
 0x346   :  { %5201 = vmatpush1.bf16.msra.mxu1 %v7349_v6  ;;  %5665 = vmatprep.subr.bf16.mxu0 %v7420_v55  ;;  %v4929_v6 = vpop.f32.mrf.mxu0  ;;  %v7466_v55 = vld [vmem:[#allocation9 + $0x1d0] ss:$8 sps:$4 sm:$0xff]  }
 0x347   :  { %5202 = vmatprep.subr.bf16.mxu1 %v7354_v50  ;;  %v7471_v50 = vld [vmem:[#allocation9 + $0x1c4] ss:$8 sps:$4 sm:$0xff]  }
 0x349   :  { %5666 = vmatpush2.bf16.msra.mxu0 %v7418_v9  ;;  %v4931_v9 = vpop.f32.mrf.mxu0 }
 0x34a   :  { %5203 = vmatpush1.bf16.msra.mxu1 %v7352_v10  ;;  %5667 = vmatprep.subr.bf16.mxu0 %v7423_v11  ;;  %v4970_v10 = vpop.f32.mrf.mxu1  ;;  %v7469_v11 = vld [vmem:[#allocation9 + $0x1c0] ss:$8 sps:$4 sm:$0xff]  }
 0x34b   :  { %5204 = vmatprep.subr.bf16.mxu1 %v7357_v14  ;;  %v7474_v14 = vld [vmem:[#allocation9 + $0x1b4] ss:$8 sps:$4 sm:$0xff]  }
 0x34d   :  { %5668 = vmatpush2.bf16.msra.mxu0 %v7421_v2  ;;  %v4933_v2 = vpop.f32.mrf.mxu0 }
 0x34e   :  { %5205 = vmatpush1.bf16.msra.mxu1 %v7355_v16  ;;  %5669 = vmatprep.subr.bf16.mxu0 %v7426_v20  ;;  %v4972_v16 = vpop.f32.mrf.mxu1 }
 0x34f   :  { %5206 = vmatprep.subr.bf16.mxu1 %v7360_v21  ;;  %v7472_v21 = vld [vmem:[#allocation9 + $0x1b0] ss:$8 sps:$4 sm:$0xff]  }
 0x351   :  { %5670 = vmatpush2.bf16.msra.mxu0 %v7424_v23  ;;  %v8088_v23 = vld [vmem:[#allocation7] sm:$0xf] }
 0x352   :  { %5207 = vmatpush1.bf16.msra.mxu1 %v7358_v27  ;;  %5671 = vmatprep.subr.bf16.mxu0 %v7429_v31  ;;  %v4974_v27 = vpop.f32.mrf.mxu1 }
 0x353   :  { %5208 = vmatprep.subr.bf16.mxu1 %v7363_v13  ;;  %v3600_v13 = vrot.slane %v8088_v23, %v8018_v17 }
 0x355   :  { %5672 = vmatpush2.bf16.msra.mxu0 %v7427_v32  ;;  %v3596_v32 = vrot.slane %v8088_v23, %v7967_v30 }
 0x356   :  { %5209 = vmatpush1.bf16.msra.mxu1 %v7361_v25  ;;  %5673 = vmatprep.subr.bf16.mxu0 %v7432_v34  ;;  %v4976_v25 = vpop.f32.mrf.mxu1 }
 0x357   :  { %5210 = vmatprep.subr.bf16.mxu1 %v7366_v35  ;;  %v4930_v35 = vadd.f32 %v4929_v6, %v3600_v13  ;;  %v7492_v6 = vld [vmem:[#allocation12 + $0x58] sm:$0xff]  }
 0x359   :  { %5674 = vmatpush2.bf16.msra.mxu0 %v7430_v19  ;;  %v4932_v19 = vadd.f32 %v4931_v9, %v3596_v32 }
 0x35a   :  { %5211 = vmatpush2.bf16.msra.mxu1 %v7364_v37  ;;  %5675 = vmatprep.subr.bf16.mxu0 %v7435_v38  ;;  %v4928_v37 = vadd.f32 %v4927_v40, %v3596_v32  ;;  %v7489_v40 = vld [vmem:[#allocation12 + $0x28] sm:$0xff]  }
 0x35b   :  { %5212 = vmatprep.subr.bf16.mxu1 %v7369_v58  ;;  %v7477_v58 = vld [vmem:[#allocation9 + $0x1a4] ss:$8 sps:$4 sm:$0xff]  }
 0x35d   :  { %5676 = vmatpush2.bf16.msra.mxu0 %v7433_v39  ;;  %v4934_v39 = vadd.f32 %v4933_v2, %v3600_v13 }
 0x35e   :  { %5213 = vmatpush2.bf16.msra.mxu1 %v7367_v8  ;;  %v4973_v8 = vadd.f32 %v4972_v16, %v4930_v35 }
 0x35f   :  { %5214 = vmatprep.subr.bf16.mxu1 %v7372_v41  ;;  %v4975_v41 = vadd.f32 %v4974_v27, %v4932_v19 }
 0x360   :  { %v5013_v20 = vpop.f32.mrf.mxu0 }
 0x362   :  { %5215 = vmatpush2.bf16.msra.mxu1 %v7370_v42  ;;  %v5015_v31 = vpop.f32.mrf.mxu0  ;;  %v7475_v42 = vld [vmem:[#allocation9 + $0x1a0] ss:$8 sps:$4 sm:$0xff]  }
 0x363   :  { %5216 = vmatprep.subr.bf16.mxu1 %v7375_v43  ;;  %v4971_v43 = vadd.f32 %v4970_v10, %v4928_v37 }
 0x364   :  { %v5017_v34 = vpop.f32.mrf.mxu0 }
 0x366   :  { %5217 = vmatpush2.bf16.msra.mxu1 %v7373_v47  ;;  %v5019_v47 = vpop.f32.mrf.mxu0 }
 0x367   :  { %5218 = vmatprep.subr.bf16.mxu1 %v7378_v59 }
 0x36a   :  { %5219 = vmatpush2.bf16.msra.mxu1 %v7376_v36  ;;  %v4977_v36 = vadd.f32 %v4976_v25, %v4934_v39 }
 0x36b   :  { %5220 = vmatprep.subr.bf16.mxu1 %v7381_v45  ;;  %v5016_v45 = vadd.f32 %v5015_v31, %v4973_v8 }
 0x36e   :  { %5221 = vmatpush2.bf16.msra.mxu1 %v7379_v46  ;;  %v5018_v46 = vadd.f32 %v5017_v34, %v4975_v41 }
 0x36f   :  { %5222 = vmatprep.subr.bf16.mxu1 %v7384_v48  ;;  %v5014_v48 = vadd.f32 %v5013_v20, %v4971_v43  ;;  %v3608_v20 = vrot.slane %v8088_v23, %v598_v26 }
 0x372   :  { %5223 = vmatpush2.bf16.msra.mxu1 %v7382_v28 }
 0x373   :  { %5224 = vmatprep.subr.bf16.mxu1 %v7387_v49  ;;  %v7480_v49 = vld [vmem:[#allocation9 + $0x194] ss:$8 sps:$4 sm:$0xff]  }
 0x376   :  { %5225 = vmatpush2.bf16.msra.mxu1 %v7385_v53  ;;  %v5020_v53 = vadd.f32 %v5019_v47, %v4977_v36 }
 0x377   :  { %5688 = vmatprep.subr.bf16.mxu1 %v7438_v51 }
 0x379   :  { %5227 = vmatmul.mubr.bf16.vlgmr.msra.gmra.mxu1 %v8079_v5  ;;  %v7453_v5 = vld [vmem:[#allocation9 + $0x124] ss:$8 sps:$4 sm:$0xff]  }
 0x37a   :  { %5689 = vmatpush1.bf16.msra.mxu1 %v7436_v7 }
 0x37b   :  { %5690 = vmatprep.subr.bf16.mxu1 %v7441_v54  ;;  %v7478_v54 = vld [vmem:[#allocation9 + $0x190] ss:$8 sps:$4 sm:$0xff]  }
 0x37e   :  { %5691 = vmatpush1.bf16.msra.mxu1 %v7439_v52 }
 0x37f   :  { %5692 = vmatprep.subr.bf16.mxu1 %v7444_v57 }
 0x382   :  { %5693 = vmatpush1.bf16.msra.mxu1 %v7442_v60 }
 0x383   :  { %5694 = vmatprep.subr.bf16.mxu1 %v7447_v56 }
 0x386   :  { %5695 = vmatpush1.bf16.msra.mxu1 %v7445_v29  ;;  %v7483_v29 = vld [vmem:[#allocation9 + $0x184] ss:$8 sps:$4 sm:$0xff]  }
 0x387   :  { %5696 = vmatprep.subr.bf16.mxu1 %v7450_v61 }
 0x38a   :  { %5697 = vmatpush1.bf16.msra.mxu1 %v7448_v0 }
 0x38b   :  { %5698 = vmatprep.subr.bf16.mxu1 %v7453_v5  ;;  %v7481_v5 = vld [vmem:[#allocation9 + $0x180] ss:$8 sps:$4 sm:$0xff]  }
 0x38e   :  { %5699 = vmatpush1.bf16.msra.mxu1 %v7451_v62 }
 0x38f   :  { %5700 = vmatprep.subr.bf16.mxu1 %v7456_v15 }
 0x392   :  { %5701 = vmatpush1.bf16.msra.mxu1 %v7454_v63 }
 0x393   :  { %5702 = vmatprep.subr.bf16.mxu1 %v7459_v22  ;;  %v7484_v22 = vld [vmem:[#allocation12 + $0x78] sm:$0xff]  }
 0x394   :  { %6904 = vmatprep.subr.bf16.mxu0 %v7484_v22 }
 0x396   :  { %5703 = vmatpush1.bf16.msra.mxu1 %v7457_v1  ;;  %v7485_v1 = vld [vmem:[#allocation12 + $0x38] sm:$0xff]  }
 0x397   :  { %5704 = vmatprep.subr.bf16.mxu1 %v7462_v33  ;;  %v7486_v33 = vld [vmem:[#allocation12 + $0x70] sm:$0xff]  }
 0x39a   :  { %5705 = vmatpush2.bf16.msra.mxu1 %v7460_v12  ;;  %v7487_v12 = vld [vmem:[#allocation12 + $0x30] sm:$0xff]  }
 0x39b   :  { %5706 = vmatprep.subr.bf16.mxu1 %v7465_v3  ;;  %v7488_v3 = vld [vmem:[#allocation12 + $0x68] sm:$0xff]  }
 0x39e   :  { %5707 = vmatpush2.bf16.msra.mxu1 %v7463_v4  ;;  %v7490_v4 = vld [vmem:[#allocation12 + $0x60] sm:$0xff]  }
 0x39f   :  { %5708 = vmatprep.subr.bf16.mxu1 %v7468_v24  ;;  %v7491_v24 = vld [vmem:[#allocation12 + $0x20] sm:$0xff]  }
 0x3a2   :  { %5709 = vmatpush2.bf16.msra.mxu1 %v7466_v55  ;;  %v7493_v55 = vld [vmem:[#allocation12 + $0x18] sm:$0xff]  }
 0x3a3   :  { %5710 = vmatprep.subr.bf16.mxu1 %v7471_v50  ;;  %v5099_v50 = vpop.f32.mrf.mxu0 }
 0x3a5   :  { %v5101_v9 = vpop.f32.mrf.mxu0 }
 0x3a6   :  { %5711 = vmatpush2.bf16.msra.mxu1 %v7469_v11  ;;  %v5102_v13 = vadd.f32 %v5101_v9, %v3608_v20 }
 0x3a7   :  { %5712 = vmatprep.subr.bf16.mxu1 %v7474_v14  ;;  %v5103_v10 = vpop.f32.mrf.mxu0 }
 0x3a9   :  { %v5105_v14 = vpop.f32.mrf.mxu0 }
 0x3aa   :  { %5713 = vmatpush2.bf16.msra.mxu1 %v7472_v21  ;;  %v3604_v21 = vrot.slane %v8088_v23, %v594_v44  ;;  %v5106_v35 = vadd.f32 %v5105_v14, %v3608_v20 }
 0x3ab   :  { %5714 = vmatprep.subr.bf16.mxu1 %v7477_v58 }
 0x3ac   :  { %v5104_v32 = vadd.f32 %v5103_v10, %v3604_v21  ;;  %v5100_v25 = vadd.f32 %v5099_v50, %v3604_v21 }
 0x3ae   :  { %5715 = vmatpush2.bf16.msra.mxu1 %v7475_v42 }
 0x3af   :  { %5716 = vmatprep.subr.bf16.mxu1 %v7480_v49 }
 0x3b2   :  { %5717 = vmatpush2.bf16.msra.mxu1 %v7478_v54  ;;  %v7494_v54 = vld [vmem:[#allocation12 + $0x50] sm:$0xff]  }
 0x3b3   :  { %5718 = vmatprep.subr.bf16.mxu1 %v7483_v29  ;;  %v7499_v29 = vld [vmem:[#allocation12] sm:$0xff]  }
 0x3b6   :  { %5719 = vmatpush2.bf16.msra.mxu1 %v7481_v5  ;;  %v7501_v5 = vld [vmem:[%s8155_s9 + $0x30] sm:$0xff]  }
 0x3b9   :  { %v5056_v38 = vpop.f32.mrf.mxu1 }
 0x3ba   :  { %v5057_v52 = vadd.f32 %v5056_v38, %v5014_v48 }
 0x3bb   :  { %v5058_v59 = vpop.f32.mrf.mxu1 }
 0x3bc   :  { %v5059_v7 = vadd.f32 %v5058_v59, %v5016_v45  ;;  %v5237_v62 = vmax.f32 %v5057_v52, 0.0  ;;  %v7495_v52 = vld [vmem:[#allocation12 + $0x10] sm:$0xff]  }
 0x3bd   :  { %v5060_v28 = vpop.f32.mrf.mxu1 }
 0x3be   :  { %v5061_v51 = vadd.f32 %v5060_v28, %v5018_v46  ;;  %v5238_v61 = vmax.f32 %v5059_v7, 0.0 }
 0x3bf   :  { %v5062_v57 = vpop.f32.mrf.mxu1 }
 0x3c0   :  { %v5063_v60 = vadd.f32 %v5062_v57, %v5020_v53  ;;  %v5241_v56 = vmax.f32 %v5061_v51, 0.0  ;;  %v7496_v57 = vld [vmem:[#allocation12 + $0x48] sm:$0xff]  }
 0x3c2   :  { %v5242_v0 = vmax.f32 %v5063_v60, 0.0  ;;  %v5245_v63 = vpack.c.bf16 %v5241_v56, %v5237_v62  ;;  %v7497_v60 = vld [vmem:[#allocation12 + $0x8] sm:$0xff]   ;;  %v7498_v56 = vld [vmem:[#allocation12 + $0x40] sm:$0xff]  }
 0x3c3   :  { %v7502_v62 = vld [vmem:[%s8155_s9 + $0x28] sm:$0xff]  }
 0x3c4   :  { %v5246_v15 = vpack.c.bf16 %v5242_v0, %v5238_v61  ;;  %v7500_v61 = vld [vmem:[%s8155_s9 + $0x38] sm:$0xff]   ;;  %v7782_v0 = vmov 0.0  }
 0x3c5   :  { %6940 = vmatprep.subr.bf16.mxu1 %v7782_v0 }
 0x3c6   :  { %5677 = vmatprep.mubr.bf16.mxu0 %v5246_v15  ;;  %v7503_v15 = vld [vmem:[%s8155_s9 + $0x20] sm:$0xff]  }
 0x3c7   :  { %5678 = vmatmul.mubr.bf16.vlgmr.msra.gmra.mxu0 %v5245_v63 }
 0x3c8   :  { %6905 = vmatpush3.bf16.msra.mxu0 %v7485_v1  ;;  %v5313_v1 = vld [vmem:[#allocation10] sm:$0x3] }
 0x3c9   :  { %6906 = vmatprep.subr.bf16.mxu0 %v7486_v33 }
 0x3cc   :  { %6907 = vmatpush3.bf16.msra.mxu0 %v7487_v12  ;;  %v5322_v12 = vrot.slane %v5313_v1, %v8018_v17 }
 0x3cd   :  { %6908 = vmatprep.subr.bf16.mxu0 %v7488_v3  ;;  %v5318_v3 = vrot.slane %v5313_v1, %v7967_v30  ;;  %v7504_v30 = vld [vmem:[%s8155_s9 + $0x18] sm:$0xff]  }
 0x3d0   :  { %6909 = vmatpush3.bf16.msra.mxu0 %v7489_v40 }
 0x3d1   :  { %6910 = vmatprep.subr.bf16.mxu0 %v7490_v4 }
 0x3d4   :  { %6911 = vmatpush3.bf16.msra.mxu0 %v7491_v24 }
 0x3d5   :  { %6912 = vmatprep.subr.bf16.mxu0 %v7492_v6 }
 0x3d8   :  { %6913 = vmatpush3.bf16.msra.mxu0 %v7493_v55 }
 0x3d9   :  { %6914 = vmatprep.subr.bf16.mxu0 %v7494_v54 }
 0x3dc   :  { %6915 = vmatpush3.bf16.msra.mxu0 %v7495_v52 }
 0x3dd   :  { %6916 = vmatprep.subr.bf16.mxu0 %v7496_v57  ;;  %v6898_v57 = vld [vmem:[#allocation18] ss:$0 sm:$0xff] }
 0x3e0   :  { %v5185_v16 = vpop.f32.mrf.mxu0  ;;  %6917 = vmatpush3.bf16.msra.mxu0 %v7497_v60 }
 0x3e1   :  { %6918 = vmatprep.subr.bf16.mxu0 %v7498_v56 }
 0x3e2   :  { %v5187_v31 = vpop.f32.mrf.mxu0 }
 0x3e4   :  { %v5189_v38 = vpop.f32.mrf.mxu0  ;;  %6919 = vmatpush3.bf16.msra.mxu0 %v7499_v29 }
 0x3e5   :  { %6960 = vmatprep.subr.bf16.mxu0 %v7782_v0 }
 0x3e6   :  { %v5191_v43 = vpop.f32.mrf.mxu0 }
 0x3f9   :  { %v5142_v11 = vpop.f32.mrf.mxu1 }
 0x3fa   :  { %v5143_v58 = vadd.f32 %v5142_v11, %v5100_v25  ;;  %v7505_v25 = vld [vmem:[%s8155_s9 + $0x10] sm:$0xff]  }
 0x3fb   :  { %v5144_v2 = vpop.f32.mrf.mxu1 }
 0x3fc   :  { %v5145_v19 = vadd.f32 %v5144_v2, %v5102_v13  ;;  %v5186_v18 = vadd.f32 %v5185_v16, %v5143_v58 }
 0x3fd   :  { %v5146_v27 = vpop.f32.mrf.mxu1 }
 0x3fe   :  { %v5147_v37 = vadd.f32 %v5146_v27, %v5104_v32  ;;  %v5188_v42 = vadd.f32 %v5187_v31, %v5145_v19  ;;  %v7508_v19 = vld [vmem:[#allocation16 + $0x18] sm:$0xff]  }
 0x3ff   :  { %v5148_v34 = vpop.f32.mrf.mxu1 }
 0x400   :  { %v5149_v8 = vadd.f32 %v5148_v34, %v5106_v35  ;;  %v5190_v26 = vadd.f32 %v5189_v38, %v5147_v37  ;;  %v7506_v34 = vld [vmem:[%s8155_s9 + $0x8] sm:$0xff]   ;;  %v7507_v35 = vld [vmem:[%s8155_s9] sm:$0xff]  }
 0x402   :  { %v5192_v59 = vadd.f32 %v5191_v43, %v5149_v8 }
 0x439   :  { %v5228_v39 = vpop.f32.mrf.mxu1 }
 0x43a   :  { %v5229_v36 = vadd.f32 %v5228_v39, %v5186_v18  ;;  %v6872_v39 = vld [vmem:[#allocation13] ss:$0 sm:$0xff] }
 0x43b   :  { %v5230_v41 = vpop.f32.mrf.mxu1 }
 0x43c   :  { %v5231_v44 = vadd.f32 %v5230_v41, %v5188_v42  ;;  %v5239_v53 = vmax.f32 %v5229_v36, 0.0  ;;  %v7511_v36 = vld [vmem:[#allocation16] sm:$0xff]  }
 0x43d   :  { %v5232_v47 = vpop.f32.mrf.mxu1 }
 0x43e   :  { %v5233_v23 = vadd.f32 %v5232_v47, %v5190_v26  ;;  %v5240_v28 = vmax.f32 %v5231_v44, 0.0 }
 0x43f   :  { %v5234_v45 = vpop.f32.mrf.mxu1 }
 0x440   :  { %v5235_v46 = vadd.f32 %v5234_v45, %v5192_v59  ;;  %v5243_v48 = vmax.f32 %v5233_v23, 0.0  ;;  %v7509_v23 = vld [vmem:[#allocation16 + $0x10] sm:$0xff]   ;;  %v7510_v59 = vld [vmem:[#allocation16 + $0x8] sm:$0xff]   ;;  %v6889_v45 = vld [vmem:[#allocation15] ss:$0 sm:$0xff] }
 0x442   :  { %v5244_v49 = vmax.f32 %v5235_v46, 0.0  ;;  %v5247_v51 = vpack.c.bf16 %v5243_v48, %v5239_v53 }
 0x444   :  { %v5248_v7 = vpack.c.bf16 %v5244_v49, %v5240_v28 }
 0x446   :  { %5720 = vmatprep.mubr.bf16.mxu1 %v5248_v7 }
 0x447   :  { %5721 = vmatmul.mubr.bf16.vlgmr.msra.gmra.mxu1 %v5247_v51 }
 0x448   :  { %6941 = vmatpush3.bf16.msra.mxu1 %v7500_v61  ;;  %6956 = vmatprep.mubr.msk.bf16.mxu1 %vm7783_vm1, %v7782_v0 }
 0x449   :  { %6942 = vmatprep.subr.bf16.mxu1 %v7782_v0 }
 0x44c   :  { %6943 = vmatpush3.bf16.msra.mxu1 %v7501_v5 }
 0x44d   :  { %6944 = vmatprep.subr.bf16.mxu1 %v7782_v0 }
 0x450   :  { %6945 = vmatpush3.bf16.msra.mxu1 %v7502_v62 }
 0x451   :  { %6946 = vmatprep.subr.bf16.mxu1 %v7782_v0 }
 0x454   :  { %6947 = vmatpush3.bf16.msra.mxu1 %v7503_v15 }
 0x455   :  { %6948 = vmatprep.subr.bf16.mxu1 %v7782_v0 }
 0x458   :  { %6949 = vmatpush3.bf16.msra.mxu1 %v7504_v30 }
 0x459   :  { %6950 = vmatprep.subr.bf16.mxu1 %v7782_v0 }
 0x45c   :  { %6951 = vmatpush3.bf16.msra.mxu1 %v7505_v25 }
 0x45d   :  { %6952 = vmatprep.subr.bf16.mxu1 %v7782_v0 }
 0x460   :  { %6953 = vmatpush3.bf16.msra.mxu1 %v7506_v34 }
 0x461   :  { %6954 = vmatprep.subr.bf16.mxu1 %v7782_v0 }
 0x464   :  { %6955 = vmatpush3.bf16.msra.mxu1 %v7507_v35 }
 0x487   :  { %v5679_v63 = vpop.f32.mrf.mxu0 }
 0x488   :  { %v5680_v50 = vadd.f32 %v5679_v63, %v5318_v3 }
 0x489   :  { %v5681_v22 = vpop.f32.mrf.mxu0 }
 0x48a   :  { %v5682_v6 = vadd.f32 %v5681_v22, %v5322_v12 }
 0x48b   :  { %v5683_v33 = vpop.f32.mrf.mxu0 }
 0x48c   :  { %v5684_v55 = vadd.f32 %v5683_v33, %v5318_v3 }
 0x48d   :  { %v5685_v4 = vpop.f32.mrf.mxu0 }
 0x48e   :  { %v5686_v10 = vadd.f32 %v5685_v4, %v5322_v12 }
 0x507   :  { %v5722_v40 = vpop.f32.mrf.mxu1 }
 0x508   :  { %v5723_v2 = vadd.f32 %v5722_v40, %v5680_v50 }
 0x509   :  { %v5724_v24 = vpop.f32.mrf.mxu1 }
 0x50a   :  { %v5725_v11 = vadd.f32 %v5724_v24, %v5682_v6  ;;  %v5731_v13 = vmax.f32 %v5723_v2, 0.0 }
 0x50b   :  { %v5726_v9 = vpop.f32.mrf.mxu1 }
 0x50c   :  { %v5727_v14 = vadd.f32 %v5726_v9, %v5684_v55  ;;  %v5732_v27 = vmax.f32 %v5725_v11, 0.0 }
 0x50d   :  { %v5728_v16 = vpop.f32.mrf.mxu1 }
 0x50e   :  { %v5729_v20 = vadd.f32 %v5728_v16, %v5686_v10  ;;  %v5733_v21 = vmax.f32 %v5727_v14, 0.0 }
 0x510   :  { %v5734_v31 = vmax.f32 %v5729_v20, 0.0  ;;  %v5735_v32 = vpack.c.bf16 %v5733_v21, %v5731_v13 }
 0x512   :  { %v5736_v17 = vpack.c.bf16 %v5734_v31, %v5732_v27 }
 0x514   :  { %5904 = vmatprep.mubr.bf16.mxu0 %v5736_v17 }
 0x515   :  { %5905 = vmatmul.mubr.bf16.vlgmr.msra.gmra.mxu0 %v5735_v32 }
 0x516   :  { %6968 = vmatprep.mubr.msk.bf16.mxu0 %vm7783_vm1, %v7782_v0  ;;  %6961 = vmatpush3.bf16.msra.mxu0 %v7508_v19 }
 0x517   :  { %6962 = vmatprep.subr.bf16.mxu0 %v7782_v0 }
 0x51a   :  { %6963 = vmatpush3.bf16.msra.mxu0 %v7509_v23 }
 0x51b   :  { %6964 = vmatprep.subr.bf16.mxu0 %v7782_v0 }
 0x51e   :  { %6965 = vmatpush3.bf16.msra.mxu0 %v7510_v59 }
 0x51f   :  { %6966 = vmatprep.subr.bf16.mxu0 %v7782_v0 }
 0x522   :  { %6967 = vmatpush3.bf16.msra.mxu0 %v7511_v36 }
 0x5d5   :  { %v6920_v37 = vpop.f32.mrf.mxu0 }
 0x5d7   :  { %v6921_v38 = vpop.f32.mrf.mxu0 }
 0x5d8   :  { %v6922_v58 = vadd.f32 %v6921_v38, %v6920_v37 }
 0x5d9   :  { %v6923_v8 = vpop.f32.mrf.mxu0 }
 0x5da   :  { %v5907_v42 = vadd.f32 %v6922_v58, %v6872_v39 }
 0x5db   :  { %v6924_v41 = vpop.f32.mrf.mxu0 }
 0x5dc   :  { %v6925_v26 = vadd.f32 %v6924_v41, %v6923_v8  ;;  %v5913_v18 = vmax.f32 %v5907_v42, 0.0 }
 0x5de   :  { %v5910_v43 = vadd.f32 %v6925_v26, %v6872_v39 }
 0x5e0   :  { %v5914_v47 = vmax.f32 %v5910_v43, 0.0 }
 0x5e2   :  { %v5915_v44 = vpack.c.bf16 %v5914_v47, %v5913_v18 }
 0x5e4   :  { %6957 = vmatmul.mubr.bf16.vlgmr.msra.gmra.mxu1 %v5915_v44 }
 0x6a4   :  { %v6021_v46 = vpop.f32.mrf.mxu1 }
 0x6a5   :  { %v6022_v28 = vadd.f32 %v6889_v45, %v6021_v46 }
 0x6a6   :  { %v6958_v48 = vpop.f32.mrf.mxu1 }
 0x6a7   :  { %v6028_v51 = vmax.f32 %v6022_v28, 0.0 }
 0x6a8   :  { %v6024_v49 = vpop.f32.mrf.mxu1 }
 0x6a9   :  { %v6025_v53 = vadd.f32 %v6889_v45, %v6024_v49 }
 0x6aa   :  { %v6959_v7 = vpop.f32.mrf.mxu1 }
 0x6ab   :  { %v6029_v54 = vmax.f32 %v6025_v53, 0.0 }
 0x6ad   :  { %v6030_v52 = vpack.c.bf16 %v6029_v54, %v6028_v51 }
 0x6af   :  { %6969 = vmatmul.mubr.msk.bf16.vlgmr.msra.gmra.mxu0 %vm6070_vm2, %v6030_v52 }
 0x76f   :  { %v6108_v60 = vpop.f32.mrf.mxu0 }
 0x770   :  { %v6109_v56 = vadd.f32 %v6898_v57, %v6108_v60 }
 0x771   :  { %v6970_v29 = vpop.f32.mrf.mxu0 }
 0x772   :  { %6115 = vmax.xlane.f32.xlu0 %v6109_v56 }
 0x773   :  { %v6111_v61 = vpop.f32.mrf.mxu0 }
 0x774   :  { %v6112_v0 = vadd.f32 %v6898_v57, %v6111_v61 }
 0x775   :  { %v6971_v5 = vpop.f32.mrf.mxu0 }
 0x776   :  { %6117 = vmax.xlane.f32.xlu0 %v6112_v0 }
 0x7fb   :  { %v6116_v62 = vpop.xlane.xlu0 %6115 }
 0x7fc   :  { %v6119_v15 = vsub.f32 %v6109_v56, %v6116_v62 }
 0x7fe   :  { %v6121_v63 = vmul.f32 1.442695, %v6119_v15 }
 0x7ff   :  { %v6118_v22 = vpop.xlane.xlu0 %6117 }
 0x800   :  { %7512 = vpow2.f32 %v6121_v63  ;;  %v6120_v1 = vsub.f32 %v6112_v0, %v6118_v22 }
 0x802   :  { %v6123_v33 = vmul.f32 1.442695, %v6120_v1 }
 0x804   :  { %7514 = vpow2.f32 %v6123_v33 }
 0x80d   :  { %v7513_v12 = vpop.eup %7512 }
 0x80e   :  { %6125 = vadd.xlane.f32.xlu1 %v7513_v12 }
 0x811   :  { %v7515_v3 = vpop.eup %7514 }
 0x812   :  { %6127 = vadd.xlane.f32.xlu1 %v7515_v3 }
 0x897   :  { %v6126_v40 = vpop.xlane.xlu1 %6125 }
 0x898   :  { %7516 = vlog2.f32 %v6126_v40 }
 0x89b   :  { %v6128_v4 = vpop.xlane.xlu1 %6127 }
 0x89c   :  { %7518 = vlog2.f32 %v6128_v4 }
 0x8a5   :  { %v7517_v24 = vpop.eup %7516 }
 0x8a6   :  { %v6130_v6 = vmul.f32 0.6931472, %v7517_v24 }
 0x8a8   :  { %v6133_v55 = vadd.f32 %v6130_v6, %v6116_v62 }
 0x8a9   :  { %v7519_v50 = vpop.eup %7518 }
 0x8aa   :  { %v6135_v9 = vsub.f32 %v6109_v56, %v6133_v55  ;;  %v6132_v10 = vmul.f32 0.6931472, %v7519_v50 }
 0x8ac   :  { %6137 = vst [vmem:[%s8159_s13] sm:$0xff] %v6135_v9  ;;  %v6134_v11 = vadd.f32 %v6132_v10, %v6118_v22 }
 0x8ae   :  { %v6136_v14 = vsub.f32 %v6112_v0, %v6134_v11 }
 0x8b0   :  { %6138 = vst [vmem:[%s8159_s13 + $0x8] sm:$0xff] %v6136_v14 }
 0x8b1   :  { %6143 = vsyncpa [#allocation3], 1 }
 0x8b2   :  { %6144 = vsyncpa [#allocation5], 1 }
 0x8b3   :  { %6145 = vsyncpa [#allocation8], 1 }
 0x8b4   :  { %6146 = vsyncpa [#allocation11], 1 }
 0x8b5   :  { %6147 = vsyncpa [#allocation14], 1 }
 0x8b6   :  { %6148 = vsyncpa [#allocation17], 1 }

</bundles_post_ra>
